<compile_context>
chip_gen: v6e
topology: v6e:2x2x1
jax: 0.10.0
libtpu: 0.0.40
codegen_flags: <defaults>
</compile_context>

<pallas_src>
import functools

import jax
import jax.numpy as jnp
from jax.experimental import pallas as pl
from jax.experimental.pallas import tpu as pltpu


def _round_up(x, m):
    return ((x + m - 1) // m) * m


# ----------------------------- Pallas kernel -------------------------------
def _make_encoder_kernel(T, B, Bp, H, GP, FW, E, n_layers):
    """Fused (embedding gather + all layers, both directions) GRU kernel."""
    H2 = 2 * H

    def kernel(*refs):
        tok_ref = refs[0]                        # SMEM (B, T) int32 token ids
        emb_ref = refs[1]                        # VMEM (vocab, 1, E) f32 table
        w_refs = refs[2:2 + 4 * n_layers]        # per layer: wih, whh, bih, bhh
        out_ref = refs[2 + 4 * n_layers]         # (B, T*2H) f32
        hid_ref = refs[3 + 4 * n_layers]         # (2*n_layers, B, H) f32
        scr = refs[4 + 4 * n_layers]             # (T, Bp, FW) f32 activations
        gi_scr = refs[5 + 4 * n_layers]          # (T, Bp, 6*GP) f32 input proj

        # ---- Fused embedding lookup (dropout = identity, eval semantics) ----
        scr[...] = jnp.zeros((T, Bp, FW), jnp.float32)
        for t in range(T):
            for b in range(B):
                tok = tok_ref[b, t]
                scr[t, pl.ds(b, 1), pl.ds(0, E)] = emb_ref[tok]   # (1, E) row

        # ---- GRU stack (all layers, both directions, fully resident) ----
        for l in range(n_layers):
            wih, whh, bih, bhh = w_refs[4 * l:4 * (l + 1)]

            # Hoisted input projection for ALL timesteps & both directions:
            # one (T*Bp, FW) @ (FW, 6*GP) MXU matmul (bf16 in, f32 accumulate).
            x = scr[...].reshape(T * Bp, FW).astype(jnp.bfloat16)
            gi = jnp.dot(x, wih[...],
                         preferred_element_type=jnp.float32) + bih[...]
            gi_scr[...] = gi.reshape(T, Bp, 6 * GP)

            # Serial recurrence, fully unrolled (T small & static).  Forward
            # step t and backward step T-1-t share ONE fused hidden matmul.
            h = jnp.zeros((Bp, 2 * GP), jnp.float32)     # [h_fwd | h_bwd]
            for s in range(T):
                t = s
                tb = T - 1 - s

                # Lane-aligned (128-block) gate inputs; fwd from time t,
                # bwd from time tb.  Off the h-dependence chain.
                gi_t = gi_scr[t]        # (Bp, 6*GP): [r_f r_b z_f z_b n_f n_b]
                gi_tb = gi_scr[tb]
                gi_r = jnp.concatenate(
                    [gi_t[:, 0 * GP:1 * GP], gi_tb[:, 1 * GP:2 * GP]], axis=-1)
                gi_z = jnp.concatenate(
                    [gi_t[:, 2 * GP:3 * GP], gi_tb[:, 3 * GP:4 * GP]], axis=-1)
                gi_n = jnp.concatenate(
                    [gi_t[:, 4 * GP:5 * GP], gi_tb[:, 5 * GP:6 * GP]], axis=-1)

                # ONE MXU op for both directions (block-diagonal Whh).
                gh = jnp.dot(h.astype(jnp.bfloat16), whh[...],
                             preferred_element_type=jnp.float32) + bhh[...]
                gh_r = gh[:, 0 * GP:2 * GP]
                gh_z = gh[:, 2 * GP:4 * GP]
                gh_n = gh[:, 4 * GP:6 * GP]

                # Gate math stays in f32 (v5e has no bf16 VPU/EUP path).
                r = jax.nn.sigmoid(gi_r + gh_r)
                z = jax.nn.sigmoid(gi_z + gh_z)
                n = jnp.tanh(gi_n + r * gh_n)
                h = (1.0 - z) * n + z * h

                # Direction-block writes: whole (Bp, GP) = (8, 128) tiles.
                scr[t, :, 0:GP] = h[:, 0:GP]
                scr[tb, :, GP:2 * GP] = h[:, GP:2 * GP]

            # Last hidden state, PyTorch ordering: layer * 2 + direction.
            hid_ref[2 * l] = h[:B, 0:H]
            hid_ref[2 * l + 1] = h[:B, GP:GP + H]
            # TODO(synk): inter-layer GRU dropout skipped (identity, eval mode).

        # ---- Emit output batch-first & lane-dense: (B, T*2H) ----
        for t in range(T):
            row = scr[t]                                    # (Bp, FW)
            out_ref[:, t * H2:(t + 1) * H2] = jnp.concatenate(
                [row[:B, 0:H], row[:B, GP:GP + H]], axis=-1)

    return kernel


# --------------------------- parameter packing ------------------------------
def _place_w(big, w_t, row0, dir_off, H, GP):
    """Scatter a transposed torch weight (rows, 3H) into the padded layout."""
    R = w_t.shape[0]
    for g in range(3):
        big = big.at[row0:row0 + R,
                     2 * g * GP + dir_off:2 * g * GP + dir_off + H].set(
                         w_t[:, g * H:(g + 1) * H])
    return big


def _place_b(big, b, dir_off, H, GP):
    for g in range(3):
        big = big.at[0, 2 * g * GP + dir_off:2 * g * GP + dir_off + H].set(
            b[g * H:(g + 1) * H])
    return big


def init_encoder_params(key, en_vocab_size, emb_dim, hid_dim, n_layers):
    """Deterministic init matching nn.Embedding / nn.GRU shapes, stored
    pre-packed in the fused, 128-lane-padded kernel layout."""
    H = hid_dim
    GP = _round_up(H, 128)                       # per-direction lane padding
    FW = max(2 * GP, _round_up(emb_dim, 128))    # activation feature width

    params = {}
    k_emb, key = jax.random.split(key)
    emb = jax.random.normal(k_emb, (en_vocab_size, emb_dim), jnp.float32)
    params["emb"] = emb.reshape(en_vocab_size, 1, emb_dim)

    bound = float(hid_dim) ** -0.5
    for l in range(n_layers):
        in_dim = emb_dim if l == 0 else 2 * hid_dim
        wih_big = jnp.zeros((FW, 6 * GP), jnp.float32)
        whh_big = jnp.zeros((2 * GP, 6 * GP), jnp.float32)
        bih_big = jnp.zeros((1, 6 * GP), jnp.float32)
        bhh_big = jnp.zeros((1, 6 * GP), jnp.float32)
        for d in range(2):                       # 0 = forward, 1 = backward
            dir_off = d * GP
            keys = jax.random.split(key, 5)
            key = keys[0]
            # PyTorch shapes: weight_ih (3H, in_dim), weight_hh (3H, H), biases (3H,)
            wih = jax.random.uniform(keys[1], (3 * H, in_dim), jnp.float32, -bound, bound)
            whh = jax.random.uniform(keys[2], (3 * H, H), jnp.float32, -bound, bound)
            bih = jax.random.uniform(keys[3], (3 * H,), jnp.float32, -bound, bound)
            bhh = jax.random.uniform(keys[4], (3 * H,), jnp.float32, -bound, bound)
            wih_t = wih.T                        # (in_dim, 3H), cols = [r z n]
            whh_t = whh.T                        # (H, 3H)
            if l == 0:
                wih_big = _place_w(wih_big, wih_t, 0, dir_off, H, GP)
            else:
                # rows 0:H multiply the fwd half of the layer input,
                # rows H:2H the bwd half -> split across the padded row blocks.
                wih_big = _place_w(wih_big, wih_t[:H], 0, dir_off, H, GP)
                wih_big = _place_w(wih_big, wih_t[H:], GP, dir_off, H, GP)
            whh_big = _place_w(whh_big, whh_t, d * GP, dir_off, H, GP)
            bih_big = _place_b(bih_big, bih, dir_off, H, GP)
            bhh_big = _place_b(bhh_big, bhh, dir_off, H, GP)
        params[f"wih{l}"] = wih_big.astype(jnp.bfloat16)
        params[f"whh{l}"] = whh_big.astype(jnp.bfloat16)
        params[f"bih{l}"] = bih_big
        params[f"bhh{l}"] = bhh_big
    return params


# ----------------------------- Encoder wrapper ------------------------------
@functools.partial(jax.jit, static_argnames=("n_layers", "hid_dim"))
def encoder_forward(tokens, params, n_layers, hid_dim):
    """tokens: (B, T) int ids. Returns (outputs (B,T,2H), hidden (2*n_layers,B,H))."""
    B, T = tokens.shape
    H = hid_dim
    H2 = 2 * H
    GP = params["whh0"].shape[0] // 2
    FW = params["wih0"].shape[0]
    E = params["emb"].shape[-1]
    Bp = _round_up(max(B, 8), 8)

    weight_args = []
    for l in range(n_layers):
        weight_args += [params[f"wih{l}"], params[f"whh{l}"],
                        params[f"bih{l}"], params[f"bhh{l}"]]

    kernel = _make_encoder_kernel(T, B, Bp, H, GP, FW, E, n_layers)
    n_vmem_in = 1 + 4 * n_layers

    out_flat, hidden = pl.pallas_call(
        kernel,
        out_shape=[
            jax.ShapeDtypeStruct((B, T * H2), jnp.float32),
            jax.ShapeDtypeStruct((2 * n_layers, B, H), jnp.float32),
        ],
        in_specs=[pl.BlockSpec(memory_space=pltpu.MemorySpace.SMEM)]
                 + [pl.BlockSpec(memory_space=pltpu.MemorySpace.VMEM)] * n_vmem_in,
        out_specs=[pl.BlockSpec(memory_space=pltpu.MemorySpace.VMEM)] * 2,
        scratch_shapes=[
            pltpu.VMEM((T, Bp, FW), jnp.float32),       # layer activations (padded)
            pltpu.VMEM((T, Bp, 6 * GP), jnp.float32),   # hoisted input projections
        ],
        compiler_params=pltpu.CompilerParams(vmem_limit_bytes=32 * 1024 * 1024),
    )(tokens.astype(jnp.int32), params["emb"], *weight_args)

    outputs = out_flat.reshape(B, T, H2)   # free view: kernel already batch-first
    return outputs, hidden


# --------------------------------- main -------------------------------------
if __name__ == "__main__":
    en_vocab_size = 50
    emb_dim = 16
    hid_dim = 32
    n_layers = 2
    B, T = 2, 8

    key = jax.random.PRNGKey(0)
    k_tok, k_param = jax.random.split(key)
    tokens = jax.random.randint(k_tok, (B, T), 0, en_vocab_size, dtype=jnp.int32)
    params = init_encoder_params(k_param, en_vocab_size, emb_dim, hid_dim, n_layers)

    outputs, hidden = encoder_forward(tokens, params, n_layers, hid_dim)
    jax.block_until_ready((outputs, hidden))

    assert outputs.shape == (B, T, 2 * hid_dim), outputs.shape
    assert hidden.shape == (2 * n_layers, B, hid_dim), hidden.shape
    assert bool(jnp.all(jnp.isfinite(outputs))) and bool(jnp.all(jnp.isfinite(hidden)))
    print("KERNEL_OK")
</pallas_src>

<mosaic_0001>
module attributes {stable_mosaic.version = 11 : i64} {
  func.func @kernel(%arg0: memref<2x8xi32, #tpu.memory_space<smem>>, %arg1: memref<50x1x16xf32, #tpu.memory_space<vmem>>, %arg2: memref<256x768xbf16, #tpu.memory_space<vmem>>, %arg3: memref<256x768xbf16, #tpu.memory_space<vmem>>, %arg4: memref<1x768xf32, #tpu.memory_space<vmem>>, %arg5: memref<1x768xf32, #tpu.memory_space<vmem>>, %arg6: memref<256x768xbf16, #tpu.memory_space<vmem>>, %arg7: memref<256x768xbf16, #tpu.memory_space<vmem>>, %arg8: memref<1x768xf32, #tpu.memory_space<vmem>>, %arg9: memref<1x768xf32, #tpu.memory_space<vmem>>, %arg10: memref<2x512xf32, #tpu.memory_space<vmem>>, %arg11: memref<4x2x32xf32, #tpu.memory_space<vmem>>, %arg12: memref<8x8x256xf32, #tpu.memory_space<vmem>>, %arg13: memref<8x8x768xf32, #tpu.memory_space<vmem>>) attributes {dimension_semantics = [], scalar_prefetch = 0 : i64, scratch_operands = 2 : i64, tpu.core_type = #tpu.core_type<tc>} {
    %cst = arith.constant 0.000000e+00 : f32
    %0 = vector.broadcast %cst : f32 to vector<8x8x256xf32>
    %c0 = arith.constant 0 : index
    %c0_0 = arith.constant 0 : index
    %c0_1 = arith.constant 0 : index
    %1 = vector.load %arg12[%c0, %c0_0, %c0_1] : memref<8x8x256xf32, #tpu.memory_space<vmem>>, vector<8x8x256xf32>
    tpu.vector_store %arg12[%c0, %c0_0, %c0_1], %0 {strides = array<i32>} : memref<8x8x256xf32, #tpu.memory_space<vmem>>, vector<8x8x256xf32>,
    %c0_2 = arith.constant 0 : index
    %c0_3 = arith.constant 0 : index
    %2 = memref.load %arg0[%c0_2, %c0_3] : memref<2x8xi32, #tpu.memory_space<smem>>
    %3 = arith.index_cast %2 : i32 to index
    %c0_4 = arith.constant 0 : index
    %c0_5 = arith.constant 0 : index
    %4 = vector.load %arg1[%3, %c0_4, %c0_5] : memref<50x1x16xf32, #tpu.memory_space<vmem>>, vector<1x1x16xf32>
    %5 = vector.shape_cast %4 : vector<1x1x16xf32> to vector<1x16xf32>
    %c0_6 = arith.constant 0 : index
    %c0_7 = arith.constant 0 : index
    %c0_8 = arith.constant 0 : index
    %6 = vector.load %arg12[%c0_6, %c0_7, %c0_8] : memref<8x8x256xf32, #tpu.memory_space<vmem>>, vector<1x1x16xf32>
    %7 = vector.shape_cast %6 : vector<1x1x16xf32> to vector<1x16xf32>
    %8 = vector.shape_cast %5 : vector<1x16xf32> to vector<1x1x16xf32>
    tpu.vector_store %arg12[%c0_6, %c0_7, %c0_8], %8 {strides = array<i32>} : memref<8x8x256xf32, #tpu.memory_space<vmem>>, vector<1x1x16xf32>,
    %c1 = arith.constant 1 : index
    %c0_9 = arith.constant 0 : index
    %9 = memref.load %arg0[%c1, %c0_9] : memref<2x8xi32, #tpu.memory_space<smem>>
    %10 = arith.index_cast %9 : i32 to index
    %c0_10 = arith.constant 0 : index
    %c0_11 = arith.constant 0 : index
    %11 = vector.load %arg1[%10, %c0_10, %c0_11] : memref<50x1x16xf32, #tpu.memory_space<vmem>>, vector<1x1x16xf32>
    %12 = vector.shape_cast %11 : vector<1x1x16xf32> to vector<1x16xf32>
    %c0_12 = arith.constant 0 : index
    %c1_13 = arith.constant 1 : index
    %c0_14 = arith.constant 0 : index
    %13 = vector.load %arg12[%c0_12, %c1_13, %c0_14] : memref<8x8x256xf32, #tpu.memory_space<vmem>>, vector<1x1x16xf32>
    %14 = vector.shape_cast %13 : vector<1x1x16xf32> to vector<1x16xf32>
    %15 = vector.shape_cast %12 : vector<1x16xf32> to vector<1x1x16xf32>
    tpu.vector_store %arg12[%c0_12, %c1_13, %c0_14], %15 {strides = array<i32>} : memref<8x8x256xf32, #tpu.memory_space<vmem>>, vector<1x1x16xf32>,
    %c0_15 = arith.constant 0 : index
    %c1_16 = arith.constant 1 : index
    %16 = memref.load %arg0[%c0_15, %c1_16] : memref<2x8xi32, #tpu.memory_space<smem>>
    %17 = arith.index_cast %16 : i32 to index
    %c0_17 = arith.constant 0 : index
    %c0_18 = arith.constant 0 : index
    %18 = vector.load %arg1[%17, %c0_17, %c0_18] : memref<50x1x16xf32, #tpu.memory_space<vmem>>, vector<1x1x16xf32>
    %19 = vector.shape_cast %18 : vector<1x1x16xf32> to vector<1x16xf32>
    %c1_19 = arith.constant 1 : index
    %c0_20 = arith.constant 0 : index
    %c0_21 = arith.constant 0 : index
    %20 = vector.load %arg12[%c1_19, %c0_20, %c0_21] : memref<8x8x256xf32, #tpu.memory_space<vmem>>, vector<1x1x16xf32>
    %21 = vector.shape_cast %20 : vector<1x1x16xf32> to vector<1x16xf32>
    %22 = vector.shape_cast %19 : vector<1x16xf32> to vector<1x1x16xf32>
    tpu.vector_store %arg12[%c1_19, %c0_20, %c0_21], %22 {strides = array<i32>} : memref<8x8x256xf32, #tpu.memory_space<vmem>>, vector<1x1x16xf32>,
    %c1_22 = arith.constant 1 : index
    %c1_23 = arith.constant 1 : index
    %23 = memref.load %arg0[%c1_22, %c1_23] : memref<2x8xi32, #tpu.memory_space<smem>>
    %24 = arith.index_cast %23 : i32 to index
    %c0_24 = arith.constant 0 : index
    %c0_25 = arith.constant 0 : index
    %25 = vector.load %arg1[%24, %c0_24, %c0_25] : memref<50x1x16xf32, #tpu.memory_space<vmem>>, vector<1x1x16xf32>
    %26 = vector.shape_cast %25 : vector<1x1x16xf32> to vector<1x16xf32>
    %c1_26 = arith.constant 1 : index
    %c1_27 = arith.constant 1 : index
    %c0_28 = arith.constant 0 : index
    %27 = vector.load %arg12[%c1_26, %c1_27, %c0_28] : memref<8x8x256xf32, #tpu.memory_space<vmem>>, vector<1x1x16xf32>
    %28 = vector.shape_cast %27 : vector<1x1x16xf32> to vector<1x16xf32>
    %29 = vector.shape_cast %26 : vector<1x16xf32> to vector<1x1x16xf32>
    tpu.vector_store %arg12[%c1_26, %c1_27, %c0_28], %29 {strides = array<i32>} : memref<8x8x256xf32, #tpu.memory_space<vmem>>, vector<1x1x16xf32>,
    %c0_29 = arith.constant 0 : index
    %c2 = arith.constant 2 : index
    %30 = memref.load %arg0[%c0_29, %c2] : memref<2x8xi32, #tpu.memory_space<smem>>
    %31 = arith.index_cast %30 : i32 to index
    %c0_30 = arith.constant 0 : index
    %c0_31 = arith.constant 0 : index
    %32 = vector.load %arg1[%31, %c0_30, %c0_31] : memref<50x1x16xf32, #tpu.memory_space<vmem>>, vector<1x1x16xf32>
    %33 = vector.shape_cast %32 : vector<1x1x16xf32> to vector<1x16xf32>
    %c2_32 = arith.constant 2 : index
    %c0_33 = arith.constant 0 : index
    %c0_34 = arith.constant 0 : index
    %34 = vector.load %arg12[%c2_32, %c0_33, %c0_34] : memref<8x8x256xf32, #tpu.memory_space<vmem>>, vector<1x1x16xf32>
    %35 = vector.shape_cast %34 : vector<1x1x16xf32> to vector<1x16xf32>
    %36 = vector.shape_cast %33 : vector<1x16xf32> to vector<1x1x16xf32>
    tpu.vector_store %arg12[%c2_32, %c0_33, %c0_34], %36 {strides = array<i32>} : memref<8x8x256xf32, #tpu.memory_space<vmem>>, vector<1x1x16xf32>,
    %c1_35 = arith.constant 1 : index
    %c2_36 = arith.constant 2 : index
    %37 = memref.load %arg0[%c1_35, %c2_36] : memref<2x8xi32, #tpu.memory_space<smem>>
    %38 = arith.index_cast %37 : i32 to index
    %c0_37 = arith.constant 0 : index
    %c0_38 = arith.constant 0 : index
    %39 = vector.load %arg1[%38, %c0_37, %c0_38] : memref<50x1x16xf32, #tpu.memory_space<vmem>>, vector<1x1x16xf32>
    %40 = vector.shape_cast %39 : vector<1x1x16xf32> to vector<1x16xf32>
    %c2_39 = arith.constant 2 : index
    %c1_40 = arith.constant 1 : index
    %c0_41 = arith.constant 0 : index
    %41 = vector.load %arg12[%c2_39, %c1_40, %c0_41] : memref<8x8x256xf32, #tpu.memory_space<vmem>>, vector<1x1x16xf32>
    %42 = vector.shape_cast %41 : vector<1x1x16xf32> to vector<1x16xf32>
    %43 = vector.shape_cast %40 : vector<1x16xf32> to vector<1x1x16xf32>
    tpu.vector_store %arg12[%c2_39, %c1_40, %c0_41], %43 {strides = array<i32>} : memref<8x8x256xf32, #tpu.memory_space<vmem>>, vector<1x1x16xf32>,
    %c0_42 = arith.constant 0 : index
    %c3 = arith.constant 3 : index
    %44 = memref.load %arg0[%c0_42, %c3] : memref<2x8xi32, #tpu.memory_space<smem>>
    %45 = arith.index_cast %44 : i32 to index
    %c0_43 = arith.constant 0 : index
    %c0_44 = arith.constant 0 : index
    %46 = vector.load %arg1[%45, %c0_43, %c0_44] : memref<50x1x16xf32, #tpu.memory_space<vmem>>, vector<1x1x16xf32>
    %47 = vector.shape_cast %46 : vector<1x1x16xf32> to vector<1x16xf32>
    %c3_45 = arith.constant 3 : index
    %c0_46 = arith.constant 0 : index
    %c0_47 = arith.constant 0 : index
    %48 = vector.load %arg12[%c3_45, %c0_46, %c0_47] : memref<8x8x256xf32, #tpu.memory_space<vmem>>, vector<1x1x16xf32>
    %49 = vector.shape_cast %48 : vector<1x1x16xf32> to vector<1x16xf32>
    %50 = vector.shape_cast %47 : vector<1x16xf32> to vector<1x1x16xf32>
    tpu.vector_store %arg12[%c3_45, %c0_46, %c0_47], %50 {strides = array<i32>} : memref<8x8x256xf32, #tpu.memory_space<vmem>>, vector<1x1x16xf32>,
    %c1_48 = arith.constant 1 : index
    %c3_49 = arith.constant 3 : index
    %51 = memref.load %arg0[%c1_48, %c3_49] : memref<2x8xi32, #tpu.memory_space<smem>>
    %52 = arith.index_cast %51 : i32 to index
    %c0_50 = arith.constant 0 : index
    %c0_51 = arith.constant 0 : index
    %53 = vector.load %arg1[%52, %c0_50, %c0_51] : memref<50x1x16xf32, #tpu.memory_space<vmem>>, vector<1x1x16xf32>
    %54 = vector.shape_cast %53 : vector<1x1x16xf32> to vector<1x16xf32>
    %c3_52 = arith.constant 3 : index
    %c1_53 = arith.constant 1 : index
    %c0_54 = arith.constant 0 : index
    %55 = vector.load %arg12[%c3_52, %c1_53, %c0_54] : memref<8x8x256xf32, #tpu.memory_space<vmem>>, vector<1x1x16xf32>
    %56 = vector.shape_cast %55 : vector<1x1x16xf32> to vector<1x16xf32>
    %57 = vector.shape_cast %54 : vector<1x16xf32> to vector<1x1x16xf32>
    tpu.vector_store %arg12[%c3_52, %c1_53, %c0_54], %57 {strides = array<i32>} : memref<8x8x256xf32, #tpu.memory_space<vmem>>, vector<1x1x16xf32>,
    %c0_55 = arith.constant 0 : index
    %c4 = arith.constant 4 : index
    %58 = memref.load %arg0[%c0_55, %c4] : memref<2x8xi32, #tpu.memory_space<smem>>
    %59 = arith.index_cast %58 : i32 to index
    %c0_56 = arith.constant 0 : index
    %c0_57 = arith.constant 0 : index
    %60 = vector.load %arg1[%59, %c0_56, %c0_57] : memref<50x1x16xf32, #tpu.memory_space<vmem>>, vector<1x1x16xf32>
    %61 = vector.shape_cast %60 : vector<1x1x16xf32> to vector<1x16xf32>
    %c4_58 = arith.constant 4 : index
    %c0_59 = arith.constant 0 : index
    %c0_60 = arith.constant 0 : index
    %62 = vector.load %arg12[%c4_58, %c0_59, %c0_60] : memref<8x8x256xf32, #tpu.memory_space<vmem>>, vector<1x1x16xf32>
    %63 = vector.shape_cast %62 : vector<1x1x16xf32> to vector<1x16xf32>
    %64 = vector.shape_cast %61 : vector<1x16xf32> to vector<1x1x16xf32>
    tpu.vector_store %arg12[%c4_58, %c0_59, %c0_60], %64 {strides = array<i32>} : memref<8x8x256xf32, #tpu.memory_space<vmem>>, vector<1x1x16xf32>,
    %c1_61 = arith.constant 1 : index
    %c4_62 = arith.constant 4 : index
    %65 = memref.load %arg0[%c1_61, %c4_62] : memref<2x8xi32, #tpu.memory_space<smem>>
    %66 = arith.index_cast %65 : i32 to index
    %c0_63 = arith.constant 0 : index
    %c0_64 = arith.constant 0 : index
    %67 = vector.load %arg1[%66, %c0_63, %c0_64] : memref<50x1x16xf32, #tpu.memory_space<vmem>>, vector<1x1x16xf32>
    %68 = vector.shape_cast %67 : vector<1x1x16xf32> to vector<1x16xf32>
    %c4_65 = arith.constant 4 : index
    %c1_66 = arith.constant 1 : index
    %c0_67 = arith.constant 0 : index
    %69 = vector.load %arg12[%c4_65, %c1_66, %c0_67] : memref<8x8x256xf32, #tpu.memory_space<vmem>>, vector<1x1x16xf32>
    %70 = vector.shape_cast %69 : vector<1x1x16xf32> to vector<1x16xf32>
    %71 = vector.shape_cast %68 : vector<1x16xf32> to vector<1x1x16xf32>
    tpu.vector_store %arg12[%c4_65, %c1_66, %c0_67], %71 {strides = array<i32>} : memref<8x8x256xf32, #tpu.memory_space<vmem>>, vector<1x1x16xf32>,
    %c0_68 = arith.constant 0 : index
    %c5 = arith.constant 5 : index
    %72 = memref.load %arg0[%c0_68, %c5] : memref<2x8xi32, #tpu.memory_space<smem>>
    %73 = arith.index_cast %72 : i32 to index
    %c0_69 = arith.constant 0 : index
    %c0_70 = arith.constant 0 : index
    %74 = vector.load %arg1[%73, %c0_69, %c0_70] : memref<50x1x16xf32, #tpu.memory_space<vmem>>, vector<1x1x16xf32>
    %75 = vector.shape_cast %74 : vector<1x1x16xf32> to vector<1x16xf32>
    %c5_71 = arith.constant 5 : index
    %c0_72 = arith.constant 0 : index
    %c0_73 = arith.constant 0 : index
    %76 = vector.load %arg12[%c5_71, %c0_72, %c0_73] : memref<8x8x256xf32, #tpu.memory_space<vmem>>, vector<1x1x16xf32>
    %77 = vector.shape_cast %76 : vector<1x1x16xf32> to vector<1x16xf32>
    %78 = vector.shape_cast %75 : vector<1x16xf32> to vector<1x1x16xf32>
    tpu.vector_store %arg12[%c5_71, %c0_72, %c0_73], %78 {strides = array<i32>} : memref<8x8x256xf32, #tpu.memory_space<vmem>>, vector<1x1x16xf32>,
    %c1_74 = arith.constant 1 : index
    %c5_75 = arith.constant 5 : index
    %79 = memref.load %arg0[%c1_74, %c5_75] : memref<2x8xi32, #tpu.memory_space<smem>>
    %80 = arith.index_cast %79 : i32 to index
    %c0_76 = arith.constant 0 : index
    %c0_77 = arith.constant 0 : index
    %81 = vector.load %arg1[%80, %c0_76, %c0_77] : memref<50x1x16xf32, #tpu.memory_space<vmem>>, vector<1x1x16xf32>
    %82 = vector.shape_cast %81 : vector<1x1x16xf32> to vector<1x16xf32>
    %c5_78 = arith.constant 5 : index
    %c1_79 = arith.constant 1 : index
    %c0_80 = arith.constant 0 : index
    %83 = vector.load %arg12[%c5_78, %c1_79, %c0_80] : memref<8x8x256xf32, #tpu.memory_space<vmem>>, vector<1x1x16xf32>
    %84 = vector.shape_cast %83 : vector<1x1x16xf32> to vector<1x16xf32>
    %85 = vector.shape_cast %82 : vector<1x16xf32> to vector<1x1x16xf32>
    tpu.vector_store %arg12[%c5_78, %c1_79, %c0_80], %85 {strides = array<i32>} : memref<8x8x256xf32, #tpu.memory_space<vmem>>, vector<1x1x16xf32>,
    %c0_81 = arith.constant 0 : index
    %c6 = arith.constant 6 : index
    %86 = memref.load %arg0[%c0_81, %c6] : memref<2x8xi32, #tpu.memory_space<smem>>
    %87 = arith.index_cast %86 : i32 to index
    %c0_82 = arith.constant 0 : index
    %c0_83 = arith.constant 0 : index
    %88 = vector.load %arg1[%87, %c0_82, %c0_83] : memref<50x1x16xf32, #tpu.memory_space<vmem>>, vector<1x1x16xf32>
    %89 = vector.shape_cast %88 : vector<1x1x16xf32> to vector<1x16xf32>
    %c6_84 = arith.constant 6 : index
    %c0_85 = arith.constant 0 : index
    %c0_86 = arith.constant 0 : index
    %90 = vector.load %arg12[%c6_84, %c0_85, %c0_86] : memref<8x8x256xf32, #tpu.memory_space<vmem>>, vector<1x1x16xf32>
    %91 = vector.shape_cast %90 : vector<1x1x16xf32> to vector<1x16xf32>
    %92 = vector.shape_cast %89 : vector<1x16xf32> to vector<1x1x16xf32>
    tpu.vector_store %arg12[%c6_84, %c0_85, %c0_86], %92 {strides = array<i32>} : memref<8x8x256xf32, #tpu.memory_space<vmem>>, vector<1x1x16xf32>,
    %c1_87 = arith.constant 1 : index
    %c6_88 = arith.constant 6 : index
    %93 = memref.load %arg0[%c1_87, %c6_88] : memref<2x8xi32, #tpu.memory_space<smem>>
    %94 = arith.index_cast %93 : i32 to index
    %c0_89 = arith.constant 0 : index
    %c0_90 = arith.constant 0 : index
    %95 = vector.load %arg1[%94, %c0_89, %c0_90] : memref<50x1x16xf32, #tpu.memory_space<vmem>>, vector<1x1x16xf32>
    %96 = vector.shape_cast %95 : vector<1x1x16xf32> to vector<1x16xf32>
    %c6_91 = arith.constant 6 : index
    %c1_92 = arith.constant 1 : index
    %c0_93 = arith.constant 0 : index
    %97 = vector.load %arg12[%c6_91, %c1_92, %c0_93] : memref<8x8x256xf32, #tpu.memory_space<vmem>>, vector<1x1x16xf32>
    %98 = vector.shape_cast %97 : vector<1x1x16xf32> to vector<1x16xf32>
    %99 = vector.shape_cast %96 : vector<1x16xf32> to vector<1x1x16xf32>
    tpu.vector_store %arg12[%c6_91, %c1_92, %c0_93], %99 {strides = array<i32>} : memref<8x8x256xf32, #tpu.memory_space<vmem>>, vector<1x1x16xf32>,
    %c0_94 = arith.constant 0 : index
    %c7 = arith.constant 7 : index
    %100 = memref.load %arg0[%c0_94, %c7] : memref<2x8xi32, #tpu.memory_space<smem>>
    %101 = arith.index_cast %100 : i32 to index
    %c0_95 = arith.constant 0 : index
    %c0_96 = arith.constant 0 : index
    %102 = vector.load %arg1[%101, %c0_95, %c0_96] : memref<50x1x16xf32, #tpu.memory_space<vmem>>, vector<1x1x16xf32>
    %103 = vector.shape_cast %102 : vector<1x1x16xf32> to vector<1x16xf32>
    %c7_97 = arith.constant 7 : index
    %c0_98 = arith.constant 0 : index
    %c0_99 = arith.constant 0 : index
    %104 = vector.load %arg12[%c7_97, %c0_98, %c0_99] : memref<8x8x256xf32, #tpu.memory_space<vmem>>, vector<1x1x16xf32>
    %105 = vector.shape_cast %104 : vector<1x1x16xf32> to vector<1x16xf32>
    %106 = vector.shape_cast %103 : vector<1x16xf32> to vector<1x1x16xf32>
    tpu.vector_store %arg12[%c7_97, %c0_98, %c0_99], %106 {strides = array<i32>} : memref<8x8x256xf32, #tpu.memory_space<vmem>>, vector<1x1x16xf32>,
    %c1_100 = arith.constant 1 : index
    %c7_101 = arith.constant 7 : index
    %107 = memref.load %arg0[%c1_100, %c7_101] : memref<2x8xi32, #tpu.memory_space<smem>>
    %108 = arith.index_cast %107 : i32 to index
    %c0_102 = arith.constant 0 : index
    %c0_103 = arith.constant 0 : index
    %109 = vector.load %arg1[%108, %c0_102, %c0_103] : memref<50x1x16xf32, #tpu.memory_space<vmem>>, vector<1x1x16xf32>
    %110 = vector.shape_cast %109 : vector<1x1x16xf32> to vector<1x16xf32>
    %c7_104 = arith.constant 7 : index
    %c1_105 = arith.constant 1 : index
    %c0_106 = arith.constant 0 : index
    %111 = vector.load %arg12[%c7_104, %c1_105, %c0_106] : memref<8x8x256xf32, #tpu.memory_space<vmem>>, vector<1x1x16xf32>
    %112 = vector.shape_cast %111 : vector<1x1x16xf32> to vector<1x16xf32>
    %113 = vector.shape_cast %110 : vector<1x16xf32> to vector<1x1x16xf32>
    tpu.vector_store %arg12[%c7_104, %c1_105, %c0_106], %113 {strides = array<i32>} : memref<8x8x256xf32, #tpu.memory_space<vmem>>, vector<1x1x16xf32>,
    %c0_107 = arith.constant 0 : index
    %c0_108 = arith.constant 0 : index
    %c0_109 = arith.constant 0 : index
    %114 = vector.load %arg12[%c0_107, %c0_108, %c0_109] : memref<8x8x256xf32, #tpu.memory_space<vmem>>, vector<8x8x256xf32>
    %115 = vector.shape_cast %114 : vector<8x8x256xf32> to vector<64x256xf32>
    %116 = arith.truncf %115 : vector<64x256xf32> to vector<64x256xbf16>
    %c0_110 = arith.constant 0 : index
    %c0_111 = arith.constant 0 : index
    %117 = vector.load %arg2[%c0_110, %c0_111] : memref<256x768xbf16, #tpu.memory_space<vmem>>, vector<256x768xbf16>
    %cst_112 = arith.constant dense<0.000000e+00> : vector<64x768xf32>
    %118 = tpu.matmul %116, %117, %cst_112 {dimension_numbers = #tpu.dot_dimension_numbers<[1], [0], [0], [1], [0, 0, 1, 1], [], []>} : vector<64x256xbf16>, vector<256x768xbf16>, vector<64x768xf32> -> vector<64x768xf32>
    %c0_113 = arith.constant 0 : index
    %c0_114 = arith.constant 0 : index
    %119 = vector.load %arg4[%c0_113, %c0_114] : memref<1x768xf32, #tpu.memory_space<vmem>>, vector<1x768xf32>
    %120 = vector.broadcast %119 : vector<1x768xf32> to vector<64x768xf32>
    %121 = arith.addf %118, %120 : vector<64x768xf32>
    %122 = vector.shape_cast %121 : vector<64x768xf32> to vector<8x8x768xf32>
    %c0_115 = arith.constant 0 : index
    %c0_116 = arith.constant 0 : index
    %c0_117 = arith.constant 0 : index
    %123 = vector.load %arg13[%c0_115, %c0_116, %c0_117] : memref<8x8x768xf32, #tpu.memory_space<vmem>>, vector<8x8x768xf32>
    tpu.vector_store %arg13[%c0_115, %c0_116, %c0_117], %122 {strides = array<i32>} : memref<8x8x768xf32, #tpu.memory_space<vmem>>, vector<8x8x768xf32>,
    %cst_118 = arith.constant 0.000000e+00 : f32
    %124 = vector.broadcast %cst_118 : f32 to vector<8x256xf32>
    %c0_119 = arith.constant 0 : index
    %c0_120 = arith.constant 0 : index
    %c0_121 = arith.constant 0 : index
    %125 = vector.load %arg13[%c0_119, %c0_120, %c0_121] : memref<8x8x768xf32, #tpu.memory_space<vmem>>, vector<1x8x768xf32>
    %126 = vector.shape_cast %125 : vector<1x8x768xf32> to vector<8x768xf32>
    %c7_122 = arith.constant 7 : index
    %c0_123 = arith.constant 0 : index
    %c0_124 = arith.constant 0 : index
    %127 = vector.load %arg13[%c7_122, %c0_123, %c0_124] : memref<8x8x768xf32, #tpu.memory_space<vmem>>, vector<1x8x768xf32>
    %128 = vector.shape_cast %127 : vector<1x8x768xf32> to vector<8x768xf32>
    %129 = vector.extract_strided_slice %126 {offsets = [0, 0], sizes = [8, 128], strides = [1, 1]} : vector<8x768xf32> to vector<8x128xf32>
    %130 = vector.extract_strided_slice %128 {offsets = [0, 128], sizes = [8, 128], strides = [1, 1]} : vector<8x768xf32> to vector<8x128xf32>
    %131 = tpu.concatenate %129, %130 in 1 : vector<8x128xf32>, vector<8x128xf32> -> vector<8x256xf32>
    %132 = vector.extract_strided_slice %126 {offsets = [0, 256], sizes = [8, 128], strides = [1, 1]} : vector<8x768xf32> to vector<8x128xf32>
    %133 = vector.extract_strided_slice %128 {offsets = [0, 384], sizes = [8, 128], strides = [1, 1]} : vector<8x768xf32> to vector<8x128xf32>
    %134 = tpu.concatenate %132, %133 in 1 : vector<8x128xf32>, vector<8x128xf32> -> vector<8x256xf32>
    %135 = vector.extract_strided_slice %126 {offsets = [0, 512], sizes = [8, 128], strides = [1, 1]} : vector<8x768xf32> to vector<8x128xf32>
    %136 = vector.extract_strided_slice %128 {offsets = [0, 640], sizes = [8, 128], strides = [1, 1]} : vector<8x768xf32> to vector<8x128xf32>
    %137 = tpu.concatenate %135, %136 in 1 : vector<8x128xf32>, vector<8x128xf32> -> vector<8x256xf32>
    %138 = arith.truncf %124 : vector<8x256xf32> to vector<8x256xbf16>
    %c0_125 = arith.constant 0 : index
    %c0_126 = arith.constant 0 : index
    %139 = vector.load %arg3[%c0_125, %c0_126] : memref<256x768xbf16, #tpu.memory_space<vmem>>, vector<256x768xbf16>
    %cst_127 = arith.constant dense<0.000000e+00> : vector<8x768xf32>
    %140 = tpu.matmul %138, %139, %cst_127 {dimension_numbers = #tpu.dot_dimension_numbers<[1], [0], [0], [1], [0, 0, 1, 1], [], []>} : vector<8x256xbf16>, vector<256x768xbf16>, vector<8x768xf32> -> vector<8x768xf32>
    %c0_128 = arith.constant 0 : index
    %c0_129 = arith.constant 0 : index
    %141 = vector.load %arg5[%c0_128, %c0_129] : memref<1x768xf32, #tpu.memory_space<vmem>>, vector<1x768xf32>
    %142 = vector.broadcast %141 : vector<1x768xf32> to vector<8x768xf32>
    %143 = arith.addf %140, %142 : vector<8x768xf32>
    %144 = vector.extract_strided_slice %143 {offsets = [0, 0], sizes = [8, 256], strides = [1, 1]} : vector<8x768xf32> to vector<8x256xf32>
    %145 = vector.extract_strided_slice %143 {offsets = [0, 256], sizes = [8, 256], strides = [1, 1]} : vector<8x768xf32> to vector<8x256xf32>
    %146 = vector.extract_strided_slice %143 {offsets = [0, 512], sizes = [8, 256], strides = [1, 1]} : vector<8x768xf32> to vector<8x256xf32>
    %147 = arith.addf %131, %144 : vector<8x256xf32>
    %148 = arith.negf %147 : vector<8x256xf32>
    %149 = math.exp %148 : vector<8x256xf32>
    %cst_130 = arith.constant 1.000000e+00 : f32
    %150 = vector.broadcast %cst_130 : f32 to vector<8x256xf32>
    %151 = arith.addf %150, %149 : vector<8x256xf32>
    %152 = arith.divf %150, %151 : vector<8x256xf32>
    %153 = arith.addf %134, %145 : vector<8x256xf32>
    %154 = arith.negf %153 : vector<8x256xf32>
    %155 = math.exp %154 : vector<8x256xf32>
    %cst_131 = arith.constant 1.000000e+00 : f32
    %156 = vector.broadcast %cst_131 : f32 to vector<8x256xf32>
    %157 = arith.addf %156, %155 : vector<8x256xf32>
    %158 = arith.divf %156, %157 : vector<8x256xf32>
    %159 = arith.mulf %152, %146 : vector<8x256xf32>
    %160 = arith.addf %137, %159 : vector<8x256xf32>
    %161 = math.tanh %160 : vector<8x256xf32>
    %cst_132 = arith.constant 1.000000e+00 : f32
    %162 = vector.broadcast %cst_132 : f32 to vector<8x256xf32>
    %163 = arith.subf %162, %158 : vector<8x256xf32>
    %164 = arith.mulf %163, %161 : vector<8x256xf32>
    %165 = arith.mulf %158, %124 : vector<8x256xf32>
    %166 = arith.addf %164, %165 : vector<8x256xf32>
    %167 = vector.extract_strided_slice %166 {offsets = [0, 0], sizes = [8, 128], strides = [1, 1]} : vector<8x256xf32> to vector<8x128xf32>
    %c0_133 = arith.constant 0 : index
    %c0_134 = arith.constant 0 : index
    %c0_135 = arith.constant 0 : index
    %168 = vector.load %arg12[%c0_133, %c0_134, %c0_135] : memref<8x8x256xf32, #tpu.memory_space<vmem>>, vector<1x8x128xf32>
    %169 = vector.shape_cast %168 : vector<1x8x128xf32> to vector<8x128xf32>
    %170 = vector.shape_cast %167 : vector<8x128xf32> to vector<1x8x128xf32>
    tpu.vector_store %arg12[%c0_133, %c0_134, %c0_135], %170 {strides = array<i32>} : memref<8x8x256xf32, #tpu.memory_space<vmem>>, vector<1x8x128xf32>,
    %171 = vector.extract_strided_slice %166 {offsets = [0, 128], sizes = [8, 128], strides = [1, 1]} : vector<8x256xf32> to vector<8x128xf32>
    %c7_136 = arith.constant 7 : index
    %c0_137 = arith.constant 0 : index
    %c128 = arith.constant 128 : index
    %172 = vector.load %arg12[%c7_136, %c0_137, %c128] : memref<8x8x256xf32, #tpu.memory_space<vmem>>, vector<1x8x128xf32>
    %173 = vector.shape_cast %172 : vector<1x8x128xf32> to vector<8x128xf32>
    %174 = vector.shape_cast %171 : vector<8x128xf32> to vector<1x8x128xf32>
    tpu.vector_store %arg12[%c7_136, %c0_137, %c128], %174 {strides = array<i32>} : memref<8x8x256xf32, #tpu.memory_space<vmem>>, vector<1x8x128xf32>,
    %c1_138 = arith.constant 1 : index
    %c0_139 = arith.constant 0 : index
    %c0_140 = arith.constant 0 : index
    %175 = vector.load %arg13[%c1_138, %c0_139, %c0_140] : memref<8x8x768xf32, #tpu.memory_space<vmem>>, vector<1x8x768xf32>
    %176 = vector.shape_cast %175 : vector<1x8x768xf32> to vector<8x768xf32>
    %c6_141 = arith.constant 6 : index
    %c0_142 = arith.constant 0 : index
    %c0_143 = arith.constant 0 : index
    %177 = vector.load %arg13[%c6_141, %c0_142, %c0_143] : memref<8x8x768xf32, #tpu.memory_space<vmem>>, vector<1x8x768xf32>
    %178 = vector.shape_cast %177 : vector<1x8x768xf32> to vector<8x768xf32>
    %179 = vector.extract_strided_slice %176 {offsets = [0, 0], sizes = [8, 128], strides = [1, 1]} : vector<8x768xf32> to vector<8x128xf32>
    %180 = vector.extract_strided_slice %178 {offsets = [0, 128], sizes = [8, 128], strides = [1, 1]} : vector<8x768xf32> to vector<8x128xf32>
    %181 = tpu.concatenate %179, %180 in 1 : vector<8x128xf32>, vector<8x128xf32> -> vector<8x256xf32>
    %182 = vector.extract_strided_slice %176 {offsets = [0, 256], sizes = [8, 128], strides = [1, 1]} : vector<8x768xf32> to vector<8x128xf32>
    %183 = vector.extract_strided_slice %178 {offsets = [0, 384], sizes = [8, 128], strides = [1, 1]} : vector<8x768xf32> to vector<8x128xf32>
    %184 = tpu.concatenate %182, %183 in 1 : vector<8x128xf32>, vector<8x128xf32> -> vector<8x256xf32>
    %185 = vector.extract_strided_slice %176 {offsets = [0, 512], sizes = [8, 128], strides = [1, 1]} : vector<8x768xf32> to vector<8x128xf32>
    %186 = vector.extract_strided_slice %178 {offsets = [0, 640], sizes = [8, 128], strides = [1, 1]} : vector<8x768xf32> to vector<8x128xf32>
    %187 = tpu.concatenate %185, %186 in 1 : vector<8x128xf32>, vector<8x128xf32> -> vector<8x256xf32>
    %188 = arith.truncf %166 : vector<8x256xf32> to vector<8x256xbf16>
    %c0_144 = arith.constant 0 : index
    %c0_145 = arith.constant 0 : index
    %189 = vector.load %arg3[%c0_144, %c0_145] : memref<256x768xbf16, #tpu.memory_space<vmem>>, vector<256x768xbf16>
    %cst_146 = arith.constant dense<0.000000e+00> : vector<8x768xf32>
    %190 = tpu.matmul %188, %189, %cst_146 {dimension_numbers = #tpu.dot_dimension_numbers<[1], [0], [0], [1], [0, 0, 1, 1], [], []>} : vector<8x256xbf16>, vector<256x768xbf16>, vector<8x768xf32> -> vector<8x768xf32>
    %c0_147 = arith.constant 0 : index
    %c0_148 = arith.constant 0 : index
    %191 = vector.load %arg5[%c0_147, %c0_148] : memref<1x768xf32, #tpu.memory_space<vmem>>, vector<1x768xf32>
    %192 = vector.broadcast %191 : vector<1x768xf32> to vector<8x768xf32>
    %193 = arith.addf %190, %192 : vector<8x768xf32>
    %194 = vector.extract_strided_slice %193 {offsets = [0, 0], sizes = [8, 256], strides = [1, 1]} : vector<8x768xf32> to vector<8x256xf32>
    %195 = vector.extract_strided_slice %193 {offsets = [0, 256], sizes = [8, 256], strides = [1, 1]} : vector<8x768xf32> to vector<8x256xf32>
    %196 = vector.extract_strided_slice %193 {offsets = [0, 512], sizes = [8, 256], strides = [1, 1]} : vector<8x768xf32> to vector<8x256xf32>
    %197 = arith.addf %181, %194 : vector<8x256xf32>
    %198 = arith.negf %197 : vector<8x256xf32>
    %199 = math.exp %198 : vector<8x256xf32>
    %cst_149 = arith.constant 1.000000e+00 : f32
    %200 = vector.broadcast %cst_149 : f32 to vector<8x256xf32>
    %201 = arith.addf %200, %199 : vector<8x256xf32>
    %202 = arith.divf %200, %201 : vector<8x256xf32>
    %203 = arith.addf %184, %195 : vector<8x256xf32>
    %204 = arith.negf %203 : vector<8x256xf32>
    %205 = math.exp %204 : vector<8x256xf32>
    %cst_150 = arith.constant 1.000000e+00 : f32
    %206 = vector.broadcast %cst_150 : f32 to vector<8x256xf32>
    %207 = arith.addf %206, %205 : vector<8x256xf32>
    %208 = arith.divf %206, %207 : vector<8x256xf32>
    %209 = arith.mulf %202, %196 : vector<8x256xf32>
    %210 = arith.addf %187, %209 : vector<8x256xf32>
    %211 = math.tanh %210 : vector<8x256xf32>
    %cst_151 = arith.constant 1.000000e+00 : f32
    %212 = vector.broadcast %cst_151 : f32 to vector<8x256xf32>
    %213 = arith.subf %212, %208 : vector<8x256xf32>
    %214 = arith.mulf %213, %211 : vector<8x256xf32>
    %215 = arith.mulf %208, %166 : vector<8x256xf32>
    %216 = arith.addf %214, %215 : vector<8x256xf32>
    %217 = vector.extract_strided_slice %216 {offsets = [0, 0], sizes = [8, 128], strides = [1, 1]} : vector<8x256xf32> to vector<8x128xf32>
    %c1_152 = arith.constant 1 : index
    %c0_153 = arith.constant 0 : index
    %c0_154 = arith.constant 0 : index
    %218 = vector.load %arg12[%c1_152, %c0_153, %c0_154] : memref<8x8x256xf32, #tpu.memory_space<vmem>>, vector<1x8x128xf32>
    %219 = vector.shape_cast %218 : vector<1x8x128xf32> to vector<8x128xf32>
    %220 = vector.shape_cast %217 : vector<8x128xf32> to vector<1x8x128xf32>
    tpu.vector_store %arg12[%c1_152, %c0_153, %c0_154], %220 {strides = array<i32>} : memref<8x8x256xf32, #tpu.memory_space<vmem>>, vector<1x8x128xf32>,
    %221 = vector.extract_strided_slice %216 {offsets = [0, 128], sizes = [8, 128], strides = [1, 1]} : vector<8x256xf32> to vector<8x128xf32>
    %c6_155 = arith.constant 6 : index
    %c0_156 = arith.constant 0 : index
    %c128_157 = arith.constant 128 : index
    %222 = vector.load %arg12[%c6_155, %c0_156, %c128_157] : memref<8x8x256xf32, #tpu.memory_space<vmem>>, vector<1x8x128xf32>
    %223 = vector.shape_cast %222 : vector<1x8x128xf32> to vector<8x128xf32>
    %224 = vector.shape_cast %221 : vector<8x128xf32> to vector<1x8x128xf32>
    tpu.vector_store %arg12[%c6_155, %c0_156, %c128_157], %224 {strides = array<i32>} : memref<8x8x256xf32, #tpu.memory_space<vmem>>, vector<1x8x128xf32>,
    %c2_158 = arith.constant 2 : index
    %c0_159 = arith.constant 0 : index
    %c0_160 = arith.constant 0 : index
    %225 = vector.load %arg13[%c2_158, %c0_159, %c0_160] : memref<8x8x768xf32, #tpu.memory_space<vmem>>, vector<1x8x768xf32>
    %226 = vector.shape_cast %225 : vector<1x8x768xf32> to vector<8x768xf32>
    %c5_161 = arith.constant 5 : index
    %c0_162 = arith.constant 0 : index
    %c0_163 = arith.constant 0 : index
    %227 = vector.load %arg13[%c5_161, %c0_162, %c0_163] : memref<8x8x768xf32, #tpu.memory_space<vmem>>, vector<1x8x768xf32>
    %228 = vector.shape_cast %227 : vector<1x8x768xf32> to vector<8x768xf32>
    %229 = vector.extract_strided_slice %226 {offsets = [0, 0], sizes = [8, 128], strides = [1, 1]} : vector<8x768xf32> to vector<8x128xf32>
    %230 = vector.extract_strided_slice %228 {offsets = [0, 128], sizes = [8, 128], strides = [1, 1]} : vector<8x768xf32> to vector<8x128xf32>
    %231 = tpu.concatenate %229, %230 in 1 : vector<8x128xf32>, vector<8x128xf32> -> vector<8x256xf32>
    %232 = vector.extract_strided_slice %226 {offsets = [0, 256], sizes = [8, 128], strides = [1, 1]} : vector<8x768xf32> to vector<8x128xf32>
    %233 = vector.extract_strided_slice %228 {offsets = [0, 384], sizes = [8, 128], strides = [1, 1]} : vector<8x768xf32> to vector<8x128xf32>
    %234 = tpu.concatenate %232, %233 in 1 : vector<8x128xf32>, vector<8x128xf32> -> vector<8x256xf32>
    %235 = vector.extract_strided_slice %226 {offsets = [0, 512], sizes = [8, 128], strides = [1, 1]} : vector<8x768xf32> to vector<8x128xf32>
    %236 = vector.extract_strided_slice %228 {offsets = [0, 640], sizes = [8, 128], strides = [1, 1]} : vector<8x768xf32> to vector<8x128xf32>
    %237 = tpu.concatenate %235, %236 in 1 : vector<8x128xf32>, vector<8x128xf32> -> vector<8x256xf32>
    %238 = arith.truncf %216 : vector<8x256xf32> to vector<8x256xbf16>
    %c0_164 = arith.constant 0 : index
    %c0_165 = arith.constant 0 : index
    %239 = vector.load %arg3[%c0_164, %c0_165] : memref<256x768xbf16, #tpu.memory_space<vmem>>, vector<256x768xbf16>
    %cst_166 = arith.constant dense<0.000000e+00> : vector<8x768xf32>
    %240 = tpu.matmul %238, %239, %cst_166 {dimension_numbers = #tpu.dot_dimension_numbers<[1], [0], [0], [1], [0, 0, 1, 1], [], []>} : vector<8x256xbf16>, vector<256x768xbf16>, vector<8x768xf32> -> vector<8x768xf32>
    %c0_167 = arith.constant 0 : index
    %c0_168 = arith.constant 0 : index
    %241 = vector.load %arg5[%c0_167, %c0_168] : memref<1x768xf32, #tpu.memory_space<vmem>>, vector<1x768xf32>
    %242 = vector.broadcast %241 : vector<1x768xf32> to vector<8x768xf32>
    %243 = arith.addf %240, %242 : vector<8x768xf32>
    %244 = vector.extract_strided_slice %243 {offsets = [0, 0], sizes = [8, 256], strides = [1, 1]} : vector<8x768xf32> to vector<8x256xf32>
    %245 = vector.extract_strided_slice %243 {offsets = [0, 256], sizes = [8, 256], strides = [1, 1]} : vector<8x768xf32> to vector<8x256xf32>
    %246 = vector.extract_strided_slice %243 {offsets = [0, 512], sizes = [8, 256], strides = [1, 1]} : vector<8x768xf32> to vector<8x256xf32>
    %247 = arith.addf %231, %244 : vector<8x256xf32>
    %248 = arith.negf %247 : vector<8x256xf32>
    %249 = math.exp %248 : vector<8x256xf32>
    %cst_169 = arith.constant 1.000000e+00 : f32
    %250 = vector.broadcast %cst_169 : f32 to vector<8x256xf32>
    %251 = arith.addf %250, %249 : vector<8x256xf32>
    %252 = arith.divf %250, %251 : vector<8x256xf32>
    %253 = arith.addf %234, %245 : vector<8x256xf32>
    %254 = arith.negf %253 : vector<8x256xf32>
    %255 = math.exp %254 : vector<8x256xf32>
    %cst_170 = arith.constant 1.000000e+00 : f32
    %256 = vector.broadcast %cst_170 : f32 to vector<8x256xf32>
    %257 = arith.addf %256, %255 : vector<8x256xf32>
    %258 = arith.divf %256, %257 : vector<8x256xf32>
    %259 = arith.mulf %252, %246 : vector<8x256xf32>
    %260 = arith.addf %237, %259 : vector<8x256xf32>
    %261 = math.tanh %260 : vector<8x256xf32>
    %cst_171 = arith.constant 1.000000e+00 : f32
    %262 = vector.broadcast %cst_171 : f32 to vector<8x256xf32>
    %263 = arith.subf %262, %258 : vector<8x256xf32>
    %264 = arith.mulf %263, %261 : vector<8x256xf32>
    %265 = arith.mulf %258, %216 : vector<8x256xf32>
    %266 = arith.addf %264, %265 : vector<8x256xf32>
    %267 = vector.extract_strided_slice %266 {offsets = [0, 0], sizes = [8, 128], strides = [1, 1]} : vector<8x256xf32> to vector<8x128xf32>
    %c2_172 = arith.constant 2 : index
    %c0_173 = arith.constant 0 : index
    %c0_174 = arith.constant 0 : index
    %268 = vector.load %arg12[%c2_172, %c0_173, %c0_174] : memref<8x8x256xf32, #tpu.memory_space<vmem>>, vector<1x8x128xf32>
    %269 = vector.shape_cast %268 : vector<1x8x128xf32> to vector<8x128xf32>
    %270 = vector.shape_cast %267 : vector<8x128xf32> to vector<1x8x128xf32>
    tpu.vector_store %arg12[%c2_172, %c0_173, %c0_174], %270 {strides = array<i32>} : memref<8x8x256xf32, #tpu.memory_space<vmem>>, vector<1x8x128xf32>,
    %271 = vector.extract_strided_slice %266 {offsets = [0, 128], sizes = [8, 128], strides = [1, 1]} : vector<8x256xf32> to vector<8x128xf32>
    %c5_175 = arith.constant 5 : index
    %c0_176 = arith.constant 0 : index
    %c128_177 = arith.constant 128 : index
    %272 = vector.load %arg12[%c5_175, %c0_176, %c128_177] : memref<8x8x256xf32, #tpu.memory_space<vmem>>, vector<1x8x128xf32>
    %273 = vector.shape_cast %272 : vector<1x8x128xf32> to vector<8x128xf32>
    %274 = vector.shape_cast %271 : vector<8x128xf32> to vector<1x8x128xf32>
    tpu.vector_store %arg12[%c5_175, %c0_176, %c128_177], %274 {strides = array<i32>} : memref<8x8x256xf32, #tpu.memory_space<vmem>>, vector<1x8x128xf32>,
    %c3_178 = arith.constant 3 : index
    %c0_179 = arith.constant 0 : index
    %c0_180 = arith.constant 0 : index
    %275 = vector.load %arg13[%c3_178, %c0_179, %c0_180] : memref<8x8x768xf32, #tpu.memory_space<vmem>>, vector<1x8x768xf32>
    %276 = vector.shape_cast %275 : vector<1x8x768xf32> to vector<8x768xf32>
    %c4_181 = arith.constant 4 : index
    %c0_182 = arith.constant 0 : index
    %c0_183 = arith.constant 0 : index
    %277 = vector.load %arg13[%c4_181, %c0_182, %c0_183] : memref<8x8x768xf32, #tpu.memory_space<vmem>>, vector<1x8x768xf32>
    %278 = vector.shape_cast %277 : vector<1x8x768xf32> to vector<8x768xf32>
    %279 = vector.extract_strided_slice %276 {offsets = [0, 0], sizes = [8, 128], strides = [1, 1]} : vector<8x768xf32> to vector<8x128xf32>
    %280 = vector.extract_strided_slice %278 {offsets = [0, 128], sizes = [8, 128], strides = [1, 1]} : vector<8x768xf32> to vector<8x128xf32>
    %281 = tpu.concatenate %279, %280 in 1 : vector<8x128xf32>, vector<8x128xf32> -> vector<8x256xf32>
    %282 = vector.extract_strided_slice %276 {offsets = [0, 256], sizes = [8, 128], strides = [1, 1]} : vector<8x768xf32> to vector<8x128xf32>
    %283 = vector.extract_strided_slice %278 {offsets = [0, 384], sizes = [8, 128], strides = [1, 1]} : vector<8x768xf32> to vector<8x128xf32>
    %284 = tpu.concatenate %282, %283 in 1 : vector<8x128xf32>, vector<8x128xf32> -> vector<8x256xf32>
    %285 = vector.extract_strided_slice %276 {offsets = [0, 512], sizes = [8, 128], strides = [1, 1]} : vector<8x768xf32> to vector<8x128xf32>
    %286 = vector.extract_strided_slice %278 {offsets = [0, 640], sizes = [8, 128], strides = [1, 1]} : vector<8x768xf32> to vector<8x128xf32>
    %287 = tpu.concatenate %285, %286 in 1 : vector<8x128xf32>, vector<8x128xf32> -> vector<8x256xf32>
    %288 = arith.truncf %266 : vector<8x256xf32> to vector<8x256xbf16>
    %c0_184 = arith.constant 0 : index
    %c0_185 = arith.constant 0 : index
    %289 = vector.load %arg3[%c0_184, %c0_185] : memref<256x768xbf16, #tpu.memory_space<vmem>>, vector<256x768xbf16>
    %cst_186 = arith.constant dense<0.000000e+00> : vector<8x768xf32>
    %290 = tpu.matmul %288, %289, %cst_186 {dimension_numbers = #tpu.dot_dimension_numbers<[1], [0], [0], [1], [0, 0, 1, 1], [], []>} : vector<8x256xbf16>, vector<256x768xbf16>, vector<8x768xf32> -> vector<8x768xf32>
    %c0_187 = arith.constant 0 : index
    %c0_188 = arith.constant 0 : index
    %291 = vector.load %arg5[%c0_187, %c0_188] : memref<1x768xf32, #tpu.memory_space<vmem>>, vector<1x768xf32>
    %292 = vector.broadcast %291 : vector<1x768xf32> to vector<8x768xf32>
    %293 = arith.addf %290, %292 : vector<8x768xf32>
    %294 = vector.extract_strided_slice %293 {offsets = [0, 0], sizes = [8, 256], strides = [1, 1]} : vector<8x768xf32> to vector<8x256xf32>
    %295 = vector.extract_strided_slice %293 {offsets = [0, 256], sizes = [8, 256], strides = [1, 1]} : vector<8x768xf32> to vector<8x256xf32>
    %296 = vector.extract_strided_slice %293 {offsets = [0, 512], sizes = [8, 256], strides = [1, 1]} : vector<8x768xf32> to vector<8x256xf32>
    %297 = arith.addf %281, %294 : vector<8x256xf32>
    %298 = arith.negf %297 : vector<8x256xf32>
    %299 = math.exp %298 : vector<8x256xf32>
    %cst_189 = arith.constant 1.000000e+00 : f32
    %300 = vector.broadcast %cst_189 : f32 to vector<8x256xf32>
    %301 = arith.addf %300, %299 : vector<8x256xf32>
    %302 = arith.divf %300, %301 : vector<8x256xf32>
    %303 = arith.addf %284, %295 : vector<8x256xf32>
    %304 = arith.negf %303 : vector<8x256xf32>
    %305 = math.exp %304 : vector<8x256xf32>
    %cst_190 = arith.constant 1.000000e+00 : f32
    %306 = vector.broadcast %cst_190 : f32 to vector<8x256xf32>
    %307 = arith.addf %306, %305 : vector<8x256xf32>
    %308 = arith.divf %306, %307 : vector<8x256xf32>
    %309 = arith.mulf %302, %296 : vector<8x256xf32>
    %310 = arith.addf %287, %309 : vector<8x256xf32>
    %311 = math.tanh %310 : vector<8x256xf32>
    %cst_191 = arith.constant 1.000000e+00 : f32
    %312 = vector.broadcast %cst_191 : f32 to vector<8x256xf32>
    %313 = arith.subf %312, %308 : vector<8x256xf32>
    %314 = arith.mulf %313, %311 : vector<8x256xf32>
    %315 = arith.mulf %308, %266 : vector<8x256xf32>
    %316 = arith.addf %314, %315 : vector<8x256xf32>
    %317 = vector.extract_strided_slice %316 {offsets = [0, 0], sizes = [8, 128], strides = [1, 1]} : vector<8x256xf32> to vector<8x128xf32>
    %c3_192 = arith.constant 3 : index
    %c0_193 = arith.constant 0 : index
    %c0_194 = arith.constant 0 : index
    %318 = vector.load %arg12[%c3_192, %c0_193, %c0_194] : memref<8x8x256xf32, #tpu.memory_space<vmem>>, vector<1x8x128xf32>
    %319 = vector.shape_cast %318 : vector<1x8x128xf32> to vector<8x128xf32>
    %320 = vector.shape_cast %317 : vector<8x128xf32> to vector<1x8x128xf32>
    tpu.vector_store %arg12[%c3_192, %c0_193, %c0_194], %320 {strides = array<i32>} : memref<8x8x256xf32, #tpu.memory_space<vmem>>, vector<1x8x128xf32>,
    %321 = vector.extract_strided_slice %316 {offsets = [0, 128], sizes = [8, 128], strides = [1, 1]} : vector<8x256xf32> to vector<8x128xf32>
    %c4_195 = arith.constant 4 : index
    %c0_196 = arith.constant 0 : index
    %c128_197 = arith.constant 128 : index
    %322 = vector.load %arg12[%c4_195, %c0_196, %c128_197] : memref<8x8x256xf32, #tpu.memory_space<vmem>>, vector<1x8x128xf32>
    %323 = vector.shape_cast %322 : vector<1x8x128xf32> to vector<8x128xf32>
    %324 = vector.shape_cast %321 : vector<8x128xf32> to vector<1x8x128xf32>
    tpu.vector_store %arg12[%c4_195, %c0_196, %c128_197], %324 {strides = array<i32>} : memref<8x8x256xf32, #tpu.memory_space<vmem>>, vector<1x8x128xf32>,
    %c4_198 = arith.constant 4 : index
    %c0_199 = arith.constant 0 : index
    %c0_200 = arith.constant 0 : index
    %325 = vector.load %arg13[%c4_198, %c0_199, %c0_200] : memref<8x8x768xf32, #tpu.memory_space<vmem>>, vector<1x8x768xf32>
    %326 = vector.shape_cast %325 : vector<1x8x768xf32> to vector<8x768xf32>
    %c3_201 = arith.constant 3 : index
    %c0_202 = arith.constant 0 : index
    %c0_203 = arith.constant 0 : index
    %327 = vector.load %arg13[%c3_201, %c0_202, %c0_203] : memref<8x8x768xf32, #tpu.memory_space<vmem>>, vector<1x8x768xf32>
    %328 = vector.shape_cast %327 : vector<1x8x768xf32> to vector<8x768xf32>
    %329 = vector.extract_strided_slice %326 {offsets = [0, 0], sizes = [8, 128], strides = [1, 1]} : vector<8x768xf32> to vector<8x128xf32>
    %330 = vector.extract_strided_slice %328 {offsets = [0, 128], sizes = [8, 128], strides = [1, 1]} : vector<8x768xf32> to vector<8x128xf32>
    %331 = tpu.concatenate %329, %330 in 1 : vector<8x128xf32>, vector<8x128xf32> -> vector<8x256xf32>
    %332 = vector.extract_strided_slice %326 {offsets = [0, 256], sizes = [8, 128], strides = [1, 1]} : vector<8x768xf32> to vector<8x128xf32>
    %333 = vector.extract_strided_slice %328 {offsets = [0, 384], sizes = [8, 128], strides = [1, 1]} : vector<8x768xf32> to vector<8x128xf32>
    %334 = tpu.concatenate %332, %333 in 1 : vector<8x128xf32>, vector<8x128xf32> -> vector<8x256xf32>
    %335 = vector.extract_strided_slice %326 {offsets = [0, 512], sizes = [8, 128], strides = [1, 1]} : vector<8x768xf32> to vector<8x128xf32>
    %336 = vector.extract_strided_slice %328 {offsets = [0, 640], sizes = [8, 128], strides = [1, 1]} : vector<8x768xf32> to vector<8x128xf32>
    %337 = tpu.concatenate %335, %336 in 1 : vector<8x128xf32>, vector<8x128xf32> -> vector<8x256xf32>
    %338 = arith.truncf %316 : vector<8x256xf32> to vector<8x256xbf16>
    %c0_204 = arith.constant 0 : index
    %c0_205 = arith.constant 0 : index
    %339 = vector.load %arg3[%c0_204, %c0_205] : memref<256x768xbf16, #tpu.memory_space<vmem>>, vector<256x768xbf16>
    %cst_206 = arith.constant dense<0.000000e+00> : vector<8x768xf32>
    %340 = tpu.matmul %338, %339, %cst_206 {dimension_numbers = #tpu.dot_dimension_numbers<[1], [0], [0], [1], [0, 0, 1, 1], [], []>} : vector<8x256xbf16>, vector<256x768xbf16>, vector<8x768xf32> -> vector<8x768xf32>
    %c0_207 = arith.constant 0 : index
    %c0_208 = arith.constant 0 : index
    %341 = vector.load %arg5[%c0_207, %c0_208] : memref<1x768xf32, #tpu.memory_space<vmem>>, vector<1x768xf32>
    %342 = vector.broadcast %341 : vector<1x768xf32> to vector<8x768xf32>
    %343 = arith.addf %340, %342 : vector<8x768xf32>
    %344 = vector.extract_strided_slice %343 {offsets = [0, 0], sizes = [8, 256], strides = [1, 1]} : vector<8x768xf32> to vector<8x256xf32>
    %345 = vector.extract_strided_slice %343 {offsets = [0, 256], sizes = [8, 256], strides = [1, 1]} : vector<8x768xf32> to vector<8x256xf32>
    %346 = vector.extract_strided_slice %343 {offsets = [0, 512], sizes = [8, 256], strides = [1, 1]} : vector<8x768xf32> to vector<8x256xf32>
    %347 = arith.addf %331, %344 : vector<8x256xf32>
    %348 = arith.negf %347 : vector<8x256xf32>
    %349 = math.exp %348 : vector<8x256xf32>
    %cst_209 = arith.constant 1.000000e+00 : f32
    %350 = vector.broadcast %cst_209 : f32 to vector<8x256xf32>
    %351 = arith.addf %350, %349 : vector<8x256xf32>
    %352 = arith.divf %350, %351 : vector<8x256xf32>
    %353 = arith.addf %334, %345 : vector<8x256xf32>
    %354 = arith.negf %353 : vector<8x256xf32>
    %355 = math.exp %354 : vector<8x256xf32>
    %cst_210 = arith.constant 1.000000e+00 : f32
    %356 = vector.broadcast %cst_210 : f32 to vector<8x256xf32>
    %357 = arith.addf %356, %355 : vector<8x256xf32>
    %358 = arith.divf %356, %357 : vector<8x256xf32>
    %359 = arith.mulf %352, %346 : vector<8x256xf32>
    %360 = arith.addf %337, %359 : vector<8x256xf32>
    %361 = math.tanh %360 : vector<8x256xf32>
    %cst_211 = arith.constant 1.000000e+00 : f32
    %362 = vector.broadcast %cst_211 : f32 to vector<8x256xf32>
    %363 = arith.subf %362, %358 : vector<8x256xf32>
    %364 = arith.mulf %363, %361 : vector<8x256xf32>
    %365 = arith.mulf %358, %316 : vector<8x256xf32>
    %366 = arith.addf %364, %365 : vector<8x256xf32>
    %367 = vector.extract_strided_slice %366 {offsets = [0, 0], sizes = [8, 128], strides = [1, 1]} : vector<8x256xf32> to vector<8x128xf32>
    %c4_212 = arith.constant 4 : index
    %c0_213 = arith.constant 0 : index
    %c0_214 = arith.constant 0 : index
    %368 = vector.load %arg12[%c4_212, %c0_213, %c0_214] : memref<8x8x256xf32, #tpu.memory_space<vmem>>, vector<1x8x128xf32>
    %369 = vector.shape_cast %368 : vector<1x8x128xf32> to vector<8x128xf32>
    %370 = vector.shape_cast %367 : vector<8x128xf32> to vector<1x8x128xf32>
    tpu.vector_store %arg12[%c4_212, %c0_213, %c0_214], %370 {strides = array<i32>} : memref<8x8x256xf32, #tpu.memory_space<vmem>>, vector<1x8x128xf32>,
    %371 = vector.extract_strided_slice %366 {offsets = [0, 128], sizes = [8, 128], strides = [1, 1]} : vector<8x256xf32> to vector<8x128xf32>
    %c3_215 = arith.constant 3 : index
    %c0_216 = arith.constant 0 : index
    %c128_217 = arith.constant 128 : index
    %372 = vector.load %arg12[%c3_215, %c0_216, %c128_217] : memref<8x8x256xf32, #tpu.memory_space<vmem>>, vector<1x8x128xf32>
    %373 = vector.shape_cast %372 : vector<1x8x128xf32> to vector<8x128xf32>
    %374 = vector.shape_cast %371 : vector<8x128xf32> to vector<1x8x128xf32>
    tpu.vector_store %arg12[%c3_215, %c0_216, %c128_217], %374 {strides = array<i32>} : memref<8x8x256xf32, #tpu.memory_space<vmem>>, vector<1x8x128xf32>,
    %c5_218 = arith.constant 5 : index
    %c0_219 = arith.constant 0 : index
    %c0_220 = arith.constant 0 : index
    %375 = vector.load %arg13[%c5_218, %c0_219, %c0_220] : memref<8x8x768xf32, #tpu.memory_space<vmem>>, vector<1x8x768xf32>
    %376 = vector.shape_cast %375 : vector<1x8x768xf32> to vector<8x768xf32>
    %c2_221 = arith.constant 2 : index
    %c0_222 = arith.constant 0 : index
    %c0_223 = arith.constant 0 : index
    %377 = vector.load %arg13[%c2_221, %c0_222, %c0_223] : memref<8x8x768xf32, #tpu.memory_space<vmem>>, vector<1x8x768xf32>
    %378 = vector.shape_cast %377 : vector<1x8x768xf32> to vector<8x768xf32>
    %379 = vector.extract_strided_slice %376 {offsets = [0, 0], sizes = [8, 128], strides = [1, 1]} : vector<8x768xf32> to vector<8x128xf32>
    %380 = vector.extract_strided_slice %378 {offsets = [0, 128], sizes = [8, 128], strides = [1, 1]} : vector<8x768xf32> to vector<8x128xf32>
    %381 = tpu.concatenate %379, %380 in 1 : vector<8x128xf32>, vector<8x128xf32> -> vector<8x256xf32>
    %382 = vector.extract_strided_slice %376 {offsets = [0, 256], sizes = [8, 128], strides = [1, 1]} : vector<8x768xf32> to vector<8x128xf32>
    %383 = vector.extract_strided_slice %378 {offsets = [0, 384], sizes = [8, 128], strides = [1, 1]} : vector<8x768xf32> to vector<8x128xf32>
    %384 = tpu.concatenate %382, %383 in 1 : vector<8x128xf32>, vector<8x128xf32> -> vector<8x256xf32>
    %385 = vector.extract_strided_slice %376 {offsets = [0, 512], sizes = [8, 128], strides = [1, 1]} : vector<8x768xf32> to vector<8x128xf32>
    %386 = vector.extract_strided_slice %378 {offsets = [0, 640], sizes = [8, 128], strides = [1, 1]} : vector<8x768xf32> to vector<8x128xf32>
    %387 = tpu.concatenate %385, %386 in 1 : vector<8x128xf32>, vector<8x128xf32> -> vector<8x256xf32>
    %388 = arith.truncf %366 : vector<8x256xf32> to vector<8x256xbf16>
    %c0_224 = arith.constant 0 : index
    %c0_225 = arith.constant 0 : index
    %389 = vector.load %arg3[%c0_224, %c0_225] : memref<256x768xbf16, #tpu.memory_space<vmem>>, vector<256x768xbf16>
    %cst_226 = arith.constant dense<0.000000e+00> : vector<8x768xf32>
    %390 = tpu.matmul %388, %389, %cst_226 {dimension_numbers = #tpu.dot_dimension_numbers<[1], [0], [0], [1], [0, 0, 1, 1], [], []>} : vector<8x256xbf16>, vector<256x768xbf16>, vector<8x768xf32> -> vector<8x768xf32>
    %c0_227 = arith.constant 0 : index
    %c0_228 = arith.constant 0 : index
    %391 = vector.load %arg5[%c0_227, %c0_228] : memref<1x768xf32, #tpu.memory_space<vmem>>, vector<1x768xf32>
    %392 = vector.broadcast %391 : vector<1x768xf32> to vector<8x768xf32>
    %393 = arith.addf %390, %392 : vector<8x768xf32>
    %394 = vector.extract_strided_slice %393 {offsets = [0, 0], sizes = [8, 256], strides = [1, 1]} : vector<8x768xf32> to vector<8x256xf32>
    %395 = vector.extract_strided_slice %393 {offsets = [0, 256], sizes = [8, 256], strides = [1, 1]} : vector<8x768xf32> to vector<8x256xf32>
    %396 = vector.extract_strided_slice %393 {offsets = [0, 512], sizes = [8, 256], strides = [1, 1]} : vector<8x768xf32> to vector<8x256xf32>
    %397 = arith.addf %381, %394 : vector<8x256xf32>
    %398 = arith.negf %397 : vector<8x256xf32>
    %399 = math.exp %398 : vector<8x256xf32>
    %cst_229 = arith.constant 1.000000e+00 : f32
    %400 = vector.broadcast %cst_229 : f32 to vector<8x256xf32>
    %401 = arith.addf %400, %399 : vector<8x256xf32>
    %402 = arith.divf %400, %401 : vector<8x256xf32>
    %403 = arith.addf %384, %395 : vector<8x256xf32>
    %404 = arith.negf %403 : vector<8x256xf32>
    %405 = math.exp %404 : vector<8x256xf32>
    %cst_230 = arith.constant 1.000000e+00 : f32
    %406 = vector.broadcast %cst_230 : f32 to vector<8x256xf32>
    %407 = arith.addf %406, %405 : vector<8x256xf32>
    %408 = arith.divf %406, %407 : vector<8x256xf32>
    %409 = arith.mulf %402, %396 : vector<8x256xf32>
    %410 = arith.addf %387, %409 : vector<8x256xf32>
    %411 = math.tanh %410 : vector<8x256xf32>
    %cst_231 = arith.constant 1.000000e+00 : f32
    %412 = vector.broadcast %cst_231 : f32 to vector<8x256xf32>
    %413 = arith.subf %412, %408 : vector<8x256xf32>
    %414 = arith.mulf %413, %411 : vector<8x256xf32>
    %415 = arith.mulf %408, %366 : vector<8x256xf32>
    %416 = arith.addf %414, %415 : vector<8x256xf32>
    %417 = vector.extract_strided_slice %416 {offsets = [0, 0], sizes = [8, 128], strides = [1, 1]} : vector<8x256xf32> to vector<8x128xf32>
    %c5_232 = arith.constant 5 : index
    %c0_233 = arith.constant 0 : index
    %c0_234 = arith.constant 0 : index
    %418 = vector.load %arg12[%c5_232, %c0_233, %c0_234] : memref<8x8x256xf32, #tpu.memory_space<vmem>>, vector<1x8x128xf32>
    %419 = vector.shape_cast %418 : vector<1x8x128xf32> to vector<8x128xf32>
    %420 = vector.shape_cast %417 : vector<8x128xf32> to vector<1x8x128xf32>
    tpu.vector_store %arg12[%c5_232, %c0_233, %c0_234], %420 {strides = array<i32>} : memref<8x8x256xf32, #tpu.memory_space<vmem>>, vector<1x8x128xf32>,
    %421 = vector.extract_strided_slice %416 {offsets = [0, 128], sizes = [8, 128], strides = [1, 1]} : vector<8x256xf32> to vector<8x128xf32>
    %c2_235 = arith.constant 2 : index
    %c0_236 = arith.constant 0 : index
    %c128_237 = arith.constant 128 : index
    %422 = vector.load %arg12[%c2_235, %c0_236, %c128_237] : memref<8x8x256xf32, #tpu.memory_space<vmem>>, vector<1x8x128xf32>
    %423 = vector.shape_cast %422 : vector<1x8x128xf32> to vector<8x128xf32>
    %424 = vector.shape_cast %421 : vector<8x128xf32> to vector<1x8x128xf32>
    tpu.vector_store %arg12[%c2_235, %c0_236, %c128_237], %424 {strides = array<i32>} : memref<8x8x256xf32, #tpu.memory_space<vmem>>, vector<1x8x128xf32>,
    %c6_238 = arith.constant 6 : index
    %c0_239 = arith.constant 0 : index
    %c0_240 = arith.constant 0 : index
    %425 = vector.load %arg13[%c6_238, %c0_239, %c0_240] : memref<8x8x768xf32, #tpu.memory_space<vmem>>, vector<1x8x768xf32>
    %426 = vector.shape_cast %425 : vector<1x8x768xf32> to vector<8x768xf32>
    %c1_241 = arith.constant 1 : index
    %c0_242 = arith.constant 0 : index
    %c0_243 = arith.constant 0 : index
    %427 = vector.load %arg13[%c1_241, %c0_242, %c0_243] : memref<8x8x768xf32, #tpu.memory_space<vmem>>, vector<1x8x768xf32>
    %428 = vector.shape_cast %427 : vector<1x8x768xf32> to vector<8x768xf32>
    %429 = vector.extract_strided_slice %426 {offsets = [0, 0], sizes = [8, 128], strides = [1, 1]} : vector<8x768xf32> to vector<8x128xf32>
    %430 = vector.extract_strided_slice %428 {offsets = [0, 128], sizes = [8, 128], strides = [1, 1]} : vector<8x768xf32> to vector<8x128xf32>
    %431 = tpu.concatenate %429, %430 in 1 : vector<8x128xf32>, vector<8x128xf32> -> vector<8x256xf32>
    %432 = vector.extract_strided_slice %426 {offsets = [0, 256], sizes = [8, 128], strides = [1, 1]} : vector<8x768xf32> to vector<8x128xf32>
    %433 = vector.extract_strided_slice %428 {offsets = [0, 384], sizes = [8, 128], strides = [1, 1]} : vector<8x768xf32> to vector<8x128xf32>
    %434 = tpu.concatenate %432, %433 in 1 : vector<8x128xf32>, vector<8x128xf32> -> vector<8x256xf32>
    %435 = vector.extract_strided_slice %426 {offsets = [0, 512], sizes = [8, 128], strides = [1, 1]} : vector<8x768xf32> to vector<8x128xf32>
    %436 = vector.extract_strided_slice %428 {offsets = [0, 640], sizes = [8, 128], strides = [1, 1]} : vector<8x768xf32> to vector<8x128xf32>
    %437 = tpu.concatenate %435, %436 in 1 : vector<8x128xf32>, vector<8x128xf32> -> vector<8x256xf32>
    %438 = arith.truncf %416 : vector<8x256xf32> to vector<8x256xbf16>
    %c0_244 = arith.constant 0 : index
    %c0_245 = arith.constant 0 : index
    %439 = vector.load %arg3[%c0_244, %c0_245] : memref<256x768xbf16, #tpu.memory_space<vmem>>, vector<256x768xbf16>
    %cst_246 = arith.constant dense<0.000000e+00> : vector<8x768xf32>
    %440 = tpu.matmul %438, %439, %cst_246 {dimension_numbers = #tpu.dot_dimension_numbers<[1], [0], [0], [1], [0, 0, 1, 1], [], []>} : vector<8x256xbf16>, vector<256x768xbf16>, vector<8x768xf32> -> vector<8x768xf32>
    %c0_247 = arith.constant 0 : index
    %c0_248 = arith.constant 0 : index
    %441 = vector.load %arg5[%c0_247, %c0_248] : memref<1x768xf32, #tpu.memory_space<vmem>>, vector<1x768xf32>
    %442 = vector.broadcast %441 : vector<1x768xf32> to vector<8x768xf32>
    %443 = arith.addf %440, %442 : vector<8x768xf32>
    %444 = vector.extract_strided_slice %443 {offsets = [0, 0], sizes = [8, 256], strides = [1, 1]} : vector<8x768xf32> to vector<8x256xf32>
    %445 = vector.extract_strided_slice %443 {offsets = [0, 256], sizes = [8, 256], strides = [1, 1]} : vector<8x768xf32> to vector<8x256xf32>
    %446 = vector.extract_strided_slice %443 {offsets = [0, 512], sizes = [8, 256], strides = [1, 1]} : vector<8x768xf32> to vector<8x256xf32>
    %447 = arith.addf %431, %444 : vector<8x256xf32>
    %448 = arith.negf %447 : vector<8x256xf32>
    %449 = math.exp %448 : vector<8x256xf32>
    %cst_249 = arith.constant 1.000000e+00 : f32
    %450 = vector.broadcast %cst_249 : f32 to vector<8x256xf32>
    %451 = arith.addf %450, %449 : vector<8x256xf32>
    %452 = arith.divf %450, %451 : vector<8x256xf32>
    %453 = arith.addf %434, %445 : vector<8x256xf32>
    %454 = arith.negf %453 : vector<8x256xf32>
    %455 = math.exp %454 : vector<8x256xf32>
    %cst_250 = arith.constant 1.000000e+00 : f32
    %456 = vector.broadcast %cst_250 : f32 to vector<8x256xf32>
    %457 = arith.addf %456, %455 : vector<8x256xf32>
    %458 = arith.divf %456, %457 : vector<8x256xf32>
    %459 = arith.mulf %452, %446 : vector<8x256xf32>
    %460 = arith.addf %437, %459 : vector<8x256xf32>
    %461 = math.tanh %460 : vector<8x256xf32>
    %cst_251 = arith.constant 1.000000e+00 : f32
    %462 = vector.broadcast %cst_251 : f32 to vector<8x256xf32>
    %463 = arith.subf %462, %458 : vector<8x256xf32>
    %464 = arith.mulf %463, %461 : vector<8x256xf32>
    %465 = arith.mulf %458, %416 : vector<8x256xf32>
    %466 = arith.addf %464, %465 : vector<8x256xf32>
    %467 = vector.extract_strided_slice %466 {offsets = [0, 0], sizes = [8, 128], strides = [1, 1]} : vector<8x256xf32> to vector<8x128xf32>
    %c6_252 = arith.constant 6 : index
    %c0_253 = arith.constant 0 : index
    %c0_254 = arith.constant 0 : index
    %468 = vector.load %arg12[%c6_252, %c0_253, %c0_254] : memref<8x8x256xf32, #tpu.memory_space<vmem>>, vector<1x8x128xf32>
    %469 = vector.shape_cast %468 : vector<1x8x128xf32> to vector<8x128xf32>
    %470 = vector.shape_cast %467 : vector<8x128xf32> to vector<1x8x128xf32>
    tpu.vector_store %arg12[%c6_252, %c0_253, %c0_254], %470 {strides = array<i32>} : memref<8x8x256xf32, #tpu.memory_space<vmem>>, vector<1x8x128xf32>,
    %471 = vector.extract_strided_slice %466 {offsets = [0, 128], sizes = [8, 128], strides = [1, 1]} : vector<8x256xf32> to vector<8x128xf32>
    %c1_255 = arith.constant 1 : index
    %c0_256 = arith.constant 0 : index
    %c128_257 = arith.constant 128 : index
    %472 = vector.load %arg12[%c1_255, %c0_256, %c128_257] : memref<8x8x256xf32, #tpu.memory_space<vmem>>, vector<1x8x128xf32>
    %473 = vector.shape_cast %472 : vector<1x8x128xf32> to vector<8x128xf32>
    %474 = vector.shape_cast %471 : vector<8x128xf32> to vector<1x8x128xf32>
    tpu.vector_store %arg12[%c1_255, %c0_256, %c128_257], %474 {strides = array<i32>} : memref<8x8x256xf32, #tpu.memory_space<vmem>>, vector<1x8x128xf32>,
    %c7_258 = arith.constant 7 : index
    %c0_259 = arith.constant 0 : index
    %c0_260 = arith.constant 0 : index
    %475 = vector.load %arg13[%c7_258, %c0_259, %c0_260] : memref<8x8x768xf32, #tpu.memory_space<vmem>>, vector<1x8x768xf32>
    %476 = vector.shape_cast %475 : vector<1x8x768xf32> to vector<8x768xf32>
    %c0_261 = arith.constant 0 : index
    %c0_262 = arith.constant 0 : index
    %c0_263 = arith.constant 0 : index
    %477 = vector.load %arg13[%c0_261, %c0_262, %c0_263] : memref<8x8x768xf32, #tpu.memory_space<vmem>>, vector<1x8x768xf32>
    %478 = vector.shape_cast %477 : vector<1x8x768xf32> to vector<8x768xf32>
    %479 = vector.extract_strided_slice %476 {offsets = [0, 0], sizes = [8, 128], strides = [1, 1]} : vector<8x768xf32> to vector<8x128xf32>
    %480 = vector.extract_strided_slice %478 {offsets = [0, 128], sizes = [8, 128], strides = [1, 1]} : vector<8x768xf32> to vector<8x128xf32>
    %481 = tpu.concatenate %479, %480 in 1 : vector<8x128xf32>, vector<8x128xf32> -> vector<8x256xf32>
    %482 = vector.extract_strided_slice %476 {offsets = [0, 256], sizes = [8, 128], strides = [1, 1]} : vector<8x768xf32> to vector<8x128xf32>
    %483 = vector.extract_strided_slice %478 {offsets = [0, 384], sizes = [8, 128], strides = [1, 1]} : vector<8x768xf32> to vector<8x128xf32>
    %484 = tpu.concatenate %482, %483 in 1 : vector<8x128xf32>, vector<8x128xf32> -> vector<8x256xf32>
    %485 = vector.extract_strided_slice %476 {offsets = [0, 512], sizes = [8, 128], strides = [1, 1]} : vector<8x768xf32> to vector<8x128xf32>
    %486 = vector.extract_strided_slice %478 {offsets = [0, 640], sizes = [8, 128], strides = [1, 1]} : vector<8x768xf32> to vector<8x128xf32>
    %487 = tpu.concatenate %485, %486 in 1 : vector<8x128xf32>, vector<8x128xf32> -> vector<8x256xf32>
    %488 = arith.truncf %466 : vector<8x256xf32> to vector<8x256xbf16>
    %c0_264 = arith.constant 0 : index
    %c0_265 = arith.constant 0 : index
    %489 = vector.load %arg3[%c0_264, %c0_265] : memref<256x768xbf16, #tpu.memory_space<vmem>>, vector<256x768xbf16>
    %cst_266 = arith.constant dense<0.000000e+00> : vector<8x768xf32>
    %490 = tpu.matmul %488, %489, %cst_266 {dimension_numbers = #tpu.dot_dimension_numbers<[1], [0], [0], [1], [0, 0, 1, 1], [], []>} : vector<8x256xbf16>, vector<256x768xbf16>, vector<8x768xf32> -> vector<8x768xf32>
    %c0_267 = arith.constant 0 : index
    %c0_268 = arith.constant 0 : index
    %491 = vector.load %arg5[%c0_267, %c0_268] : memref<1x768xf32, #tpu.memory_space<vmem>>, vector<1x768xf32>
    %492 = vector.broadcast %491 : vector<1x768xf32> to vector<8x768xf32>
    %493 = arith.addf %490, %492 : vector<8x768xf32>
    %494 = vector.extract_strided_slice %493 {offsets = [0, 0], sizes = [8, 256], strides = [1, 1]} : vector<8x768xf32> to vector<8x256xf32>
    %495 = vector.extract_strided_slice %493 {offsets = [0, 256], sizes = [8, 256], strides = [1, 1]} : vector<8x768xf32> to vector<8x256xf32>
    %496 = vector.extract_strided_slice %493 {offsets = [0, 512], sizes = [8, 256], strides = [1, 1]} : vector<8x768xf32> to vector<8x256xf32>
    %497 = arith.addf %481, %494 : vector<8x256xf32>
    %498 = arith.negf %497 : vector<8x256xf32>
    %499 = math.exp %498 : vector<8x256xf32>
    %cst_269 = arith.constant 1.000000e+00 : f32
    %500 = vector.broadcast %cst_269 : f32 to vector<8x256xf32>
    %501 = arith.addf %500, %499 : vector<8x256xf32>
    %502 = arith.divf %500, %501 : vector<8x256xf32>
    %503 = arith.addf %484, %495 : vector<8x256xf32>
    %504 = arith.negf %503 : vector<8x256xf32>
    %505 = math.exp %504 : vector<8x256xf32>
    %cst_270 = arith.constant 1.000000e+00 : f32
    %506 = vector.broadcast %cst_270 : f32 to vector<8x256xf32>
    %507 = arith.addf %506, %505 : vector<8x256xf32>
    %508 = arith.divf %506, %507 : vector<8x256xf32>
    %509 = arith.mulf %502, %496 : vector<8x256xf32>
    %510 = arith.addf %487, %509 : vector<8x256xf32>
    %511 = math.tanh %510 : vector<8x256xf32>
    %cst_271 = arith.constant 1.000000e+00 : f32
    %512 = vector.broadcast %cst_271 : f32 to vector<8x256xf32>
    %513 = arith.subf %512, %508 : vector<8x256xf32>
    %514 = arith.mulf %513, %511 : vector<8x256xf32>
    %515 = arith.mulf %508, %466 : vector<8x256xf32>
    %516 = arith.addf %514, %515 : vector<8x256xf32>
    %517 = vector.extract_strided_slice %516 {offsets = [0, 0], sizes = [8, 128], strides = [1, 1]} : vector<8x256xf32> to vector<8x128xf32>
    %c7_272 = arith.constant 7 : index
    %c0_273 = arith.constant 0 : index
    %c0_274 = arith.constant 0 : index
    %518 = vector.load %arg12[%c7_272, %c0_273, %c0_274] : memref<8x8x256xf32, #tpu.memory_space<vmem>>, vector<1x8x128xf32>
    %519 = vector.shape_cast %518 : vector<1x8x128xf32> to vector<8x128xf32>
    %520 = vector.shape_cast %517 : vector<8x128xf32> to vector<1x8x128xf32>
    tpu.vector_store %arg12[%c7_272, %c0_273, %c0_274], %520 {strides = array<i32>} : memref<8x8x256xf32, #tpu.memory_space<vmem>>, vector<1x8x128xf32>,
    %521 = vector.extract_strided_slice %516 {offsets = [0, 128], sizes = [8, 128], strides = [1, 1]} : vector<8x256xf32> to vector<8x128xf32>
    %c0_275 = arith.constant 0 : index
    %c0_276 = arith.constant 0 : index
    %c128_277 = arith.constant 128 : index
    %522 = vector.load %arg12[%c0_275, %c0_276, %c128_277] : memref<8x8x256xf32, #tpu.memory_space<vmem>>, vector<1x8x128xf32>
    %523 = vector.shape_cast %522 : vector<1x8x128xf32> to vector<8x128xf32>
    %524 = vector.shape_cast %521 : vector<8x128xf32> to vector<1x8x128xf32>
    tpu.vector_store %arg12[%c0_275, %c0_276, %c128_277], %524 {strides = array<i32>} : memref<8x8x256xf32, #tpu.memory_space<vmem>>, vector<1x8x128xf32>,
    %525 = vector.extract_strided_slice %516 {offsets = [0, 0], sizes = [2, 32], strides = [1, 1]} : vector<8x256xf32> to vector<2x32xf32>
    %c0_278 = arith.constant 0 : index
    %c0_279 = arith.constant 0 : index
    %c0_280 = arith.constant 0 : index
    %526 = vector.load %arg11[%c0_278, %c0_279, %c0_280] : memref<4x2x32xf32, #tpu.memory_space<vmem>>, vector<1x2x32xf32>
    %527 = vector.shape_cast %526 : vector<1x2x32xf32> to vector<2x32xf32>
    %528 = vector.shape_cast %525 : vector<2x32xf32> to vector<1x2x32xf32>
    tpu.vector_store %arg11[%c0_278, %c0_279, %c0_280], %528 {strides = array<i32>} : memref<4x2x32xf32, #tpu.memory_space<vmem>>, vector<1x2x32xf32>,
    %529 = vector.extract_strided_slice %516 {offsets = [0, 128], sizes = [2, 32], strides = [1, 1]} : vector<8x256xf32> to vector<2x32xf32>
    %c1_281 = arith.constant 1 : index
    %c0_282 = arith.constant 0 : index
    %c0_283 = arith.constant 0 : index
    %530 = vector.load %arg11[%c1_281, %c0_282, %c0_283] : memref<4x2x32xf32, #tpu.memory_space<vmem>>, vector<1x2x32xf32>
    %531 = vector.shape_cast %530 : vector<1x2x32xf32> to vector<2x32xf32>
    %532 = vector.shape_cast %529 : vector<2x32xf32> to vector<1x2x32xf32>
    tpu.vector_store %arg11[%c1_281, %c0_282, %c0_283], %532 {strides = array<i32>} : memref<4x2x32xf32, #tpu.memory_space<vmem>>, vector<1x2x32xf32>,
    %c0_284 = arith.constant 0 : index
    %c0_285 = arith.constant 0 : index
    %c0_286 = arith.constant 0 : index
    %533 = vector.load %arg12[%c0_284, %c0_285, %c0_286] : memref<8x8x256xf32, #tpu.memory_space<vmem>>, vector<8x8x256xf32>
    %534 = vector.shape_cast %533 : vector<8x8x256xf32> to vector<64x256xf32>
    %535 = arith.truncf %534 : vector<64x256xf32> to vector<64x256xbf16>
    %c0_287 = arith.constant 0 : index
    %c0_288 = arith.constant 0 : index
    %536 = vector.load %arg6[%c0_287, %c0_288] : memref<256x768xbf16, #tpu.memory_space<vmem>>, vector<256x768xbf16>
    %cst_289 = arith.constant dense<0.000000e+00> : vector<64x768xf32>
    %537 = tpu.matmul %535, %536, %cst_289 {dimension_numbers = #tpu.dot_dimension_numbers<[1], [0], [0], [1], [0, 0, 1, 1], [], []>} : vector<64x256xbf16>, vector<256x768xbf16>, vector<64x768xf32> -> vector<64x768xf32>
    %c0_290 = arith.constant 0 : index
    %c0_291 = arith.constant 0 : index
    %538 = vector.load %arg8[%c0_290, %c0_291] : memref<1x768xf32, #tpu.memory_space<vmem>>, vector<1x768xf32>
    %539 = vector.broadcast %538 : vector<1x768xf32> to vector<64x768xf32>
    %540 = arith.addf %537, %539 : vector<64x768xf32>
    %541 = vector.shape_cast %540 : vector<64x768xf32> to vector<8x8x768xf32>
    %c0_292 = arith.constant 0 : index
    %c0_293 = arith.constant 0 : index
    %c0_294 = arith.constant 0 : index
    %542 = vector.load %arg13[%c0_292, %c0_293, %c0_294] : memref<8x8x768xf32, #tpu.memory_space<vmem>>, vector<8x8x768xf32>
    tpu.vector_store %arg13[%c0_292, %c0_293, %c0_294], %541 {strides = array<i32>} : memref<8x8x768xf32, #tpu.memory_space<vmem>>, vector<8x8x768xf32>,
    %cst_295 = arith.constant 0.000000e+00 : f32
    %543 = vector.broadcast %cst_295 : f32 to vector<8x256xf32>
    %c0_296 = arith.constant 0 : index
    %c0_297 = arith.constant 0 : index
    %c0_298 = arith.constant 0 : index
    %544 = vector.load %arg13[%c0_296, %c0_297, %c0_298] : memref<8x8x768xf32, #tpu.memory_space<vmem>>, vector<1x8x768xf32>
    %545 = vector.shape_cast %544 : vector<1x8x768xf32> to vector<8x768xf32>
    %c7_299 = arith.constant 7 : index
    %c0_300 = arith.constant 0 : index
    %c0_301 = arith.constant 0 : index
    %546 = vector.load %arg13[%c7_299, %c0_300, %c0_301] : memref<8x8x768xf32, #tpu.memory_space<vmem>>, vector<1x8x768xf32>
    %547 = vector.shape_cast %546 : vector<1x8x768xf32> to vector<8x768xf32>
    %548 = vector.extract_strided_slice %545 {offsets = [0, 0], sizes = [8, 128], strides = [1, 1]} : vector<8x768xf32> to vector<8x128xf32>
    %549 = vector.extract_strided_slice %547 {offsets = [0, 128], sizes = [8, 128], strides = [1, 1]} : vector<8x768xf32> to vector<8x128xf32>
    %550 = tpu.concatenate %548, %549 in 1 : vector<8x128xf32>, vector<8x128xf32> -> vector<8x256xf32>
    %551 = vector.extract_strided_slice %545 {offsets = [0, 256], sizes = [8, 128], strides = [1, 1]} : vector<8x768xf32> to vector<8x128xf32>
    %552 = vector.extract_strided_slice %547 {offsets = [0, 384], sizes = [8, 128], strides = [1, 1]} : vector<8x768xf32> to vector<8x128xf32>
    %553 = tpu.concatenate %551, %552 in 1 : vector<8x128xf32>, vector<8x128xf32> -> vector<8x256xf32>
    %554 = vector.extract_strided_slice %545 {offsets = [0, 512], sizes = [8, 128], strides = [1, 1]} : vector<8x768xf32> to vector<8x128xf32>
    %555 = vector.extract_strided_slice %547 {offsets = [0, 640], sizes = [8, 128], strides = [1, 1]} : vector<8x768xf32> to vector<8x128xf32>
    %556 = tpu.concatenate %554, %555 in 1 : vector<8x128xf32>, vector<8x128xf32> -> vector<8x256xf32>
    %557 = arith.truncf %543 : vector<8x256xf32> to vector<8x256xbf16>
    %c0_302 = arith.constant 0 : index
    %c0_303 = arith.constant 0 : index
    %558 = vector.load %arg7[%c0_302, %c0_303] : memref<256x768xbf16, #tpu.memory_space<vmem>>, vector<256x768xbf16>
    %cst_304 = arith.constant dense<0.000000e+00> : vector<8x768xf32>
    %559 = tpu.matmul %557, %558, %cst_304 {dimension_numbers = #tpu.dot_dimension_numbers<[1], [0], [0], [1], [0, 0, 1, 1], [], []>} : vector<8x256xbf16>, vector<256x768xbf16>, vector<8x768xf32> -> vector<8x768xf32>
    %c0_305 = arith.constant 0 : index
    %c0_306 = arith.constant 0 : index
    %560 = vector.load %arg9[%c0_305, %c0_306] : memref<1x768xf32, #tpu.memory_space<vmem>>, vector<1x768xf32>
    %561 = vector.broadcast %560 : vector<1x768xf32> to vector<8x768xf32>
    %562 = arith.addf %559, %561 : vector<8x768xf32>
    %563 = vector.extract_strided_slice %562 {offsets = [0, 0], sizes = [8, 256], strides = [1, 1]} : vector<8x768xf32> to vector<8x256xf32>
    %564 = vector.extract_strided_slice %562 {offsets = [0, 256], sizes = [8, 256], strides = [1, 1]} : vector<8x768xf32> to vector<8x256xf32>
    %565 = vector.extract_strided_slice %562 {offsets = [0, 512], sizes = [8, 256], strides = [1, 1]} : vector<8x768xf32> to vector<8x256xf32>
    %566 = arith.addf %550, %563 : vector<8x256xf32>
    %567 = arith.negf %566 : vector<8x256xf32>
    %568 = math.exp %567 : vector<8x256xf32>
    %cst_307 = arith.constant 1.000000e+00 : f32
    %569 = vector.broadcast %cst_307 : f32 to vector<8x256xf32>
    %570 = arith.addf %569, %568 : vector<8x256xf32>
    %571 = arith.divf %569, %570 : vector<8x256xf32>
    %572 = arith.addf %553, %564 : vector<8x256xf32>
    %573 = arith.negf %572 : vector<8x256xf32>
    %574 = math.exp %573 : vector<8x256xf32>
    %cst_308 = arith.constant 1.000000e+00 : f32
    %575 = vector.broadcast %cst_308 : f32 to vector<8x256xf32>
    %576 = arith.addf %575, %574 : vector<8x256xf32>
    %577 = arith.divf %575, %576 : vector<8x256xf32>
    %578 = arith.mulf %571, %565 : vector<8x256xf32>
    %579 = arith.addf %556, %578 : vector<8x256xf32>
    %580 = math.tanh %579 : vector<8x256xf32>
    %cst_309 = arith.constant 1.000000e+00 : f32
    %581 = vector.broadcast %cst_309 : f32 to vector<8x256xf32>
    %582 = arith.subf %581, %577 : vector<8x256xf32>
    %583 = arith.mulf %582, %580 : vector<8x256xf32>
    %584 = arith.mulf %577, %543 : vector<8x256xf32>
    %585 = arith.addf %583, %584 : vector<8x256xf32>
    %586 = vector.extract_strided_slice %585 {offsets = [0, 0], sizes = [8, 128], strides = [1, 1]} : vector<8x256xf32> to vector<8x128xf32>
    %c0_310 = arith.constant 0 : index
    %c0_311 = arith.constant 0 : index
    %c0_312 = arith.constant 0 : index
    %587 = vector.load %arg12[%c0_310, %c0_311, %c0_312] : memref<8x8x256xf32, #tpu.memory_space<vmem>>, vector<1x8x128xf32>
    %588 = vector.shape_cast %587 : vector<1x8x128xf32> to vector<8x128xf32>
    %589 = vector.shape_cast %586 : vector<8x128xf32> to vector<1x8x128xf32>
    tpu.vector_store %arg12[%c0_310, %c0_311, %c0_312], %589 {strides = array<i32>} : memref<8x8x256xf32, #tpu.memory_space<vmem>>, vector<1x8x128xf32>,
    %590 = vector.extract_strided_slice %585 {offsets = [0, 128], sizes = [8, 128], strides = [1, 1]} : vector<8x256xf32> to vector<8x128xf32>
    %c7_313 = arith.constant 7 : index
    %c0_314 = arith.constant 0 : index
    %c128_315 = arith.constant 128 : index
    %591 = vector.load %arg12[%c7_313, %c0_314, %c128_315] : memref<8x8x256xf32, #tpu.memory_space<vmem>>, vector<1x8x128xf32>
    %592 = vector.shape_cast %591 : vector<1x8x128xf32> to vector<8x128xf32>
    %593 = vector.shape_cast %590 : vector<8x128xf32> to vector<1x8x128xf32>
    tpu.vector_store %arg12[%c7_313, %c0_314, %c128_315], %593 {strides = array<i32>} : memref<8x8x256xf32, #tpu.memory_space<vmem>>, vector<1x8x128xf32>,
    %c1_316 = arith.constant 1 : index
    %c0_317 = arith.constant 0 : index
    %c0_318 = arith.constant 0 : index
    %594 = vector.load %arg13[%c1_316, %c0_317, %c0_318] : memref<8x8x768xf32, #tpu.memory_space<vmem>>, vector<1x8x768xf32>
    %595 = vector.shape_cast %594 : vector<1x8x768xf32> to vector<8x768xf32>
    %c6_319 = arith.constant 6 : index
    %c0_320 = arith.constant 0 : index
    %c0_321 = arith.constant 0 : index
    %596 = vector.load %arg13[%c6_319, %c0_320, %c0_321] : memref<8x8x768xf32, #tpu.memory_space<vmem>>, vector<1x8x768xf32>
    %597 = vector.shape_cast %596 : vector<1x8x768xf32> to vector<8x768xf32>
    %598 = vector.extract_strided_slice %595 {offsets = [0, 0], sizes = [8, 128], strides = [1, 1]} : vector<8x768xf32> to vector<8x128xf32>
    %599 = vector.extract_strided_slice %597 {offsets = [0, 128], sizes = [8, 128], strides = [1, 1]} : vector<8x768xf32> to vector<8x128xf32>
    %600 = tpu.concatenate %598, %599 in 1 : vector<8x128xf32>, vector<8x128xf32> -> vector<8x256xf32>
    %601 = vector.extract_strided_slice %595 {offsets = [0, 256], sizes = [8, 128], strides = [1, 1]} : vector<8x768xf32> to vector<8x128xf32>
    %602 = vector.extract_strided_slice %597 {offsets = [0, 384], sizes = [8, 128], strides = [1, 1]} : vector<8x768xf32> to vector<8x128xf32>
    %603 = tpu.concatenate %601, %602 in 1 : vector<8x128xf32>, vector<8x128xf32> -> vector<8x256xf32>
    %604 = vector.extract_strided_slice %595 {offsets = [0, 512], sizes = [8, 128], strides = [1, 1]} : vector<8x768xf32> to vector<8x128xf32>
    %605 = vector.extract_strided_slice %597 {offsets = [0, 640], sizes = [8, 128], strides = [1, 1]} : vector<8x768xf32> to vector<8x128xf32>
    %606 = tpu.concatenate %604, %605 in 1 : vector<8x128xf32>, vector<8x128xf32> -> vector<8x256xf32>
    %607 = arith.truncf %585 : vector<8x256xf32> to vector<8x256xbf16>
    %c0_322 = arith.constant 0 : index
    %c0_323 = arith.constant 0 : index
    %608 = vector.load %arg7[%c0_322, %c0_323] : memref<256x768xbf16, #tpu.memory_space<vmem>>, vector<256x768xbf16>
    %cst_324 = arith.constant dense<0.000000e+00> : vector<8x768xf32>
    %609 = tpu.matmul %607, %608, %cst_324 {dimension_numbers = #tpu.dot_dimension_numbers<[1], [0], [0], [1], [0, 0, 1, 1], [], []>} : vector<8x256xbf16>, vector<256x768xbf16>, vector<8x768xf32> -> vector<8x768xf32>
    %c0_325 = arith.constant 0 : index
    %c0_326 = arith.constant 0 : index
    %610 = vector.load %arg9[%c0_325, %c0_326] : memref<1x768xf32, #tpu.memory_space<vmem>>, vector<1x768xf32>
    %611 = vector.broadcast %610 : vector<1x768xf32> to vector<8x768xf32>
    %612 = arith.addf %609, %611 : vector<8x768xf32>
    %613 = vector.extract_strided_slice %612 {offsets = [0, 0], sizes = [8, 256], strides = [1, 1]} : vector<8x768xf32> to vector<8x256xf32>
    %614 = vector.extract_strided_slice %612 {offsets = [0, 256], sizes = [8, 256], strides = [1, 1]} : vector<8x768xf32> to vector<8x256xf32>
    %615 = vector.extract_strided_slice %612 {offsets = [0, 512], sizes = [8, 256], strides = [1, 1]} : vector<8x768xf32> to vector<8x256xf32>
    %616 = arith.addf %600, %613 : vector<8x256xf32>
    %617 = arith.negf %616 : vector<8x256xf32>
    %618 = math.exp %617 : vector<8x256xf32>
    %cst_327 = arith.constant 1.000000e+00 : f32
    %619 = vector.broadcast %cst_327 : f32 to vector<8x256xf32>
    %620 = arith.addf %619, %618 : vector<8x256xf32>
    %621 = arith.divf %619, %620 : vector<8x256xf32>
    %622 = arith.addf %603, %614 : vector<8x256xf32>
    %623 = arith.negf %622 : vector<8x256xf32>
    %624 = math.exp %623 : vector<8x256xf32>
    %cst_328 = arith.constant 1.000000e+00 : f32
    %625 = vector.broadcast %cst_328 : f32 to vector<8x256xf32>
    %626 = arith.addf %625, %624 : vector<8x256xf32>
    %627 = arith.divf %625, %626 : vector<8x256xf32>
    %628 = arith.mulf %621, %615 : vector<8x256xf32>
    %629 = arith.addf %606, %628 : vector<8x256xf32>
    %630 = math.tanh %629 : vector<8x256xf32>
    %cst_329 = arith.constant 1.000000e+00 : f32
    %631 = vector.broadcast %cst_329 : f32 to vector<8x256xf32>
    %632 = arith.subf %631, %627 : vector<8x256xf32>
    %633 = arith.mulf %632, %630 : vector<8x256xf32>
    %634 = arith.mulf %627, %585 : vector<8x256xf32>
    %635 = arith.addf %633, %634 : vector<8x256xf32>
    %636 = vector.extract_strided_slice %635 {offsets = [0, 0], sizes = [8, 128], strides = [1, 1]} : vector<8x256xf32> to vector<8x128xf32>
    %c1_330 = arith.constant 1 : index
    %c0_331 = arith.constant 0 : index
    %c0_332 = arith.constant 0 : index
    %637 = vector.load %arg12[%c1_330, %c0_331, %c0_332] : memref<8x8x256xf32, #tpu.memory_space<vmem>>, vector<1x8x128xf32>
    %638 = vector.shape_cast %637 : vector<1x8x128xf32> to vector<8x128xf32>
    %639 = vector.shape_cast %636 : vector<8x128xf32> to vector<1x8x128xf32>
    tpu.vector_store %arg12[%c1_330, %c0_331, %c0_332], %639 {strides = array<i32>} : memref<8x8x256xf32, #tpu.memory_space<vmem>>, vector<1x8x128xf32>,
    %640 = vector.extract_strided_slice %635 {offsets = [0, 128], sizes = [8, 128], strides = [1, 1]} : vector<8x256xf32> to vector<8x128xf32>
    %c6_333 = arith.constant 6 : index
    %c0_334 = arith.constant 0 : index
    %c128_335 = arith.constant 128 : index
    %641 = vector.load %arg12[%c6_333, %c0_334, %c128_335] : memref<8x8x256xf32, #tpu.memory_space<vmem>>, vector<1x8x128xf32>
    %642 = vector.shape_cast %641 : vector<1x8x128xf32> to vector<8x128xf32>
    %643 = vector.shape_cast %640 : vector<8x128xf32> to vector<1x8x128xf32>
    tpu.vector_store %arg12[%c6_333, %c0_334, %c128_335], %643 {strides = array<i32>} : memref<8x8x256xf32, #tpu.memory_space<vmem>>, vector<1x8x128xf32>,
    %c2_336 = arith.constant 2 : index
    %c0_337 = arith.constant 0 : index
    %c0_338 = arith.constant 0 : index
    %644 = vector.load %arg13[%c2_336, %c0_337, %c0_338] : memref<8x8x768xf32, #tpu.memory_space<vmem>>, vector<1x8x768xf32>
    %645 = vector.shape_cast %644 : vector<1x8x768xf32> to vector<8x768xf32>
    %c5_339 = arith.constant 5 : index
    %c0_340 = arith.constant 0 : index
    %c0_341 = arith.constant 0 : index
    %646 = vector.load %arg13[%c5_339, %c0_340, %c0_341] : memref<8x8x768xf32, #tpu.memory_space<vmem>>, vector<1x8x768xf32>
    %647 = vector.shape_cast %646 : vector<1x8x768xf32> to vector<8x768xf32>
    %648 = vector.extract_strided_slice %645 {offsets = [0, 0], sizes = [8, 128], strides = [1, 1]} : vector<8x768xf32> to vector<8x128xf32>
    %649 = vector.extract_strided_slice %647 {offsets = [0, 128], sizes = [8, 128], strides = [1, 1]} : vector<8x768xf32> to vector<8x128xf32>
    %650 = tpu.concatenate %648, %649 in 1 : vector<8x128xf32>, vector<8x128xf32> -> vector<8x256xf32>
    %651 = vector.extract_strided_slice %645 {offsets = [0, 256], sizes = [8, 128], strides = [1, 1]} : vector<8x768xf32> to vector<8x128xf32>
    %652 = vector.extract_strided_slice %647 {offsets = [0, 384], sizes = [8, 128], strides = [1, 1]} : vector<8x768xf32> to vector<8x128xf32>
    %653 = tpu.concatenate %651, %652 in 1 : vector<8x128xf32>, vector<8x128xf32> -> vector<8x256xf32>
    %654 = vector.extract_strided_slice %645 {offsets = [0, 512], sizes = [8, 128], strides = [1, 1]} : vector<8x768xf32> to vector<8x128xf32>
    %655 = vector.extract_strided_slice %647 {offsets = [0, 640], sizes = [8, 128], strides = [1, 1]} : vector<8x768xf32> to vector<8x128xf32>
    %656 = tpu.concatenate %654, %655 in 1 : vector<8x128xf32>, vector<8x128xf32> -> vector<8x256xf32>
    %657 = arith.truncf %635 : vector<8x256xf32> to vector<8x256xbf16>
    %c0_342 = arith.constant 0 : index
    %c0_343 = arith.constant 0 : index
    %658 = vector.load %arg7[%c0_342, %c0_343] : memref<256x768xbf16, #tpu.memory_space<vmem>>, vector<256x768xbf16>
    %cst_344 = arith.constant dense<0.000000e+00> : vector<8x768xf32>
    %659 = tpu.matmul %657, %658, %cst_344 {dimension_numbers = #tpu.dot_dimension_numbers<[1], [0], [0], [1], [0, 0, 1, 1], [], []>} : vector<8x256xbf16>, vector<256x768xbf16>, vector<8x768xf32> -> vector<8x768xf32>
    %c0_345 = arith.constant 0 : index
    %c0_346 = arith.constant 0 : index
    %660 = vector.load %arg9[%c0_345, %c0_346] : memref<1x768xf32, #tpu.memory_space<vmem>>, vector<1x768xf32>
    %661 = vector.broadcast %660 : vector<1x768xf32> to vector<8x768xf32>
    %662 = arith.addf %659, %661 : vector<8x768xf32>
    %663 = vector.extract_strided_slice %662 {offsets = [0, 0], sizes = [8, 256], strides = [1, 1]} : vector<8x768xf32> to vector<8x256xf32>
    %664 = vector.extract_strided_slice %662 {offsets = [0, 256], sizes = [8, 256], strides = [1, 1]} : vector<8x768xf32> to vector<8x256xf32>
    %665 = vector.extract_strided_slice %662 {offsets = [0, 512], sizes = [8, 256], strides = [1, 1]} : vector<8x768xf32> to vector<8x256xf32>
    %666 = arith.addf %650, %663 : vector<8x256xf32>
    %667 = arith.negf %666 : vector<8x256xf32>
    %668 = math.exp %667 : vector<8x256xf32>
    %cst_347 = arith.constant 1.000000e+00 : f32
    %669 = vector.broadcast %cst_347 : f32 to vector<8x256xf32>
    %670 = arith.addf %669, %668 : vector<8x256xf32>
    %671 = arith.divf %669, %670 : vector<8x256xf32>
    %672 = arith.addf %653, %664 : vector<8x256xf32>
    %673 = arith.negf %672 : vector<8x256xf32>
    %674 = math.exp %673 : vector<8x256xf32>
    %cst_348 = arith.constant 1.000000e+00 : f32
    %675 = vector.broadcast %cst_348 : f32 to vector<8x256xf32>
    %676 = arith.addf %675, %674 : vector<8x256xf32>
    %677 = arith.divf %675, %676 : vector<8x256xf32>
    %678 = arith.mulf %671, %665 : vector<8x256xf32>
    %679 = arith.addf %656, %678 : vector<8x256xf32>
    %680 = math.tanh %679 : vector<8x256xf32>
    %cst_349 = arith.constant 1.000000e+00 : f32
    %681 = vector.broadcast %cst_349 : f32 to vector<8x256xf32>
    %682 = arith.subf %681, %677 : vector<8x256xf32>
    %683 = arith.mulf %682, %680 : vector<8x256xf32>
    %684 = arith.mulf %677, %635 : vector<8x256xf32>
    %685 = arith.addf %683, %684 : vector<8x256xf32>
    %686 = vector.extract_strided_slice %685 {offsets = [0, 0], sizes = [8, 128], strides = [1, 1]} : vector<8x256xf32> to vector<8x128xf32>
    %c2_350 = arith.constant 2 : index
    %c0_351 = arith.constant 0 : index
    %c0_352 = arith.constant 0 : index
    %687 = vector.load %arg12[%c2_350, %c0_351, %c0_352] : memref<8x8x256xf32, #tpu.memory_space<vmem>>, vector<1x8x128xf32>
    %688 = vector.shape_cast %687 : vector<1x8x128xf32> to vector<8x128xf32>
    %689 = vector.shape_cast %686 : vector<8x128xf32> to vector<1x8x128xf32>
    tpu.vector_store %arg12[%c2_350, %c0_351, %c0_352], %689 {strides = array<i32>} : memref<8x8x256xf32, #tpu.memory_space<vmem>>, vector<1x8x128xf32>,
    %690 = vector.extract_strided_slice %685 {offsets = [0, 128], sizes = [8, 128], strides = [1, 1]} : vector<8x256xf32> to vector<8x128xf32>
    %c5_353 = arith.constant 5 : index
    %c0_354 = arith.constant 0 : index
    %c128_355 = arith.constant 128 : index
    %691 = vector.load %arg12[%c5_353, %c0_354, %c128_355] : memref<8x8x256xf32, #tpu.memory_space<vmem>>, vector<1x8x128xf32>
    %692 = vector.shape_cast %691 : vector<1x8x128xf32> to vector<8x128xf32>
    %693 = vector.shape_cast %690 : vector<8x128xf32> to vector<1x8x128xf32>
    tpu.vector_store %arg12[%c5_353, %c0_354, %c128_355], %693 {strides = array<i32>} : memref<8x8x256xf32, #tpu.memory_space<vmem>>, vector<1x8x128xf32>,
    %c3_356 = arith.constant 3 : index
    %c0_357 = arith.constant 0 : index
    %c0_358 = arith.constant 0 : index
    %694 = vector.load %arg13[%c3_356, %c0_357, %c0_358] : memref<8x8x768xf32, #tpu.memory_space<vmem>>, vector<1x8x768xf32>
    %695 = vector.shape_cast %694 : vector<1x8x768xf32> to vector<8x768xf32>
    %c4_359 = arith.constant 4 : index
    %c0_360 = arith.constant 0 : index
    %c0_361 = arith.constant 0 : index
    %696 = vector.load %arg13[%c4_359, %c0_360, %c0_361] : memref<8x8x768xf32, #tpu.memory_space<vmem>>, vector<1x8x768xf32>
    %697 = vector.shape_cast %696 : vector<1x8x768xf32> to vector<8x768xf32>
    %698 = vector.extract_strided_slice %695 {offsets = [0, 0], sizes = [8, 128], strides = [1, 1]} : vector<8x768xf32> to vector<8x128xf32>
    %699 = vector.extract_strided_slice %697 {offsets = [0, 128], sizes = [8, 128], strides = [1, 1]} : vector<8x768xf32> to vector<8x128xf32>
    %700 = tpu.concatenate %698, %699 in 1 : vector<8x128xf32>, vector<8x128xf32> -> vector<8x256xf32>
    %701 = vector.extract_strided_slice %695 {offsets = [0, 256], sizes = [8, 128], strides = [1, 1]} : vector<8x768xf32> to vector<8x128xf32>
    %702 = vector.extract_strided_slice %697 {offsets = [0, 384], sizes = [8, 128], strides = [1, 1]} : vector<8x768xf32> to vector<8x128xf32>
    %703 = tpu.concatenate %701, %702 in 1 : vector<8x128xf32>, vector<8x128xf32> -> vector<8x256xf32>
    %704 = vector.extract_strided_slice %695 {offsets = [0, 512], sizes = [8, 128], strides = [1, 1]} : vector<8x768xf32> to vector<8x128xf32>
    %705 = vector.extract_strided_slice %697 {offsets = [0, 640], sizes = [8, 128], strides = [1, 1]} : vector<8x768xf32> to vector<8x128xf32>
    %706 = tpu.concatenate %704, %705 in 1 : vector<8x128xf32>, vector<8x128xf32> -> vector<8x256xf32>
    %707 = arith.truncf %685 : vector<8x256xf32> to vector<8x256xbf16>
    %c0_362 = arith.constant 0 : index
    %c0_363 = arith.constant 0 : index
    %708 = vector.load %arg7[%c0_362, %c0_363] : memref<256x768xbf16, #tpu.memory_space<vmem>>, vector<256x768xbf16>
    %cst_364 = arith.constant dense<0.000000e+00> : vector<8x768xf32>
    %709 = tpu.matmul %707, %708, %cst_364 {dimension_numbers = #tpu.dot_dimension_numbers<[1], [0], [0], [1], [0, 0, 1, 1], [], []>} : vector<8x256xbf16>, vector<256x768xbf16>, vector<8x768xf32> -> vector<8x768xf32>
    %c0_365 = arith.constant 0 : index
    %c0_366 = arith.constant 0 : index
    %710 = vector.load %arg9[%c0_365, %c0_366] : memref<1x768xf32, #tpu.memory_space<vmem>>, vector<1x768xf32>
    %711 = vector.broadcast %710 : vector<1x768xf32> to vector<8x768xf32>
    %712 = arith.addf %709, %711 : vector<8x768xf32>
    %713 = vector.extract_strided_slice %712 {offsets = [0, 0], sizes = [8, 256], strides = [1, 1]} : vector<8x768xf32> to vector<8x256xf32>
    %714 = vector.extract_strided_slice %712 {offsets = [0, 256], sizes = [8, 256], strides = [1, 1]} : vector<8x768xf32> to vector<8x256xf32>
    %715 = vector.extract_strided_slice %712 {offsets = [0, 512], sizes = [8, 256], strides = [1, 1]} : vector<8x768xf32> to vector<8x256xf32>
    %716 = arith.addf %700, %713 : vector<8x256xf32>
    %717 = arith.negf %716 : vector<8x256xf32>
    %718 = math.exp %717 : vector<8x256xf32>
    %cst_367 = arith.constant 1.000000e+00 : f32
    %719 = vector.broadcast %cst_367 : f32 to vector<8x256xf32>
    %720 = arith.addf %719, %718 : vector<8x256xf32>
    %721 = arith.divf %719, %720 : vector<8x256xf32>
    %722 = arith.addf %703, %714 : vector<8x256xf32>
    %723 = arith.negf %722 : vector<8x256xf32>
    %724 = math.exp %723 : vector<8x256xf32>
    %cst_368 = arith.constant 1.000000e+00 : f32
    %725 = vector.broadcast %cst_368 : f32 to vector<8x256xf32>
    %726 = arith.addf %725, %724 : vector<8x256xf32>
    %727 = arith.divf %725, %726 : vector<8x256xf32>
    %728 = arith.mulf %721, %715 : vector<8x256xf32>
    %729 = arith.addf %706, %728 : vector<8x256xf32>
    %730 = math.tanh %729 : vector<8x256xf32>
    %cst_369 = arith.constant 1.000000e+00 : f32
    %731 = vector.broadcast %cst_369 : f32 to vector<8x256xf32>
    %732 = arith.subf %731, %727 : vector<8x256xf32>
    %733 = arith.mulf %732, %730 : vector<8x256xf32>
    %734 = arith.mulf %727, %685 : vector<8x256xf32>
    %735 = arith.addf %733, %734 : vector<8x256xf32>
    %736 = vector.extract_strided_slice %735 {offsets = [0, 0], sizes = [8, 128], strides = [1, 1]} : vector<8x256xf32> to vector<8x128xf32>
    %c3_370 = arith.constant 3 : index
    %c0_371 = arith.constant 0 : index
    %c0_372 = arith.constant 0 : index
    %737 = vector.load %arg12[%c3_370, %c0_371, %c0_372] : memref<8x8x256xf32, #tpu.memory_space<vmem>>, vector<1x8x128xf32>
    %738 = vector.shape_cast %737 : vector<1x8x128xf32> to vector<8x128xf32>
    %739 = vector.shape_cast %736 : vector<8x128xf32> to vector<1x8x128xf32>
    tpu.vector_store %arg12[%c3_370, %c0_371, %c0_372], %739 {strides = array<i32>} : memref<8x8x256xf32, #tpu.memory_space<vmem>>, vector<1x8x128xf32>,
    %740 = vector.extract_strided_slice %735 {offsets = [0, 128], sizes = [8, 128], strides = [1, 1]} : vector<8x256xf32> to vector<8x128xf32>
    %c4_373 = arith.constant 4 : index
    %c0_374 = arith.constant 0 : index
    %c128_375 = arith.constant 128 : index
    %741 = vector.load %arg12[%c4_373, %c0_374, %c128_375] : memref<8x8x256xf32, #tpu.memory_space<vmem>>, vector<1x8x128xf32>
    %742 = vector.shape_cast %741 : vector<1x8x128xf32> to vector<8x128xf32>
    %743 = vector.shape_cast %740 : vector<8x128xf32> to vector<1x8x128xf32>
    tpu.vector_store %arg12[%c4_373, %c0_374, %c128_375], %743 {strides = array<i32>} : memref<8x8x256xf32, #tpu.memory_space<vmem>>, vector<1x8x128xf32>,
    %c4_376 = arith.constant 4 : index
    %c0_377 = arith.constant 0 : index
    %c0_378 = arith.constant 0 : index
    %744 = vector.load %arg13[%c4_376, %c0_377, %c0_378] : memref<8x8x768xf32, #tpu.memory_space<vmem>>, vector<1x8x768xf32>
    %745 = vector.shape_cast %744 : vector<1x8x768xf32> to vector<8x768xf32>
    %c3_379 = arith.constant 3 : index
    %c0_380 = arith.constant 0 : index
    %c0_381 = arith.constant 0 : index
    %746 = vector.load %arg13[%c3_379, %c0_380, %c0_381] : memref<8x8x768xf32, #tpu.memory_space<vmem>>, vector<1x8x768xf32>
    %747 = vector.shape_cast %746 : vector<1x8x768xf32> to vector<8x768xf32>
    %748 = vector.extract_strided_slice %745 {offsets = [0, 0], sizes = [8, 128], strides = [1, 1]} : vector<8x768xf32> to vector<8x128xf32>
    %749 = vector.extract_strided_slice %747 {offsets = [0, 128], sizes = [8, 128], strides = [1, 1]} : vector<8x768xf32> to vector<8x128xf32>
    %750 = tpu.concatenate %748, %749 in 1 : vector<8x128xf32>, vector<8x128xf32> -> vector<8x256xf32>
    %751 = vector.extract_strided_slice %745 {offsets = [0, 256], sizes = [8, 128], strides = [1, 1]} : vector<8x768xf32> to vector<8x128xf32>
    %752 = vector.extract_strided_slice %747 {offsets = [0, 384], sizes = [8, 128], strides = [1, 1]} : vector<8x768xf32> to vector<8x128xf32>
    %753 = tpu.concatenate %751, %752 in 1 : vector<8x128xf32>, vector<8x128xf32> -> vector<8x256xf32>
    %754 = vector.extract_strided_slice %745 {offsets = [0, 512], sizes = [8, 128], strides = [1, 1]} : vector<8x768xf32> to vector<8x128xf32>
    %755 = vector.extract_strided_slice %747 {offsets = [0, 640], sizes = [8, 128], strides = [1, 1]} : vector<8x768xf32> to vector<8x128xf32>
    %756 = tpu.concatenate %754, %755 in 1 : vector<8x128xf32>, vector<8x128xf32> -> vector<8x256xf32>
    %757 = arith.truncf %735 : vector<8x256xf32> to vector<8x256xbf16>
    %c0_382 = arith.constant 0 : index
    %c0_383 = arith.constant 0 : index
    %758 = vector.load %arg7[%c0_382, %c0_383] : memref<256x768xbf16, #tpu.memory_space<vmem>>, vector<256x768xbf16>
    %cst_384 = arith.constant dense<0.000000e+00> : vector<8x768xf32>
    %759 = tpu.matmul %757, %758, %cst_384 {dimension_numbers = #tpu.dot_dimension_numbers<[1], [0], [0], [1], [0, 0, 1, 1], [], []>} : vector<8x256xbf16>, vector<256x768xbf16>, vector<8x768xf32> -> vector<8x768xf32>
    %c0_385 = arith.constant 0 : index
    %c0_386 = arith.constant 0 : index
    %760 = vector.load %arg9[%c0_385, %c0_386] : memref<1x768xf32, #tpu.memory_space<vmem>>, vector<1x768xf32>
    %761 = vector.broadcast %760 : vector<1x768xf32> to vector<8x768xf32>
    %762 = arith.addf %759, %761 : vector<8x768xf32>
    %763 = vector.extract_strided_slice %762 {offsets = [0, 0], sizes = [8, 256], strides = [1, 1]} : vector<8x768xf32> to vector<8x256xf32>
    %764 = vector.extract_strided_slice %762 {offsets = [0, 256], sizes = [8, 256], strides = [1, 1]} : vector<8x768xf32> to vector<8x256xf32>
    %765 = vector.extract_strided_slice %762 {offsets = [0, 512], sizes = [8, 256], strides = [1, 1]} : vector<8x768xf32> to vector<8x256xf32>
    %766 = arith.addf %750, %763 : vector<8x256xf32>
    %767 = arith.negf %766 : vector<8x256xf32>
    %768 = math.exp %767 : vector<8x256xf32>
    %cst_387 = arith.constant 1.000000e+00 : f32
    %769 = vector.broadcast %cst_387 : f32 to vector<8x256xf32>
    %770 = arith.addf %769, %768 : vector<8x256xf32>
    %771 = arith.divf %769, %770 : vector<8x256xf32>
    %772 = arith.addf %753, %764 : vector<8x256xf32>
    %773 = arith.negf %772 : vector<8x256xf32>
    %774 = math.exp %773 : vector<8x256xf32>
    %cst_388 = arith.constant 1.000000e+00 : f32
    %775 = vector.broadcast %cst_388 : f32 to vector<8x256xf32>
    %776 = arith.addf %775, %774 : vector<8x256xf32>
    %777 = arith.divf %775, %776 : vector<8x256xf32>
    %778 = arith.mulf %771, %765 : vector<8x256xf32>
    %779 = arith.addf %756, %778 : vector<8x256xf32>
    %780 = math.tanh %779 : vector<8x256xf32>
    %cst_389 = arith.constant 1.000000e+00 : f32
    %781 = vector.broadcast %cst_389 : f32 to vector<8x256xf32>
    %782 = arith.subf %781, %777 : vector<8x256xf32>
    %783 = arith.mulf %782, %780 : vector<8x256xf32>
    %784 = arith.mulf %777, %735 : vector<8x256xf32>
    %785 = arith.addf %783, %784 : vector<8x256xf32>
    %786 = vector.extract_strided_slice %785 {offsets = [0, 0], sizes = [8, 128], strides = [1, 1]} : vector<8x256xf32> to vector<8x128xf32>
    %c4_390 = arith.constant 4 : index
    %c0_391 = arith.constant 0 : index
    %c0_392 = arith.constant 0 : index
    %787 = vector.load %arg12[%c4_390, %c0_391, %c0_392] : memref<8x8x256xf32, #tpu.memory_space<vmem>>, vector<1x8x128xf32>
    %788 = vector.shape_cast %787 : vector<1x8x128xf32> to vector<8x128xf32>
    %789 = vector.shape_cast %786 : vector<8x128xf32> to vector<1x8x128xf32>
    tpu.vector_store %arg12[%c4_390, %c0_391, %c0_392], %789 {strides = array<i32>} : memref<8x8x256xf32, #tpu.memory_space<vmem>>, vector<1x8x128xf32>,
    %790 = vector.extract_strided_slice %785 {offsets = [0, 128], sizes = [8, 128], strides = [1, 1]} : vector<8x256xf32> to vector<8x128xf32>
    %c3_393 = arith.constant 3 : index
    %c0_394 = arith.constant 0 : index
    %c128_395 = arith.constant 128 : index
    %791 = vector.load %arg12[%c3_393, %c0_394, %c128_395] : memref<8x8x256xf32, #tpu.memory_space<vmem>>, vector<1x8x128xf32>
    %792 = vector.shape_cast %791 : vector<1x8x128xf32> to vector<8x128xf32>
    %793 = vector.shape_cast %790 : vector<8x128xf32> to vector<1x8x128xf32>
    tpu.vector_store %arg12[%c3_393, %c0_394, %c128_395], %793 {strides = array<i32>} : memref<8x8x256xf32, #tpu.memory_space<vmem>>, vector<1x8x128xf32>,
    %c5_396 = arith.constant 5 : index
    %c0_397 = arith.constant 0 : index
    %c0_398 = arith.constant 0 : index
    %794 = vector.load %arg13[%c5_396, %c0_397, %c0_398] : memref<8x8x768xf32, #tpu.memory_space<vmem>>, vector<1x8x768xf32>
    %795 = vector.shape_cast %794 : vector<1x8x768xf32> to vector<8x768xf32>
    %c2_399 = arith.constant 2 : index
    %c0_400 = arith.constant 0 : index
    %c0_401 = arith.constant 0 : index
    %796 = vector.load %arg13[%c2_399, %c0_400, %c0_401] : memref<8x8x768xf32, #tpu.memory_space<vmem>>, vector<1x8x768xf32>
    %797 = vector.shape_cast %796 : vector<1x8x768xf32> to vector<8x768xf32>
    %798 = vector.extract_strided_slice %795 {offsets = [0, 0], sizes = [8, 128], strides = [1, 1]} : vector<8x768xf32> to vector<8x128xf32>
    %799 = vector.extract_strided_slice %797 {offsets = [0, 128], sizes = [8, 128], strides = [1, 1]} : vector<8x768xf32> to vector<8x128xf32>
    %800 = tpu.concatenate %798, %799 in 1 : vector<8x128xf32>, vector<8x128xf32> -> vector<8x256xf32>
    %801 = vector.extract_strided_slice %795 {offsets = [0, 256], sizes = [8, 128], strides = [1, 1]} : vector<8x768xf32> to vector<8x128xf32>
    %802 = vector.extract_strided_slice %797 {offsets = [0, 384], sizes = [8, 128], strides = [1, 1]} : vector<8x768xf32> to vector<8x128xf32>
    %803 = tpu.concatenate %801, %802 in 1 : vector<8x128xf32>, vector<8x128xf32> -> vector<8x256xf32>
    %804 = vector.extract_strided_slice %795 {offsets = [0, 512], sizes = [8, 128], strides = [1, 1]} : vector<8x768xf32> to vector<8x128xf32>
    %805 = vector.extract_strided_slice %797 {offsets = [0, 640], sizes = [8, 128], strides = [1, 1]} : vector<8x768xf32> to vector<8x128xf32>
    %806 = tpu.concatenate %804, %805 in 1 : vector<8x128xf32>, vector<8x128xf32> -> vector<8x256xf32>
    %807 = arith.truncf %785 : vector<8x256xf32> to vector<8x256xbf16>
    %c0_402 = arith.constant 0 : index
    %c0_403 = arith.constant 0 : index
    %808 = vector.load %arg7[%c0_402, %c0_403] : memref<256x768xbf16, #tpu.memory_space<vmem>>, vector<256x768xbf16>
    %cst_404 = arith.constant dense<0.000000e+00> : vector<8x768xf32>
    %809 = tpu.matmul %807, %808, %cst_404 {dimension_numbers = #tpu.dot_dimension_numbers<[1], [0], [0], [1], [0, 0, 1, 1], [], []>} : vector<8x256xbf16>, vector<256x768xbf16>, vector<8x768xf32> -> vector<8x768xf32>
    %c0_405 = arith.constant 0 : index
    %c0_406 = arith.constant 0 : index
    %810 = vector.load %arg9[%c0_405, %c0_406] : memref<1x768xf32, #tpu.memory_space<vmem>>, vector<1x768xf32>
    %811 = vector.broadcast %810 : vector<1x768xf32> to vector<8x768xf32>
    %812 = arith.addf %809, %811 : vector<8x768xf32>
    %813 = vector.extract_strided_slice %812 {offsets = [0, 0], sizes = [8, 256], strides = [1, 1]} : vector<8x768xf32> to vector<8x256xf32>
    %814 = vector.extract_strided_slice %812 {offsets = [0, 256], sizes = [8, 256], strides = [1, 1]} : vector<8x768xf32> to vector<8x256xf32>
    %815 = vector.extract_strided_slice %812 {offsets = [0, 512], sizes = [8, 256], strides = [1, 1]} : vector<8x768xf32> to vector<8x256xf32>
    %816 = arith.addf %800, %813 : vector<8x256xf32>
    %817 = arith.negf %816 : vector<8x256xf32>
    %818 = math.exp %817 : vector<8x256xf32>
    %cst_407 = arith.constant 1.000000e+00 : f32
    %819 = vector.broadcast %cst_407 : f32 to vector<8x256xf32>
    %820 = arith.addf %819, %818 : vector<8x256xf32>
    %821 = arith.divf %819, %820 : vector<8x256xf32>
    %822 = arith.addf %803, %814 : vector<8x256xf32>
    %823 = arith.negf %822 : vector<8x256xf32>
    %824 = math.exp %823 : vector<8x256xf32>
    %cst_408 = arith.constant 1.000000e+00 : f32
    %825 = vector.broadcast %cst_408 : f32 to vector<8x256xf32>
    %826 = arith.addf %825, %824 : vector<8x256xf32>
    %827 = arith.divf %825, %826 : vector<8x256xf32>
    %828 = arith.mulf %821, %815 : vector<8x256xf32>
    %829 = arith.addf %806, %828 : vector<8x256xf32>
    %830 = math.tanh %829 : vector<8x256xf32>
    %cst_409 = arith.constant 1.000000e+00 : f32
    %831 = vector.broadcast %cst_409 : f32 to vector<8x256xf32>
    %832 = arith.subf %831, %827 : vector<8x256xf32>
    %833 = arith.mulf %832, %830 : vector<8x256xf32>
    %834 = arith.mulf %827, %785 : vector<8x256xf32>
    %835 = arith.addf %833, %834 : vector<8x256xf32>
    %836 = vector.extract_strided_slice %835 {offsets = [0, 0], sizes = [8, 128], strides = [1, 1]} : vector<8x256xf32> to vector<8x128xf32>
    %c5_410 = arith.constant 5 : index
    %c0_411 = arith.constant 0 : index
    %c0_412 = arith.constant 0 : index
    %837 = vector.load %arg12[%c5_410, %c0_411, %c0_412] : memref<8x8x256xf32, #tpu.memory_space<vmem>>, vector<1x8x128xf32>
    %838 = vector.shape_cast %837 : vector<1x8x128xf32> to vector<8x128xf32>
    %839 = vector.shape_cast %836 : vector<8x128xf32> to vector<1x8x128xf32>
    tpu.vector_store %arg12[%c5_410, %c0_411, %c0_412], %839 {strides = array<i32>} : memref<8x8x256xf32, #tpu.memory_space<vmem>>, vector<1x8x128xf32>,
    %840 = vector.extract_strided_slice %835 {offsets = [0, 128], sizes = [8, 128], strides = [1, 1]} : vector<8x256xf32> to vector<8x128xf32>
    %c2_413 = arith.constant 2 : index
    %c0_414 = arith.constant 0 : index
    %c128_415 = arith.constant 128 : index
    %841 = vector.load %arg12[%c2_413, %c0_414, %c128_415] : memref<8x8x256xf32, #tpu.memory_space<vmem>>, vector<1x8x128xf32>
    %842 = vector.shape_cast %841 : vector<1x8x128xf32> to vector<8x128xf32>
    %843 = vector.shape_cast %840 : vector<8x128xf32> to vector<1x8x128xf32>
    tpu.vector_store %arg12[%c2_413, %c0_414, %c128_415], %843 {strides = array<i32>} : memref<8x8x256xf32, #tpu.memory_space<vmem>>, vector<1x8x128xf32>,
    %c6_416 = arith.constant 6 : index
    %c0_417 = arith.constant 0 : index
    %c0_418 = arith.constant 0 : index
    %844 = vector.load %arg13[%c6_416, %c0_417, %c0_418] : memref<8x8x768xf32, #tpu.memory_space<vmem>>, vector<1x8x768xf32>
    %845 = vector.shape_cast %844 : vector<1x8x768xf32> to vector<8x768xf32>
    %c1_419 = arith.constant 1 : index
    %c0_420 = arith.constant 0 : index
    %c0_421 = arith.constant 0 : index
    %846 = vector.load %arg13[%c1_419, %c0_420, %c0_421] : memref<8x8x768xf32, #tpu.memory_space<vmem>>, vector<1x8x768xf32>
    %847 = vector.shape_cast %846 : vector<1x8x768xf32> to vector<8x768xf32>
    %848 = vector.extract_strided_slice %845 {offsets = [0, 0], sizes = [8, 128], strides = [1, 1]} : vector<8x768xf32> to vector<8x128xf32>
    %849 = vector.extract_strided_slice %847 {offsets = [0, 128], sizes = [8, 128], strides = [1, 1]} : vector<8x768xf32> to vector<8x128xf32>
    %850 = tpu.concatenate %848, %849 in 1 : vector<8x128xf32>, vector<8x128xf32> -> vector<8x256xf32>
    %851 = vector.extract_strided_slice %845 {offsets = [0, 256], sizes = [8, 128], strides = [1, 1]} : vector<8x768xf32> to vector<8x128xf32>
    %852 = vector.extract_strided_slice %847 {offsets = [0, 384], sizes = [8, 128], strides = [1, 1]} : vector<8x768xf32> to vector<8x128xf32>
    %853 = tpu.concatenate %851, %852 in 1 : vector<8x128xf32>, vector<8x128xf32> -> vector<8x256xf32>
    %854 = vector.extract_strided_slice %845 {offsets = [0, 512], sizes = [8, 128], strides = [1, 1]} : vector<8x768xf32> to vector<8x128xf32>
    %855 = vector.extract_strided_slice %847 {offsets = [0, 640], sizes = [8, 128], strides = [1, 1]} : vector<8x768xf32> to vector<8x128xf32>
    %856 = tpu.concatenate %854, %855 in 1 : vector<8x128xf32>, vector<8x128xf32> -> vector<8x256xf32>
    %857 = arith.truncf %835 : vector<8x256xf32> to vector<8x256xbf16>
    %c0_422 = arith.constant 0 : index
    %c0_423 = arith.constant 0 : index
    %858 = vector.load %arg7[%c0_422, %c0_423] : memref<256x768xbf16, #tpu.memory_space<vmem>>, vector<256x768xbf16>
    %cst_424 = arith.constant dense<0.000000e+00> : vector<8x768xf32>
    %859 = tpu.matmul %857, %858, %cst_424 {dimension_numbers = #tpu.dot_dimension_numbers<[1], [0], [0], [1], [0, 0, 1, 1], [], []>} : vector<8x256xbf16>, vector<256x768xbf16>, vector<8x768xf32> -> vector<8x768xf32>
    %c0_425 = arith.constant 0 : index
    %c0_426 = arith.constant 0 : index
    %860 = vector.load %arg9[%c0_425, %c0_426] : memref<1x768xf32, #tpu.memory_space<vmem>>, vector<1x768xf32>
    %861 = vector.broadcast %860 : vector<1x768xf32> to vector<8x768xf32>
    %862 = arith.addf %859, %861 : vector<8x768xf32>
    %863 = vector.extract_strided_slice %862 {offsets = [0, 0], sizes = [8, 256], strides = [1, 1]} : vector<8x768xf32> to vector<8x256xf32>
    %864 = vector.extract_strided_slice %862 {offsets = [0, 256], sizes = [8, 256], strides = [1, 1]} : vector<8x768xf32> to vector<8x256xf32>
    %865 = vector.extract_strided_slice %862 {offsets = [0, 512], sizes = [8, 256], strides = [1, 1]} : vector<8x768xf32> to vector<8x256xf32>
    %866 = arith.addf %850, %863 : vector<8x256xf32>
    %867 = arith.negf %866 : vector<8x256xf32>
    %868 = math.exp %867 : vector<8x256xf32>
    %cst_427 = arith.constant 1.000000e+00 : f32
    %869 = vector.broadcast %cst_427 : f32 to vector<8x256xf32>
    %870 = arith.addf %869, %868 : vector<8x256xf32>
    %871 = arith.divf %869, %870 : vector<8x256xf32>
    %872 = arith.addf %853, %864 : vector<8x256xf32>
    %873 = arith.negf %872 : vector<8x256xf32>
    %874 = math.exp %873 : vector<8x256xf32>
    %cst_428 = arith.constant 1.000000e+00 : f32
    %875 = vector.broadcast %cst_428 : f32 to vector<8x256xf32>
    %876 = arith.addf %875, %874 : vector<8x256xf32>
    %877 = arith.divf %875, %876 : vector<8x256xf32>
    %878 = arith.mulf %871, %865 : vector<8x256xf32>
    %879 = arith.addf %856, %878 : vector<8x256xf32>
    %880 = math.tanh %879 : vector<8x256xf32>
    %cst_429 = arith.constant 1.000000e+00 : f32
    %881 = vector.broadcast %cst_429 : f32 to vector<8x256xf32>
    %882 = arith.subf %881, %877 : vector<8x256xf32>
    %883 = arith.mulf %882, %880 : vector<8x256xf32>
    %884 = arith.mulf %877, %835 : vector<8x256xf32>
    %885 = arith.addf %883, %884 : vector<8x256xf32>
    %886 = vector.extract_strided_slice %885 {offsets = [0, 0], sizes = [8, 128], strides = [1, 1]} : vector<8x256xf32> to vector<8x128xf32>
    %c6_430 = arith.constant 6 : index
    %c0_431 = arith.constant 0 : index
    %c0_432 = arith.constant 0 : index
    %887 = vector.load %arg12[%c6_430, %c0_431, %c0_432] : memref<8x8x256xf32, #tpu.memory_space<vmem>>, vector<1x8x128xf32>
    %888 = vector.shape_cast %887 : vector<1x8x128xf32> to vector<8x128xf32>
    %889 = vector.shape_cast %886 : vector<8x128xf32> to vector<1x8x128xf32>
    tpu.vector_store %arg12[%c6_430, %c0_431, %c0_432], %889 {strides = array<i32>} : memref<8x8x256xf32, #tpu.memory_space<vmem>>, vector<1x8x128xf32>,
    %890 = vector.extract_strided_slice %885 {offsets = [0, 128], sizes = [8, 128], strides = [1, 1]} : vector<8x256xf32> to vector<8x128xf32>
    %c1_433 = arith.constant 1 : index
    %c0_434 = arith.constant 0 : index
    %c128_435 = arith.constant 128 : index
    %891 = vector.load %arg12[%c1_433, %c0_434, %c128_435] : memref<8x8x256xf32, #tpu.memory_space<vmem>>, vector<1x8x128xf32>
    %892 = vector.shape_cast %891 : vector<1x8x128xf32> to vector<8x128xf32>
    %893 = vector.shape_cast %890 : vector<8x128xf32> to vector<1x8x128xf32>
    tpu.vector_store %arg12[%c1_433, %c0_434, %c128_435], %893 {strides = array<i32>} : memref<8x8x256xf32, #tpu.memory_space<vmem>>, vector<1x8x128xf32>,
    %c7_436 = arith.constant 7 : index
    %c0_437 = arith.constant 0 : index
    %c0_438 = arith.constant 0 : index
    %894 = vector.load %arg13[%c7_436, %c0_437, %c0_438] : memref<8x8x768xf32, #tpu.memory_space<vmem>>, vector<1x8x768xf32>
    %895 = vector.shape_cast %894 : vector<1x8x768xf32> to vector<8x768xf32>
    %c0_439 = arith.constant 0 : index
    %c0_440 = arith.constant 0 : index
    %c0_441 = arith.constant 0 : index
    %896 = vector.load %arg13[%c0_439, %c0_440, %c0_441] : memref<8x8x768xf32, #tpu.memory_space<vmem>>, vector<1x8x768xf32>
    %897 = vector.shape_cast %896 : vector<1x8x768xf32> to vector<8x768xf32>
    %898 = vector.extract_strided_slice %895 {offsets = [0, 0], sizes = [8, 128], strides = [1, 1]} : vector<8x768xf32> to vector<8x128xf32>
    %899 = vector.extract_strided_slice %897 {offsets = [0, 128], sizes = [8, 128], strides = [1, 1]} : vector<8x768xf32> to vector<8x128xf32>
    %900 = tpu.concatenate %898, %899 in 1 : vector<8x128xf32>, vector<8x128xf32> -> vector<8x256xf32>
    %901 = vector.extract_strided_slice %895 {offsets = [0, 256], sizes = [8, 128], strides = [1, 1]} : vector<8x768xf32> to vector<8x128xf32>
    %902 = vector.extract_strided_slice %897 {offsets = [0, 384], sizes = [8, 128], strides = [1, 1]} : vector<8x768xf32> to vector<8x128xf32>
    %903 = tpu.concatenate %901, %902 in 1 : vector<8x128xf32>, vector<8x128xf32> -> vector<8x256xf32>
    %904 = vector.extract_strided_slice %895 {offsets = [0, 512], sizes = [8, 128], strides = [1, 1]} : vector<8x768xf32> to vector<8x128xf32>
    %905 = vector.extract_strided_slice %897 {offsets = [0, 640], sizes = [8, 128], strides = [1, 1]} : vector<8x768xf32> to vector<8x128xf32>
    %906 = tpu.concatenate %904, %905 in 1 : vector<8x128xf32>, vector<8x128xf32> -> vector<8x256xf32>
    %907 = arith.truncf %885 : vector<8x256xf32> to vector<8x256xbf16>
    %c0_442 = arith.constant 0 : index
    %c0_443 = arith.constant 0 : index
    %908 = vector.load %arg7[%c0_442, %c0_443] : memref<256x768xbf16, #tpu.memory_space<vmem>>, vector<256x768xbf16>
    %cst_444 = arith.constant dense<0.000000e+00> : vector<8x768xf32>
    %909 = tpu.matmul %907, %908, %cst_444 {dimension_numbers = #tpu.dot_dimension_numbers<[1], [0], [0], [1], [0, 0, 1, 1], [], []>} : vector<8x256xbf16>, vector<256x768xbf16>, vector<8x768xf32> -> vector<8x768xf32>
    %c0_445 = arith.constant 0 : index
    %c0_446 = arith.constant 0 : index
    %910 = vector.load %arg9[%c0_445, %c0_446] : memref<1x768xf32, #tpu.memory_space<vmem>>, vector<1x768xf32>
    %911 = vector.broadcast %910 : vector<1x768xf32> to vector<8x768xf32>
    %912 = arith.addf %909, %911 : vector<8x768xf32>
    %913 = vector.extract_strided_slice %912 {offsets = [0, 0], sizes = [8, 256], strides = [1, 1]} : vector<8x768xf32> to vector<8x256xf32>
    %914 = vector.extract_strided_slice %912 {offsets = [0, 256], sizes = [8, 256], strides = [1, 1]} : vector<8x768xf32> to vector<8x256xf32>
    %915 = vector.extract_strided_slice %912 {offsets = [0, 512], sizes = [8, 256], strides = [1, 1]} : vector<8x768xf32> to vector<8x256xf32>
    %916 = arith.addf %900, %913 : vector<8x256xf32>
    %917 = arith.negf %916 : vector<8x256xf32>
    %918 = math.exp %917 : vector<8x256xf32>
    %cst_447 = arith.constant 1.000000e+00 : f32
    %919 = vector.broadcast %cst_447 : f32 to vector<8x256xf32>
    %920 = arith.addf %919, %918 : vector<8x256xf32>
    %921 = arith.divf %919, %920 : vector<8x256xf32>
    %922 = arith.addf %903, %914 : vector<8x256xf32>
    %923 = arith.negf %922 : vector<8x256xf32>
    %924 = math.exp %923 : vector<8x256xf32>
    %cst_448 = arith.constant 1.000000e+00 : f32
    %925 = vector.broadcast %cst_448 : f32 to vector<8x256xf32>
    %926 = arith.addf %925, %924 : vector<8x256xf32>
    %927 = arith.divf %925, %926 : vector<8x256xf32>
    %928 = arith.mulf %921, %915 : vector<8x256xf32>
    %929 = arith.addf %906, %928 : vector<8x256xf32>
    %930 = math.tanh %929 : vector<8x256xf32>
    %cst_449 = arith.constant 1.000000e+00 : f32
    %931 = vector.broadcast %cst_449 : f32 to vector<8x256xf32>
    %932 = arith.subf %931, %927 : vector<8x256xf32>
    %933 = arith.mulf %932, %930 : vector<8x256xf32>
    %934 = arith.mulf %927, %885 : vector<8x256xf32>
    %935 = arith.addf %933, %934 : vector<8x256xf32>
    %936 = vector.extract_strided_slice %935 {offsets = [0, 0], sizes = [8, 128], strides = [1, 1]} : vector<8x256xf32> to vector<8x128xf32>
    %c7_450 = arith.constant 7 : index
    %c0_451 = arith.constant 0 : index
    %c0_452 = arith.constant 0 : index
    %937 = vector.load %arg12[%c7_450, %c0_451, %c0_452] : memref<8x8x256xf32, #tpu.memory_space<vmem>>, vector<1x8x128xf32>
    %938 = vector.shape_cast %937 : vector<1x8x128xf32> to vector<8x128xf32>
    %939 = vector.shape_cast %936 : vector<8x128xf32> to vector<1x8x128xf32>
    tpu.vector_store %arg12[%c7_450, %c0_451, %c0_452], %939 {strides = array<i32>} : memref<8x8x256xf32, #tpu.memory_space<vmem>>, vector<1x8x128xf32>,
    %940 = vector.extract_strided_slice %935 {offsets = [0, 128], sizes = [8, 128], strides = [1, 1]} : vector<8x256xf32> to vector<8x128xf32>
    %c0_453 = arith.constant 0 : index
    %c0_454 = arith.constant 0 : index
    %c128_455 = arith.constant 128 : index
    %941 = vector.load %arg12[%c0_453, %c0_454, %c128_455] : memref<8x8x256xf32, #tpu.memory_space<vmem>>, vector<1x8x128xf32>
    %942 = vector.shape_cast %941 : vector<1x8x128xf32> to vector<8x128xf32>
    %943 = vector.shape_cast %940 : vector<8x128xf32> to vector<1x8x128xf32>
    tpu.vector_store %arg12[%c0_453, %c0_454, %c128_455], %943 {strides = array<i32>} : memref<8x8x256xf32, #tpu.memory_space<vmem>>, vector<1x8x128xf32>,
    %944 = vector.extract_strided_slice %935 {offsets = [0, 0], sizes = [2, 32], strides = [1, 1]} : vector<8x256xf32> to vector<2x32xf32>
    %c2_456 = arith.constant 2 : index
    %c0_457 = arith.constant 0 : index
    %c0_458 = arith.constant 0 : index
    %945 = vector.load %arg11[%c2_456, %c0_457, %c0_458] : memref<4x2x32xf32, #tpu.memory_space<vmem>>, vector<1x2x32xf32>
    %946 = vector.shape_cast %945 : vector<1x2x32xf32> to vector<2x32xf32>
    %947 = vector.shape_cast %944 : vector<2x32xf32> to vector<1x2x32xf32>
    tpu.vector_store %arg11[%c2_456, %c0_457, %c0_458], %947 {strides = array<i32>} : memref<4x2x32xf32, #tpu.memory_space<vmem>>, vector<1x2x32xf32>,
    %948 = vector.extract_strided_slice %935 {offsets = [0, 128], sizes = [2, 32], strides = [1, 1]} : vector<8x256xf32> to vector<2x32xf32>
    %c3_459 = arith.constant 3 : index
    %c0_460 = arith.constant 0 : index
    %c0_461 = arith.constant 0 : index
    %949 = vector.load %arg11[%c3_459, %c0_460, %c0_461] : memref<4x2x32xf32, #tpu.memory_space<vmem>>, vector<1x2x32xf32>
    %950 = vector.shape_cast %949 : vector<1x2x32xf32> to vector<2x32xf32>
    %951 = vector.shape_cast %948 : vector<2x32xf32> to vector<1x2x32xf32>
    tpu.vector_store %arg11[%c3_459, %c0_460, %c0_461], %951 {strides = array<i32>} : memref<4x2x32xf32, #tpu.memory_space<vmem>>, vector<1x2x32xf32>,
    %c0_462 = arith.constant 0 : index
    %c0_463 = arith.constant 0 : index
    %c0_464 = arith.constant 0 : index
    %952 = vector.load %arg12[%c0_462, %c0_463, %c0_464] : memref<8x8x256xf32, #tpu.memory_space<vmem>>, vector<1x8x256xf32>
    %953 = vector.shape_cast %952 : vector<1x8x256xf32> to vector<8x256xf32>
    %954 = vector.extract_strided_slice %953 {offsets = [0, 0], sizes = [2, 32], strides = [1, 1]} : vector<8x256xf32> to vector<2x32xf32>
    %955 = vector.extract_strided_slice %953 {offsets = [0, 128], sizes = [2, 32], strides = [1, 1]} : vector<8x256xf32> to vector<2x32xf32>
    %956 = tpu.concatenate %954, %955 in 1 : vector<2x32xf32>, vector<2x32xf32> -> vector<2x64xf32>
    %c0_465 = arith.constant 0 : index
    %c0_466 = arith.constant 0 : index
    %957 = vector.load %arg10[%c0_465, %c0_466] : memref<2x512xf32, #tpu.memory_space<vmem>>, vector<2x64xf32>
    tpu.vector_store %arg10[%c0_465, %c0_466], %956 {strides = array<i32>} : memref<2x512xf32, #tpu.memory_space<vmem>>, vector<2x64xf32>,
    %c1_467 = arith.constant 1 : index
    %c0_468 = arith.constant 0 : index
    %c0_469 = arith.constant 0 : index
    %958 = vector.load %arg12[%c1_467, %c0_468, %c0_469] : memref<8x8x256xf32, #tpu.memory_space<vmem>>, vector<1x8x256xf32>
    %959 = vector.shape_cast %958 : vector<1x8x256xf32> to vector<8x256xf32>
    %960 = vector.extract_strided_slice %959 {offsets = [0, 0], sizes = [2, 32], strides = [1, 1]} : vector<8x256xf32> to vector<2x32xf32>
    %961 = vector.extract_strided_slice %959 {offsets = [0, 128], sizes = [2, 32], strides = [1, 1]} : vector<8x256xf32> to vector<2x32xf32>
    %962 = tpu.concatenate %960, %961 in 1 : vector<2x32xf32>, vector<2x32xf32> -> vector<2x64xf32>
    %c0_470 = arith.constant 0 : index
    %c64 = arith.constant 64 : index
    %963 = vector.load %arg10[%c0_470, %c64] : memref<2x512xf32, #tpu.memory_space<vmem>>, vector<2x64xf32>
    tpu.vector_store %arg10[%c0_470, %c64], %962 {strides = array<i32>} : memref<2x512xf32, #tpu.memory_space<vmem>>, vector<2x64xf32>,
    %c2_471 = arith.constant 2 : index
    %c0_472 = arith.constant 0 : index
    %c0_473 = arith.constant 0 : index
    %964 = vector.load %arg12[%c2_471, %c0_472, %c0_473] : memref<8x8x256xf32, #tpu.memory_space<vmem>>, vector<1x8x256xf32>
    %965 = vector.shape_cast %964 : vector<1x8x256xf32> to vector<8x256xf32>
    %966 = vector.extract_strided_slice %965 {offsets = [0, 0], sizes = [2, 32], strides = [1, 1]} : vector<8x256xf32> to vector<2x32xf32>
    %967 = vector.extract_strided_slice %965 {offsets = [0, 128], sizes = [2, 32], strides = [1, 1]} : vector<8x256xf32> to vector<2x32xf32>
    %968 = tpu.concatenate %966, %967 in 1 : vector<2x32xf32>, vector<2x32xf32> -> vector<2x64xf32>
    %c0_474 = arith.constant 0 : index
    %c128_475 = arith.constant 128 : index
    %969 = vector.load %arg10[%c0_474, %c128_475] : memref<2x512xf32, #tpu.memory_space<vmem>>, vector<2x64xf32>
    tpu.vector_store %arg10[%c0_474, %c128_475], %968 {strides = array<i32>} : memref<2x512xf32, #tpu.memory_space<vmem>>, vector<2x64xf32>,
    %c3_476 = arith.constant 3 : index
    %c0_477 = arith.constant 0 : index
    %c0_478 = arith.constant 0 : index
    %970 = vector.load %arg12[%c3_476, %c0_477, %c0_478] : memref<8x8x256xf32, #tpu.memory_space<vmem>>, vector<1x8x256xf32>
    %971 = vector.shape_cast %970 : vector<1x8x256xf32> to vector<8x256xf32>
    %972 = vector.extract_strided_slice %971 {offsets = [0, 0], sizes = [2, 32], strides = [1, 1]} : vector<8x256xf32> to vector<2x32xf32>
    %973 = vector.extract_strided_slice %971 {offsets = [0, 128], sizes = [2, 32], strides = [1, 1]} : vector<8x256xf32> to vector<2x32xf32>
    %974 = tpu.concatenate %972, %973 in 1 : vector<2x32xf32>, vector<2x32xf32> -> vector<2x64xf32>
    %c0_479 = arith.constant 0 : index
    %c192 = arith.constant 192 : index
    %975 = vector.load %arg10[%c0_479, %c192] : memref<2x512xf32, #tpu.memory_space<vmem>>, vector<2x64xf32>
    tpu.vector_store %arg10[%c0_479, %c192], %974 {strides = array<i32>} : memref<2x512xf32, #tpu.memory_space<vmem>>, vector<2x64xf32>,
    %c4_480 = arith.constant 4 : index
    %c0_481 = arith.constant 0 : index
    %c0_482 = arith.constant 0 : index
    %976 = vector.load %arg12[%c4_480, %c0_481, %c0_482] : memref<8x8x256xf32, #tpu.memory_space<vmem>>, vector<1x8x256xf32>
    %977 = vector.shape_cast %976 : vector<1x8x256xf32> to vector<8x256xf32>
    %978 = vector.extract_strided_slice %977 {offsets = [0, 0], sizes = [2, 32], strides = [1, 1]} : vector<8x256xf32> to vector<2x32xf32>
    %979 = vector.extract_strided_slice %977 {offsets = [0, 128], sizes = [2, 32], strides = [1, 1]} : vector<8x256xf32> to vector<2x32xf32>
    %980 = tpu.concatenate %978, %979 in 1 : vector<2x32xf32>, vector<2x32xf32> -> vector<2x64xf32>
    %c0_483 = arith.constant 0 : index
    %c256 = arith.constant 256 : index
    %981 = vector.load %arg10[%c0_483, %c256] : memref<2x512xf32, #tpu.memory_space<vmem>>, vector<2x64xf32>
    tpu.vector_store %arg10[%c0_483, %c256], %980 {strides = array<i32>} : memref<2x512xf32, #tpu.memory_space<vmem>>, vector<2x64xf32>,
    %c5_484 = arith.constant 5 : index
    %c0_485 = arith.constant 0 : index
    %c0_486 = arith.constant 0 : index
    %982 = vector.load %arg12[%c5_484, %c0_485, %c0_486] : memref<8x8x256xf32, #tpu.memory_space<vmem>>, vector<1x8x256xf32>
    %983 = vector.shape_cast %982 : vector<1x8x256xf32> to vector<8x256xf32>
    %984 = vector.extract_strided_slice %983 {offsets = [0, 0], sizes = [2, 32], strides = [1, 1]} : vector<8x256xf32> to vector<2x32xf32>
    %985 = vector.extract_strided_slice %983 {offsets = [0, 128], sizes = [2, 32], strides = [1, 1]} : vector<8x256xf32> to vector<2x32xf32>
    %986 = tpu.concatenate %984, %985 in 1 : vector<2x32xf32>, vector<2x32xf32> -> vector<2x64xf32>
    %c0_487 = arith.constant 0 : index
    %c320 = arith.constant 320 : index
    %987 = vector.load %arg10[%c0_487, %c320] : memref<2x512xf32, #tpu.memory_space<vmem>>, vector<2x64xf32>
    tpu.vector_store %arg10[%c0_487, %c320], %986 {strides = array<i32>} : memref<2x512xf32, #tpu.memory_space<vmem>>, vector<2x64xf32>,
    %c6_488 = arith.constant 6 : index
    %c0_489 = arith.constant 0 : index
    %c0_490 = arith.constant 0 : index
    %988 = vector.load %arg12[%c6_488, %c0_489, %c0_490] : memref<8x8x256xf32, #tpu.memory_space<vmem>>, vector<1x8x256xf32>
    %989 = vector.shape_cast %988 : vector<1x8x256xf32> to vector<8x256xf32>
    %990 = vector.extract_strided_slice %989 {offsets = [0, 0], sizes = [2, 32], strides = [1, 1]} : vector<8x256xf32> to vector<2x32xf32>
    %991 = vector.extract_strided_slice %989 {offsets = [0, 128], sizes = [2, 32], strides = [1, 1]} : vector<8x256xf32> to vector<2x32xf32>
    %992 = tpu.concatenate %990, %991 in 1 : vector<2x32xf32>, vector<2x32xf32> -> vector<2x64xf32>
    %c0_491 = arith.constant 0 : index
    %c384 = arith.constant 384 : index
    %993 = vector.load %arg10[%c0_491, %c384] : memref<2x512xf32, #tpu.memory_space<vmem>>, vector<2x64xf32>
    tpu.vector_store %arg10[%c0_491, %c384], %992 {strides = array<i32>} : memref<2x512xf32, #tpu.memory_space<vmem>>, vector<2x64xf32>,
    %c7_492 = arith.constant 7 : index
    %c0_493 = arith.constant 0 : index
    %c0_494 = arith.constant 0 : index
    %994 = vector.load %arg12[%c7_492, %c0_493, %c0_494] : memref<8x8x256xf32, #tpu.memory_space<vmem>>, vector<1x8x256xf32>
    %995 = vector.shape_cast %994 : vector<1x8x256xf32> to vector<8x256xf32>
    %996 = vector.extract_strided_slice %995 {offsets = [0, 0], sizes = [2, 32], strides = [1, 1]} : vector<8x256xf32> to vector<2x32xf32>
    %997 = vector.extract_strided_slice %995 {offsets = [0, 128], sizes = [2, 32], strides = [1, 1]} : vector<8x256xf32> to vector<2x32xf32>
    %998 = tpu.concatenate %996, %997 in 1 : vector<2x32xf32>, vector<2x32xf32> -> vector<2x64xf32>
    %c0_495 = arith.constant 0 : index
    %c448 = arith.constant 448 : index
    %999 = vector.load %arg10[%c0_495, %c448] : memref<2x512xf32, #tpu.memory_space<vmem>>, vector<2x64xf32>
    tpu.vector_store %arg10[%c0_495, %c448], %998 {strides = array<i32>} : memref<2x512xf32, #tpu.memory_space<vmem>>, vector<2x64xf32>,
    return
  }
}

</mosaic_0001>

<bundles_post_ra>
// kernel: encoder_forward.1
= control target key start
LH: loop header
LB: loop body
LE: loop exit
PB: predicated region body
PF: predicated region fallthrough
CT: control target
= control target key end

     0   :  { %17 = vsyncpa [#allocation7], 0  ;;  %s22213_s0 = inlined_call_operand.vmem [shape: s32[2,8], index: 0, kind: input, shape index: {}]   ;;  %s22214_s1 = inlined_call_operand.vmem [shape: f32[50,1,16], index: 1, kind: input, shape index: {}]   ;;  %s22215_s2 = inlined_call_operand.hbm [shape: bf16[256,768], index: 2, kind: input, shape index: {}]   ;;  %s22216_s3 = inlined_call_operand.hbm [shape: bf16[256,768], index: 3, kind: input, shape index: {}]   ;;  %s22217_s4 = inlined_call_operand.vmem [shape: f32[1,768], index: 4, kind: input, shape index: {}]   ;;  %s22218_s5 = inlined_call_operand.vmem [shape: f32[1,768], index: 5, kind: input, shape index: {}]   ;;  %s22219_s6 = inlined_call_operand.hbm [shape: bf16[256,768], index: 6, kind: input, shape index: {}]   ;;  %s22220_s7 = inlined_call_operand.hbm [shape: bf16[256,768], index: 7, kind: input, shape index: {}]   ;;  %s22221_s8 = inlined_call_operand.vmem [shape: f32[1,768], index: 8, kind: input, shape index: {}]   ;;  %s22222_s9 = inlined_call_operand.vmem [shape: f32[1,768], index: 9, kind: input, shape index: {}]   ;;  %s22223_s10 = inlined_call_operand.vmem [shape: f32[2,512], index: 10, kind: output, shape index: {0}]   ;;  %s22224_s11 = inlined_call_operand.hbm [shape: f32[4,2,32], index: 11, kind: output, shape index: {1}]  }
   0x1   :  { %18 = vsyncpa [#allocation5], 0 }
   0x2   :  { %19 = vsyncpa [#allocation10], 0 }
   0x3   :  { %20 = vsyncpa [#allocation13], 0 }
   0x4   :  { %21 = vsyncpa [#allocation6], 0  ;;  %s28_s19 = sshll.u32 %s22213_s0, 4  ;;  %s18576_s20 = smov [#allocation9]   ;;  %s29_s19 = int_to_ptr.vmem [resolvable:$true] %s28_s19 }
   0x5   :  { %s51_s21 = sshll.u32 %s18576_s20, 4  ;;  %s52_s21 = int_to_ptr.vmem [resolvable:$true] %s51_s21 }
   0x6   :  { %s18462_s22 = scalar_lea.vmem %s52_s21, 12288  ;;  %p18467_p1 = scmp.lt.s32.totalorder %s52_s21, %s52_s21 }
   0x7   :  { %p18463_p0 = scmp.ne.s32.totalorder %s52_s21, %s18462_s22  ;;  %p18468_p2 = scmp.lt.s32.totalorder %s18462_s22, %s18462_s22 }
   0x9   :  { %p18469_p3 = por %p18468_p2, %p18467_p1 }
   0xb   :  { %p18470_p4 = pnand %p18469_p3, %p18463_p0 }
   0xd   :  { %18473 = shalt.err (!%p18470_p4)
}
   0xe   :  { %s18577_s23 = smov 384   ;;  %s18578_s24 = smov 24  }
   0xf   :  { %57 = dma.hbm_to_vmem [thread:$0]  %s22216_s3, 12288, %s52_s21, [#allocation10], %s18577_s23, %s18577_s23, %s18578_s24  }
  0x10   :  { %s18474_s0 = scalar_lea.vmem %s29_s19, 32  ;;  %p18479_p6 = scmp.lt.s32.totalorder %s29_s19, %s29_s19 }
  0x11   :  { %p18475_p5 = scmp.ne.s32.totalorder %s29_s19, %s18474_s0  ;;  %p18480_p7 = scmp.lt.s32.totalorder %s18474_s0, %s18474_s0 }
  0x13   :  { %p18481_p8 = por %p18480_p7, %p18479_p6 }
  0x15   :  { %p18482_p9 = pnand %p18481_p8, %p18475_p5 }
  0x17   :  { %18485 = shalt.err (!%p18482_p9)
}
  0x18   :  { %s18579_s27 = smov [#allocation4]   ;;  %s18580_s28 = smov [#allocation8]  }
  0x19   :  { %31 = dma.vmem_to_smem %s29_s19, 32, %s18579_s27, [#allocation7]  }
  0x1a   :  { %s39_s29 = sshll.u32 %s18580_s28, 4  ;;  %s18581_s30 = smov [#allocation11]   ;;  %s40_s29 = int_to_ptr.vmem [resolvable:$true] %s39_s29 }
  0x1b   :  { %s67_s12 = sshll.u32 %s18581_s30, 4  ;;  %s18494_s13 = scalar_lea.vmem %s40_s29, 12288  ;;  %s68_s12 = int_to_ptr.vmem [resolvable:$true] %s67_s12 }
  0x1c   :  { %p18495_p10 = scmp.ne.s32.totalorder %s40_s29, %s18494_s13  ;;  %p18499_p11 = scmp.lt.s32.totalorder %s40_s29, %s40_s29 }
  0x1d   :  { %p18500_p12 = scmp.lt.s32.totalorder %s18494_s13, %s18494_s13 }
  0x1f   :  { %p18501_p13 = por %p18500_p12, %p18499_p11 }
  0x21   :  { %p18502_p0 = pnand %p18501_p13, %p18495_p10 }
  0x23   :  { %18505 = shalt.err (!%p18502_p0)
}
  0x24   :  { %45 = dma.hbm_to_vmem [thread:$0]  %s22215_s2, 12288, %s40_s29, [#allocation5], %s18577_s23, %s18577_s23, %s18578_s24  }
  0x25   :  { %s18514_s15 = scalar_lea.vmem %s68_s12, 12288  ;;  %p18519_p2 = scmp.lt.s32.totalorder %s68_s12, %s68_s12 }
  0x26   :  { %p18515_p1 = scmp.ne.s32.totalorder %s68_s12, %s18514_s15  ;;  %p18520_p3 = scmp.lt.s32.totalorder %s18514_s15, %s18514_s15 }
  0x28   :  { %p18521_p4 = por %p18520_p3, %p18519_p2 }
  0x2a   :  { %p18522_p5 = pnand %p18521_p4, %p18515_p1 }
  0x2c   :  { %18525 = shalt.err (!%p18522_p5)
}
  0x2d   :  { %73 = dma.hbm_to_vmem [thread:$0]  %s22219_s6, 12288, %s68_s12, [#allocation10], %s18577_s23, %s18577_s23, %s18578_s24  }
  0x2e   :  { %s18582_s18 = smov [#allocation12]  }
  0x2f   :  { %s79_s19 = sshll.u32 %s18582_s18, 4  ;;  %s80_s19 = int_to_ptr.vmem [resolvable:$true] %s79_s19 }
  0x30   :  { %s18534_s20 = scalar_lea.vmem %s80_s19, 12288  ;;  %p18539_p7 = scmp.lt.s32.totalorder %s80_s19, %s80_s19 }
  0x31   :  { %p18535_p6 = scmp.ne.s32.totalorder %s80_s19, %s18534_s20  ;;  %p18540_p8 = scmp.lt.s32.totalorder %s18534_s20, %s18534_s20 }
  0x33   :  { %p18541_p9 = por %p18540_p8, %p18539_p7 }
  0x35   :  { %p18542_p10 = pnand %p18541_p9, %p18535_p6 }
  0x37   :  { %18545 = shalt.err (!%p18542_p10)
}
  0x38   :  { %85 = dma.hbm_to_vmem [thread:$0]  %s22220_s7, 12288, %s80_s19, [#allocation13], %s18577_s23, %s18577_s23, %s18578_s24  }
  0x39   :  { %18566 = dma.done.wait [#allocation7], 32  }
  0x3a   :  { %18567 = vsyncadd [#allocation7], 4294967264 }
  0x3b   :  { %18568 = dma.done.wait [#allocation5], 12288  }
  0x3c   :  { %18569 = vsyncadd [#allocation5], 4294955008 }
  0x3d   :  { %18570 = dma.done.wait [#allocation10], 24576  }
  0x3e   :  { %18571 = vsyncadd [#allocation10], 4294942720 }
  0x3f   :  { %18572 = dma.done.wait [#allocation13], 12288  }
  0x40   :  { %18573 = vsyncadd [#allocation13], 4294955008 }
  0x41   :  { %105 = sfence }
  0x42   :  { %v16504_v0 = vld [vmem:[#allocation8 + $0x154] ss:$24 sps:$4 sm:$0xff]   ;;  %v18583_v2 = vmov 0.0   ;;  %v16508_v3 = vld [vmem:[#allocation8 + $0x150] ss:$24 sps:$4 sm:$0xff]   ;;  %v18584_v6 = vmov 0.0|0.0  }
  0x43   :  { %v16506_v1 = vld [vmem:[#allocation8 + $0x15c] ss:$24 sps:$4 sm:$0xff]   ;;  %107 = vst [vmem:[#allocation2] sm:$0xff] %v18583_v2  ;;  %109 = vst [vmem:[#allocation2 + $0x10] sm:$0xff] %v18583_v2  ;;  %827 = vmatprep.subr.bf16.mxu0 %v16504_v0  ;;  %v16509_v4 = vld [vmem:[#allocation8 + $0x158] ss:$24 sps:$4 sm:$0xff]   ;;  %859 = vmatprep.mubr.bf16.mxu0 %v18584_v6 }
  0x44   :  { %111 = vst [vmem:[#allocation2 + $0x20] sm:$0xff] %v18583_v2  ;;  %113 = vst [vmem:[#allocation2 + $0x30] sm:$0xff] %v18583_v2  ;;  %900 = vmatprep.subr.bf16.mxu1 %v16506_v1  ;;  %v16510_v5 = vld [vmem:[#allocation8 + $0x124] ss:$24 sps:$4 sm:$0xff]   ;;  %828 = vmatpush1.bf16.msra.mxu0 %v16508_v3  ;;  %v16514_v8 = vld [vmem:[#allocation8 + $0x120] ss:$24 sps:$4 sm:$0xff]  }
  0x45   :  { %115 = vst [vmem:[#allocation2 + $0x40] sm:$0xff] %v18583_v2  ;;  %117 = vst [vmem:[#allocation2 + $0x50] sm:$0xff] %v18583_v2  ;;  %901 = vmatpush1.bf16.msra.mxu1 %v16509_v4  ;;  %v16512_v7 = vld [vmem:[#allocation8 + $0x12c] ss:$24 sps:$4 sm:$0xff]   ;;  %829 = vmatprep.subr.bf16.mxu0 %v16510_v5  ;;  %v16515_v9 = vld [vmem:[#allocation8 + $0x128] ss:$24 sps:$4 sm:$0xff]  }
  0x46   :  { %119 = vst [vmem:[#allocation2 + $0x60] sm:$0xff] %v18583_v2  ;;  %121 = vst [vmem:[#allocation2 + $0x70] sm:$0xff] %v18583_v2  ;;  %932 = vmatprep.mubr.bf16.mxu1 %v18584_v6  ;;  %902 = vmatprep.subr.bf16.mxu1 %v16512_v7  ;;  %v16516_v10 = vld [vmem:[#allocation8 + $0xf4] ss:$24 sps:$4 sm:$0xff]   ;;  %v16520_v12 = vld [vmem:[#allocation8 + $0xf0] ss:$24 sps:$4 sm:$0xff]  }
  0x47   :  { %v16518_v11 = vld [vmem:[#allocation8 + $0xfc] ss:$24 sps:$4 sm:$0xff]   ;;  %v16521_v13 = vld [vmem:[#allocation8 + $0xf8] ss:$24 sps:$4 sm:$0xff]   ;;  %v16524_v15 = vld [vmem:[#allocation8 + $0xcc] ss:$24 sps:$4 sm:$0xff]  }
  0x48   :  { %830 = vmatpush1.bf16.msra.mxu0 %v16514_v8  ;;  %v16522_v14 = vld [vmem:[#allocation8 + $0xc4] ss:$24 sps:$4 sm:$0xff]   ;;  %v16526_v16 = vld [vmem:[#allocation8 + $0xc0] ss:$24 sps:$4 sm:$0xff]   ;;  %v16528_v18 = vld [vmem:[#allocation8 + $0x94] ss:$24 sps:$4 sm:$0xff]  }
  0x49   :  { %903 = vmatpush1.bf16.msra.mxu1 %v16515_v9  ;;  %831 = vmatprep.subr.bf16.mxu0 %v16516_v10  ;;  %v16527_v17 = vld [vmem:[#allocation8 + $0xc8] ss:$24 sps:$4 sm:$0xff]   ;;  %v16530_v19 = vld [vmem:[#allocation8 + $0x9c] ss:$24 sps:$4 sm:$0xff]   ;;  %v16533_v21 = vld [vmem:[#allocation8 + $0x98] ss:$24 sps:$4 sm:$0xff]  }
  0x4a   :  { %904 = vmatprep.subr.bf16.mxu1 %v16518_v11  ;;  %v16532_v20 = vld [vmem:[#allocation8 + $0x90] ss:$24 sps:$4 sm:$0xff]   ;;  %v16534_v22 = vld [vmem:[#allocation8 + $0x64] ss:$24 sps:$4 sm:$0xff]   ;;  %v16538_v24 = vld [vmem:[#allocation8 + $0x60] ss:$24 sps:$4 sm:$0xff]  }
  0x4b   :  { %v16536_v23 = vld [vmem:[#allocation8 + $0x6c] ss:$24 sps:$4 sm:$0xff]   ;;  %v16539_v25 = vld [vmem:[#allocation8 + $0x68] ss:$24 sps:$4 sm:$0xff]   ;;  %v16542_v27 = vld [vmem:[#allocation8 + $0x3c] ss:$24 sps:$4 sm:$0xff]  }
  0x4c   :  { %832 = vmatpush1.bf16.msra.mxu0 %v16520_v12  ;;  %v16540_v26 = vld [vmem:[#allocation8 + $0x34] ss:$24 sps:$4 sm:$0xff]   ;;  %v16544_v28 = vld [vmem:[#allocation8 + $0x30] ss:$24 sps:$4 sm:$0xff]   ;;  %v16546_v30 = vld [vmem:[#allocation8 + $0x4] ss:$24 sps:$4 sm:$0xff]  }
  0x4d   :  { %905 = vmatpush1.bf16.msra.mxu1 %v16521_v13  ;;  %833 = vmatprep.subr.bf16.mxu0 %v16522_v14  ;;  %v16545_v29 = vld [vmem:[#allocation8 + $0x38] ss:$24 sps:$4 sm:$0xff]   ;;  %v16548_v31 = vld [vmem:[#allocation8 + $0xc] ss:$24 sps:$4 sm:$0xff]   ;;  %v16551_v33 = vld [vmem:[#allocation8 + $0x8] ss:$24 sps:$4 sm:$0xff]  }
  0x4e   :  { %906 = vmatprep.subr.bf16.mxu1 %v16524_v15  ;;  %v16550_v32 = vld [vmem:[#allocation8] ss:$24 sps:$4 sm:$0xff]   ;;  %v16552_v34 = vld [vmem:[#allocation8 + $0x2d4] ss:$24 sps:$4 sm:$0xff]   ;;  %s18680_s6 = sld [smem:[#allocation4]]  ;;  %vm126_vm0 = vcmask 122880  }
  0x4f   :  { %v16554_v35 = vld [vmem:[#allocation8 + $0x2dc] ss:$24 sps:$4 sm:$0xff]   ;;  %s18682_s7 = sld [smem:[#allocation4 + $0x80]]  ;;  %v16556_v36 = vld [vmem:[#allocation8 + $0x2d0] ss:$24 sps:$4 sm:$0xff]   ;;  %vm7363_vm1 = vcmask 254976  }
  0x50   :  { %834 = vmatpush1.bf16.msra.mxu0 %v16526_v16  ;;  %v16557_v37 = vld [vmem:[#allocation8 + $0x2d8] ss:$24 sps:$4 sm:$0xff]   ;;  %s18684_s22 = sld [smem:[#allocation4 + $0x1]]  ;;  %v16558_v38 = vld [vmem:[#allocation8 + $0x2a4] ss:$24 sps:$4 sm:$0xff]   ;;  %vm14540_vm2 = vcmask 517120  }
  0x51   :  { %907 = vmatpush1.bf16.msra.mxu1 %v16527_v17  ;;  %835 = vmatprep.subr.bf16.mxu0 %v16528_v18  ;;  %s18686_s23 = sld [smem:[#allocation4 + $0x81]]  ;;  %v16560_v39 = vld [vmem:[#allocation8 + $0x2ac] ss:$24 sps:$4 sm:$0xff]   ;;  %v16562_v40 = vld [vmem:[#allocation8 + $0x2a0] ss:$24 sps:$4 sm:$0xff]   ;;  %vm14538_vm3 = vcmask 261120  }
  0x52   :  { %908 = vmatprep.subr.bf16.mxu1 %v16530_v19  ;;  %v16563_v41 = vld [vmem:[#allocation8 + $0x2a8] ss:$24 sps:$4 sm:$0xff]   ;;  %v16564_v42 = vld [vmem:[#allocation8 + $0x274] ss:$24 sps:$4 sm:$0xff]   ;;  %v16569_v45 = vld [vmem:[#allocation8 + $0x278] ss:$24 sps:$4 sm:$0xff]  }
  0x53   :  { %v16566_v43 = vld [vmem:[#allocation8 + $0x27c] ss:$24 sps:$4 sm:$0xff]   ;;  %v16568_v44 = vld [vmem:[#allocation8 + $0x270] ss:$24 sps:$4 sm:$0xff]   ;;  %v16572_v47 = vld [vmem:[#allocation8 + $0x24c] ss:$24 sps:$4 sm:$0xff]  }
  0x54   :  { %836 = vmatpush1.bf16.msra.mxu0 %v16532_v20  ;;  %s124_s26 = scalar_lea.vmem %s22214_s1, %s18680_s6  ;;  %v16570_v46 = vld [vmem:[#allocation8 + $0x244] ss:$24 sps:$4 sm:$0xff]   ;;  %v16574_v48 = vld [vmem:[#allocation8 + $0x240] ss:$24 sps:$4 sm:$0xff]   ;;  %v16576_v54 = vld [vmem:[#allocation8 + $0x214] ss:$24 sps:$4 sm:$0xff]  }
  0x55   :  { %909 = vmatpush1.bf16.msra.mxu1 %v16533_v21  ;;  %837 = vmatprep.subr.bf16.mxu0 %v16534_v22  ;;  %s129_s28 = scalar_lea.vmem %s22214_s1, %s18682_s7  ;;  %v16575_v49 = vld [vmem:[#allocation8 + $0x248] ss:$24 sps:$4 sm:$0xff]   ;;  %v16578_v55 = vld [vmem:[#allocation8 + $0x21c] ss:$24 sps:$4 sm:$0xff]   ;;  %v16581_v57 = vld [vmem:[#allocation8 + $0x218] ss:$24 sps:$4 sm:$0xff]  }
  0x56   :  { %910 = vmatprep.subr.bf16.mxu1 %v16536_v23  ;;  %s133_s12 = scalar_lea.vmem %s22214_s1, %s18684_s22  ;;  %v125_v50 = vld [vmem:[%s124_s26] sm:$0x1]  ;;  %v16580_v56 = vld [vmem:[#allocation8 + $0x210] ss:$24 sps:$4 sm:$0xff]   ;;  %v16582_v58 = vld [vmem:[#allocation8 + $0x1e4] ss:$24 sps:$4 sm:$0xff]  }
  0x57   :  { %s138_s14 = scalar_lea.vmem %s22214_s1, %s18686_s23  ;;  %127 = vst.msk [vmem:[#allocation2] sm:$0x1] %vm126_vm0, %v125_v50  ;;  %v130_v51 = vld [vmem:[%s129_s28] sm:$0x1]  ;;  %v16584_v59 = vld [vmem:[#allocation8 + $0x1ec] ss:$24 sps:$4 sm:$0xff]  }
  0x58   :  { %838 = vmatpush1.bf16.msra.mxu0 %v16538_v24  ;;  %v134_v52 = vld [vmem:[%s133_s12] sm:$0x1]  ;;  %131 = vst.msk [vmem:[#allocation2 + $0x1] sm:$0x1] %vm126_vm0, %v130_v51  ;;  %s18708_s15 = sld [smem:[#allocation4 + $0x2]]  ;;  %vm14560_vm4 = vcmask 1041920  }
  0x59   :  { %911 = vmatpush1.bf16.msra.mxu1 %v16539_v25  ;;  %839 = vmatprep.subr.bf16.mxu0 %v16540_v26  ;;  %v139_v53 = vld [vmem:[%s138_s14] sm:$0x1]  ;;  %136 = vst.msk [vmem:[#allocation2 + $0x10] sm:$0x1] %vm126_vm0, %v134_v52  ;;  %v16588_v62 = vld [vmem:[#allocation8 + $0x1b4] ss:$24 sps:$4 sm:$0xff]  }
  0x5a   :  { %912 = vmatprep.subr.bf16.mxu1 %v16542_v27  ;;  %140 = vst.msk [vmem:[#allocation2 + $0x11] sm:$0x1] %vm126_vm0, %v139_v53  ;;  %v16586_v60 = vld [vmem:[#allocation8 + $0x1e0] ss:$24 sps:$4 sm:$0xff]   ;;  %v16590_v63 = vld [vmem:[#allocation8 + $0x1bc] ss:$24 sps:$4 sm:$0xff]  }
  0x5b   :  { %v16587_v61 = vld [vmem:[#allocation8 + $0x1e8] ss:$24 sps:$4 sm:$0xff]   ;;  %s18710_s16 = sld [smem:[#allocation4 + $0x82]]  ;;  %v16593_v1 = vld [vmem:[#allocation8 + $0x1b8] ss:$24 sps:$4 sm:$0xff]  }
  0x5c   :  { %840 = vmatpush1.bf16.msra.mxu0 %v16544_v28  ;;  %s18712_s17 = sld [smem:[#allocation4 + $0x3]]  ;;  %v16592_v0 = vld [vmem:[#allocation8 + $0x1b0] ss:$24 sps:$4 sm:$0xff]   ;;  %v16594_v2 = vld [vmem:[#allocation8 + $0x184] ss:$24 sps:$4 sm:$0xff]  }
  0x5d   :  { %913 = vmatpush1.bf16.msra.mxu1 %v16545_v29  ;;  %841 = vmatprep.subr.bf16.mxu0 %v16546_v30  ;;  %v16596_v3 = vld [vmem:[#allocation8 + $0x18c] ss:$24 sps:$4 sm:$0xff]   ;;  %v16598_v4 = vld [vmem:[#allocation8 + $0x180] ss:$24 sps:$4 sm:$0xff]   ;;  %s18714_s18 = sld [smem:[#allocation4 + $0x83]] }
  0x5e   :  { %914 = vmatprep.subr.bf16.mxu1 %v16548_v31  ;;  %v16599_v5 = vld [vmem:[#allocation8 + $0x188] ss:$24 sps:$4 sm:$0xff]   ;;  %s18716_s19 = sld [smem:[#allocation4 + $0x4]]  ;;  %v16602_v9 = vld [vmem:[#allocation8 + $0x164] ss:$24 sps:$4 sm:$0xff]   ;;  %s142_s22 = scalar_lea.vmem %s22214_s1, %s18708_s15 }
  0x5f   :  { %v195_v7 = vld [vmem:[#allocation2] sm:$0xff]  ;;  %s18718_s20 = sld [smem:[#allocation4 + $0x84]]  ;;  %v16605_v10 = vld [vmem:[#allocation9 + $0x154] ss:$24 sps:$4 sm:$0xff]   ;;  %v16603_v13 = vld [vmem:[#allocation9 + $0x150] ss:$24 sps:$4 sm:$0xff]  }
  0x60   :  { %842 = vmatpush1.bf16.msra.mxu0 %v16550_v32  ;;  %s18720_s2 = sld [smem:[#allocation4 + $0x5]]  ;;  %v16600_v12 = vld [vmem:[#allocation8 + $0x160] ss:$24 sps:$4 sm:$0xff]   ;;  %v16608_v14 = vld [vmem:[#allocation8 + $0x134] ss:$24 sps:$4 sm:$0xff]  }
  0x61   :  { %915 = vmatpush1.bf16.msra.mxu1 %v16551_v33  ;;  %843 = vmatprep.subr.bf16.mxu0 %v16552_v34  ;;  %v197_v8 = vld [vmem:[#allocation2 + $0x10] sm:$0xff]  ;;  %s18724_s21 = sld [smem:[#allocation4 + $0x85]]  ;;  %v16611_v15 = vld [vmem:[#allocation9 + $0x124] ss:$24 sps:$4 sm:$0xff]   ;;  %s147_s25 = scalar_lea.vmem %s22214_s1, %s18710_s16  ;;  %v16609_v17 = vld [vmem:[#allocation9 + $0x120] ss:$24 sps:$4 sm:$0xff]  }
  0x62   :  { %916 = vmatprep.subr.bf16.mxu1 %v16554_v35  ;;  %v18722_v11 = vpack.c.bf16 %v197_v8, %v195_v7  ;;  %s151_s27 = scalar_lea.vmem %s22214_s1, %s18712_s17  ;;  %v16606_v16 = vld [vmem:[#allocation8 + $0x130] ss:$24 sps:$4 sm:$0xff]   ;;  %s18742_s12 = sld [smem:[#allocation4 + $0x6]]  ;;  %v16614_v18 = vld [vmem:[#allocation8 + $0x104] ss:$24 sps:$4 sm:$0xff]   ;;  %v22225_v8 = vmov 0  }
  0x63   :  { %s156_s30 = scalar_lea.vmem %s22214_s1, %s18714_s18  ;;  %s18746_s13 = sld [smem:[#allocation4 + $0x86]]  ;;  %v16617_v19 = vld [vmem:[#allocation9 + $0xf4] ss:$24 sps:$4 sm:$0xff]   ;;  %v143_v20 = vld [vmem:[%s142_s22] sm:$0x1] }
  0x64   :  { %844 = vmatpush2.bf16.msra.mxu0 %v16556_v36  ;;  %145 = vst.msk [vmem:[#allocation2 + $0x20] sm:$0x1] %vm126_vm0, %v143_v20  ;;  %v148_v21 = vld [vmem:[%s147_s25] sm:$0x1]  ;;  %s18754_s3 = sld [smem:[#allocation4 + $0x7]]  ;;  %s160_s17 = scalar_lea.vmem %s22214_s1, %s18716_s19 }
  0x65   :  { %917 = vmatpush2.bf16.msra.mxu1 %v16557_v37  ;;  %845 = vmatprep.subr.bf16.mxu0 %v16558_v38  ;;  %v152_v22 = vld [vmem:[%s151_s27] sm:$0x1]  ;;  %149 = vst.msk [vmem:[#allocation2 + $0x21] sm:$0x1] %vm126_vm0, %v148_v21  ;;  %s18756_s14 = sld [smem:[#allocation4 + $0x87]]  ;;  %s165_s7 = scalar_lea.vmem %s22214_s1, %s18718_s20 }
  0x66   :  { %918 = vmatprep.subr.bf16.mxu1 %v16560_v39  ;;  %v157_v23 = vld [vmem:[%s156_s30] sm:$0x1]  ;;  %154 = vst.msk [vmem:[#allocation2 + $0x30] sm:$0x1] %vm126_vm0, %v152_v22  ;;  %v16615_v25 = vld [vmem:[#allocation9 + $0xf0] ss:$24 sps:$4 sm:$0xff]   ;;  %s169_s24 = scalar_lea.vmem %s22214_s1, %s18720_s2 }
  0x67   :  { %158 = vst.msk [vmem:[#allocation2 + $0x31] sm:$0x1] %vm126_vm0, %v157_v23  ;;  %v16612_v24 = vld [vmem:[#allocation8 + $0x100] ss:$24 sps:$4 sm:$0xff]   ;;  %v16620_v26 = vld [vmem:[#allocation8 + $0xd4] ss:$24 sps:$4 sm:$0xff]   ;;  %s174_s0 = scalar_lea.vmem %s22214_s1, %s18724_s21 }
  0x68   :  { %846 = vmatpush2.bf16.msra.mxu0 %v16562_v40  ;;  %v16623_v27 = vld [vmem:[#allocation9 + $0xc4] ss:$24 sps:$4 sm:$0xff]   ;;  %v16618_v28 = vld [vmem:[#allocation8 + $0xd0] ss:$24 sps:$4 sm:$0xff]   ;;  %v16621_v29 = vld [vmem:[#allocation9 + $0xc0] ss:$24 sps:$4 sm:$0xff]   ;;  %s178_s2 = scalar_lea.vmem %s22214_s1, %s18742_s12 }
  0x69   :  { %919 = vmatpush2.bf16.msra.mxu1 %v16563_v41  ;;  %847 = vmatprep.subr.bf16.mxu0 %v16564_v42  ;;  %v16626_v30 = vld [vmem:[#allocation8 + $0xa4] ss:$24 sps:$4 sm:$0xff]   ;;  %v16629_v31 = vld [vmem:[#allocation9 + $0x94] ss:$24 sps:$4 sm:$0xff]   ;;  %v161_v32 = vld [vmem:[%s160_s17] sm:$0x1]  ;;  %s183_s28 = scalar_lea.vmem %s22214_s1, %s18746_s13 }
  0x6a   :  { %920 = vmatprep.subr.bf16.mxu1 %v16566_v43  ;;  %v166_v33 = vld [vmem:[%s165_s7] sm:$0x1]  ;;  %163 = vst.msk [vmem:[#allocation2 + $0x40] sm:$0x1] %vm126_vm0, %v161_v32  ;;  %v16627_v40 = vld [vmem:[#allocation9 + $0x90] ss:$24 sps:$4 sm:$0xff]   ;;  %s187_s15 = scalar_lea.vmem %s22214_s1, %s18754_s3 }
  0x6b   :  { %167 = vst.msk [vmem:[#allocation2 + $0x41] sm:$0x1] %vm126_vm0, %v166_v33  ;;  %v170_v34 = vld [vmem:[%s169_s24] sm:$0x1]  ;;  %v16632_v41 = vld [vmem:[#allocation8 + $0x74] ss:$24 sps:$4 sm:$0xff]   ;;  %s192_s18 = scalar_lea.vmem %s22214_s1, %s18756_s14 }
  0x6c   :  { %848 = vmatpush2.bf16.msra.mxu0 %v16568_v44  ;;  %v175_v35 = vld [vmem:[%s174_s0] sm:$0x1]  ;;  %172 = vst.msk [vmem:[#allocation2 + $0x50] sm:$0x1] %vm126_vm0, %v170_v34  ;;  %v16635_v42 = vld [vmem:[#allocation9 + $0x64] ss:$24 sps:$4 sm:$0xff]  }
  0x6d   :  { %921 = vmatpush2.bf16.msra.mxu1 %v16569_v45  ;;  %849 = vmatprep.subr.bf16.mxu0 %v16570_v46  ;;  %v199_v36 = vld [vmem:[#allocation2 + $0x20] sm:$0xff]  ;;  %176 = vst.msk [vmem:[#allocation2 + $0x51] sm:$0x1] %vm126_vm0, %v175_v35  ;;  %v16630_v43 = vld [vmem:[#allocation8 + $0x70] ss:$24 sps:$4 sm:$0xff]   ;;  %s18586_s17 = smov 32  }
  0x6e   :  { %922 = vmatprep.subr.bf16.mxu1 %v16572_v47  ;;  %v201_v37 = vld [vmem:[#allocation2 + $0x30] sm:$0xff]  ;;  %v16624_v39 = vld [vmem:[#allocation8 + $0xa0] ss:$24 sps:$4 sm:$0xff]   ;;  %v16638_v51 = vld [vmem:[#allocation8 + $0x44] ss:$24 sps:$4 sm:$0xff]   ;;  %s18588_s25 = smov 64  }
  0x6f   :  { %v18778_v38 = vpack.c.bf16 %v201_v37, %v199_v36  ;;  %v16633_v44 = vld [vmem:[#allocation9 + $0x60] ss:$24 sps:$4 sm:$0xff]   ;;  %v16641_v52 = vld [vmem:[#allocation9 + $0x34] ss:$24 sps:$4 sm:$0xff]   ;;  %v16675_v21 = vld [vmem:[#allocation9 + $0x210] ss:$24 sps:$4 sm:$0xff]  }
  0x70   :  { %850 = vmatpush2.bf16.msra.mxu0 %v16574_v48  ;;  %v179_v45 = vld [vmem:[%s178_s2] sm:$0x1]  ;;  %v16680_v22 = vld [vmem:[#allocation8 + $0x1f4] ss:$24 sps:$4 sm:$0xff]   ;;  %v16683_v23 = vld [vmem:[#allocation9 + $0x1e4] ss:$24 sps:$4 sm:$0xff]  }
  0x71   :  { %923 = vmatpush2.bf16.msra.mxu1 %v16575_v49  ;;  %851 = vmatprep.subr.bf16.mxu0 %v16576_v54  ;;  %181 = vst.msk [vmem:[#allocation2 + $0x60] sm:$0x1] %vm126_vm0, %v179_v45  ;;  %v184_v47 = vld [vmem:[%s183_s28] sm:$0x1]  ;;  %v16690_v32 = vld [vmem:[#allocation8 + $0x190] ss:$24 sps:$4 sm:$0xff]  }
  0x72   :  { %924 = vmatprep.subr.bf16.mxu1 %v16578_v55  ;;  %v203_v46 = vld [vmem:[#allocation2 + $0x40] sm:$0xff]  ;;  %185 = vst.msk [vmem:[#allocation2 + $0x61] sm:$0x1] %vm126_vm0, %v184_v47  ;;  %v16639_v55 = vld [vmem:[#allocation9 + $0x30] ss:$24 sps:$4 sm:$0xff]   ;;  %s18589_s21 = smov [#allocation14]  }
  0x73   :  { %v188_v48 = vld [vmem:[%s187_s15] sm:$0x1]  ;;  %v18816_v34 = vld [vmem:[#allocation9 + $0x15c] ss:$24 sps:$4 sm:$0xff]   ;;  %v18818_v36 = vld [vmem:[#allocation9 + $0x158] ss:$24 sps:$4 sm:$0xff]  }
  0x74   :  { %852 = vmatpush2.bf16.msra.mxu0 %v16580_v56  ;;  %v205_v49 = vld [vmem:[#allocation2 + $0x50] sm:$0xff]  ;;  %190 = vst.msk [vmem:[#allocation2 + $0x70] sm:$0x1] %vm126_vm0, %v188_v48  ;;  %v193_v50 = vld [vmem:[%s192_s18] sm:$0x1] }
  0x75   :  { %925 = vmatpush2.bf16.msra.mxu1 %v16581_v57  ;;  %853 = vmatprep.subr.bf16.mxu0 %v16582_v58  ;;  %194 = vst.msk [vmem:[#allocation2 + $0x71] sm:$0x1] %vm126_vm0, %v193_v50  ;;  %v18804_v53 = vpack.c.bf16 %v205_v49, %v203_v46  ;;  %v16636_v54 = vld [vmem:[#allocation8 + $0x40] ss:$24 sps:$4 sm:$0xff]   ;;  %v16644_v56 = vld [vmem:[#allocation8 + $0x14] ss:$24 sps:$4 sm:$0xff]  }
  0x76   :  { %926 = vmatprep.subr.bf16.mxu1 %v16584_v59  ;;  %v16647_v57 = vld [vmem:[#allocation9 + $0x4] ss:$24 sps:$4 sm:$0xff]   ;;  %v16642_v58 = vld [vmem:[#allocation8 + $0x10] ss:$24 sps:$4 sm:$0xff]   ;;  %v16645_v59 = vld [vmem:[#allocation9] ss:$24 sps:$4 sm:$0xff]  }
  0x77   :  { %v16657_v7 = vld [vmem:[#allocation9 + $0x2a0] ss:$24 sps:$4 sm:$0xff]   ;;  %v16701_v35 = vld [vmem:[#allocation9 + $0x164] ss:$24 sps:$4 sm:$0xff]   ;;  %v16719_v47 = vld [vmem:[#allocation9 + $0xd4] ss:$24 sps:$4 sm:$0xff]  }
  0x78   :  { %854 = vmatpush2.bf16.msra.mxu0 %v16586_v60  ;;  %v16672_v20 = vld [vmem:[#allocation8 + $0x220] ss:$24 sps:$4 sm:$0xff]   ;;  %v18835_v46 = vld [vmem:[#allocation9 + $0xcc] ss:$24 sps:$4 sm:$0xff]   ;;  %v16717_v49 = vld [vmem:[#allocation9 + $0xd0] ss:$24 sps:$4 sm:$0xff]  }
  0x79   :  { %927 = vmatpush2.bf16.msra.mxu1 %v16587_v61  ;;  %855 = vmatprep.subr.bf16.mxu0 %v16588_v62  ;;  %v207_v60 = vld [vmem:[#allocation2 + $0x60] sm:$0xff]  ;;  %v18831_v45 = vld [vmem:[#allocation9 + $0xf8] ss:$24 sps:$4 sm:$0xff]   ;;  %v18841_v50 = vld [vmem:[#allocation9 + $0x9c] ss:$24 sps:$4 sm:$0xff]  }
  0x7a   :  { %928 = vmatprep.subr.bf16.mxu1 %v16590_v63  ;;  %v16650_v61 = vld [vmem:[#allocation8 + $0x2e4] ss:$24 sps:$4 sm:$0xff]   ;;  %v16653_v63 = vld [vmem:[#allocation9 + $0x2d4] ss:$24 sps:$4 sm:$0xff]   ;;  %v16693_v33 = vld [vmem:[#allocation9 + $0x180] ss:$24 sps:$4 sm:$0xff]  }
  0x7b   :  { %v16699_v37 = vld [vmem:[#allocation9 + $0x160] ss:$24 sps:$4 sm:$0xff]  }
  0x7c   :  { %856 = vmatpush2.bf16.msra.mxu0 %v16592_v0  ;;  %v209_v62 = vld [vmem:[#allocation2 + $0x70] sm:$0xff]  ;;  %v18839_v48 = vld [vmem:[#allocation9 + $0xc8] ss:$24 sps:$4 sm:$0xff]  }
  0x7d   :  { %929 = vmatpush2.bf16.msra.mxu1 %v16593_v1  ;;  %857 = vmatprep.subr.bf16.mxu0 %v16594_v2  ;;  %v18810_v0 = vpack.c.bf16 %v209_v62, %v207_v60  ;;  %v16648_v1 = vld [vmem:[#allocation8 + $0x2e0] ss:$24 sps:$4 sm:$0xff]   ;;  %v16651_v2 = vld [vmem:[#allocation9 + $0x2d0] ss:$24 sps:$4 sm:$0xff]   ;;  %v18863_v62 = vld [vmem:[#allocation9 + $0xc] ss:$24 sps:$4 sm:$0xff]  }
  0x7e   :  { %930 = vmatprep.subr.bf16.mxu1 %v16596_v3  ;;  %v16656_v3 = vld [vmem:[#allocation8 + $0x2b4] ss:$24 sps:$4 sm:$0xff]   ;;  %v18860_v60 = vld [vmem:[#allocation9 + $0x38] ss:$24 sps:$4 sm:$0xff]  }
  0x80   :  { %858 = vmatpush2.bf16.msra.mxu0 %v16598_v4  ;;  %v16659_v4 = vld [vmem:[#allocation9 + $0x2a4] ss:$24 sps:$4 sm:$0xff]  }
  0x81   :  { %931 = vmatpush2.bf16.msra.mxu1 %v16599_v5  ;;  %973 = vmatprep.subr.bf16.mxu0 %v16602_v9  ;;  %v16654_v5 = vld [vmem:[#allocation8 + $0x2b0] ss:$24 sps:$4 sm:$0xff]   ;;  %v16662_v9 = vld [vmem:[#allocation8 + $0x284] ss:$24 sps:$4 sm:$0xff]  }
  0x82   :  { %1709 = vmatprep.subr.bf16.mxu1 %v16605_v10  ;;  %v16665_v10 = vld [vmem:[#allocation9 + $0x274] ss:$24 sps:$4 sm:$0xff]  }
  0x83   :  { %860 = vmatmul.mubr.bf16.vlgmr.msra.gmra.mxu0 %v18722_v11 }
  0x84   :  { %933 = vmatmul.mubr.bf16.vlgmr.msra.gmra.mxu1 %v18722_v11  ;;  %974 = vmatpush1.bf16.msra.mxu0 %v16600_v12  ;;  %v16660_v12 = vld [vmem:[#allocation8 + $0x280] ss:$24 sps:$4 sm:$0xff]  }
  0x85   :  { %1710 = vmatpush1.bf16.msra.mxu1 %v16603_v13  ;;  %975 = vmatprep.subr.bf16.mxu0 %v16608_v14  ;;  %v16663_v13 = vld [vmem:[#allocation9 + $0x270] ss:$24 sps:$4 sm:$0xff]   ;;  %v16668_v14 = vld [vmem:[#allocation8 + $0x254] ss:$24 sps:$4 sm:$0xff]  }
  0x86   :  { %1711 = vmatprep.subr.bf16.mxu1 %v16611_v15  ;;  %869 = vmatprep.mubr.bf16.mxu0 %v18584_v6  ;;  %v16671_v15 = vld [vmem:[#allocation9 + $0x244] ss:$24 sps:$4 sm:$0xff]  }
  0x87   :  { %942 = vmatprep.mubr.bf16.mxu1 %v18584_v6 }
  0x88   :  { %976 = vmatpush1.bf16.msra.mxu0 %v16606_v16  ;;  %v16666_v16 = vld [vmem:[#allocation8 + $0x250] ss:$24 sps:$4 sm:$0xff]  }
  0x89   :  { %1712 = vmatpush1.bf16.msra.mxu1 %v16609_v17  ;;  %977 = vmatprep.subr.bf16.mxu0 %v16614_v18  ;;  %v16669_v17 = vld [vmem:[#allocation9 + $0x240] ss:$24 sps:$4 sm:$0xff]   ;;  %v16674_v18 = vld [vmem:[#allocation8 + $0x224] ss:$24 sps:$4 sm:$0xff]  }
  0x8a   :  { %1713 = vmatprep.subr.bf16.mxu1 %v16617_v19  ;;  %v16677_v19 = vld [vmem:[#allocation9 + $0x214] ss:$24 sps:$4 sm:$0xff]  }
  0x8b   :  { %870 = vmatmul.mubr.bf16.gmra.mxu0 %v18778_v38 }
  0x8c   :  { %978 = vmatpush1.bf16.msra.mxu0 %v16612_v24  ;;  %943 = vmatmul.mubr.bf16.gmra.mxu1 %v18778_v38  ;;  %v16678_v24 = vld [vmem:[#allocation8 + $0x1f0] ss:$24 sps:$4 sm:$0xff]  }
  0x8d   :  { %1714 = vmatpush1.bf16.msra.mxu1 %v16615_v25  ;;  %979 = vmatprep.subr.bf16.mxu0 %v16620_v26  ;;  %v16681_v25 = vld [vmem:[#allocation9 + $0x1e0] ss:$24 sps:$4 sm:$0xff]   ;;  %v16686_v26 = vld [vmem:[#allocation8 + $0x1c4] ss:$24 sps:$4 sm:$0xff]  }
  0x8e   :  { %1715 = vmatprep.subr.bf16.mxu1 %v16623_v27  ;;  %879 = vmatprep.mubr.bf16.mxu0 %v18584_v6  ;;  %v16689_v27 = vld [vmem:[#allocation9 + $0x1b4] ss:$24 sps:$4 sm:$0xff]  }
  0x8f   :  { %952 = vmatprep.mubr.bf16.mxu1 %v18584_v6 }
  0x90   :  { %980 = vmatpush1.bf16.msra.mxu0 %v16618_v28  ;;  %v16684_v28 = vld [vmem:[#allocation8 + $0x1c0] ss:$24 sps:$4 sm:$0xff]  }
  0x91   :  { %1716 = vmatpush1.bf16.msra.mxu1 %v16621_v29  ;;  %981 = vmatprep.subr.bf16.mxu0 %v16626_v30  ;;  %v16687_v29 = vld [vmem:[#allocation9 + $0x1b0] ss:$24 sps:$4 sm:$0xff]   ;;  %v16692_v30 = vld [vmem:[#allocation8 + $0x194] ss:$24 sps:$4 sm:$0xff]  }
  0x92   :  { %1717 = vmatprep.subr.bf16.mxu1 %v16629_v31  ;;  %v16695_v31 = vld [vmem:[#allocation9 + $0x184] ss:$24 sps:$4 sm:$0xff]  }
  0x93   :  { %880 = vmatmul.mubr.bf16.gmra.mxu0 %v18804_v53 }
  0x94   :  { %982 = vmatpush1.bf16.msra.mxu0 %v16624_v39  ;;  %953 = vmatmul.mubr.bf16.gmra.mxu1 %v18804_v53  ;;  %v18820_v39 = vld [vmem:[#allocation9 + $0x12c] ss:$24 sps:$4 sm:$0xff]  }
  0x95   :  { %1718 = vmatpush1.bf16.msra.mxu1 %v16627_v40  ;;  %983 = vmatprep.subr.bf16.mxu0 %v16632_v41  ;;  %v16707_v40 = vld [vmem:[#allocation9 + $0x134] ss:$24 sps:$4 sm:$0xff]   ;;  %v18825_v41 = vld [vmem:[#allocation9 + $0x128] ss:$24 sps:$4 sm:$0xff]  }
  0x96   :  { %1719 = vmatprep.subr.bf16.mxu1 %v16635_v42  ;;  %889 = vmatprep.mubr.bf16.mxu0 %v18584_v6  ;;  %v16705_v42 = vld [vmem:[#allocation9 + $0x130] ss:$24 sps:$4 sm:$0xff]  }
  0x97   :  { %962 = vmatprep.mubr.bf16.mxu1 %v18584_v6 }
  0x98   :  { %984 = vmatpush1.bf16.msra.mxu0 %v16630_v43  ;;  %v18828_v43 = vld [vmem:[#allocation9 + $0xfc] ss:$24 sps:$4 sm:$0xff]  }
  0x99   :  { %1720 = vmatpush1.bf16.msra.mxu1 %v16633_v44  ;;  %985 = vmatprep.subr.bf16.mxu0 %v16638_v51  ;;  %v16713_v44 = vld [vmem:[#allocation9 + $0x104] ss:$24 sps:$4 sm:$0xff]  }
  0x9a   :  { %1721 = vmatprep.subr.bf16.mxu1 %v16641_v52  ;;  %v16725_v51 = vld [vmem:[#allocation9 + $0xa4] ss:$24 sps:$4 sm:$0xff]   ;;  %v18846_v52 = vld [vmem:[#allocation9 + $0x98] ss:$24 sps:$4 sm:$0xff]  }
  0x9b   :  { %890 = vmatmul.mubr.bf16.gmra.mxu0 %v18810_v0 }
  0x9c   :  { %986 = vmatpush1.bf16.msra.mxu0 %v16636_v54  ;;  %963 = vmatmul.mubr.bf16.gmra.mxu1 %v18810_v0  ;;  %v16723_v54 = vld [vmem:[#allocation9 + $0xa0] ss:$24 sps:$4 sm:$0xff]  }
  0x9d   :  { %1722 = vmatpush1.bf16.msra.mxu1 %v16639_v55  ;;  %987 = vmatprep.subr.bf16.mxu0 %v16644_v56  ;;  %v18849_v55 = vld [vmem:[#allocation9 + $0x6c] ss:$24 sps:$4 sm:$0xff]  }
  0x9e   :  { %1723 = vmatprep.subr.bf16.mxu1 %v16647_v57  ;;  %1005 = vmatprep.mubr.bf16.mxu0 %v18584_v6  ;;  %v16731_v56 = vld [vmem:[#allocation9 + $0x74] ss:$24 sps:$4 sm:$0xff]   ;;  %v16729_v57 = vld [vmem:[#allocation9 + $0x70] ss:$24 sps:$4 sm:$0xff]  }
  0x9f   :  { %1741 = vmatprep.mubr.bf16.mxu1 %v22225_v8 }
  0xa0   :  { %988 = vmatpush1.bf16.msra.mxu0 %v16642_v58  ;;  %v18855_v58 = vld [vmem:[#allocation9 + $0x3c] ss:$24 sps:$4 sm:$0xff]  }
  0xa1   :  { %1724 = vmatpush1.bf16.msra.mxu1 %v16645_v59  ;;  %989 = vmatprep.subr.bf16.mxu0 %v16650_v61  ;;  %v16737_v59 = vld [vmem:[#allocation9 + $0x44] ss:$24 sps:$4 sm:$0xff]   ;;  %v16735_v61 = vld [vmem:[#allocation9 + $0x40] ss:$24 sps:$4 sm:$0xff]  }
  0xa2   :  { %1725 = vmatprep.subr.bf16.mxu1 %v16653_v63  ;;  %v16743_v63 = vld [vmem:[#allocation9 + $0x14] ss:$24 sps:$4 sm:$0xff]  }
  0xa4   :  { %990 = vmatpush2.bf16.msra.mxu0 %v16648_v1  ;;  %v16741_v1 = vld [vmem:[#allocation9 + $0x10] ss:$24 sps:$4 sm:$0xff]  }
  0xa5   :  { %1726 = vmatpush2.bf16.msra.mxu1 %v16651_v2  ;;  %991 = vmatprep.subr.bf16.mxu0 %v16656_v3  ;;  %v18869_v2 = vld [vmem:[#allocation9 + $0x2dc] ss:$24 sps:$4 sm:$0xff]  }
  0xa6   :  { %1727 = vmatprep.subr.bf16.mxu1 %v16659_v4  ;;  %v16749_v3 = vld [vmem:[#allocation9 + $0x2e4] ss:$24 sps:$4 sm:$0xff]   ;;  %v16747_v4 = vld [vmem:[#allocation9 + $0x2e0] ss:$24 sps:$4 sm:$0xff]  }
  0xa8   :  { %992 = vmatpush2.bf16.msra.mxu0 %v16654_v5  ;;  %v18877_v5 = vld [vmem:[#allocation9 + $0x2ac] ss:$24 sps:$4 sm:$0xff]  }
  0xa9   :  { %1728 = vmatpush2.bf16.msra.mxu1 %v16657_v7  ;;  %993 = vmatprep.subr.bf16.mxu0 %v16662_v9  ;;  %v16755_v7 = vld [vmem:[#allocation9 + $0x2b4] ss:$24 sps:$4 sm:$0xff]   ;;  %v16753_v9 = vld [vmem:[#allocation9 + $0x2b0] ss:$24 sps:$4 sm:$0xff]  }
  0xaa   :  { %1729 = vmatprep.subr.bf16.mxu1 %v16665_v10  ;;  %v18883_v10 = vld [vmem:[#allocation9 + $0x27c] ss:$24 sps:$4 sm:$0xff]  }
  0xac   :  { %994 = vmatpush2.bf16.msra.mxu0 %v16660_v12  ;;  %v16761_v12 = vld [vmem:[#allocation9 + $0x284] ss:$24 sps:$4 sm:$0xff]  }
  0xad   :  { %1730 = vmatpush2.bf16.msra.mxu1 %v16663_v13  ;;  %995 = vmatprep.subr.bf16.mxu0 %v16668_v14  ;;  %v18887_v13 = vld [vmem:[#allocation9 + $0x278] ss:$24 sps:$4 sm:$0xff]  }
  0xae   :  { %1731 = vmatprep.subr.bf16.mxu1 %v16671_v15  ;;  %v16759_v14 = vld [vmem:[#allocation9 + $0x280] ss:$24 sps:$4 sm:$0xff]   ;;  %v18889_v15 = vld [vmem:[#allocation9 + $0x24c] ss:$24 sps:$4 sm:$0xff]  }
  0xb0   :  { %996 = vmatpush2.bf16.msra.mxu0 %v16666_v16  ;;  %v16767_v16 = vld [vmem:[#allocation9 + $0x254] ss:$24 sps:$4 sm:$0xff]  }
  0xb1   :  { %1732 = vmatpush2.bf16.msra.mxu1 %v16669_v17  ;;  %997 = vmatprep.subr.bf16.mxu0 %v16674_v18  ;;  %v18893_v17 = vld [vmem:[#allocation9 + $0x248] ss:$24 sps:$4 sm:$0xff]  }
  0xb2   :  { %1733 = vmatprep.subr.bf16.mxu1 %v16677_v19  ;;  %v16765_v18 = vld [vmem:[#allocation9 + $0x250] ss:$24 sps:$4 sm:$0xff]   ;;  %v18895_v19 = vld [vmem:[#allocation9 + $0x21c] ss:$24 sps:$4 sm:$0xff]  }
  0xb4   :  { %998 = vmatpush2.bf16.msra.mxu0 %v16672_v20  ;;  %v16773_v20 = vld [vmem:[#allocation9 + $0x224] ss:$24 sps:$4 sm:$0xff]  }
  0xb5   :  { %1734 = vmatpush2.bf16.msra.mxu1 %v16675_v21  ;;  %999 = vmatprep.subr.bf16.mxu0 %v16680_v22  ;;  %v18899_v21 = vld [vmem:[#allocation9 + $0x218] ss:$24 sps:$4 sm:$0xff]  }
  0xb6   :  { %1735 = vmatprep.subr.bf16.mxu1 %v16683_v23  ;;  %v16771_v22 = vld [vmem:[#allocation9 + $0x220] ss:$24 sps:$4 sm:$0xff]   ;;  %v18901_v23 = vld [vmem:[#allocation9 + $0x1ec] ss:$24 sps:$4 sm:$0xff]  }
  0xb8   :  { %1000 = vmatpush2.bf16.msra.mxu0 %v16678_v24  ;;  %v16779_v24 = vld [vmem:[#allocation9 + $0x1f4] ss:$24 sps:$4 sm:$0xff]  }
  0xb9   :  { %1736 = vmatpush2.bf16.msra.mxu1 %v16681_v25  ;;  %1001 = vmatprep.subr.bf16.mxu0 %v16686_v26  ;;  %v18905_v25 = vld [vmem:[#allocation9 + $0x1e8] ss:$24 sps:$4 sm:$0xff]  }
  0xba   :  { %1737 = vmatprep.subr.bf16.mxu1 %v16689_v27  ;;  %v16777_v26 = vld [vmem:[#allocation9 + $0x1f0] ss:$24 sps:$4 sm:$0xff]   ;;  %v18907_v27 = vld [vmem:[#allocation9 + $0x1bc] ss:$24 sps:$4 sm:$0xff]  }
  0xbc   :  { %1002 = vmatpush2.bf16.msra.mxu0 %v16684_v28  ;;  %v16785_v28 = vld [vmem:[#allocation9 + $0x1c4] ss:$24 sps:$4 sm:$0xff]  }
  0xbd   :  { %1738 = vmatpush2.bf16.msra.mxu1 %v16687_v29  ;;  %1003 = vmatprep.subr.bf16.mxu0 %v16692_v30  ;;  %v18911_v29 = vld [vmem:[#allocation9 + $0x1b8] ss:$24 sps:$4 sm:$0xff]  }
  0xbe   :  { %1739 = vmatprep.subr.bf16.mxu1 %v16695_v31  ;;  %v16783_v30 = vld [vmem:[#allocation9 + $0x1c0] ss:$24 sps:$4 sm:$0xff]   ;;  %v18913_v31 = vld [vmem:[#allocation9 + $0x18c] ss:$24 sps:$4 sm:$0xff]  }
  0xc0   :  { %1004 = vmatpush2.bf16.msra.mxu0 %v16690_v32  ;;  %v16791_v32 = vld [vmem:[#allocation9 + $0x194] ss:$24 sps:$4 sm:$0xff]  }
  0xc1   :  { %1740 = vmatpush2.bf16.msra.mxu1 %v16693_v33  ;;  %1750 = vmatprep.subr.bf16.mxu0 %v18816_v34  ;;  %v18917_v33 = vld [vmem:[#allocation9 + $0x188] ss:$24 sps:$4 sm:$0xff]  }
  0xc2   :  { %1791 = vmatprep.subr.bf16.mxu1 %v16701_v35  ;;  %v16789_v35 = vld [vmem:[#allocation9 + $0x190] ss:$24 sps:$4 sm:$0xff]  }
  0xc3   :  { %1006 = vmatmul.mubr.bf16.vlgmr.msra.gmra.mxu0 %v18722_v11  ;;  %v16711_v11 = vld [vmem:[#allocation9 + $0x100] ss:$24 sps:$4 sm:$0xff]  }
  0xc4   :  { %1742 = vmatmul.mubr.bf16.vlgmr.msra.gmra.mxu1 %v22225_v8  ;;  %1751 = vmatpush1.bf16.msra.mxu0 %v18818_v36 }
  0xc5   :  { %1792 = vmatpush1.bf16.msra.mxu1 %v16699_v37  ;;  %1752 = vmatprep.subr.bf16.mxu0 %v18820_v39  ;;  %v16795_v37 = vld [vmem:[#allocation9 + $0x120] ss:$24 sps:$4 sm:$0xff]  }
  0xc6   :  { %1793 = vmatprep.subr.bf16.mxu1 %v16707_v40  ;;  %1015 = vmatprep.mubr.bf16.mxu0 %v18584_v6  ;;  %v16800_v40 = vld [vmem:[#allocation9 + $0xf4] ss:$24 sps:$4 sm:$0xff]  }
  0xc7   :  { %1823 = vmatprep.mubr.bf16.mxu1 %v22225_v8 }
  0xc8   :  { %1753 = vmatpush1.bf16.msra.mxu0 %v18825_v41 }
  0xc9   :  { %1794 = vmatpush1.bf16.msra.mxu1 %v16705_v42  ;;  %1754 = vmatprep.subr.bf16.mxu0 %v18828_v43  ;;  %v16803_v42 = vld [vmem:[#allocation9 + $0xc4] ss:$24 sps:$4 sm:$0xff]  }
  0xca   :  { %1795 = vmatprep.subr.bf16.mxu1 %v16713_v44  ;;  %v16806_v44 = vld [vmem:[#allocation9 + $0x94] ss:$24 sps:$4 sm:$0xff]  }
  0xcb   :  { %1016 = vmatmul.mubr.bf16.gmra.mxu0 %v18778_v38  ;;  %v18853_v38 = vld [vmem:[#allocation9 + $0x68] ss:$24 sps:$4 sm:$0xff]  }
  0xcc   :  { %1755 = vmatpush1.bf16.msra.mxu0 %v18831_v45  ;;  %1025 = vmatprep.mubr.bf16.mxu0 %v18584_v6 }
  0xcd   :  { %1796 = vmatpush1.bf16.msra.mxu1 %v16711_v11  ;;  %1756 = vmatprep.subr.bf16.mxu0 %v18835_v46  ;;  %v317_v11 = vlaneseq }
  0xce   :  { %1797 = vmatprep.subr.bf16.mxu1 %v16719_v47  ;;  %v18959_v47 = vld [vmem:[%s22217_s4] sm:$0x3f] }
  0xd0   :  { %1757 = vmatpush1.bf16.msra.mxu0 %v18839_v48 }
  0xd1   :  { %1798 = vmatpush1.bf16.msra.mxu1 %v16717_v49  ;;  %1758 = vmatprep.subr.bf16.mxu0 %v18841_v50 }
  0xd2   :  { %1799 = vmatprep.subr.bf16.mxu1 %v16725_v51 }
  0xd3   :  { %1026 = vmatmul.mubr.bf16.gmra.mxu0 %v18804_v53  ;;  %v18867_v53 = vld [vmem:[#allocation9 + $0x8] ss:$24 sps:$4 sm:$0xff]  }
  0xd4   :  { %1759 = vmatpush1.bf16.msra.mxu0 %v18846_v52  ;;  %1035 = vmatprep.mubr.bf16.mxu0 %v18584_v6  ;;  %v18874_v6 = vld [vmem:[#allocation9 + $0x2d8] ss:$24 sps:$4 sm:$0xff]  }
  0xd5   :  { %1800 = vmatpush1.bf16.msra.mxu1 %v16723_v54  ;;  %1760 = vmatprep.subr.bf16.mxu0 %v18849_v55 }
  0xd6   :  { %1801 = vmatprep.subr.bf16.mxu1 %v16731_v56 }
  0xd8   :  { %1761 = vmatpush1.bf16.msra.mxu0 %v18853_v38 }
  0xd9   :  { %1802 = vmatpush1.bf16.msra.mxu1 %v16729_v57  ;;  %1762 = vmatprep.subr.bf16.mxu0 %v18855_v58 }
  0xda   :  { %1803 = vmatprep.subr.bf16.mxu1 %v16737_v59  ;;  %v16809_v59 = vld [vmem:[#allocation9 + $0x64] ss:$24 sps:$4 sm:$0xff]  }
  0xdb   :  { %1036 = vmatmul.mubr.bf16.gmra.mxu0 %v18810_v0  ;;  %v18881_v0 = vld [vmem:[#allocation9 + $0x2a8] ss:$24 sps:$4 sm:$0xff]  }
  0xdc   :  { %1763 = vmatpush1.bf16.msra.mxu0 %v18860_v60  ;;  %1782 = vmatprep.mubr.bf16.mxu0 %v22225_v8 }
  0xdd   :  { %1804 = vmatpush1.bf16.msra.mxu1 %v16735_v61  ;;  %1764 = vmatprep.subr.bf16.mxu0 %v18863_v62 }
  0xde   :  { %1805 = vmatprep.subr.bf16.mxu1 %v16743_v63  ;;  %v16807_v63 = vld [vmem:[#allocation9 + $0x60] ss:$24 sps:$4 sm:$0xff]  }
  0xe0   :  { %1765 = vmatpush1.bf16.msra.mxu0 %v18867_v53 }
  0xe1   :  { %1806 = vmatpush1.bf16.msra.mxu1 %v16741_v1  ;;  %1766 = vmatprep.subr.bf16.mxu0 %v18869_v2 }
  0xe2   :  { %1807 = vmatprep.subr.bf16.mxu1 %v16749_v3 }
  0xe4   :  { %1767 = vmatpush2.bf16.msra.mxu0 %v18874_v6 }
  0xe5   :  { %1808 = vmatpush2.bf16.msra.mxu1 %v16747_v4  ;;  %1768 = vmatprep.subr.bf16.mxu0 %v18877_v5  ;;  %v16810_v4 = vld [vmem:[#allocation9 + $0x30] ss:$24 sps:$4 sm:$0xff]  }
  0xe6   :  { %1809 = vmatprep.subr.bf16.mxu1 %v16755_v7  ;;  %v16813_v7 = vld [vmem:[#allocation9] ss:$24 sps:$4 sm:$0xff]  }
  0xe8   :  { %1769 = vmatpush2.bf16.msra.mxu0 %v18881_v0 }
  0xe9   :  { %1810 = vmatpush2.bf16.msra.mxu1 %v16753_v9  ;;  %1770 = vmatprep.subr.bf16.mxu0 %v18883_v10 }
  0xea   :  { %1811 = vmatprep.subr.bf16.mxu1 %v16761_v12 }
  0xec   :  { %1771 = vmatpush2.bf16.msra.mxu0 %v18887_v13 }
  0xed   :  { %1812 = vmatpush2.bf16.msra.mxu1 %v16759_v14  ;;  %1772 = vmatprep.subr.bf16.mxu0 %v18889_v15  ;;  %v16816_v14 = vld [vmem:[#allocation9 + $0x2d0] ss:$24 sps:$4 sm:$0xff]  }
  0xee   :  { %1813 = vmatprep.subr.bf16.mxu1 %v16767_v16 }
  0xf0   :  { %1773 = vmatpush2.bf16.msra.mxu0 %v18893_v17 }
  0xf1   :  { %1814 = vmatpush2.bf16.msra.mxu1 %v16765_v18  ;;  %1774 = vmatprep.subr.bf16.mxu0 %v18895_v19 }
  0xf2   :  { %1815 = vmatprep.subr.bf16.mxu1 %v16773_v20 }
  0xf4   :  { %1775 = vmatpush2.bf16.msra.mxu0 %v18899_v21 }
  0xf5   :  { %1816 = vmatpush2.bf16.msra.mxu1 %v16771_v22  ;;  %1776 = vmatprep.subr.bf16.mxu0 %v18901_v23 }
  0xf6   :  { %1817 = vmatprep.subr.bf16.mxu1 %v16779_v24  ;;  %v16819_v24 = vld [vmem:[#allocation9 + $0x2a0] ss:$24 sps:$4 sm:$0xff]  }
  0xf8   :  { %1777 = vmatpush2.bf16.msra.mxu0 %v18905_v25 }
  0xf9   :  { %1818 = vmatpush2.bf16.msra.mxu1 %v16777_v26  ;;  %1778 = vmatprep.subr.bf16.mxu0 %v18907_v27 }
  0xfa   :  { %1819 = vmatprep.subr.bf16.mxu1 %v16785_v28 }
  0xfc   :  { %1779 = vmatpush2.bf16.msra.mxu0 %v18911_v29 }
  0xfd   :  { %1820 = vmatpush2.bf16.msra.mxu1 %v16783_v30  ;;  %1780 = vmatprep.subr.bf16.mxu0 %v18913_v31 }
  0xfe   :  { %1821 = vmatprep.subr.bf16.mxu1 %v16791_v32  ;;  %v16822_v32 = vld [vmem:[#allocation9 + $0x270] ss:$24 sps:$4 sm:$0xff]  }
 0x100   :  { %1781 = vmatpush2.bf16.msra.mxu0 %v18917_v33 }
 0x101   :  { %1822 = vmatpush2.bf16.msra.mxu1 %v16789_v35 }
 0x102   :  { %2535 = vmatprep.subr.bf16.mxu1 %v18816_v34  ;;  %v16792_v34 = vld [vmem:[#allocation9 + $0x150] ss:$24 sps:$4 sm:$0xff]  }
 0x103   :  { %1783 = vmatmul.mubr.bf16.vlgmr.msra.gmra.mxu0 %v22225_v8 }
 0x104   :  { %1824 = vmatmul.mubr.bf16.vlgmr.msra.gmra.mxu1 %v22225_v8 }
 0x105   :  { %2536 = vmatpush1.bf16.msra.mxu1 %v18818_v36  ;;  %v16794_v36 = vld [vmem:[#allocation9 + $0x154] ss:$24 sps:$4 sm:$0xff]  }
 0x106   :  { %2537 = vmatprep.subr.bf16.mxu1 %v18820_v39  ;;  %v16797_v39 = vld [vmem:[#allocation9 + $0x124] ss:$24 sps:$4 sm:$0xff]   ;;  %2494 = vmatprep.subr.bf16.mxu0 %v16794_v36 }
 0x107   :  { %2495 = vmatpush1.bf16.msra.mxu0 %v16792_v34 }
 0x108   :  { %2496 = vmatprep.subr.bf16.mxu0 %v16797_v39  ;;  %v16827_v39 = vld [vmem:[#allocation9 + $0x244] ss:$24 sps:$4 sm:$0xff]  }
 0x109   :  { %2538 = vmatpush1.bf16.msra.mxu1 %v18825_v41  ;;  %v16798_v41 = vld [vmem:[#allocation9 + $0xf0] ss:$24 sps:$4 sm:$0xff]  }
 0x10a   :  { %2539 = vmatprep.subr.bf16.mxu1 %v18828_v43  ;;  %v16801_v43 = vld [vmem:[#allocation9 + $0xc0] ss:$24 sps:$4 sm:$0xff]  }
 0x10b   :  { %2497 = vmatpush1.bf16.msra.mxu0 %v16795_v37  ;;  %v16825_v37 = vld [vmem:[#allocation9 + $0x240] ss:$24 sps:$4 sm:$0xff]  }
 0x10c   :  { %2498 = vmatprep.subr.bf16.mxu0 %v16800_v40 }
 0x10d   :  { %2540 = vmatpush1.bf16.msra.mxu1 %v18831_v45  ;;  %v16804_v45 = vld [vmem:[#allocation9 + $0x90] ss:$24 sps:$4 sm:$0xff]  }
 0x10e   :  { %2541 = vmatprep.subr.bf16.mxu1 %v18835_v46  ;;  %v18953_v46 = vshrl.u32 %v317_v11, 7 }
 0x10f   :  { %2499 = vmatpush1.bf16.msra.mxu0 %v16798_v41 }
 0x110   :  { %2500 = vmatprep.subr.bf16.mxu0 %v16803_v42  ;;  %22388 = vst [vmem:[#allocation20_spill] sm:$0xff] %v18953_v46  ;;  %v18966_v49 = vsub.s32 3, %v18953_v46  ;;  %v18973_v51 = vsub.s32 0, %v18953_v46  ;;  %v16830_v42 = vld [vmem:[#allocation9 + $0x214] ss:$24 sps:$4 sm:$0xff]  }
 0x111   :  { %2542 = vmatpush1.bf16.msra.mxu1 %v18839_v48  ;;  %v18963_v48 = vsub.s32 1, %v18953_v46 }
 0x112   :  { %2543 = vmatprep.subr.bf16.mxu1 %v18841_v50  ;;  %22390 = vst [vmem:[#allocation22_spill] sm:$0xff] %v18966_v49  ;;  %v18969_v50 = vsub.s32 2, %v18953_v46  ;;  %22391 = vst [vmem:[#allocation23_spill] sm:$0xff] %v18973_v51  ;;  %v18981_v54 = vrot.slane %v18959_v47, %v18966_v49 }
 0x113   :  { %2501 = vmatpush1.bf16.msra.mxu0 %v16801_v43  ;;  %22389 = vst [vmem:[#allocation21_spill] sm:$0xff] %v18963_v48 }
 0x114   :  { %2502 = vmatprep.subr.bf16.mxu0 %v16806_v44  ;;  %22393 = vst [vmem:[#allocation25_spill] sm:$0xff] %v18981_v54 }
 0x115   :  { %2544 = vmatpush1.bf16.msra.mxu1 %v18846_v52  ;;  %v18977_v52 = vrot.slane %v18959_v47, %v18963_v48 }
 0x116   :  { %2545 = vmatprep.subr.bf16.mxu1 %v18849_v55 }
 0x117   :  { %2503 = vmatpush1.bf16.msra.mxu0 %v16804_v45  ;;  %22392 = vst [vmem:[#allocation24_spill] sm:$0xff] %v18977_v52  ;;  %v16828_v45 = vld [vmem:[#allocation9 + $0x210] ss:$24 sps:$4 sm:$0xff]  }
 0x118   :  { %2504 = vmatprep.subr.bf16.mxu0 %v16809_v59 }
 0x119   :  { %2546 = vmatpush1.bf16.msra.mxu1 %v18853_v38  ;;  %v18989_v38 = vrot.slane %v18959_v47, %v18969_v50 }
 0x11a   :  { %2547 = vmatprep.subr.bf16.mxu1 %v18855_v58 }
 0x11b   :  { %2505 = vmatpush1.bf16.msra.mxu0 %v16807_v63 }
 0x11d   :  { %2548 = vmatpush1.bf16.msra.mxu1 %v18860_v60  ;;  %v18993_v60 = vrot.slane %v18959_v47, %v18973_v51 }
 0x11e   :  { %2549 = vmatprep.subr.bf16.mxu1 %v18863_v62 }
 0x121   :  { %2550 = vmatpush1.bf16.msra.mxu1 %v18867_v53 }
 0x122   :  { %2551 = vmatprep.subr.bf16.mxu1 %v18869_v2 }
 0x125   :  { %2552 = vmatpush2.bf16.msra.mxu1 %v18874_v6  ;;  %v16812_v6 = vld [vmem:[#allocation9 + $0x34] ss:$24 sps:$4 sm:$0xff]  }
 0x126   :  { %2553 = vmatprep.subr.bf16.mxu1 %v18877_v5  ;;  %2506 = vmatprep.subr.bf16.mxu0 %v16812_v6  ;;  %v16815_v5 = vld [vmem:[#allocation9 + $0x4] ss:$24 sps:$4 sm:$0xff]   ;;  %v16831_v6 = vld [vmem:[#allocation9 + $0x1e0] ss:$24 sps:$4 sm:$0xff]  }
 0x127   :  { %2507 = vmatpush1.bf16.msra.mxu0 %v16810_v4 }
 0x128   :  { %2508 = vmatprep.subr.bf16.mxu0 %v16815_v5 }
 0x129   :  { %2554 = vmatpush2.bf16.msra.mxu1 %v18881_v0 }
 0x12a   :  { %2555 = vmatprep.subr.bf16.mxu1 %v18883_v10  ;;  %v16818_v10 = vld [vmem:[#allocation9 + $0x2d4] ss:$24 sps:$4 sm:$0xff]  }
 0x12b   :  { %2509 = vmatpush1.bf16.msra.mxu0 %v16813_v7  ;;  %v16836_v7 = vld [vmem:[#allocation9 + $0x1b4] ss:$24 sps:$4 sm:$0xff]  }
 0x12c   :  { %2510 = vmatprep.subr.bf16.mxu0 %v16818_v10 }
 0x12d   :  { %2556 = vmatpush2.bf16.msra.mxu1 %v18887_v13 }
 0x12e   :  { %2557 = vmatprep.subr.bf16.mxu1 %v18889_v15 }
 0x12f   :  { %2511 = vmatpush2.bf16.msra.mxu0 %v16816_v14 }
 0x131   :  { %2558 = vmatpush2.bf16.msra.mxu1 %v18893_v17 }
 0x132   :  { %2559 = vmatprep.subr.bf16.mxu1 %v18895_v19 }
 0x135   :  { %2560 = vmatpush2.bf16.msra.mxu1 %v18899_v21  ;;  %v16821_v21 = vld [vmem:[#allocation9 + $0x2a4] ss:$24 sps:$4 sm:$0xff]  }
 0x136   :  { %2561 = vmatprep.subr.bf16.mxu1 %v18901_v23  ;;  %2512 = vmatprep.subr.bf16.mxu0 %v16821_v21  ;;  %v16834_v21 = vld [vmem:[#allocation9 + $0x1b0] ss:$24 sps:$4 sm:$0xff]  }
 0x137   :  { %2513 = vmatpush2.bf16.msra.mxu0 %v16819_v24  ;;  %v16839_v24 = vld [vmem:[#allocation9 + $0x184] ss:$24 sps:$4 sm:$0xff]  }
 0x139   :  { %2562 = vmatpush2.bf16.msra.mxu1 %v18905_v25 }
 0x13a   :  { %2563 = vmatprep.subr.bf16.mxu1 %v18907_v27 }
 0x13d   :  { %2564 = vmatpush2.bf16.msra.mxu1 %v18911_v29  ;;  %v16824_v29 = vld [vmem:[#allocation9 + $0x274] ss:$24 sps:$4 sm:$0xff]  }
 0x13e   :  { %2565 = vmatprep.subr.bf16.mxu1 %v18913_v31  ;;  %2514 = vmatprep.subr.bf16.mxu0 %v16824_v29  ;;  %v16837_v29 = vld [vmem:[#allocation9 + $0x180] ss:$24 sps:$4 sm:$0xff]  }
 0x13f   :  { %2515 = vmatpush2.bf16.msra.mxu0 %v16822_v32 }
 0x140   :  { %2516 = vmatprep.subr.bf16.mxu0 %v16827_v39 }
 0x141   :  { %2566 = vmatpush2.bf16.msra.mxu1 %v18917_v33 }
 0x142   :  { %3279 = vmatprep.subr.bf16.mxu1 %v16794_v36 }
 0x143   :  { %v18983_v55 = vpop.f32.mrf.mxu0  ;;  %2517 = vmatpush2.bf16.msra.mxu0 %v16825_v37 }
 0x144   :  { %v18985_v56 = vpop.f32.mrf.mxu1  ;;  %2518 = vmatprep.subr.bf16.mxu0 %v16830_v42 }
 0x145   :  { %v863_v57 = vpop.f32.mrf.mxu0 }
 0x146   :  { %v936_v58 = vpop.f32.mrf.mxu1  ;;  %v18996_v61 = vadd.f32 %v863_v57, %v18977_v52 }
 0x147   :  { %v18999_v62 = vadd.f32 %v936_v58, %v18981_v54  ;;  %v865_v53 = vpop.f32.mrf.mxu0  ;;  %v16833_v58 = vld [vmem:[#allocation9 + $0x1e4] ss:$24 sps:$4 sm:$0xff]   ;;  %2519 = vmatpush2.bf16.msra.mxu0 %v16828_v45 }
 0x148   :  { %22394 = vst [vmem:[#allocation26_spill] sm:$0xff] %v18996_v61  ;;  %v938_v1 = vpop.f32.mrf.mxu1  ;;  %v19002_v2 = vadd.f32 %v865_v53, %v18993_v60  ;;  %2520 = vmatprep.subr.bf16.mxu0 %v16833_v58 }
 0x149   :  { %22395 = vst [vmem:[#allocation27_spill] sm:$0xff] %v18999_v62  ;;  %v19005_v3 = vadd.f32 %v938_v1, %v18989_v38  ;;  %v19007_v0 = vpop.f32.mrf.mxu0 }
 0x14a   :  { %22396 = vst [vmem:[#allocation28_spill] sm:$0xff] %v19007_v0  ;;  %v19009_v9 = vpop.f32.mrf.mxu1 }
 0x14b   :  { %22397 = vst [vmem:[#allocation29_spill] sm:$0xff] %v19009_v9  ;;  %v871_v12 = vpop.f32.mrf.mxu0  ;;  %2521 = vmatpush2.bf16.msra.mxu0 %v16831_v6 }
 0x14c   :  { %v944_v13 = vpop.f32.mrf.mxu1  ;;  %v19012_v15 = vadd.f32 %v871_v12, %v18993_v60  ;;  %2522 = vmatprep.subr.bf16.mxu0 %v16836_v7 }
 0x14d   :  { %v19015_v16 = vadd.f32 %v944_v13, %v18989_v38  ;;  %v873_v17 = vpop.f32.mrf.mxu0 }
 0x14e   :  { %22398 = vst [vmem:[#allocation30_spill] sm:$0xff] %v19012_v15  ;;  %v946_v18 = vpop.f32.mrf.mxu1  ;;  %v19018_v19 = vadd.f32 %v873_v17, %v18977_v52  ;;  %v19301_v15 = vld [vmem:[#allocation9 + $0x18c] ss:$24 sps:$4 sm:$0xff]  }
 0x14f   :  { %22399 = vst [vmem:[#allocation31_spill] sm:$0xff] %v19015_v16  ;;  %v19021_v20 = vadd.f32 %v946_v18, %v18981_v54  ;;  %v875_v22 = vpop.f32.mrf.mxu0  ;;  %2523 = vmatpush2.bf16.msra.mxu0 %v16834_v21  ;;  %v19292_v16 = vld [vmem:[#allocation9 + $0x1e8] ss:$24 sps:$4 sm:$0xff]   ;;  %22445 = vst [vmem:[#allocation77_spill] sm:$0xff] %v19301_v15 }
 0x150   :  { %22400 = vst [vmem:[#allocation32_spill] sm:$0xff] %v19018_v19  ;;  %v948_v23 = vpop.f32.mrf.mxu1  ;;  %v19024_v25 = vadd.f32 %v875_v22, %v18993_v60  ;;  %2524 = vmatprep.subr.bf16.mxu0 %v16839_v24  ;;  %v18431_v19 = vld [vmem:[#allocation9 + $0x280] ss:$24 sps:$4 sm:$0xff]   ;;  %22442 = vst [vmem:[#allocation74_spill] sm:$0xff] %v19292_v16 }
 0x151   :  { %22401 = vst [vmem:[#allocation33_spill] sm:$0xff] %v19021_v20  ;;  %v19027_v26 = vadd.f32 %v948_v23, %v18989_v38  ;;  %v19029_v27 = vpop.f32.mrf.mxu0 }
 0x152   :  { %22402 = vst [vmem:[#allocation34_spill] sm:$0xff] %v19024_v25  ;;  %22404 = vst [vmem:[#allocation36_spill] sm:$0xff] %v19029_v27  ;;  %v19031_v28 = vpop.f32.mrf.mxu1  ;;  %v19262_v27 = vld [vmem:[#allocation9 + $0x2d8] ss:$24 sps:$4 sm:$0xff]   ;;  %v19280_v25 = vld [vmem:[#allocation9 + $0x248] ss:$24 sps:$4 sm:$0xff]  }
 0x153   :  { %22403 = vst [vmem:[#allocation35_spill] sm:$0xff] %v19027_v26  ;;  %22405 = vst [vmem:[#allocation37_spill] sm:$0xff] %v19031_v28  ;;  %v881_v30 = vpop.f32.mrf.mxu0  ;;  %2525 = vmatpush2.bf16.msra.mxu0 %v16837_v29  ;;  %v19256_v28 = vld [vmem:[#allocation9 + $0x8] ss:$24 sps:$4 sm:$0xff]   ;;  %v19274_v26 = vld [vmem:[#allocation9 + $0x278] ss:$24 sps:$4 sm:$0xff]  }
 0x154   :  { %v954_v31 = vpop.f32.mrf.mxu1  ;;  %v19034_v33 = vadd.f32 %v881_v30, %v18993_v60  ;;  %v16842_v30 = vld [vmem:[#allocation9 + $0x164] ss:$24 sps:$4 sm:$0xff]   ;;  %22432 = vst [vmem:[#allocation64_spill] sm:$0xff] %v19262_v27  ;;  %22436 = vst [vmem:[#allocation68_spill] sm:$0xff] %v19274_v26 }
 0x155   :  { %v19037_v35 = vadd.f32 %v954_v31, %v18989_v38  ;;  %v883_v34 = vpop.f32.mrf.mxu0  ;;  %2576 = vmatprep.subr.bf16.mxu0 %v16842_v30  ;;  %v19074_v31 = vsub.s32 5, %v18953_v46  ;;  %22438 = vst [vmem:[#allocation70_spill] sm:$0xff] %v19280_v25 }
 0x156   :  { %22406 = vst [vmem:[#allocation38_spill] sm:$0xff] %v19034_v33  ;;  %v956_v36 = vpop.f32.mrf.mxu1  ;;  %v19040_v40 = vadd.f32 %v883_v34, %v18977_v52  ;;  %v19259_v33 = vld [vmem:[#allocation9 + $0x2dc] ss:$24 sps:$4 sm:$0xff]  }
 0x157   :  { %22407 = vst [vmem:[#allocation39_spill] sm:$0xff] %v19037_v35  ;;  %v19043_v41 = vadd.f32 %v956_v36, %v18981_v54  ;;  %v885_v43 = vpop.f32.mrf.mxu0  ;;  %v19077_v36 = vsub.s32 4, %v18953_v46  ;;  %v19081_v37 = vrot.slane %v18959_v47, %v19074_v31  ;;  %v19253_v35 = vld [vmem:[#allocation9 + $0xc] ss:$24 sps:$4 sm:$0xff]   ;;  %22431 = vst [vmem:[#allocation63_spill] sm:$0xff] %v19259_v33 }
 0x158   :  { %22408 = vst [vmem:[#allocation40_spill] sm:$0xff] %v19040_v40  ;;  %v958_v44 = vpop.f32.mrf.mxu1  ;;  %v19046_v11 = vadd.f32 %v885_v43, %v18993_v60  ;;  %v19278_v40 = vld [vmem:[#allocation9 + $0x24c] ss:$24 sps:$4 sm:$0xff]  }
 0x159   :  { %22409 = vst [vmem:[#allocation41_spill] sm:$0xff] %v19043_v41  ;;  %v19049_v57 = vadd.f32 %v958_v44, %v18989_v38  ;;  %v19051_v59 = vpop.f32.mrf.mxu0  ;;  %22418 = vst [vmem:[#allocation50_spill] sm:$0xff] %v19081_v37  ;;  %v19087_v45 = vrot.slane %v18959_v47, %v19077_v36  ;;  %v19272_v41 = vld [vmem:[#allocation9 + $0x27c] ss:$24 sps:$4 sm:$0xff]  }
 0x15a   :  { %22410 = vst [vmem:[#allocation42_spill] sm:$0xff] %v19046_v11  ;;  %22412 = vst [vmem:[#allocation44_spill] sm:$0xff] %v19051_v59  ;;  %v19053_v63 = vpop.f32.mrf.mxu1  ;;  %v18434_v11 = vld [vmem:[#allocation9 + $0x244] ss:$24 sps:$4 sm:$0xff]   ;;  %v19304_v59 = vld [vmem:[#allocation9 + $0x188] ss:$24 sps:$4 sm:$0xff]  }
 0x15b   :  { %22411 = vst [vmem:[#allocation43_spill] sm:$0xff] %v19049_v57  ;;  %22413 = vst [vmem:[#allocation45_spill] sm:$0xff] %v19053_v63  ;;  %v891_v53 = vpop.f32.mrf.mxu0  ;;  %v18430_v57 = vld [vmem:[#allocation9 + $0x274] ss:$24 sps:$4 sm:$0xff]  }
 0x15c   :  { %v964_v1 = vpop.f32.mrf.mxu1  ;;  %v19056_v4 = vadd.f32 %v891_v53, %v18993_v60  ;;  %22435 = vst [vmem:[#allocation67_spill] sm:$0xff] %v19272_v41  ;;  %22437 = vst [vmem:[#allocation69_spill] sm:$0xff] %v19278_v40  ;;  %v19295_v63 = vld [vmem:[#allocation9 + $0x1bc] ss:$24 sps:$4 sm:$0xff]  }
 0x15d   :  { %v19059_v5 = vadd.f32 %v964_v1, %v18989_v38  ;;  %v893_v10 = vpop.f32.mrf.mxu0  ;;  %22443 = vst [vmem:[#allocation75_spill] sm:$0xff] %v19295_v63  ;;  %22446 = vst [vmem:[#allocation78_spill] sm:$0xff] %v19304_v59 }
 0x15e   :  { %22414 = vst [vmem:[#allocation46_spill] sm:$0xff] %v19056_v4  ;;  %v966_v12 = vpop.f32.mrf.mxu1  ;;  %v19062_v13 = vadd.f32 %v893_v10, %v18977_v52 }
 0x15f   :  { %22415 = vst [vmem:[#allocation47_spill] sm:$0xff] %v19059_v5  ;;  %v19065_v14 = vadd.f32 %v966_v12, %v18981_v54  ;;  %v895_v17 = vpop.f32.mrf.mxu0 }
 0x160   :  { %v968_v18 = vpop.f32.mrf.mxu1  ;;  %v19068_v22 = vadd.f32 %v895_v17, %v18993_v60 }
 0x161   :  { %v19071_v23 = vadd.f32 %v968_v18, %v18989_v38  ;;  %v897_v34 = vpop.f32.mrf.mxu0 }
 0x162   :  { %22416 = vst [vmem:[#allocation48_spill] sm:$0xff] %v19068_v22  ;;  %v970_v32 = vpop.f32.mrf.mxu1  ;;  %v862_v22 = vadd.f32 %v18983_v55, %v18993_v60  ;;  %v935_v55 = vadd.f32 %v18985_v56, %v18989_v38 }
 0x163   :  { %22417 = vst [vmem:[#allocation49_spill] sm:$0xff] %v19071_v23 }
 0x183   :  { %v19083_v39 = vpop.f32.mrf.mxu0 }
 0x184   :  { %v1743_v42 = vpop.f32.mrf.mxu1 }
 0x185   :  { %v1009_v43 = vpop.f32.mrf.mxu0 }
 0x186   :  { %v1745_v44 = vpop.f32.mrf.mxu1  ;;  %v19090_v58 = vadd.f32 %v1009_v43, %v19081_v37 }
 0x187   :  { %v1011_v53 = vpop.f32.mrf.mxu0 }
 0x188   :  { %22419 = vst [vmem:[#allocation51_spill] sm:$0xff] %v19090_v58  ;;  %v1747_v1 = vpop.f32.mrf.mxu1  ;;  %v19093_v6 = vadd.f32 %v1011_v53, %v19087_v45 }
 0x189   :  { %v19095_v7 = vpop.f32.mrf.mxu0 }
 0x18a   :  { %22420 = vst [vmem:[#allocation52_spill] sm:$0xff] %v19095_v7  ;;  %v1748_v10 = vpop.f32.mrf.mxu1 }
 0x18b   :  { %v1017_v12 = vpop.f32.mrf.mxu0 }
 0x18c   :  { %v19098_v17 = vadd.f32 %v1017_v12, %v19087_v45 }
 0x18d   :  { %v1019_v18 = vpop.f32.mrf.mxu0 }
 0x18e   :  { %22421 = vst [vmem:[#allocation53_spill] sm:$0xff] %v19098_v17  ;;  %v19101_v21 = vadd.f32 %v1019_v18, %v19081_v37  ;;  %v19282_v17 = vld [vmem:[#allocation9 + $0x21c] ss:$24 sps:$4 sm:$0xff]  }
 0x18f   :  { %v1021_v47 = vpop.f32.mrf.mxu0  ;;  %22439 = vst [vmem:[#allocation71_spill] sm:$0xff] %v19282_v17 }
 0x190   :  { %22422 = vst [vmem:[#allocation54_spill] sm:$0xff] %v19101_v21  ;;  %v19104_v24 = vadd.f32 %v1021_v47, %v19087_v45  ;;  %v1197_v47 = vld [vmem:[%s22218_s5] sm:$0x3f] }
 0x191   :  { %v19106_v29 = vpop.f32.mrf.mxu0  ;;  %v1206_v23 = vrot.slane %v1197_v47, %v18963_v48  ;;  %v1218_v56 = vrot.slane %v1197_v47, %v19077_v36  ;;  %v1222_v38 = vrot.slane %v1197_v47, %v19074_v31 }
 0x192   :  { %22423 = vst [vmem:[#allocation55_spill] sm:$0xff] %v19104_v24  ;;  %22424 = vst [vmem:[#allocation56_spill] sm:$0xff] %v19106_v29  ;;  %v19250_v29 = vld [vmem:[#allocation9 + $0x38] ss:$24 sps:$4 sm:$0xff]   ;;  %v19268_v24 = vld [vmem:[#allocation9 + $0x2a8] ss:$24 sps:$4 sm:$0xff]  }
 0x193   :  { %v1027_v30 = vpop.f32.mrf.mxu0  ;;  %v1746_v7 = vadd.f32 %v1745_v44, %v1206_v23  ;;  %22434 = vst [vmem:[#allocation66_spill] sm:$0xff] %v19268_v24 }
 0x194   :  { %v19109_v43 = vadd.f32 %v1027_v30, %v19087_v45 }
 0x195   :  { %v1029_v53 = vpop.f32.mrf.mxu0 }
 0x196   :  { %22425 = vst [vmem:[#allocation57_spill] sm:$0xff] %v19109_v43  ;;  %v19112_v1 = vadd.f32 %v1029_v53, %v19081_v37  ;;  %v19247_v43 = vld [vmem:[#allocation9 + $0x3c] ss:$24 sps:$4 sm:$0xff]  }
 0x197   :  { %v1031_v10 = vpop.f32.mrf.mxu0 }
 0x198   :  { %22426 = vst [vmem:[#allocation58_spill] sm:$0xff] %v19112_v1  ;;  %v19115_v12 = vadd.f32 %v1031_v10, %v19087_v45  ;;  %v1202_v10 = vrot.slane %v1197_v47, %v18973_v51  ;;  %v19266_v1 = vld [vmem:[#allocation9 + $0x2ac] ss:$24 sps:$4 sm:$0xff]  }
 0x199   :  { %v19117_v18 = vpop.f32.mrf.mxu0  ;;  %22433 = vst [vmem:[#allocation65_spill] sm:$0xff] %v19266_v1 }
 0x19a   :  { %22427 = vst [vmem:[#allocation59_spill] sm:$0xff] %v19115_v12  ;;  %22428 = vst [vmem:[#allocation60_spill] sm:$0xff] %v19117_v18  ;;  %v1744_v61 = vadd.f32 %v1743_v42, %v1202_v10  ;;  %v1214_v42 = vrot.slane %v1197_v47, %v18966_v49  ;;  %v19286_v18 = vld [vmem:[#allocation9 + $0x218] ss:$24 sps:$4 sm:$0xff]  }
 0x19b   :  { %v1037_v8 = vpop.f32.mrf.mxu0  ;;  %22440 = vst [vmem:[#allocation72_spill] sm:$0xff] %v19286_v18 }
 0x19c   :  { %v19123_v46 = vadd.f32 %v1037_v8, %v19087_v45  ;;  %v1832_v5 = vadd.f32 %v1744_v61, %v862_v22  ;;  %v898_v8 = vadd.f32 %v897_v34, %v18977_v52 }
 0x19d   :  { %v1039_v30 = vpop.f32.mrf.mxu0 }
 0x19e   :  { %22429 = vst [vmem:[#allocation61_spill] sm:$0xff] %v19123_v46  ;;  %v19126_v58 = vadd.f32 %v1039_v30, %v19081_v37  ;;  %v1833_v46 = vadd.f32 %v1746_v7, %v898_v8  ;;  %v14890_v9 = vmul.f32 -1.442695, %v1832_v5 }
 0x19f   :  { %v1041_v53 = vpop.f32.mrf.mxu0 }
 0x1a0   :  { %v19129_v62 = vadd.f32 %v1041_v53, %v19087_v45  ;;  %v14891_v30 = vmul.f32 -1.442695, %v1833_v46  ;;  %18088 = vpow2.f32 %v14890_v9  ;;  %v1210_v53 = vrot.slane %v1197_v47, %v18969_v50 }
 0x1a1   :  { %v1043_v21 = vpop.f32.mrf.mxu0  ;;  %v971_v9 = vadd.f32 %v970_v32, %v18981_v54  ;;  %v19298_v54 = vld [vmem:[#allocation9 + $0x1b8] ss:$24 sps:$4 sm:$0xff]  }
 0x1a2   :  { %22430 = vst [vmem:[#allocation62_spill] sm:$0xff] %v19129_v62  ;;  %18090 = vpow2.f32 %v14891_v30  ;;  %22444 = vst [vmem:[#allocation76_spill] sm:$0xff] %v19298_v54 }
 0x1ad   :  { %v18089_v4 = vpop.eup %18088 }
 0x1ae   :  { %v1840_v0 = vadd.f32 1.0, %v18089_v4 }
 0x1af   :  { %v18091_v62 = vpop.eup %18090 }
 0x1b0   :  { %v1841_v60 = vadd.f32 1.0, %v18091_v62  ;;  %18092 = vrcp.f32 %v1840_v0 }
 0x1b2   :  { %18094 = vrcp.f32 %v1841_v60 }
 0x1bd   :  { %v18093_v0 = vpop.eup %18092 }
 0x1c3   :  { %v1784_v10 = vpop.f32.mrf.mxu0 }
 0x1c4   :  { %v1825_v12 = vpop.f32.mrf.mxu1  ;;  %v1785_v61 = vadd.f32 %v1784_v10, %v1210_v53  ;;  %v18095_v10 = vpop.eup %18094 }
 0x1c5   :  { %v1786_v5 = vpop.f32.mrf.mxu0  ;;  %v1826_v62 = vadd.f32 %v1825_v12, %v1218_v56  ;;  %v19150_v56 = vld [vmem:[#allocation9 + $0x160] ss:$24 sps:$4 sm:$0xff]  }
 0x1c6   :  { %v1827_v46 = vpop.f32.mrf.mxu1  ;;  %v1846_v22 = vadd.f32 %v1785_v61, %v935_v55  ;;  %v1787_v23 = vadd.f32 %v1786_v5, %v1214_v42  ;;  %v1008_v42 = vadd.f32 %v19083_v39, %v19087_v45  ;;  %v1044_v5 = vadd.f32 %v1043_v21, %v19081_v37  ;;  %v19289_v37 = vld [vmem:[#allocation9 + $0x1ec] ss:$24 sps:$4 sm:$0xff]  }
 0x1c7   :  { %v1788_v34 = vpop.f32.mrf.mxu0  ;;  %v1828_v53 = vadd.f32 %v1827_v46, %v1222_v38  ;;  %v1860_v32 = vmul.f32 %v18093_v0, %v1826_v62  ;;  %v19153_v38 = vld [vmem:[#allocation9 + $0x134] ss:$24 sps:$4 sm:$0xff]   ;;  %22441 = vst [vmem:[#allocation73_spill] sm:$0xff] %v19289_v37 }
 0x1c8   :  { %v1829_v44 = vpop.f32.mrf.mxu1  ;;  %v14892_v4 = vmul.f32 -1.442695, %v1846_v22  ;;  %v1847_v7 = vadd.f32 %v1787_v23, %v971_v9 }
 0x1c9   :  { %v1789_v8 = vpop.f32.mrf.mxu0  ;;  %v1861_v55 = vmul.f32 %v18095_v10, %v1828_v53  ;;  %v1862_v61 = vadd.f32 %v1860_v32, %v1008_v42  ;;  %v19162_v53 = vld [vmem:[#allocation9 + $0x130] ss:$24 sps:$4 sm:$0xff]   ;;  %v19168_v32 = vld [vmem:[#allocation9 + $0x104] ss:$24 sps:$4 sm:$0xff]   ;;  %v19170_v42 = vld [vmem:[#allocation9 + $0x100] ss:$24 sps:$4 sm:$0xff]  }
 0x1ca   :  { %v1830_v30 = vpop.f32.mrf.mxu1  ;;  %18096 = vpow2.f32 %v14892_v4  ;;  %v14893_v20 = vmul.f32 -1.442695, %v1847_v7  ;;  %v18408_v10 = vld [vmem:[#allocation9 + $0x150] ss:$24 sps:$4 sm:$0xff]  }
 0x1cc   :  { %18098 = vpow2.f32 %v14893_v20  ;;  %v1863_v20 = vadd.f32 %v1861_v55, %v1044_v5  ;;  %v18409_v55 = vld [vmem:[#allocation9 + $0x124] ss:$24 sps:$4 sm:$0xff]   ;;  %v18411_v5 = vld [vmem:[#allocation9 + $0xf4] ss:$24 sps:$4 sm:$0xff]  }
 0x1d7   :  { %v18097_v60 = vpop.eup %18096 }
 0x1d8   :  { %v1854_v9 = vadd.f32 1.0, %v18097_v60  ;;  %v19172_v60 = vld [vmem:[#allocation9 + $0xd4] ss:$24 sps:$4 sm:$0xff]  }
 0x1d9   :  { %v18099_v22 = vpop.eup %18098 }
 0x1da   :  { %18100 = vrcp.f32 %v1854_v9  ;;  %v1855_v23 = vadd.f32 1.0, %v18099_v22  ;;  %v19177_v9 = vld [vmem:[#allocation9 + $0xd0] ss:$24 sps:$4 sm:$0xff]   ;;  %v19180_v22 = vld [vmem:[#allocation9 + $0xa4] ss:$24 sps:$4 sm:$0xff]  }
 0x1db   :  { %18102 = vtanh.f32 %v1862_v61  ;;  %v18410_v61 = vld [vmem:[#allocation9 + $0x120] ss:$24 sps:$4 sm:$0xff]  }
 0x1dc   :  { %18104 = vrcp.f32 %v1855_v23  ;;  %v18412_v23 = vld [vmem:[#allocation9 + $0xf0] ss:$24 sps:$4 sm:$0xff]  }
 0x1dd   :  { %18106 = vtanh.f32 %v1863_v20  ;;  %v18413_v20 = vld [vmem:[#allocation9 + $0xc4] ss:$24 sps:$4 sm:$0xff]  }
 0x1e7   :  { %v18101_v12 = vpop.eup %18100 }
 0x1e8   :  { %v18103_v47 = vpop.eup %18102  ;;  %v1866_v46 = vsub.f32 1.0, %v18101_v12  ;;  %v1870_v39 = vmul.f32 0.0, %v18101_v12  ;;  %v19183_v12 = vld [vmem:[#allocation9 + $0xa0] ss:$24 sps:$4 sm:$0xff]  }
 0x1e9   :  { %v18105_v34 = vpop.eup %18104 }
 0x1ea   :  { %v1867_v44 = vsub.f32 1.0, %v18105_v34  ;;  %v1868_v4 = vmul.f32 %v18103_v47, %v1866_v46  ;;  %v18107_v45 = vpop.eup %18106  ;;  %v1871_v8 = vmul.f32 0.0, %v18105_v34  ;;  %v19186_v47 = vld [vmem:[#allocation9 + $0x74] ss:$24 sps:$4 sm:$0xff]   ;;  %v18414_v46 = vld [vmem:[#allocation9 + $0xc0] ss:$24 sps:$4 sm:$0xff]  }
 0x1eb   :  { %v18415_v34 = vld [vmem:[#allocation9 + $0x94] ss:$24 sps:$4 sm:$0xff]  }
 0x1ec   :  { %v1869_v7 = vmul.f32 %v18107_v45, %v1867_v44  ;;  %v19146_v30 = vadd.f32 %v1870_v39, %v1868_v4  ;;  %v19189_v44 = vld [vmem:[#allocation9 + $0x70] ss:$24 sps:$4 sm:$0xff]   ;;  %v19192_v4 = vld [vmem:[#allocation9 + $0x44] ss:$24 sps:$4 sm:$0xff]  }
 0x1ed   :  { %v18416_v39 = vld [vmem:[#allocation9 + $0x90] ss:$24 sps:$4 sm:$0xff]   ;;  %v18417_v45 = vld [vmem:[#allocation9 + $0x64] ss:$24 sps:$4 sm:$0xff]  }
 0x1ee   :  { %v19148_v21 = vadd.f32 %v1871_v8, %v1869_v7  ;;  %1874 = vst [vmem:[#allocation2] sm:$0xff] %v19146_v30  ;;  %v19160_v0 = vpack.c.bf16 %v19146_v30, %v19146_v30  ;;  %v19195_v7 = vld [vmem:[#allocation9 + $0x40] ss:$24 sps:$4 sm:$0xff]   ;;  %v19198_v8 = vld [vmem:[#allocation9 + $0x14] ss:$24 sps:$4 sm:$0xff]  }
 0x1f0   :  { %1875 = vst [vmem:[#allocation2 + $0x78] sm:$0xff] %v19148_v21  ;;  %v1885_v62 = vpack.c.bf16 %v19148_v21, %v19148_v21 }
 0x1f2   :  { %2526 = vmatprep.mubr.bf16.mxu0 %v1885_v62  ;;  %2567 = vmatprep.mubr.bf16.mxu1 %v1885_v62 }
 0x1f3   :  { %2527 = vmatmul.mubr.bf16.vlgmr.msra.gmra.mxu0 %v19160_v0  ;;  %2568 = vmatmul.mubr.bf16.vlgmr.msra.gmra.mxu1 %v19160_v0 }
 0x1f4   :  { %2577 = vmatpush1.bf16.msra.mxu0 %v19150_v56  ;;  %2608 = vmatprep.mubr.bf16.mxu0 %v1885_v62  ;;  %v18418_v62 = vld [vmem:[#allocation9 + $0x60] ss:$24 sps:$4 sm:$0xff]  }
 0x1f5   :  { %2578 = vmatprep.subr.bf16.mxu0 %v19153_v38  ;;  %3280 = vmatpush1.bf16.msra.mxu1 %v18408_v10  ;;  %v18419_v10 = vld [vmem:[#allocation9 + $0x34] ss:$24 sps:$4 sm:$0xff]  }
 0x1f6   :  { %3281 = vmatprep.subr.bf16.mxu1 %v18409_v55  ;;  %v19201_v55 = vld [vmem:[#allocation9 + $0x10] ss:$24 sps:$4 sm:$0xff]  }
 0x1f8   :  { %2579 = vmatpush1.bf16.msra.mxu0 %v19162_v53 }
 0x1f9   :  { %2580 = vmatprep.subr.bf16.mxu0 %v19168_v32  ;;  %3282 = vmatpush1.bf16.msra.mxu1 %v18410_v61  ;;  %v19204_v61 = vld [vmem:[#allocation9 + $0x2e4] ss:$24 sps:$4 sm:$0xff]  }
 0x1fa   :  { %3283 = vmatprep.subr.bf16.mxu1 %v18411_v5  ;;  %v18420_v5 = vld [vmem:[#allocation9 + $0x30] ss:$24 sps:$4 sm:$0xff]  }
 0x1fc   :  { %2581 = vmatpush1.bf16.msra.mxu0 %v19170_v42 }
 0x1fd   :  { %2582 = vmatprep.subr.bf16.mxu0 %v19172_v60  ;;  %3284 = vmatpush1.bf16.msra.mxu1 %v18412_v23  ;;  %v18421_v23 = vld [vmem:[#allocation9 + $0x4] ss:$24 sps:$4 sm:$0xff]  }
 0x1fe   :  { %3285 = vmatprep.subr.bf16.mxu1 %v18413_v20  ;;  %v19207_v20 = vld [vmem:[#allocation9 + $0x2e0] ss:$24 sps:$4 sm:$0xff]  }
 0x200   :  { %2583 = vmatpush1.bf16.msra.mxu0 %v19177_v9 }
 0x201   :  { %2584 = vmatprep.subr.bf16.mxu0 %v19180_v22  ;;  %3286 = vmatpush1.bf16.msra.mxu1 %v18414_v46  ;;  %v18422_v46 = vld [vmem:[#allocation9] ss:$24 sps:$4 sm:$0xff]  }
 0x202   :  { %3287 = vmatprep.subr.bf16.mxu1 %v18415_v34  ;;  %v18423_v34 = vld [vmem:[#allocation9 + $0x2d4] ss:$24 sps:$4 sm:$0xff]  }
 0x204   :  { %2585 = vmatpush1.bf16.msra.mxu0 %v19183_v12 }
 0x205   :  { %2586 = vmatprep.subr.bf16.mxu0 %v19186_v47  ;;  %3288 = vmatpush1.bf16.msra.mxu1 %v18416_v39  ;;  %v18424_v39 = vld [vmem:[#allocation9 + $0x2b4] ss:$24 sps:$4 sm:$0xff]  }
 0x206   :  { %3289 = vmatprep.subr.bf16.mxu1 %v18417_v45  ;;  %v18425_v45 = vld [vmem:[#allocation9 + $0x2d0] ss:$24 sps:$4 sm:$0xff]  }
 0x208   :  { %2587 = vmatpush1.bf16.msra.mxu0 %v19189_v44 }
 0x209   :  { %2588 = vmatprep.subr.bf16.mxu0 %v19192_v4  ;;  %3290 = vmatpush1.bf16.msra.mxu1 %v18418_v62  ;;  %v18426_v62 = vld [vmem:[#allocation9 + $0x2a4] ss:$24 sps:$4 sm:$0xff]  }
 0x20a   :  { %3291 = vmatprep.subr.bf16.mxu1 %v18419_v10  ;;  %v18427_v10 = vld [vmem:[#allocation9 + $0x2b0] ss:$24 sps:$4 sm:$0xff]  }
 0x20c   :  { %2589 = vmatpush1.bf16.msra.mxu0 %v19195_v7 }
 0x20d   :  { %2590 = vmatprep.subr.bf16.mxu0 %v19198_v8  ;;  %3292 = vmatpush1.bf16.msra.mxu1 %v18420_v5  ;;  %v18428_v5 = vld [vmem:[#allocation9 + $0x284] ss:$24 sps:$4 sm:$0xff]  }
 0x20e   :  { %3293 = vmatprep.subr.bf16.mxu1 %v18421_v23  ;;  %v18429_v23 = vld [vmem:[#allocation9 + $0x2a0] ss:$24 sps:$4 sm:$0xff]  }
 0x210   :  { %2591 = vmatpush1.bf16.msra.mxu0 %v19201_v55 }
 0x211   :  { %2592 = vmatprep.subr.bf16.mxu0 %v19204_v61  ;;  %3294 = vmatpush1.bf16.msra.mxu1 %v18422_v46  ;;  %v18432_v46 = vld [vmem:[#allocation9 + $0x254] ss:$24 sps:$4 sm:$0xff]  }
 0x212   :  { %3295 = vmatprep.subr.bf16.mxu1 %v18423_v34  ;;  %v18433_v34 = vld [vmem:[#allocation9 + $0x270] ss:$24 sps:$4 sm:$0xff]  }
 0x214   :  { %2593 = vmatpush2.bf16.msra.mxu0 %v19207_v20 }
 0x215   :  { %2594 = vmatprep.subr.bf16.mxu0 %v18424_v39  ;;  %3296 = vmatpush2.bf16.msra.mxu1 %v18425_v45  ;;  %v18435_v39 = vld [vmem:[#allocation9 + $0x250] ss:$24 sps:$4 sm:$0xff]   ;;  %v18436_v45 = vld [vmem:[#allocation9 + $0x224] ss:$24 sps:$4 sm:$0xff]  }
 0x216   :  { %3297 = vmatprep.subr.bf16.mxu1 %v18426_v62  ;;  %v18437_v62 = vld [vmem:[#allocation9 + $0x240] ss:$24 sps:$4 sm:$0xff]  }
 0x218   :  { %2595 = vmatpush2.bf16.msra.mxu0 %v18427_v10  ;;  %v18438_v10 = vld [vmem:[#allocation9 + $0x214] ss:$24 sps:$4 sm:$0xff]  }
 0x219   :  { %2596 = vmatprep.subr.bf16.mxu0 %v18428_v5  ;;  %3298 = vmatpush2.bf16.msra.mxu1 %v18429_v23  ;;  %v18439_v5 = vld [vmem:[#allocation9 + $0x220] ss:$24 sps:$4 sm:$0xff]   ;;  %v18440_v23 = vld [vmem:[#allocation9 + $0x1f4] ss:$24 sps:$4 sm:$0xff]  }
 0x21a   :  { %3299 = vmatprep.subr.bf16.mxu1 %v18430_v57  ;;  %v18441_v57 = vld [vmem:[#allocation9 + $0x210] ss:$24 sps:$4 sm:$0xff]  }
 0x21c   :  { %2597 = vmatpush2.bf16.msra.mxu0 %v18431_v19  ;;  %v18442_v19 = vld [vmem:[#allocation9 + $0x1e4] ss:$24 sps:$4 sm:$0xff]  }
 0x21d   :  { %2598 = vmatprep.subr.bf16.mxu0 %v18432_v46  ;;  %3300 = vmatpush2.bf16.msra.mxu1 %v18433_v34  ;;  %v18443_v46 = vld [vmem:[#allocation9 + $0x1f0] ss:$24 sps:$4 sm:$0xff]   ;;  %v18444_v34 = vld [vmem:[#allocation9 + $0x1c4] ss:$24 sps:$4 sm:$0xff]  }
 0x21e   :  { %3301 = vmatprep.subr.bf16.mxu1 %v18434_v11  ;;  %v18445_v11 = vld [vmem:[#allocation9 + $0x1e0] ss:$24 sps:$4 sm:$0xff]  }
 0x220   :  { %2599 = vmatpush2.bf16.msra.mxu0 %v18435_v39  ;;  %v18446_v39 = vld [vmem:[#allocation9 + $0x1b4] ss:$24 sps:$4 sm:$0xff]  }
 0x221   :  { %2600 = vmatprep.subr.bf16.mxu0 %v18436_v45  ;;  %3302 = vmatpush2.bf16.msra.mxu1 %v18437_v62  ;;  %v18447_v45 = vld [vmem:[#allocation9 + $0x1c0] ss:$24 sps:$4 sm:$0xff]   ;;  %v18448_v62 = vld [vmem:[#allocation9 + $0x194] ss:$24 sps:$4 sm:$0xff]  }
 0x222   :  { %3303 = vmatprep.subr.bf16.mxu1 %v18438_v10  ;;  %v18449_v10 = vld [vmem:[#allocation9 + $0x1b0] ss:$24 sps:$4 sm:$0xff]  }
 0x224   :  { %2601 = vmatpush2.bf16.msra.mxu0 %v18439_v5  ;;  %v18450_v5 = vld [vmem:[#allocation9 + $0x184] ss:$24 sps:$4 sm:$0xff]  }
 0x225   :  { %2602 = vmatprep.subr.bf16.mxu0 %v18440_v23  ;;  %3304 = vmatpush2.bf16.msra.mxu1 %v18441_v57  ;;  %v18451_v23 = vld [vmem:[#allocation9 + $0x190] ss:$24 sps:$4 sm:$0xff]   ;;  %v18452_v57 = vld [vmem:[#allocation9 + $0x180] ss:$24 sps:$4 sm:$0xff]  }
 0x226   :  { %3305 = vmatprep.subr.bf16.mxu1 %v18442_v19  ;;  %v18453_v19 = vld [vmem:[#allocation9 + $0x164] ss:$24 sps:$4 sm:$0xff]  }
 0x228   :  { %2603 = vmatpush2.bf16.msra.mxu0 %v18443_v46  ;;  %v19212_v46 = vld [vmem:[#allocation9 + $0x158] ss:$24 sps:$4 sm:$0xff]  }
 0x229   :  { %2604 = vmatprep.subr.bf16.mxu0 %v18444_v34  ;;  %3306 = vmatpush2.bf16.msra.mxu1 %v18445_v11  ;;  %v19214_v34 = vld [vmem:[#allocation9 + $0x15c] ss:$24 sps:$4 sm:$0xff]   ;;  %v19216_v11 = vld [vmem:[#allocation9 + $0x12c] ss:$24 sps:$4 sm:$0xff]  }
 0x22a   :  { %3307 = vmatprep.subr.bf16.mxu1 %v18446_v39  ;;  %v19220_v39 = vld [vmem:[#allocation9 + $0x128] ss:$24 sps:$4 sm:$0xff]  }
 0x22c   :  { %2605 = vmatpush2.bf16.msra.mxu0 %v18447_v45  ;;  %v19223_v45 = vld [vmem:[#allocation9 + $0xfc] ss:$24 sps:$4 sm:$0xff]  }
 0x22d   :  { %2606 = vmatprep.subr.bf16.mxu0 %v18448_v62  ;;  %3308 = vmatpush2.bf16.msra.mxu1 %v18449_v10  ;;  %v19226_v62 = vld [vmem:[#allocation9 + $0xf8] ss:$24 sps:$4 sm:$0xff]   ;;  %v19232_v10 = vld [vmem:[#allocation9 + $0xc8] ss:$24 sps:$4 sm:$0xff]  }
 0x22e   :  { %3309 = vmatprep.subr.bf16.mxu1 %v18450_v5  ;;  %v19235_v5 = vld [vmem:[#allocation9 + $0x9c] ss:$24 sps:$4 sm:$0xff]  }
 0x230   :  { %2607 = vmatpush2.bf16.msra.mxu0 %v18451_v23  ;;  %v19238_v23 = vld [vmem:[#allocation9 + $0x98] ss:$24 sps:$4 sm:$0xff]  }
 0x231   :  { %3310 = vmatpush2.bf16.msra.mxu1 %v18452_v57  ;;  %3320 = vmatprep.subr.bf16.mxu0 %v19214_v34  ;;  %v19241_v57 = vld [vmem:[#allocation9 + $0x6c] ss:$24 sps:$4 sm:$0xff]  }
 0x232   :  { %3361 = vmatprep.subr.bf16.mxu1 %v18453_v19  ;;  %v19244_v19 = vld [vmem:[#allocation9 + $0x68] ss:$24 sps:$4 sm:$0xff]  }
 0x233   :  { %2609 = vmatmul.mubr.bf16.vlgmr.msra.gmra.mxu0 %v19160_v0  ;;  %v19229_v0 = vld [vmem:[#allocation9 + $0xcc] ss:$24 sps:$4 sm:$0xff]  }
 0x234   :  { %3321 = vmatpush1.bf16.msra.mxu0 %v19212_v46 }
 0x235   :  { %3322 = vmatprep.subr.bf16.mxu0 %v19216_v11 }
 0x238   :  { %3323 = vmatpush1.bf16.msra.mxu0 %v19220_v39 }
 0x239   :  { %3324 = vmatprep.subr.bf16.mxu0 %v19223_v45 }
 0x23c   :  { %3325 = vmatpush1.bf16.msra.mxu0 %v19226_v62 }
 0x23d   :  { %3326 = vmatprep.subr.bf16.mxu0 %v19229_v0 }
 0x240   :  { %3327 = vmatpush1.bf16.msra.mxu0 %v19232_v10 }
 0x241   :  { %3328 = vmatprep.subr.bf16.mxu0 %v19235_v5 }
 0x244   :  { %3329 = vmatpush1.bf16.msra.mxu0 %v19238_v23 }
 0x245   :  { %3330 = vmatprep.subr.bf16.mxu0 %v19241_v57 }
 0x248   :  { %3331 = vmatpush1.bf16.msra.mxu0 %v19244_v19 }
 0x249   :  { %3332 = vmatprep.subr.bf16.mxu0 %v19247_v43 }
 0x24c   :  { %3333 = vmatpush1.bf16.msra.mxu0 %v19250_v29 }
 0x24d   :  { %3334 = vmatprep.subr.bf16.mxu0 %v19253_v35 }
 0x250   :  { %3335 = vmatpush1.bf16.msra.mxu0 %v19256_v28 }
 0x251   :  { %3336 = vmatprep.subr.bf16.mxu0 %v19259_v33 }
 0x254   :  { %3337 = vmatpush2.bf16.msra.mxu0 %v19262_v27 }
 0x255   :  { %3338 = vmatprep.subr.bf16.mxu0 %v19266_v1 }
 0x258   :  { %3339 = vmatpush2.bf16.msra.mxu0 %v19268_v24 }
 0x259   :  { %3340 = vmatprep.subr.bf16.mxu0 %v19272_v41 }
 0x25c   :  { %3341 = vmatpush2.bf16.msra.mxu0 %v19274_v26 }
 0x25d   :  { %3342 = vmatprep.subr.bf16.mxu0 %v19278_v40 }
 0x260   :  { %3343 = vmatpush2.bf16.msra.mxu0 %v19280_v25 }
 0x261   :  { %3344 = vmatprep.subr.bf16.mxu0 %v19282_v17 }
 0x264   :  { %3345 = vmatpush2.bf16.msra.mxu0 %v19286_v18 }
 0x265   :  { %3346 = vmatprep.subr.bf16.mxu0 %v19289_v37 }
 0x268   :  { %3347 = vmatpush2.bf16.msra.mxu0 %v19292_v16 }
 0x269   :  { %3348 = vmatprep.subr.bf16.mxu0 %v19295_v63  ;;  %v1982_v63 = vld [vmem:[%s22218_s5] sm:$0x3f] }
 0x26a   :  { %v1991_v41 = vrot.slane %v1982_v63, %v18963_v48 }
 0x26c   :  { %3349 = vmatpush2.bf16.msra.mxu0 %v19298_v54  ;;  %v1987_v54 = vrot.slane %v1982_v63, %v18973_v51 }
 0x26d   :  { %3350 = vmatprep.subr.bf16.mxu0 %v19301_v15 }
 0x270   :  { %3351 = vmatpush2.bf16.msra.mxu0 %v19304_v59 }
 0x2b3   :  { %v2528_v52 = vpop.f32.mrf.mxu0  ;;  %v2569_v37 = vpop.f32.mrf.mxu1 }
 0x2b4   :  { %v2529_v24 = vadd.f32 %v2528_v52, %v1987_v54 }
 0x2b5   :  { %v2530_v18 = vpop.f32.mrf.mxu0  ;;  %v2571_v17 = vpop.f32.mrf.mxu1 }
 0x2b6   :  { %v2531_v15 = vadd.f32 %v2530_v18, %v1991_v41  ;;  %v2617_v59 = vadd.f32 %v2529_v24, %v19002_v2 }
 0x2b7   :  { %v2532_v25 = vpop.f32.mrf.mxu0  ;;  %v2573_v16 = vpop.f32.mrf.mxu1 }
 0x2b8   :  { %v2618_v1 = vadd.f32 %v2531_v15, %v19062_v13  ;;  %v14990_v27 = vmul.f32 -1.442695, %v2617_v59  ;;  %v1995_v25 = vrot.slane %v1982_v63, %v18969_v50  ;;  %v2003_v13 = vrot.slane %v1982_v63, %v19077_v36 }
 0x2b9   :  { %v2533_v40 = vpop.f32.mrf.mxu0  ;;  %v2574_v26 = vpop.f32.mrf.mxu1 }
 0x2ba   :  { %v14991_v16 = vmul.f32 -1.442695, %v2618_v1  ;;  %18108 = vpow2.f32 %v14990_v27  ;;  %v1999_v26 = vrot.slane %v1982_v63, %v18966_v49  ;;  %v2570_v40 = vadd.f32 %v2569_v37, %v1995_v25 }
 0x2bc   :  { %18110 = vpow2.f32 %v14991_v16  ;;  %v2572_v33 = vadd.f32 %v2571_v17, %v1999_v26  ;;  %v2631_v51 = vadd.f32 %v2570_v40, %v19005_v3  ;;  %v2007_v17 = vrot.slane %v1982_v63, %v19074_v31 }
 0x2be   :  { %v2632_v48 = vadd.f32 %v2572_v33, %v19065_v14  ;;  %v14992_v52 = vmul.f32 -1.442695, %v2631_v51 }
 0x2c0   :  { %v14993_v54 = vmul.f32 -1.442695, %v2632_v48  ;;  %18112 = vpow2.f32 %v14992_v52 }
 0x2c2   :  { %18114 = vpow2.f32 %v14993_v54 }
 0x2c7   :  { %v18109_v41 = vpop.eup %18108 }
 0x2c8   :  { %v2625_v15 = vadd.f32 1.0, %v18109_v41 }
 0x2c9   :  { %v18111_v2 = vpop.eup %18110 }
 0x2ca   :  { %v2626_v59 = vadd.f32 1.0, %v18111_v2  ;;  %18116 = vrcp.f32 %v2625_v15 }
 0x2cc   :  { %18118 = vrcp.f32 %v2626_v59 }
 0x2cd   :  { %v18113_v27 = vpop.eup %18112 }
 0x2ce   :  { %v2639_v24 = vadd.f32 1.0, %v18113_v27 }
 0x2cf   :  { %v18115_v37 = vpop.eup %18114 }
 0x2d0   :  { %v2640_v1 = vadd.f32 1.0, %v18115_v37  ;;  %18120 = vrcp.f32 %v2639_v24 }
 0x2d2   :  { %18122 = vrcp.f32 %v2640_v1 }
 0x2d7   :  { %v18117_v51 = vpop.eup %18116 }
 0x2d9   :  { %v18119_v25 = vpop.eup %18118 }
 0x2dd   :  { %v18121_v63 = vpop.eup %18120 }
 0x2de   :  { %v2651_v2 = vsub.f32 1.0, %v18121_v63 }
 0x2df   :  { %v18123_v41 = vpop.eup %18122 }
 0x2e0   :  { %v2652_v59 = vsub.f32 1.0, %v18123_v41 }
 0x2f3   :  { %v2610_v3 = vpop.f32.mrf.mxu0 }
 0x2f4   :  { %v2611_v33 = vadd.f32 %v2610_v3, %v2003_v13  ;;  %v2655_v13 = vmul.f32 %v18121_v63, %v19146_v30  ;;  %v19351_v30 = vld [vmem:[#allocation9 + $0x2b4] ss:$24 sps:$4 sm:$0xff]  }
 0x2f5   :  { %v2612_v48 = vpop.f32.mrf.mxu0  ;;  %v22466_v63 = vld [vmem:[#allocation77_spill] sm:$0xff] }
 0x2f6   :  { %v2645_v14 = vmul.f32 %v18117_v51, %v2611_v33  ;;  %v2613_v18 = vadd.f32 %v2612_v48, %v2007_v17  ;;  %v2656_v17 = vmul.f32 %v18123_v41, %v19148_v21  ;;  %v19354_v21 = vld [vmem:[#allocation9 + $0x2b0] ss:$24 sps:$4 sm:$0xff]   ;;  %v22460_v33 = vld [vmem:[#allocation71_spill] sm:$0xff]  ;;  %v22467_v41 = vld [vmem:[#allocation78_spill] sm:$0xff] }
 0x2f7   :  { %v2614_v16 = vpop.f32.mrf.mxu0  ;;  %v19454_v51 = vld [vmem:[#allocation9 + $0x30] ss:$24 sps:$4 sm:$0xff]  }
 0x2f8   :  { %v2647_v26 = vadd.f32 %v2645_v14, %v19093_v6  ;;  %v2646_v40 = vmul.f32 %v18119_v25, %v2613_v18  ;;  %v22461_v48 = vld [vmem:[#allocation72_spill] sm:$0xff]  ;;  %v19458_v14 = vld [vmem:[#allocation9 + $0x4] ss:$24 sps:$4 sm:$0xff]   ;;  %v22462_v18 = vld [vmem:[#allocation73_spill] sm:$0xff] }
 0x2f9   :  { %v2615_v52 = vpop.f32.mrf.mxu0  ;;  %v19462_v25 = vld [vmem:[#allocation9] ss:$24 sps:$4 sm:$0xff]  }
 0x2fa   :  { %18124 = vtanh.f32 %v2647_v26  ;;  %v2648_v54 = vadd.f32 %v2646_v40, %v19126_v58  ;;  %v22463_v16 = vld [vmem:[#allocation74_spill] sm:$0xff]  ;;  %v19466_v26 = vld [vmem:[#allocation9 + $0x2d4] ss:$24 sps:$4 sm:$0xff]   ;;  %v22464_v40 = vld [vmem:[#allocation75_spill] sm:$0xff] }
 0x2fb   :  { %v19470_v52 = vld [vmem:[#allocation9 + $0x2d0] ss:$24 sps:$4 sm:$0xff]  }
 0x2fc   :  { %18126 = vtanh.f32 %v2648_v54  ;;  %v22465_v54 = vld [vmem:[#allocation76_spill] sm:$0xff] }
 0x307   :  { %v18125_v15 = vpop.eup %18124 }
 0x308   :  { %v2653_v27 = vmul.f32 %v18125_v15, %v2651_v2  ;;  %v19477_v2 = vld [vmem:[#allocation9 + $0x2a4] ss:$24 sps:$4 sm:$0xff]   ;;  %v19479_v15 = vld [vmem:[#allocation9 + $0x2a0] ss:$24 sps:$4 sm:$0xff]  }
 0x309   :  { %v18127_v37 = vpop.eup %18126 }
 0x30a   :  { %v2654_v24 = vmul.f32 %v18127_v37, %v2652_v59  ;;  %v19325_v3 = vadd.f32 %v2655_v13, %v2653_v27  ;;  %v19483_v59 = vld [vmem:[#allocation9 + $0x274] ss:$24 sps:$4 sm:$0xff]   ;;  %v19485_v27 = vld [vmem:[#allocation9 + $0x270] ss:$24 sps:$4 sm:$0xff]   ;;  %v19489_v13 = vld [vmem:[#allocation9 + $0x244] ss:$24 sps:$4 sm:$0xff]  }
 0x30b   :  { %v19491_v37 = vld [vmem:[#allocation9 + $0x240] ss:$24 sps:$4 sm:$0xff]  }
 0x30c   :  { %v19327_v6 = vadd.f32 %v2656_v17, %v2654_v24  ;;  %2659 = vst [vmem:[#allocation2 + $0x10] sm:$0xff] %v19325_v3  ;;  %v2669_v1 = vpack.c.bf16 %v19325_v3, %v19325_v3  ;;  %v19494_v24 = vld [vmem:[#allocation9 + $0x214] ss:$24 sps:$4 sm:$0xff]   ;;  %v19497_v17 = vld [vmem:[#allocation9 + $0x210] ss:$24 sps:$4 sm:$0xff]  }
 0x30e   :  { %2660 = vst [vmem:[#allocation2 + $0x68] sm:$0xff] %v19327_v6  ;;  %v2670_v58 = vpack.c.bf16 %v19327_v6, %v19327_v6 }
 0x310   :  { %3311 = vmatprep.mubr.bf16.mxu1 %v2670_v58  ;;  %3352 = vmatprep.mubr.bf16.mxu0 %v2670_v58 }
 0x311   :  { %3312 = vmatmul.mubr.bf16.vlgmr.msra.gmra.mxu1 %v2669_v1  ;;  %3353 = vmatmul.mubr.bf16.vlgmr.msra.gmra.mxu0 %v2669_v1 }
 0x312   :  { %3362 = vmatpush1.bf16.msra.mxu1 %v19150_v56  ;;  %3393 = vmatprep.mubr.bf16.mxu1 %v2670_v58  ;;  %v19357_v56 = vld [vmem:[#allocation9 + $0x284] ss:$24 sps:$4 sm:$0xff]  }
 0x313   :  { %3363 = vmatprep.subr.bf16.mxu1 %v19153_v38  ;;  %v19360_v38 = vld [vmem:[#allocation9 + $0x280] ss:$24 sps:$4 sm:$0xff]   ;;  %v19500_v58 = vld [vmem:[#allocation9 + $0x1e4] ss:$24 sps:$4 sm:$0xff]  }
 0x316   :  { %3364 = vmatpush1.bf16.msra.mxu1 %v19162_v53  ;;  %v19363_v53 = vld [vmem:[#allocation9 + $0x254] ss:$24 sps:$4 sm:$0xff]  }
 0x317   :  { %3365 = vmatprep.subr.bf16.mxu1 %v19168_v32  ;;  %v19366_v32 = vld [vmem:[#allocation9 + $0x250] ss:$24 sps:$4 sm:$0xff]  }
 0x31a   :  { %3366 = vmatpush1.bf16.msra.mxu1 %v19170_v42  ;;  %v19369_v42 = vld [vmem:[#allocation9 + $0x224] ss:$24 sps:$4 sm:$0xff]  }
 0x31b   :  { %3367 = vmatprep.subr.bf16.mxu1 %v19172_v60  ;;  %v19372_v60 = vld [vmem:[#allocation9 + $0x220] ss:$24 sps:$4 sm:$0xff]  }
 0x31e   :  { %3368 = vmatpush1.bf16.msra.mxu1 %v19177_v9  ;;  %v19375_v9 = vld [vmem:[#allocation9 + $0x1f4] ss:$24 sps:$4 sm:$0xff]  }
 0x31f   :  { %3369 = vmatprep.subr.bf16.mxu1 %v19180_v22  ;;  %v19378_v22 = vld [vmem:[#allocation9 + $0x1f0] ss:$24 sps:$4 sm:$0xff]  }
 0x320   :  { %22447 = vst [vmem:[#allocation79_spill] sm:$0xff] %v19378_v22 }
 0x322   :  { %3370 = vmatpush1.bf16.msra.mxu1 %v19183_v12  ;;  %v19381_v12 = vld [vmem:[#allocation9 + $0x1c4] ss:$24 sps:$4 sm:$0xff]  }
 0x323   :  { %3371 = vmatprep.subr.bf16.mxu1 %v19186_v47  ;;  %22448 = vst [vmem:[#allocation80_spill] sm:$0xff] %v19381_v12  ;;  %v19384_v47 = vld [vmem:[#allocation9 + $0x1c0] ss:$24 sps:$4 sm:$0xff]  }
 0x324   :  { %22449 = vst [vmem:[#allocation81_spill] sm:$0xff] %v19384_v47 }
 0x326   :  { %3372 = vmatpush1.bf16.msra.mxu1 %v19189_v44  ;;  %v19387_v44 = vld [vmem:[#allocation9 + $0x194] ss:$24 sps:$4 sm:$0xff]  }
 0x327   :  { %3373 = vmatprep.subr.bf16.mxu1 %v19192_v4  ;;  %22450 = vst [vmem:[#allocation82_spill] sm:$0xff] %v19387_v44  ;;  %v19390_v4 = vld [vmem:[#allocation9 + $0x190] ss:$24 sps:$4 sm:$0xff]  }
 0x328   :  { %22451 = vst [vmem:[#allocation83_spill] sm:$0xff] %v19390_v4 }
 0x32a   :  { %3374 = vmatpush1.bf16.msra.mxu1 %v19195_v7  ;;  %v19408_v7 = vld [vmem:[#allocation9 + $0x150] ss:$24 sps:$4 sm:$0xff]  }
 0x32b   :  { %3375 = vmatprep.subr.bf16.mxu1 %v19198_v8  ;;  %v16938_v8 = vld [vmem:[#allocation9 + $0x154] ss:$24 sps:$4 sm:$0xff]  }
 0x32c   :  { %4064 = vmatprep.subr.bf16.mxu0 %v16938_v8 }
 0x32d   :  { %4065 = vmatpush1.bf16.msra.mxu0 %v19408_v7 }
 0x32e   :  { %3376 = vmatpush1.bf16.msra.mxu1 %v19201_v55  ;;  %v19411_v55 = vld [vmem:[#allocation9 + $0x124] ss:$24 sps:$4 sm:$0xff]  }
 0x32f   :  { %3377 = vmatprep.subr.bf16.mxu1 %v19204_v61  ;;  %v19414_v61 = vld [vmem:[#allocation9 + $0x120] ss:$24 sps:$4 sm:$0xff]   ;;  %4066 = vmatprep.subr.bf16.mxu0 %v19411_v55 }
 0x331   :  { %4067 = vmatpush1.bf16.msra.mxu0 %v19414_v61 }
 0x332   :  { %3378 = vmatpush2.bf16.msra.mxu1 %v19207_v20  ;;  %v19418_v20 = vld [vmem:[#allocation9 + $0xf4] ss:$24 sps:$4 sm:$0xff]  }
 0x333   :  { %3379 = vmatprep.subr.bf16.mxu1 %v19351_v30  ;;  %4068 = vmatprep.subr.bf16.mxu0 %v19418_v20 }
 0x336   :  { %3380 = vmatpush2.bf16.msra.mxu1 %v19354_v21 }
 0x337   :  { %3381 = vmatprep.subr.bf16.mxu1 %v19357_v56 }
 0x33a   :  { %3382 = vmatpush2.bf16.msra.mxu1 %v19360_v38 }
 0x33b   :  { %3383 = vmatprep.subr.bf16.mxu1 %v19363_v53 }
 0x33e   :  { %3384 = vmatpush2.bf16.msra.mxu1 %v19366_v32 }
 0x33f   :  { %3385 = vmatprep.subr.bf16.mxu1 %v19369_v42 }
 0x342   :  { %3386 = vmatpush2.bf16.msra.mxu1 %v19372_v60 }
 0x343   :  { %3387 = vmatprep.subr.bf16.mxu1 %v19375_v9 }
 0x346   :  { %3388 = vmatpush2.bf16.msra.mxu1 %v19378_v22  ;;  %v22479_v22 = vld [vmem:[#allocation25_spill] sm:$0xff] }
 0x347   :  { %3389 = vmatprep.subr.bf16.mxu1 %v19381_v12 }
 0x34a   :  { %3390 = vmatpush2.bf16.msra.mxu1 %v19384_v47  ;;  %v22478_v47 = vld [vmem:[#allocation30_spill] sm:$0xff] }
 0x34b   :  { %3391 = vmatprep.subr.bf16.mxu1 %v19387_v44 }
 0x34e   :  { %3392 = vmatpush2.bf16.msra.mxu1 %v19390_v4 }
 0x34f   :  { %4105 = vmatprep.subr.bf16.mxu1 %v19214_v34  ;;  %v22454_v34 = vld [vmem:[#allocation65_spill] sm:$0xff] }
 0x351   :  { %3394 = vmatmul.mubr.bf16.vlgmr.msra.gmra.mxu1 %v2669_v1  ;;  %v19503_v1 = vld [vmem:[#allocation9 + $0x1e0] ss:$24 sps:$4 sm:$0xff]  }
 0x352   :  { %4106 = vmatpush1.bf16.msra.mxu1 %v19212_v46  ;;  %v19426_v46 = vld [vmem:[#allocation9 + $0xc4] ss:$24 sps:$4 sm:$0xff]  }
 0x353   :  { %4107 = vmatprep.subr.bf16.mxu1 %v19216_v11  ;;  %v22455_v11 = vld [vmem:[#allocation66_spill] sm:$0xff] }
 0x356   :  { %4108 = vmatpush1.bf16.msra.mxu1 %v19220_v39  ;;  %v19434_v39 = vld [vmem:[#allocation9 + $0x94] ss:$24 sps:$4 sm:$0xff]  }
 0x357   :  { %4109 = vmatprep.subr.bf16.mxu1 %v19223_v45  ;;  %v22456_v45 = vld [vmem:[#allocation67_spill] sm:$0xff] }
 0x35a   :  { %4110 = vmatpush1.bf16.msra.mxu1 %v19226_v62  ;;  %v19438_v62 = vld [vmem:[#allocation9 + $0x90] ss:$24 sps:$4 sm:$0xff]  }
 0x35b   :  { %4111 = vmatprep.subr.bf16.mxu1 %v19229_v0  ;;  %v22457_v0 = vld [vmem:[#allocation68_spill] sm:$0xff] }
 0x35e   :  { %4112 = vmatpush1.bf16.msra.mxu1 %v19232_v10  ;;  %v19442_v10 = vld [vmem:[#allocation9 + $0x64] ss:$24 sps:$4 sm:$0xff]  }
 0x35f   :  { %4113 = vmatprep.subr.bf16.mxu1 %v19235_v5  ;;  %v22458_v5 = vld [vmem:[#allocation69_spill] sm:$0xff] }
 0x362   :  { %4114 = vmatpush1.bf16.msra.mxu1 %v19238_v23  ;;  %v19446_v23 = vld [vmem:[#allocation9 + $0x60] ss:$24 sps:$4 sm:$0xff]  }
 0x363   :  { %4115 = vmatprep.subr.bf16.mxu1 %v19241_v57  ;;  %v22459_v57 = vld [vmem:[#allocation70_spill] sm:$0xff] }
 0x366   :  { %4116 = vmatpush1.bf16.msra.mxu1 %v19244_v19  ;;  %v19450_v19 = vld [vmem:[#allocation9 + $0x34] ss:$24 sps:$4 sm:$0xff]  }
 0x367   :  { %4117 = vmatprep.subr.bf16.mxu1 %v19247_v43  ;;  %v22452_v43 = vld [vmem:[#allocation63_spill] sm:$0xff] }
 0x368   :  { %22468 = vst [vmem:[#allocation63_spill] sm:$0xff] %v19503_v1 }
 0x36a   :  { %4118 = vmatpush1.bf16.msra.mxu1 %v19250_v29  ;;  %v19422_v29 = vld [vmem:[#allocation9 + $0xf0] ss:$24 sps:$4 sm:$0xff]  }
 0x36b   :  { %4119 = vmatprep.subr.bf16.mxu1 %v19253_v35  ;;  %v22453_v35 = vld [vmem:[#allocation64_spill] sm:$0xff]  ;;  %4069 = vmatpush1.bf16.msra.mxu0 %v19422_v29 }
 0x36c   :  { %4070 = vmatprep.subr.bf16.mxu0 %v19426_v46 }
 0x36e   :  { %4120 = vmatpush1.bf16.msra.mxu1 %v19256_v28  ;;  %v19430_v28 = vld [vmem:[#allocation9 + $0xc0] ss:$24 sps:$4 sm:$0xff]  }
 0x36f   :  { %4121 = vmatprep.subr.bf16.mxu1 %v22452_v43  ;;  %4071 = vmatpush1.bf16.msra.mxu0 %v19430_v28  ;;  %v19509_v43 = vld [vmem:[#allocation9 + $0x1b0] ss:$24 sps:$4 sm:$0xff]  }
 0x370   :  { %4072 = vmatprep.subr.bf16.mxu0 %v19434_v39  ;;  %22470 = vst [vmem:[#allocation65_spill] sm:$0xff] %v19509_v43 }
 0x372   :  { %4122 = vmatpush2.bf16.msra.mxu1 %v22453_v35  ;;  %v19512_v35 = vld [vmem:[#allocation9 + $0x184] ss:$24 sps:$4 sm:$0xff]  }
 0x373   :  { %4123 = vmatprep.subr.bf16.mxu1 %v22454_v34  ;;  %4073 = vmatpush1.bf16.msra.mxu0 %v19438_v62  ;;  %22471 = vst [vmem:[#allocation66_spill] sm:$0xff] %v19512_v35  ;;  %v19515_v34 = vld [vmem:[#allocation9 + $0x180] ss:$24 sps:$4 sm:$0xff]  }
 0x374   :  { %4074 = vmatprep.subr.bf16.mxu0 %v19442_v10  ;;  %22472 = vst [vmem:[#allocation67_spill] sm:$0xff] %v19515_v34 }
 0x376   :  { %4124 = vmatpush2.bf16.msra.mxu1 %v22455_v11  ;;  %v19519_v11 = vld [vmem:[#allocation9 + $0x164] ss:$24 sps:$4 sm:$0xff]  }
 0x377   :  { %4125 = vmatprep.subr.bf16.mxu1 %v22456_v45  ;;  %4075 = vmatpush1.bf16.msra.mxu0 %v19446_v23  ;;  %22473 = vst [vmem:[#allocation68_spill] sm:$0xff] %v19519_v11 }
 0x378   :  { %4076 = vmatprep.subr.bf16.mxu0 %v19450_v19 }
 0x37a   :  { %4126 = vmatpush2.bf16.msra.mxu1 %v22457_v0 }
 0x37b   :  { %4127 = vmatprep.subr.bf16.mxu1 %v22458_v5  ;;  %4077 = vmatpush1.bf16.msra.mxu0 %v19454_v51 }
 0x37c   :  { %4078 = vmatprep.subr.bf16.mxu0 %v19458_v14 }
 0x37e   :  { %4128 = vmatpush2.bf16.msra.mxu1 %v22459_v57 }
 0x37f   :  { %4129 = vmatprep.subr.bf16.mxu1 %v22460_v33  ;;  %4079 = vmatpush1.bf16.msra.mxu0 %v19462_v25 }
 0x380   :  { %4080 = vmatprep.subr.bf16.mxu0 %v19466_v26 }
 0x382   :  { %4130 = vmatpush2.bf16.msra.mxu1 %v22461_v48 }
 0x383   :  { %4131 = vmatprep.subr.bf16.mxu1 %v22462_v18  ;;  %4081 = vmatpush2.bf16.msra.mxu0 %v19470_v52 }
 0x384   :  { %4082 = vmatprep.subr.bf16.mxu0 %v19477_v2 }
 0x386   :  { %4132 = vmatpush2.bf16.msra.mxu1 %v22463_v16 }
 0x387   :  { %4133 = vmatprep.subr.bf16.mxu1 %v22464_v40  ;;  %4083 = vmatpush2.bf16.msra.mxu0 %v19479_v15  ;;  %v2767_v40 = vld [vmem:[%s22218_s5] sm:$0x3f] }
 0x388   :  { %4084 = vmatprep.subr.bf16.mxu0 %v19483_v59 }
 0x38a   :  { %4134 = vmatpush2.bf16.msra.mxu1 %v22465_v54  ;;  %v22474_v54 = vld [vmem:[#allocation23_spill] sm:$0xff] }
 0x38b   :  { %4135 = vmatprep.subr.bf16.mxu1 %v22466_v63  ;;  %4085 = vmatpush2.bf16.msra.mxu0 %v19485_v27  ;;  %v2772_v63 = vrot.slane %v2767_v40, %v22474_v54 }
 0x38c   :  { %4086 = vmatprep.subr.bf16.mxu0 %v19489_v13 }
 0x38e   :  { %4136 = vmatpush2.bf16.msra.mxu1 %v22467_v41  ;;  %v22475_v41 = vld [vmem:[#allocation21_spill] sm:$0xff] }
 0x38f   :  { %4847 = vmatprep.subr.bf16.mxu1 %v16938_v8  ;;  %4087 = vmatpush2.bf16.msra.mxu0 %v19491_v37  ;;  %v19506_v8 = vld [vmem:[#allocation9 + $0x1b4] ss:$24 sps:$4 sm:$0xff]  }
 0x390   :  { %4088 = vmatprep.subr.bf16.mxu0 %v19494_v24  ;;  %22469 = vst [vmem:[#allocation64_spill] sm:$0xff] %v19506_v8 }
 0x393   :  { %4089 = vmatpush2.bf16.msra.mxu0 %v19497_v17 }
 0x394   :  { %4090 = vmatprep.subr.bf16.mxu0 %v19500_v58 }
 0x397   :  { %4091 = vmatpush2.bf16.msra.mxu0 %v19503_v1 }
 0x398   :  { %4092 = vmatprep.subr.bf16.mxu0 %v19506_v8 }
 0x39b   :  { %4093 = vmatpush2.bf16.msra.mxu0 %v19509_v43  ;;  %v22476_v43 = vld [vmem:[#allocation24_spill] sm:$0xff] }
 0x39c   :  { %4094 = vmatprep.subr.bf16.mxu0 %v19512_v35 }
 0x39f   :  { %4095 = vmatpush2.bf16.msra.mxu0 %v19515_v34  ;;  %v2776_v34 = vrot.slane %v2767_v40, %v22475_v41  ;;  %v22480_v41 = vld [vmem:[#allocation45_spill] sm:$0xff] }
 0x3a0   :  { %4146 = vmatprep.subr.bf16.mxu0 %v19519_v11  ;;  %v22477_v11 = vld [vmem:[#allocation44_spill] sm:$0xff] }
 0x3a1   :  { %v888_v44 = vadd.f32 %v22477_v11, %v22476_v43 }
 0x3d1   :  { %v3313_v45 = vpop.f32.mrf.mxu1  ;;  %v3354_v0 = vpop.f32.mrf.mxu0 }
 0x3d2   :  { %v3314_v4 = vadd.f32 %v3313_v45, %v2772_v63  ;;  %v961_v45 = vadd.f32 %v22480_v41, %v22479_v22  ;;  %v2792_v41 = vrot.slane %v2767_v40, %v19074_v31  ;;  %v3552_v22 = vld [vmem:[%s22218_s5] sm:$0x3f] }
 0x3d3   :  { %v3315_v5 = vpop.f32.mrf.mxu1  ;;  %v3356_v57 = vpop.f32.mrf.mxu0 }
 0x3d4   :  { %v3316_v35 = vadd.f32 %v3315_v5, %v2776_v34  ;;  %v3402_v8 = vadd.f32 %v3314_v4, %v22478_v47  ;;  %v22481_v34 = vld [vmem:[#allocation31_spill] sm:$0xff] }
 0x3d5   :  { %v3317_v33 = vpop.f32.mrf.mxu1  ;;  %v3358_v48 = vpop.f32.mrf.mxu0 }
 0x3d6   :  { %v3403_v1 = vadd.f32 %v3316_v35, %v888_v44  ;;  %v15090_v33 = vmul.f32 -1.442695, %v3402_v8  ;;  %v2780_v48 = vrot.slane %v2767_v40, %v18969_v50  ;;  %v2788_v35 = vrot.slane %v2767_v40, %v19077_v36 }
 0x3d7   :  { %v3318_v18 = vpop.f32.mrf.mxu1  ;;  %v3359_v16 = vpop.f32.mrf.mxu0 }
 0x3d8   :  { %v15091_v18 = vmul.f32 -1.442695, %v3403_v1  ;;  %18128 = vpow2.f32 %v15090_v33  ;;  %v2784_v16 = vrot.slane %v2767_v40, %v18966_v49  ;;  %v3355_v12 = vadd.f32 %v3354_v0, %v2780_v48 }
 0x3da   :  { %18130 = vpow2.f32 %v15091_v18  ;;  %v3357_v54 = vadd.f32 %v3356_v57, %v2784_v16  ;;  %v3416_v5 = vadd.f32 %v3355_v12, %v22481_v34 }
 0x3dc   :  { %v3417_v63 = vadd.f32 %v3357_v54, %v961_v45  ;;  %v15092_v11 = vmul.f32 -1.442695, %v3416_v5  ;;  %v22482_v5 = vld [vmem:[#allocation50_spill] sm:$0xff] }
 0x3de   :  { %v15093_v43 = vmul.f32 -1.442695, %v3417_v63  ;;  %18132 = vpow2.f32 %v15092_v11  ;;  %v22483_v63 = vld [vmem:[#allocation60_spill] sm:$0xff] }
 0x3df   :  { %v1034_v11 = vadd.f32 %v22483_v63, %v22482_v5  ;;  %v19556_v63 = vld [vmem:[#allocation9 + $0x134] ss:$24 sps:$4 sm:$0xff]  }
 0x3e0   :  { %18134 = vpow2.f32 %v15093_v43 }
 0x3e5   :  { %v18129_v47 = vpop.eup %18128 }
 0x3e6   :  { %v3410_v4 = vadd.f32 1.0, %v18129_v47  ;;  %v22484_v47 = vld [vmem:[#allocation53_spill] sm:$0xff] }
 0x3e7   :  { %v18131_v44 = vpop.eup %18130 }
 0x3e8   :  { %v3411_v1 = vadd.f32 1.0, %v18131_v44  ;;  %18136 = vrcp.f32 %v3410_v4 }
 0x3ea   :  { %18138 = vrcp.f32 %v3411_v1 }
 0x3eb   :  { %v18133_v8 = vpop.eup %18132 }
 0x3ec   :  { %v3424_v57 = vadd.f32 1.0, %v18133_v8 }
 0x3ed   :  { %v18135_v0 = vpop.eup %18134 }
 0x3ee   :  { %v3425_v12 = vadd.f32 1.0, %v18135_v0  ;;  %18140 = vrcp.f32 %v3424_v57 }
 0x3f0   :  { %18142 = vrcp.f32 %v3425_v12 }
 0x3f5   :  { %v18137_v48 = vpop.eup %18136 }
 0x3f7   :  { %v18139_v34 = vpop.eup %18138 }
 0x3fb   :  { %v18141_v8 = vpop.eup %18140 }
 0x3fc   :  { %v3436_v0 = vsub.f32 1.0, %v18141_v8 }
 0x411   :  { %v3395_v33 = vpop.f32.mrf.mxu1 }
 0x412   :  { %v3396_v54 = vadd.f32 %v3395_v33, %v2788_v35  ;;  %v18143_v35 = vpop.eup %18142 }
 0x413   :  { %v3397_v18 = vpop.f32.mrf.mxu1  ;;  %v3437_v57 = vsub.f32 1.0, %v18143_v35 }
 0x414   :  { %v3430_v16 = vmul.f32 %v18137_v48, %v3396_v54  ;;  %v3398_v45 = vadd.f32 %v3397_v18, %v2792_v41  ;;  %v3440_v41 = vmul.f32 %v18141_v8, %v19325_v3  ;;  %v19701_v8 = vld [vmem:[#allocation9 + $0x2dc] ss:$24 sps:$4 sm:$0xff]  }
 0x415   :  { %v3399_v43 = vpop.f32.mrf.mxu1 }
 0x416   :  { %v3432_v44 = vadd.f32 %v3430_v16, %v22484_v47  ;;  %v3431_v4 = vmul.f32 %v18139_v34, %v3398_v45  ;;  %v3441_v43 = vmul.f32 %v18143_v35, %v19327_v6  ;;  %v19550_v34 = vld [vmem:[#allocation9 + $0x160] ss:$24 sps:$4 sm:$0xff]   ;;  %v19561_v6 = vld [vmem:[#allocation9 + $0x130] ss:$24 sps:$4 sm:$0xff]  }
 0x417   :  { %v3400_v1 = vpop.f32.mrf.mxu1  ;;  %v19569_v47 = vld [vmem:[#allocation9 + $0x100] ss:$24 sps:$4 sm:$0xff]  }
 0x418   :  { %18144 = vtanh.f32 %v3432_v44  ;;  %v3433_v40 = vadd.f32 %v3431_v4, %v1034_v11  ;;  %v19564_v11 = vld [vmem:[#allocation9 + $0x104] ss:$24 sps:$4 sm:$0xff]   ;;  %v19572_v44 = vld [vmem:[#allocation9 + $0xd4] ss:$24 sps:$4 sm:$0xff]   ;;  %v19577_v4 = vld [vmem:[#allocation9 + $0xd0] ss:$24 sps:$4 sm:$0xff]  }
 0x419   :  { %v19695_v1 = vld [vmem:[#allocation9 + $0xc] ss:$24 sps:$4 sm:$0xff]   ;;  %v19704_v35 = vld [vmem:[#allocation9 + $0x2d8] ss:$24 sps:$4 sm:$0xff]  }
 0x41a   :  { %18146 = vtanh.f32 %v3433_v40  ;;  %v19698_v40 = vld [vmem:[#allocation9 + $0x8] ss:$24 sps:$4 sm:$0xff]  }
 0x425   :  { %v18145_v33 = vpop.eup %18144 }
 0x426   :  { %v3438_v54 = vmul.f32 %v18145_v33, %v3436_v0  ;;  %v19708_v0 = vld [vmem:[#allocation9 + $0x2ac] ss:$24 sps:$4 sm:$0xff]   ;;  %v19710_v33 = vld [vmem:[#allocation9 + $0x2a8] ss:$24 sps:$4 sm:$0xff]  }
 0x427   :  { %v18147_v48 = vpop.eup %18146  ;;  %22496 = vst [vmem:[#allocation69_spill] sm:$0xff] %v19708_v0  ;;  %22497 = vst [vmem:[#allocation70_spill] sm:$0xff] %v19710_v33 }
 0x428   :  { %v3439_v18 = vmul.f32 %v18147_v48, %v3437_v57  ;;  %v19542_v12 = vadd.f32 %v3440_v41, %v3438_v54  ;;  %v19714_v57 = vld [vmem:[#allocation9 + $0x27c] ss:$24 sps:$4 sm:$0xff]   ;;  %v19716_v54 = vld [vmem:[#allocation9 + $0x278] ss:$24 sps:$4 sm:$0xff]   ;;  %v19720_v41 = vld [vmem:[#allocation9 + $0x24c] ss:$24 sps:$4 sm:$0xff]  }
 0x429   :  { %22498 = vst [vmem:[#allocation71_spill] sm:$0xff] %v19714_v57  ;;  %22499 = vst [vmem:[#allocation72_spill] sm:$0xff] %v19716_v54  ;;  %v19722_v48 = vld [vmem:[#allocation9 + $0x248] ss:$24 sps:$4 sm:$0xff]  }
 0x42a   :  { %v19544_v16 = vadd.f32 %v3441_v43, %v3439_v18  ;;  %3444 = vst [vmem:[#allocation2 + $0x20] sm:$0xff] %v19542_v12  ;;  %v19554_v3 = vpack.c.bf16 %v19542_v12, %v19542_v12  ;;  %22500 = vst [vmem:[#allocation73_spill] sm:$0xff] %v19720_v41  ;;  %v19724_v18 = vld [vmem:[#allocation9 + $0x21c] ss:$24 sps:$4 sm:$0xff]   ;;  %v19728_v43 = vld [vmem:[#allocation9 + $0x218] ss:$24 sps:$4 sm:$0xff]  }
 0x42b   :  { %22501 = vst [vmem:[#allocation74_spill] sm:$0xff] %v19722_v48  ;;  %22502 = vst [vmem:[#allocation75_spill] sm:$0xff] %v19724_v18 }
 0x42c   :  { %3445 = vst [vmem:[#allocation2 + $0x58] sm:$0xff] %v19544_v16  ;;  %v3455_v45 = vpack.c.bf16 %v19544_v16, %v19544_v16  ;;  %22503 = vst [vmem:[#allocation76_spill] sm:$0xff] %v19728_v43 }
 0x42e   :  { %4096 = vmatprep.mubr.bf16.mxu0 %v3455_v45  ;;  %4137 = vmatprep.mubr.bf16.mxu1 %v3455_v45 }
 0x42f   :  { %4097 = vmatmul.mubr.bf16.vlgmr.msra.gmra.mxu0 %v19554_v3  ;;  %4138 = vmatmul.mubr.bf16.vlgmr.msra.gmra.mxu1 %v19554_v3 }
 0x430   :  { %4147 = vmatpush1.bf16.msra.mxu0 %v19550_v34  ;;  %4178 = vmatprep.mubr.bf16.mxu0 %v3455_v45  ;;  %v19731_v45 = vld [vmem:[#allocation9 + $0x1ec] ss:$24 sps:$4 sm:$0xff]  }
 0x431   :  { %4148 = vmatprep.subr.bf16.mxu0 %v19556_v63  ;;  %4848 = vmatpush1.bf16.msra.mxu1 %v19408_v7  ;;  %v19580_v7 = vld [vmem:[#allocation9 + $0xa4] ss:$24 sps:$4 sm:$0xff]   ;;  %22504 = vst [vmem:[#allocation77_spill] sm:$0xff] %v19731_v45 }
 0x432   :  { %4849 = vmatprep.subr.bf16.mxu1 %v19411_v55  ;;  %v19585_v55 = vld [vmem:[#allocation9 + $0xa0] ss:$24 sps:$4 sm:$0xff]  }
 0x434   :  { %4149 = vmatpush1.bf16.msra.mxu0 %v19561_v6 }
 0x435   :  { %4150 = vmatprep.subr.bf16.mxu0 %v19564_v11  ;;  %4850 = vmatpush1.bf16.msra.mxu1 %v19414_v61  ;;  %v19588_v61 = vld [vmem:[#allocation9 + $0x74] ss:$24 sps:$4 sm:$0xff]  }
 0x436   :  { %4851 = vmatprep.subr.bf16.mxu1 %v19418_v20  ;;  %v19593_v20 = vld [vmem:[#allocation9 + $0x70] ss:$24 sps:$4 sm:$0xff]  }
 0x438   :  { %4151 = vmatpush1.bf16.msra.mxu0 %v19569_v47 }
 0x439   :  { %4152 = vmatprep.subr.bf16.mxu0 %v19572_v44  ;;  %4852 = vmatpush1.bf16.msra.mxu1 %v19422_v29  ;;  %v19596_v29 = vld [vmem:[#allocation9 + $0x44] ss:$24 sps:$4 sm:$0xff]  }
 0x43a   :  { %4853 = vmatprep.subr.bf16.mxu1 %v19426_v46  ;;  %v19601_v46 = vld [vmem:[#allocation9 + $0x40] ss:$24 sps:$4 sm:$0xff]  }
 0x43c   :  { %4153 = vmatpush1.bf16.msra.mxu0 %v19577_v4 }
 0x43d   :  { %4154 = vmatprep.subr.bf16.mxu0 %v19580_v7  ;;  %4854 = vmatpush1.bf16.msra.mxu1 %v19430_v28  ;;  %v19604_v28 = vld [vmem:[#allocation9 + $0x14] ss:$24 sps:$4 sm:$0xff]  }
 0x43e   :  { %4855 = vmatprep.subr.bf16.mxu1 %v19434_v39  ;;  %v19609_v39 = vld [vmem:[#allocation9 + $0x10] ss:$24 sps:$4 sm:$0xff]  }
 0x440   :  { %4155 = vmatpush1.bf16.msra.mxu0 %v19585_v55 }
 0x441   :  { %4156 = vmatprep.subr.bf16.mxu0 %v19588_v61  ;;  %4856 = vmatpush1.bf16.msra.mxu1 %v19438_v62  ;;  %v19612_v62 = vld [vmem:[#allocation9 + $0x2e4] ss:$24 sps:$4 sm:$0xff]  }
 0x442   :  { %4857 = vmatprep.subr.bf16.mxu1 %v19442_v10  ;;  %v19617_v10 = vld [vmem:[#allocation9 + $0x2e0] ss:$24 sps:$4 sm:$0xff]  }
 0x444   :  { %4157 = vmatpush1.bf16.msra.mxu0 %v19593_v20 }
 0x445   :  { %4158 = vmatprep.subr.bf16.mxu0 %v19596_v29  ;;  %4858 = vmatpush1.bf16.msra.mxu1 %v19446_v23  ;;  %v22494_v23 = vld [vmem:[#allocation67_spill] sm:$0xff] }
 0x446   :  { %4859 = vmatprep.subr.bf16.mxu1 %v19450_v19  ;;  %v22495_v19 = vld [vmem:[#allocation68_spill] sm:$0xff] }
 0x448   :  { %4159 = vmatpush1.bf16.msra.mxu0 %v19601_v46 }
 0x449   :  { %4160 = vmatprep.subr.bf16.mxu0 %v19604_v28  ;;  %4860 = vmatpush1.bf16.msra.mxu1 %v19454_v51  ;;  %v19654_v51 = vld [vmem:[#allocation9 + $0x158] ss:$24 sps:$4 sm:$0xff]  }
 0x44a   :  { %4861 = vmatprep.subr.bf16.mxu1 %v19458_v14  ;;  %v19656_v14 = vld [vmem:[#allocation9 + $0x15c] ss:$24 sps:$4 sm:$0xff]  }
 0x44c   :  { %4161 = vmatpush1.bf16.msra.mxu0 %v19609_v39 }
 0x44d   :  { %4162 = vmatprep.subr.bf16.mxu0 %v19612_v62  ;;  %4862 = vmatpush1.bf16.msra.mxu1 %v19462_v25  ;;  %v19658_v25 = vld [vmem:[#allocation9 + $0x12c] ss:$24 sps:$4 sm:$0xff]  }
 0x44e   :  { %4863 = vmatprep.subr.bf16.mxu1 %v19466_v26  ;;  %v19662_v26 = vld [vmem:[#allocation9 + $0x128] ss:$24 sps:$4 sm:$0xff]  }
 0x450   :  { %4163 = vmatpush2.bf16.msra.mxu0 %v19617_v10 }
 0x451   :  { %4164 = vmatprep.subr.bf16.mxu0 %v19351_v30  ;;  %4864 = vmatpush2.bf16.msra.mxu1 %v19470_v52  ;;  %v22485_v30 = vld [vmem:[#allocation79_spill] sm:$0xff]  ;;  %v19665_v52 = vld [vmem:[#allocation9 + $0xfc] ss:$24 sps:$4 sm:$0xff]  }
 0x452   :  { %4865 = vmatprep.subr.bf16.mxu1 %v19477_v2  ;;  %v19668_v2 = vld [vmem:[#allocation9 + $0xf8] ss:$24 sps:$4 sm:$0xff]  }
 0x454   :  { %4165 = vmatpush2.bf16.msra.mxu0 %v19354_v21  ;;  %v22486_v21 = vld [vmem:[#allocation80_spill] sm:$0xff] }
 0x455   :  { %4166 = vmatprep.subr.bf16.mxu0 %v19357_v56  ;;  %4866 = vmatpush2.bf16.msra.mxu1 %v19479_v15  ;;  %v22487_v56 = vld [vmem:[#allocation63_spill] sm:$0xff] }
 0x456   :  { %4867 = vmatprep.subr.bf16.mxu1 %v19483_v59  ;;  %v19671_v15 = vld [vmem:[#allocation9 + $0xcc] ss:$24 sps:$4 sm:$0xff]   ;;  %v19674_v59 = vld [vmem:[#allocation9 + $0xc8] ss:$24 sps:$4 sm:$0xff]  }
 0x458   :  { %4167 = vmatpush2.bf16.msra.mxu0 %v19360_v38  ;;  %v22488_v38 = vld [vmem:[#allocation64_spill] sm:$0xff] }
 0x459   :  { %4168 = vmatprep.subr.bf16.mxu0 %v19363_v53  ;;  %4868 = vmatpush2.bf16.msra.mxu1 %v19485_v27  ;;  %v22489_v53 = vld [vmem:[#allocation81_spill] sm:$0xff] }
 0x45a   :  { %4869 = vmatprep.subr.bf16.mxu1 %v19489_v13  ;;  %v19677_v27 = vld [vmem:[#allocation9 + $0x9c] ss:$24 sps:$4 sm:$0xff]   ;;  %v19680_v13 = vld [vmem:[#allocation9 + $0x98] ss:$24 sps:$4 sm:$0xff]  }
 0x45c   :  { %4169 = vmatpush2.bf16.msra.mxu0 %v19366_v32  ;;  %v22490_v32 = vld [vmem:[#allocation82_spill] sm:$0xff] }
 0x45d   :  { %4170 = vmatprep.subr.bf16.mxu0 %v19369_v42  ;;  %4870 = vmatpush2.bf16.msra.mxu1 %v19491_v37  ;;  %v22491_v42 = vld [vmem:[#allocation65_spill] sm:$0xff]  ;;  %v19683_v37 = vld [vmem:[#allocation9 + $0x6c] ss:$24 sps:$4 sm:$0xff]  }
 0x45e   :  { %4871 = vmatprep.subr.bf16.mxu1 %v19494_v24  ;;  %v19686_v24 = vld [vmem:[#allocation9 + $0x68] ss:$24 sps:$4 sm:$0xff]  }
 0x460   :  { %4171 = vmatpush2.bf16.msra.mxu0 %v19372_v60  ;;  %v22492_v60 = vld [vmem:[#allocation66_spill] sm:$0xff] }
 0x461   :  { %4172 = vmatprep.subr.bf16.mxu0 %v19375_v9  ;;  %4872 = vmatpush2.bf16.msra.mxu1 %v19497_v17  ;;  %v22493_v9 = vld [vmem:[#allocation83_spill] sm:$0xff]  ;;  %v19689_v17 = vld [vmem:[#allocation9 + $0x3c] ss:$24 sps:$4 sm:$0xff]  }
 0x462   :  { %4873 = vmatprep.subr.bf16.mxu1 %v19500_v58  ;;  %v19692_v58 = vld [vmem:[#allocation9 + $0x38] ss:$24 sps:$4 sm:$0xff]  }
 0x464   :  { %4173 = vmatpush2.bf16.msra.mxu0 %v22485_v30  ;;  %v19737_v30 = vld [vmem:[#allocation9 + $0x1bc] ss:$24 sps:$4 sm:$0xff]  }
 0x465   :  { %4174 = vmatprep.subr.bf16.mxu0 %v22486_v21  ;;  %4874 = vmatpush2.bf16.msra.mxu1 %v22487_v56  ;;  %22506 = vst [vmem:[#allocation44_spill] sm:$0xff] %v19737_v30  ;;  %v19740_v21 = vld [vmem:[#allocation9 + $0x1b8] ss:$24 sps:$4 sm:$0xff]   ;;  %v19743_v56 = vld [vmem:[#allocation9 + $0x18c] ss:$24 sps:$4 sm:$0xff]  }
 0x466   :  { %4875 = vmatprep.subr.bf16.mxu1 %v22488_v38  ;;  %22507 = vst [vmem:[#allocation30_spill] sm:$0xff] %v19740_v21  ;;  %22508 = vst [vmem:[#allocation45_spill] sm:$0xff] %v19743_v56  ;;  %v19746_v38 = vld [vmem:[#allocation9 + $0x188] ss:$24 sps:$4 sm:$0xff]  }
 0x467   :  { %22509 = vst [vmem:[#allocation31_spill] sm:$0xff] %v19746_v38 }
 0x468   :  { %4175 = vmatpush2.bf16.msra.mxu0 %v22489_v53 }
 0x469   :  { %4176 = vmatprep.subr.bf16.mxu0 %v22490_v32  ;;  %4876 = vmatpush2.bf16.msra.mxu1 %v22491_v42 }
 0x46a   :  { %4877 = vmatprep.subr.bf16.mxu1 %v22492_v60 }
 0x46c   :  { %4177 = vmatpush2.bf16.msra.mxu0 %v22493_v9 }
 0x46d   :  { %4878 = vmatpush2.bf16.msra.mxu1 %v22494_v23  ;;  %4888 = vmatprep.subr.bf16.mxu0 %v19656_v14 }
 0x46e   :  { %4929 = vmatprep.subr.bf16.mxu1 %v22495_v19 }
 0x46f   :  { %4179 = vmatmul.mubr.bf16.vlgmr.msra.gmra.mxu0 %v19554_v3  ;;  %v19734_v3 = vld [vmem:[#allocation9 + $0x1e8] ss:$24 sps:$4 sm:$0xff]  }
 0x470   :  { %4889 = vmatpush1.bf16.msra.mxu0 %v19654_v51  ;;  %22505 = vst [vmem:[#allocation78_spill] sm:$0xff] %v19734_v3 }
 0x471   :  { %4890 = vmatprep.subr.bf16.mxu0 %v19658_v25 }
 0x474   :  { %4891 = vmatpush1.bf16.msra.mxu0 %v19662_v26 }
 0x475   :  { %4892 = vmatprep.subr.bf16.mxu0 %v19665_v52 }
 0x478   :  { %4893 = vmatpush1.bf16.msra.mxu0 %v19668_v2 }
 0x479   :  { %4894 = vmatprep.subr.bf16.mxu0 %v19671_v15 }
 0x47c   :  { %4895 = vmatpush1.bf16.msra.mxu0 %v19674_v59 }
 0x47d   :  { %4896 = vmatprep.subr.bf16.mxu0 %v19677_v27 }
 0x480   :  { %4897 = vmatpush1.bf16.msra.mxu0 %v19680_v13 }
 0x481   :  { %4898 = vmatprep.subr.bf16.mxu0 %v19683_v37 }
 0x484   :  { %4899 = vmatpush1.bf16.msra.mxu0 %v19686_v24 }
 0x485   :  { %4900 = vmatprep.subr.bf16.mxu0 %v19689_v17 }
 0x488   :  { %4901 = vmatpush1.bf16.msra.mxu0 %v19692_v58 }
 0x489   :  { %4902 = vmatprep.subr.bf16.mxu0 %v19695_v1 }
 0x48c   :  { %4903 = vmatpush1.bf16.msra.mxu0 %v19698_v40 }
 0x48d   :  { %4904 = vmatprep.subr.bf16.mxu0 %v19701_v8 }
 0x490   :  { %4905 = vmatpush2.bf16.msra.mxu0 %v19704_v35 }
 0x491   :  { %4906 = vmatprep.subr.bf16.mxu0 %v19708_v0  ;;  %v22515_v0 = vld [vmem:[#allocation41_spill] sm:$0xff] }
 0x494   :  { %4907 = vmatpush2.bf16.msra.mxu0 %v19710_v33  ;;  %v22514_v33 = vld [vmem:[#allocation35_spill] sm:$0xff] }
 0x495   :  { %4908 = vmatprep.subr.bf16.mxu0 %v19714_v57 }
 0x498   :  { %4909 = vmatpush2.bf16.msra.mxu0 %v19716_v54 }
 0x499   :  { %4910 = vmatprep.subr.bf16.mxu0 %v19720_v41 }
 0x49c   :  { %4911 = vmatpush2.bf16.msra.mxu0 %v19722_v48  ;;  %v22513_v48 = vld [vmem:[#allocation40_spill] sm:$0xff] }
 0x49d   :  { %4912 = vmatprep.subr.bf16.mxu0 %v19724_v18  ;;  %v22512_v18 = vld [vmem:[#allocation34_spill] sm:$0xff] }
 0x4a0   :  { %4913 = vmatpush2.bf16.msra.mxu0 %v19728_v43 }
 0x4a1   :  { %4914 = vmatprep.subr.bf16.mxu0 %v19731_v45 }
 0x4a4   :  { %4915 = vmatpush2.bf16.msra.mxu0 %v19734_v3  ;;  %v22511_v3 = vld [vmem:[#allocation21_spill] sm:$0xff] }
 0x4a5   :  { %4916 = vmatprep.subr.bf16.mxu0 %v19737_v30  ;;  %v22510_v30 = vld [vmem:[#allocation23_spill] sm:$0xff]  ;;  %v3561_v45 = vrot.slane %v3552_v22, %v22511_v3 }
 0x4a8   :  { %4917 = vmatpush2.bf16.msra.mxu0 %v19740_v21  ;;  %v3557_v21 = vrot.slane %v3552_v22, %v22510_v30 }
 0x4a9   :  { %4918 = vmatprep.subr.bf16.mxu0 %v19743_v56 }
 0x4ac   :  { %4919 = vmatpush2.bf16.msra.mxu0 %v19746_v38 }
 0x4ef   :  { %v4098_v53 = vpop.f32.mrf.mxu0  ;;  %v4139_v32 = vpop.f32.mrf.mxu1 }
 0x4f0   :  { %v4099_v43 = vadd.f32 %v4098_v53, %v3557_v21 }
 0x4f1   :  { %v4100_v42 = vpop.f32.mrf.mxu0  ;;  %v4141_v60 = vpop.f32.mrf.mxu1 }
 0x4f2   :  { %v4101_v56 = vadd.f32 %v4100_v42, %v3561_v45  ;;  %v4187_v38 = vadd.f32 %v4099_v43, %v22512_v18 }
 0x4f3   :  { %v4102_v9 = vpop.f32.mrf.mxu0  ;;  %v4143_v23 = vpop.f32.mrf.mxu1 }
 0x4f4   :  { %v4188_v41 = vadd.f32 %v4101_v56, %v22513_v48  ;;  %v15190_v54 = vmul.f32 -1.442695, %v4187_v38  ;;  %v3565_v9 = vrot.slane %v3552_v22, %v18969_v50 }
 0x4f5   :  { %v4103_v19 = vpop.f32.mrf.mxu0  ;;  %v4144_v5 = vpop.f32.mrf.mxu1 }
 0x4f6   :  { %v15191_v23 = vmul.f32 -1.442695, %v4188_v41  ;;  %18148 = vpow2.f32 %v15190_v54  ;;  %v3569_v5 = vrot.slane %v3552_v22, %v18966_v49  ;;  %v4140_v19 = vadd.f32 %v4139_v32, %v3565_v9 }
 0x4f7   :  { %v3573_v41 = vrot.slane %v3552_v22, %v19077_v36  ;;  %v3577_v32 = vrot.slane %v3552_v22, %v19074_v31 }
 0x4f8   :  { %18150 = vpow2.f32 %v15191_v23  ;;  %v4142_v57 = vadd.f32 %v4141_v60, %v3569_v5  ;;  %v4201_v30 = vadd.f32 %v4140_v19, %v22514_v33  ;;  %v22516_v5 = vld [vmem:[#allocation55_spill] sm:$0xff] }
 0x4fa   :  { %v4202_v3 = vadd.f32 %v4142_v57, %v22515_v0  ;;  %v15192_v21 = vmul.f32 -1.442695, %v4201_v30 }
 0x4fc   :  { %v15193_v45 = vmul.f32 -1.442695, %v4202_v3  ;;  %18152 = vpow2.f32 %v15192_v21 }
 0x4fe   :  { %18154 = vpow2.f32 %v15193_v45 }
 0x503   :  { %v18149_v53 = vpop.eup %18148 }
 0x504   :  { %v4195_v48 = vadd.f32 1.0, %v18149_v53  ;;  %v22517_v53 = vld [vmem:[#allocation58_spill] sm:$0xff] }
 0x505   :  { %v18151_v18 = vpop.eup %18150 }
 0x506   :  { %v4196_v43 = vadd.f32 1.0, %v18151_v18  ;;  %18156 = vrcp.f32 %v4195_v48 }
 0x508   :  { %18158 = vrcp.f32 %v4196_v43 }
 0x509   :  { %v18153_v54 = vpop.eup %18152 }
 0x50a   :  { %v4209_v38 = vadd.f32 1.0, %v18153_v54 }
 0x50b   :  { %v18155_v56 = vpop.eup %18154 }
 0x50c   :  { %v4210_v42 = vadd.f32 1.0, %v18155_v56  ;;  %18160 = vrcp.f32 %v4209_v38 }
 0x50e   :  { %18162 = vrcp.f32 %v4210_v42 }
 0x513   :  { %v18157_v57 = vpop.eup %18156 }
 0x515   :  { %v18159_v9 = vpop.eup %18158 }
 0x519   :  { %v18161_v22 = vpop.eup %18160 }
 0x51a   :  { %v4221_v43 = vsub.f32 1.0, %v18161_v22  ;;  %v4225_v38 = vmul.f32 %v18161_v22, %v19542_v12  ;;  %v19793_v12 = vld [vmem:[#allocation9 + $0x2b4] ss:$24 sps:$4 sm:$0xff]   ;;  %v19919_v22 = vld [vmem:[#allocation9 + $0x2a4] ss:$24 sps:$4 sm:$0xff]  }
 0x51b   :  { %v18163_v48 = vpop.eup %18162 }
 0x51c   :  { %v4226_v42 = vmul.f32 %v18163_v48, %v19544_v16  ;;  %v19796_v16 = vld [vmem:[#allocation9 + $0x2b0] ss:$24 sps:$4 sm:$0xff]  }
 0x52f   :  { %v4180_v33 = vpop.f32.mrf.mxu0 }
 0x530   :  { %v4181_v0 = vadd.f32 %v4180_v33, %v3573_v41  ;;  %v4222_v41 = vsub.f32 1.0, %v18163_v48  ;;  %v19921_v48 = vld [vmem:[#allocation9 + $0x2a0] ss:$24 sps:$4 sm:$0xff]  }
 0x531   :  { %v4182_v3 = vpop.f32.mrf.mxu0 }
 0x532   :  { %v4215_v30 = vmul.f32 %v18157_v57, %v4181_v0  ;;  %v4183_v60 = vadd.f32 %v4182_v3, %v3577_v32 }
 0x533   :  { %v4184_v23 = vpop.f32.mrf.mxu0 }
 0x534   :  { %v4217_v19 = vadd.f32 %v4215_v30, %v22516_v5  ;;  %v4216_v21 = vmul.f32 %v18159_v9, %v4183_v60  ;;  %v22531_v60 = vld [vmem:[#allocation77_spill] sm:$0xff]  ;;  %v19904_v9 = vld [vmem:[#allocation9] ss:$24 sps:$4 sm:$0xff]  }
 0x535   :  { %v4185_v45 = vpop.f32.mrf.mxu0  ;;  %v22532_v23 = vld [vmem:[#allocation78_spill] sm:$0xff]  ;;  %v19908_v5 = vld [vmem:[#allocation9 + $0x2d4] ss:$24 sps:$4 sm:$0xff]  }
 0x536   :  { %18164 = vtanh.f32 %v4217_v19  ;;  %v4218_v18 = vadd.f32 %v4216_v21, %v22517_v53  ;;  %v22533_v19 = vld [vmem:[#allocation44_spill] sm:$0xff]  ;;  %v22534_v45 = vld [vmem:[#allocation30_spill] sm:$0xff]  ;;  %v22535_v53 = vld [vmem:[#allocation45_spill] sm:$0xff] }
 0x537   :  { %v19912_v21 = vld [vmem:[#allocation9 + $0x2d0] ss:$24 sps:$4 sm:$0xff]  }
 0x538   :  { %18166 = vtanh.f32 %v4218_v18  ;;  %v22536_v18 = vld [vmem:[#allocation31_spill] sm:$0xff] }
 0x543   :  { %v18165_v54 = vpop.eup %18164 }
 0x544   :  { %v4223_v56 = vmul.f32 %v18165_v54, %v4221_v43  ;;  %v19925_v43 = vld [vmem:[#allocation9 + $0x274] ss:$24 sps:$4 sm:$0xff]   ;;  %v19927_v54 = vld [vmem:[#allocation9 + $0x270] ss:$24 sps:$4 sm:$0xff]  }
 0x545   :  { %v18167_v32 = vpop.eup %18166 }
 0x546   :  { %v4224_v33 = vmul.f32 %v18167_v32, %v4222_v41  ;;  %v19767_v0 = vadd.f32 %v4225_v38, %v4223_v56  ;;  %v19931_v41 = vld [vmem:[#allocation9 + $0x244] ss:$24 sps:$4 sm:$0xff]   ;;  %v19933_v56 = vld [vmem:[#allocation9 + $0x240] ss:$24 sps:$4 sm:$0xff]   ;;  %v19936_v38 = vld [vmem:[#allocation9 + $0x214] ss:$24 sps:$4 sm:$0xff]  }
 0x547   :  { %v19939_v32 = vld [vmem:[#allocation9 + $0x210] ss:$24 sps:$4 sm:$0xff]  }
 0x548   :  { %v19769_v57 = vadd.f32 %v4226_v42, %v4224_v33  ;;  %4229 = vst [vmem:[#allocation2 + $0x30] sm:$0xff] %v19767_v0  ;;  %v4237_v30 = vpack.c.bf16 %v19767_v0, %v19767_v0  ;;  %v19942_v33 = vld [vmem:[#allocation9 + $0x1e4] ss:$24 sps:$4 sm:$0xff]   ;;  %v19945_v42 = vld [vmem:[#allocation9 + $0x1e0] ss:$24 sps:$4 sm:$0xff]  }
 0x549   :  { %22537 = vst [vmem:[#allocation64_spill] sm:$0xff] %v19945_v42 }
 0x54a   :  { %4230 = vst [vmem:[#allocation2 + $0x48] sm:$0xff] %v19769_v57  ;;  %v4238_v3 = vpack.c.bf16 %v19769_v57, %v19769_v57 }
 0x54c   :  { %4879 = vmatprep.mubr.bf16.mxu1 %v4238_v3  ;;  %4920 = vmatprep.mubr.bf16.mxu0 %v4238_v3 }
 0x54d   :  { %4880 = vmatmul.mubr.bf16.vlgmr.msra.gmra.mxu1 %v4237_v30  ;;  %4921 = vmatmul.mubr.bf16.vlgmr.msra.gmra.mxu0 %v4237_v30 }
 0x54e   :  { %4930 = vmatpush1.bf16.msra.mxu1 %v19550_v34  ;;  %4961 = vmatprep.mubr.bf16.mxu1 %v4238_v3  ;;  %v19799_v34 = vld [vmem:[#allocation9 + $0x284] ss:$24 sps:$4 sm:$0xff]   ;;  %v19948_v3 = vld [vmem:[#allocation9 + $0x1b4] ss:$24 sps:$4 sm:$0xff]  }
 0x54f   :  { %4931 = vmatprep.subr.bf16.mxu1 %v19556_v63  ;;  %v19802_v63 = vld [vmem:[#allocation9 + $0x280] ss:$24 sps:$4 sm:$0xff]   ;;  %22538 = vst [vmem:[#allocation81_spill] sm:$0xff] %v19948_v3 }
 0x552   :  { %4932 = vmatpush1.bf16.msra.mxu1 %v19561_v6  ;;  %v19805_v6 = vld [vmem:[#allocation9 + $0x254] ss:$24 sps:$4 sm:$0xff]  }
 0x553   :  { %4933 = vmatprep.subr.bf16.mxu1 %v19564_v11  ;;  %v19808_v11 = vld [vmem:[#allocation9 + $0x250] ss:$24 sps:$4 sm:$0xff]  }
 0x556   :  { %4934 = vmatpush1.bf16.msra.mxu1 %v19569_v47  ;;  %v19811_v47 = vld [vmem:[#allocation9 + $0x224] ss:$24 sps:$4 sm:$0xff]  }
 0x557   :  { %4935 = vmatprep.subr.bf16.mxu1 %v19572_v44  ;;  %v19814_v44 = vld [vmem:[#allocation9 + $0x220] ss:$24 sps:$4 sm:$0xff]  }
 0x55a   :  { %4936 = vmatpush1.bf16.msra.mxu1 %v19577_v4  ;;  %v19817_v4 = vld [vmem:[#allocation9 + $0x1f4] ss:$24 sps:$4 sm:$0xff]  }
 0x55b   :  { %4937 = vmatprep.subr.bf16.mxu1 %v19580_v7  ;;  %v19820_v7 = vld [vmem:[#allocation9 + $0x1f0] ss:$24 sps:$4 sm:$0xff]  }
 0x55c   :  { %22518 = vst [vmem:[#allocation60_spill] sm:$0xff] %v19820_v7 }
 0x55e   :  { %4938 = vmatpush1.bf16.msra.mxu1 %v19585_v55  ;;  %v19823_v55 = vld [vmem:[#allocation9 + $0x1c4] ss:$24 sps:$4 sm:$0xff]  }
 0x55f   :  { %4939 = vmatprep.subr.bf16.mxu1 %v19588_v61  ;;  %22519 = vst [vmem:[#allocation53_spill] sm:$0xff] %v19823_v55  ;;  %v19826_v61 = vld [vmem:[#allocation9 + $0x1c0] ss:$24 sps:$4 sm:$0xff]  }
 0x560   :  { %22520 = vst [vmem:[#allocation79_spill] sm:$0xff] %v19826_v61 }
 0x562   :  { %4940 = vmatpush1.bf16.msra.mxu1 %v19593_v20  ;;  %v19829_v20 = vld [vmem:[#allocation9 + $0x194] ss:$24 sps:$4 sm:$0xff]  }
 0x563   :  { %4941 = vmatprep.subr.bf16.mxu1 %v19596_v29  ;;  %22521 = vst [vmem:[#allocation80_spill] sm:$0xff] %v19829_v20  ;;  %v19832_v29 = vld [vmem:[#allocation9 + $0x190] ss:$24 sps:$4 sm:$0xff]  }
 0x564   :  { %22522 = vst [vmem:[#allocation63_spill] sm:$0xff] %v19832_v29 }
 0x566   :  { %4942 = vmatpush1.bf16.msra.mxu1 %v19601_v46  ;;  %v19850_v46 = vld [vmem:[#allocation9 + $0x150] ss:$24 sps:$4 sm:$0xff]  }
 0x567   :  { %4943 = vmatprep.subr.bf16.mxu1 %v19604_v28  ;;  %v17082_v28 = vld [vmem:[#allocation9 + $0x154] ss:$24 sps:$4 sm:$0xff]  }
 0x568   :  { %5630 = vmatprep.subr.bf16.mxu0 %v17082_v28 }
 0x569   :  { %5631 = vmatpush1.bf16.msra.mxu0 %v19850_v46 }
 0x56a   :  { %4944 = vmatpush1.bf16.msra.mxu1 %v19609_v39  ;;  %v19853_v39 = vld [vmem:[#allocation9 + $0x124] ss:$24 sps:$4 sm:$0xff]  }
 0x56b   :  { %4945 = vmatprep.subr.bf16.mxu1 %v19612_v62  ;;  %v19856_v62 = vld [vmem:[#allocation9 + $0x120] ss:$24 sps:$4 sm:$0xff]   ;;  %5632 = vmatprep.subr.bf16.mxu0 %v19853_v39 }
 0x56d   :  { %5633 = vmatpush1.bf16.msra.mxu0 %v19856_v62 }
 0x56e   :  { %4946 = vmatpush2.bf16.msra.mxu1 %v19617_v10  ;;  %v19860_v10 = vld [vmem:[#allocation9 + $0xf4] ss:$24 sps:$4 sm:$0xff]  }
 0x56f   :  { %4947 = vmatprep.subr.bf16.mxu1 %v19793_v12  ;;  %5634 = vmatprep.subr.bf16.mxu0 %v19860_v10 }
 0x572   :  { %4948 = vmatpush2.bf16.msra.mxu1 %v19796_v16 }
 0x573   :  { %4949 = vmatprep.subr.bf16.mxu1 %v19799_v34 }
 0x576   :  { %4950 = vmatpush2.bf16.msra.mxu1 %v19802_v63 }
 0x577   :  { %4951 = vmatprep.subr.bf16.mxu1 %v19805_v6 }
 0x57a   :  { %4952 = vmatpush2.bf16.msra.mxu1 %v19808_v11 }
 0x57b   :  { %4953 = vmatprep.subr.bf16.mxu1 %v19811_v47 }
 0x57e   :  { %4954 = vmatpush2.bf16.msra.mxu1 %v19814_v44 }
 0x57f   :  { %4955 = vmatprep.subr.bf16.mxu1 %v19817_v4 }
 0x582   :  { %4956 = vmatpush2.bf16.msra.mxu1 %v19820_v7  ;;  %v22548_v7 = vld [vmem:[#allocation25_spill] sm:$0xff] }
 0x583   :  { %4957 = vmatprep.subr.bf16.mxu1 %v19823_v55 }
 0x586   :  { %4958 = vmatpush2.bf16.msra.mxu1 %v19826_v61  ;;  %v22547_v61 = vld [vmem:[#allocation38_spill] sm:$0xff] }
 0x587   :  { %4959 = vmatprep.subr.bf16.mxu1 %v19829_v20 }
 0x58a   :  { %4960 = vmatpush2.bf16.msra.mxu1 %v19832_v29 }
 0x58b   :  { %5671 = vmatprep.subr.bf16.mxu1 %v19656_v14  ;;  %v19868_v14 = vld [vmem:[#allocation9 + $0xc4] ss:$24 sps:$4 sm:$0xff]  }
 0x58d   :  { %4962 = vmatmul.mubr.bf16.vlgmr.msra.gmra.mxu1 %v4237_v30  ;;  %v19951_v30 = vld [vmem:[#allocation9 + $0x1b0] ss:$24 sps:$4 sm:$0xff]  }
 0x58e   :  { %5672 = vmatpush1.bf16.msra.mxu1 %v19654_v51  ;;  %v19864_v51 = vld [vmem:[#allocation9 + $0xf0] ss:$24 sps:$4 sm:$0xff]   ;;  %22539 = vst [vmem:[#allocation82_spill] sm:$0xff] %v19951_v30 }
 0x58f   :  { %5673 = vmatprep.subr.bf16.mxu1 %v19658_v25  ;;  %v22523_v25 = vld [vmem:[#allocation69_spill] sm:$0xff]  ;;  %5635 = vmatpush1.bf16.msra.mxu0 %v19864_v51 }
 0x590   :  { %5636 = vmatprep.subr.bf16.mxu0 %v19868_v14 }
 0x592   :  { %5674 = vmatpush1.bf16.msra.mxu1 %v19662_v26  ;;  %v19872_v26 = vld [vmem:[#allocation9 + $0xc0] ss:$24 sps:$4 sm:$0xff]  }
 0x593   :  { %5675 = vmatprep.subr.bf16.mxu1 %v19665_v52  ;;  %v22524_v52 = vld [vmem:[#allocation70_spill] sm:$0xff]  ;;  %5637 = vmatpush1.bf16.msra.mxu0 %v19872_v26 }
 0x596   :  { %5676 = vmatpush1.bf16.msra.mxu1 %v19668_v2  ;;  %v19876_v2 = vld [vmem:[#allocation9 + $0x94] ss:$24 sps:$4 sm:$0xff]  }
 0x597   :  { %5677 = vmatprep.subr.bf16.mxu1 %v19671_v15  ;;  %v22525_v15 = vld [vmem:[#allocation71_spill] sm:$0xff]  ;;  %5638 = vmatprep.subr.bf16.mxu0 %v19876_v2 }
 0x59a   :  { %5678 = vmatpush1.bf16.msra.mxu1 %v19674_v59  ;;  %v19880_v59 = vld [vmem:[#allocation9 + $0x90] ss:$24 sps:$4 sm:$0xff]  }
 0x59b   :  { %5679 = vmatprep.subr.bf16.mxu1 %v19677_v27  ;;  %v22526_v27 = vld [vmem:[#allocation72_spill] sm:$0xff]  ;;  %5639 = vmatpush1.bf16.msra.mxu0 %v19880_v59 }
 0x59e   :  { %5680 = vmatpush1.bf16.msra.mxu1 %v19680_v13  ;;  %v19884_v13 = vld [vmem:[#allocation9 + $0x64] ss:$24 sps:$4 sm:$0xff]  }
 0x59f   :  { %5681 = vmatprep.subr.bf16.mxu1 %v19683_v37  ;;  %v22527_v37 = vld [vmem:[#allocation73_spill] sm:$0xff]  ;;  %5640 = vmatprep.subr.bf16.mxu0 %v19884_v13 }
 0x5a2   :  { %5682 = vmatpush1.bf16.msra.mxu1 %v19686_v24  ;;  %v19888_v24 = vld [vmem:[#allocation9 + $0x60] ss:$24 sps:$4 sm:$0xff]  }
 0x5a3   :  { %5683 = vmatprep.subr.bf16.mxu1 %v19689_v17  ;;  %v22528_v17 = vld [vmem:[#allocation74_spill] sm:$0xff]  ;;  %5641 = vmatpush1.bf16.msra.mxu0 %v19888_v24 }
 0x5a6   :  { %5684 = vmatpush1.bf16.msra.mxu1 %v19692_v58  ;;  %v19892_v58 = vld [vmem:[#allocation9 + $0x34] ss:$24 sps:$4 sm:$0xff]  }
 0x5a7   :  { %5685 = vmatprep.subr.bf16.mxu1 %v19695_v1  ;;  %v22529_v1 = vld [vmem:[#allocation75_spill] sm:$0xff]  ;;  %5642 = vmatprep.subr.bf16.mxu0 %v19892_v58 }
 0x5aa   :  { %5686 = vmatpush1.bf16.msra.mxu1 %v19698_v40  ;;  %v19896_v40 = vld [vmem:[#allocation9 + $0x30] ss:$24 sps:$4 sm:$0xff]  }
 0x5ab   :  { %5687 = vmatprep.subr.bf16.mxu1 %v19701_v8  ;;  %v22530_v8 = vld [vmem:[#allocation76_spill] sm:$0xff]  ;;  %5643 = vmatpush1.bf16.msra.mxu0 %v19896_v40 }
 0x5ae   :  { %5688 = vmatpush2.bf16.msra.mxu1 %v19704_v35  ;;  %v19900_v35 = vld [vmem:[#allocation9 + $0x4] ss:$24 sps:$4 sm:$0xff]  }
 0x5af   :  { %5689 = vmatprep.subr.bf16.mxu1 %v22523_v25  ;;  %5644 = vmatprep.subr.bf16.mxu0 %v19900_v35  ;;  %v19957_v25 = vld [vmem:[#allocation9 + $0x180] ss:$24 sps:$4 sm:$0xff]  }
 0x5b0   :  { %5645 = vmatpush1.bf16.msra.mxu0 %v19904_v9  ;;  %22541 = vst [vmem:[#allocation66_spill] sm:$0xff] %v19957_v25 }
 0x5b1   :  { %5646 = vmatprep.subr.bf16.mxu0 %v19908_v5 }
 0x5b2   :  { %5690 = vmatpush2.bf16.msra.mxu1 %v22524_v52  ;;  %v19961_v52 = vld [vmem:[#allocation9 + $0x164] ss:$24 sps:$4 sm:$0xff]  }
 0x5b3   :  { %5691 = vmatprep.subr.bf16.mxu1 %v22525_v15  ;;  %22542 = vst [vmem:[#allocation83_spill] sm:$0xff] %v19961_v52 }
 0x5b4   :  { %5647 = vmatpush2.bf16.msra.mxu0 %v19912_v21 }
 0x5b5   :  { %5648 = vmatprep.subr.bf16.mxu0 %v19919_v22 }
 0x5b6   :  { %5692 = vmatpush2.bf16.msra.mxu1 %v22526_v27 }
 0x5b7   :  { %5693 = vmatprep.subr.bf16.mxu1 %v22527_v37 }
 0x5b8   :  { %5649 = vmatpush2.bf16.msra.mxu0 %v19921_v48 }
 0x5b9   :  { %5650 = vmatprep.subr.bf16.mxu0 %v19925_v43 }
 0x5ba   :  { %5694 = vmatpush2.bf16.msra.mxu1 %v22528_v17 }
 0x5bb   :  { %5695 = vmatprep.subr.bf16.mxu1 %v22529_v1 }
 0x5bc   :  { %5651 = vmatpush2.bf16.msra.mxu0 %v19927_v54 }
 0x5bd   :  { %5652 = vmatprep.subr.bf16.mxu0 %v19931_v41 }
 0x5be   :  { %5696 = vmatpush2.bf16.msra.mxu1 %v22530_v8 }
 0x5bf   :  { %5697 = vmatprep.subr.bf16.mxu1 %v22531_v60 }
 0x5c0   :  { %5653 = vmatpush2.bf16.msra.mxu0 %v19933_v56 }
 0x5c1   :  { %5654 = vmatprep.subr.bf16.mxu0 %v19936_v38 }
 0x5c2   :  { %5698 = vmatpush2.bf16.msra.mxu1 %v22532_v23 }
 0x5c3   :  { %5699 = vmatprep.subr.bf16.mxu1 %v22533_v19  ;;  %v4335_v19 = vld [vmem:[%s22218_s5] sm:$0x3f] }
 0x5c4   :  { %5655 = vmatpush2.bf16.msra.mxu0 %v19939_v32 }
 0x5c5   :  { %5656 = vmatprep.subr.bf16.mxu0 %v19942_v33 }
 0x5c6   :  { %5700 = vmatpush2.bf16.msra.mxu1 %v22534_v45  ;;  %v22543_v45 = vld [vmem:[#allocation23_spill] sm:$0xff] }
 0x5c7   :  { %5701 = vmatprep.subr.bf16.mxu1 %v22535_v53  ;;  %v4340_v53 = vrot.slane %v4335_v19, %v22543_v45 }
 0x5c8   :  { %5657 = vmatpush2.bf16.msra.mxu0 %v19945_v42 }
 0x5c9   :  { %5658 = vmatprep.subr.bf16.mxu0 %v19948_v3 }
 0x5ca   :  { %5702 = vmatpush2.bf16.msra.mxu1 %v22536_v18  ;;  %v22544_v18 = vld [vmem:[#allocation21_spill] sm:$0xff] }
 0x5cb   :  { %6413 = vmatprep.subr.bf16.mxu1 %v17082_v28  ;;  %v19954_v28 = vld [vmem:[#allocation9 + $0x184] ss:$24 sps:$4 sm:$0xff]  }
 0x5cc   :  { %22540 = vst [vmem:[#allocation65_spill] sm:$0xff] %v19954_v28  ;;  %5659 = vmatpush2.bf16.msra.mxu0 %v19951_v30  ;;  %v22545_v30 = vld [vmem:[#allocation24_spill] sm:$0xff] }
 0x5cd   :  { %5660 = vmatprep.subr.bf16.mxu0 %v19954_v28 }
 0x5d0   :  { %5661 = vmatpush2.bf16.msra.mxu0 %v19957_v25  ;;  %v4344_v25 = vrot.slane %v4335_v19, %v22544_v18  ;;  %v22549_v18 = vld [vmem:[#allocation37_spill] sm:$0xff] }
 0x5d1   :  { %5712 = vmatprep.subr.bf16.mxu0 %v19961_v52  ;;  %v22546_v52 = vld [vmem:[#allocation36_spill] sm:$0xff] }
 0x5d2   :  { %v878_v20 = vadd.f32 %v22546_v52, %v22545_v30 }
 0x60d   :  { %v4881_v15 = vpop.f32.mrf.mxu1  ;;  %v4922_v27 = vpop.f32.mrf.mxu0 }
 0x60e   :  { %v4882_v29 = vadd.f32 %v4881_v15, %v4340_v53  ;;  %v951_v15 = vadd.f32 %v22549_v18, %v22548_v7  ;;  %v4360_v18 = vrot.slane %v4335_v19, %v19074_v31  ;;  %v5118_v7 = vld [vmem:[%s22218_s5] sm:$0x3f] }
 0x60f   :  { %v4883_v37 = vpop.f32.mrf.mxu1  ;;  %v4924_v17 = vpop.f32.mrf.mxu0 }
 0x610   :  { %v4884_v28 = vadd.f32 %v4883_v37, %v4344_v25  ;;  %v4970_v3 = vadd.f32 %v4882_v29, %v22547_v61  ;;  %v22550_v25 = vld [vmem:[#allocation39_spill] sm:$0xff] }
 0x611   :  { %v4885_v1 = vpop.f32.mrf.mxu1  ;;  %v4926_v8 = vpop.f32.mrf.mxu0 }
 0x612   :  { %v4971_v42 = vadd.f32 %v4884_v28, %v878_v20  ;;  %v15290_v1 = vmul.f32 -1.442695, %v4970_v3  ;;  %v4348_v8 = vrot.slane %v4335_v19, %v18969_v50  ;;  %v4356_v28 = vrot.slane %v4335_v19, %v19077_v36 }
 0x613   :  { %v4886_v60 = vpop.f32.mrf.mxu1  ;;  %v4927_v23 = vpop.f32.mrf.mxu0 }
 0x614   :  { %v15291_v60 = vmul.f32 -1.442695, %v4971_v42  ;;  %18168 = vpow2.f32 %v15290_v1  ;;  %v4352_v23 = vrot.slane %v4335_v19, %v18966_v49  ;;  %v4923_v55 = vadd.f32 %v4922_v27, %v4348_v8 }
 0x616   :  { %18170 = vpow2.f32 %v15291_v60  ;;  %v4925_v45 = vadd.f32 %v4924_v17, %v4352_v23  ;;  %v4984_v37 = vadd.f32 %v4923_v55, %v22550_v25 }
 0x618   :  { %v4985_v53 = vadd.f32 %v4925_v45, %v951_v15  ;;  %v15292_v52 = vmul.f32 -1.442695, %v4984_v37  ;;  %v22551_v37 = vld [vmem:[#allocation50_spill] sm:$0xff] }
 0x61a   :  { %v15293_v30 = vmul.f32 -1.442695, %v4985_v53  ;;  %18172 = vpow2.f32 %v15292_v52  ;;  %v22552_v53 = vld [vmem:[#allocation56_spill] sm:$0xff] }
 0x61b   :  { %v1024_v52 = vadd.f32 %v22552_v53, %v22551_v37  ;;  %v19998_v53 = vld [vmem:[#allocation9 + $0x134] ss:$24 sps:$4 sm:$0xff]  }
 0x61c   :  { %18174 = vpow2.f32 %v15293_v30 }
 0x621   :  { %v18169_v61 = vpop.eup %18168 }
 0x622   :  { %v4978_v29 = vadd.f32 1.0, %v18169_v61  ;;  %v22553_v61 = vld [vmem:[#allocation57_spill] sm:$0xff] }
 0x623   :  { %v18171_v20 = vpop.eup %18170 }
 0x624   :  { %v4979_v42 = vadd.f32 1.0, %v18171_v20  ;;  %18176 = vrcp.f32 %v4978_v29 }
 0x626   :  { %18178 = vrcp.f32 %v4979_v42 }
 0x627   :  { %v18173_v3 = vpop.eup %18172 }
 0x628   :  { %v4992_v17 = vadd.f32 1.0, %v18173_v3 }
 0x629   :  { %v18175_v27 = vpop.eup %18174 }
 0x62a   :  { %v4993_v55 = vadd.f32 1.0, %v18175_v27  ;;  %18180 = vrcp.f32 %v4992_v17 }
 0x62c   :  { %18182 = vrcp.f32 %v4993_v55 }
 0x631   :  { %v18177_v8 = vpop.eup %18176 }
 0x633   :  { %v18179_v25 = vpop.eup %18178 }
 0x637   :  { %v18181_v3 = vpop.eup %18180 }
 0x638   :  { %v5004_v27 = vsub.f32 1.0, %v18181_v3 }
 0x64d   :  { %v4963_v1 = vpop.f32.mrf.mxu1 }
 0x64e   :  { %v4964_v45 = vadd.f32 %v4963_v1, %v4356_v28  ;;  %v18183_v28 = vpop.eup %18182 }
 0x64f   :  { %v4965_v60 = vpop.f32.mrf.mxu1  ;;  %v5005_v17 = vsub.f32 1.0, %v18183_v28 }
 0x650   :  { %v4998_v23 = vmul.f32 %v18177_v8, %v4964_v45  ;;  %v4966_v15 = vadd.f32 %v4965_v60, %v4360_v18  ;;  %v5008_v18 = vmul.f32 %v18181_v3, %v19767_v0  ;;  %v20143_v3 = vld [vmem:[#allocation9 + $0x2dc] ss:$24 sps:$4 sm:$0xff]  }
 0x651   :  { %v4967_v30 = vpop.f32.mrf.mxu1 }
 0x652   :  { %v5000_v20 = vadd.f32 %v4998_v23, %v22553_v61  ;;  %v4999_v29 = vmul.f32 %v18179_v25, %v4966_v15  ;;  %v5009_v30 = vmul.f32 %v18183_v28, %v19769_v57  ;;  %v19992_v25 = vld [vmem:[#allocation9 + $0x160] ss:$24 sps:$4 sm:$0xff]   ;;  %v20003_v57 = vld [vmem:[#allocation9 + $0x130] ss:$24 sps:$4 sm:$0xff]  }
 0x653   :  { %v4968_v42 = vpop.f32.mrf.mxu1  ;;  %v20011_v61 = vld [vmem:[#allocation9 + $0x100] ss:$24 sps:$4 sm:$0xff]  }
 0x654   :  { %18184 = vtanh.f32 %v5000_v20  ;;  %v5001_v19 = vadd.f32 %v4999_v29, %v1024_v52  ;;  %v20006_v52 = vld [vmem:[#allocation9 + $0x104] ss:$24 sps:$4 sm:$0xff]   ;;  %v20014_v20 = vld [vmem:[#allocation9 + $0xd4] ss:$24 sps:$4 sm:$0xff]   ;;  %v20019_v29 = vld [vmem:[#allocation9 + $0xd0] ss:$24 sps:$4 sm:$0xff]  }
 0x655   :  { %v20137_v42 = vld [vmem:[#allocation9 + $0xc] ss:$24 sps:$4 sm:$0xff]   ;;  %v20146_v28 = vld [vmem:[#allocation9 + $0x2d8] ss:$24 sps:$4 sm:$0xff]  }
 0x656   :  { %18186 = vtanh.f32 %v5001_v19  ;;  %v20140_v19 = vld [vmem:[#allocation9 + $0x8] ss:$24 sps:$4 sm:$0xff]  }
 0x661   :  { %v18185_v1 = vpop.eup %18184 }
 0x662   :  { %v5006_v45 = vmul.f32 %v18185_v1, %v5004_v27  ;;  %v20150_v27 = vld [vmem:[#allocation9 + $0x2ac] ss:$24 sps:$4 sm:$0xff]   ;;  %v20152_v1 = vld [vmem:[#allocation9 + $0x2a8] ss:$24 sps:$4 sm:$0xff]  }
 0x663   :  { %v18187_v8 = vpop.eup %18186  ;;  %22565 = vst [vmem:[#allocation67_spill] sm:$0xff] %v20150_v27  ;;  %22566 = vst [vmem:[#allocation68_spill] sm:$0xff] %v20152_v1 }
 0x664   :  { %v5007_v60 = vmul.f32 %v18187_v8, %v5005_v17  ;;  %v19984_v55 = vadd.f32 %v5008_v18, %v5006_v45  ;;  %v20156_v17 = vld [vmem:[#allocation9 + $0x27c] ss:$24 sps:$4 sm:$0xff]   ;;  %v20158_v45 = vld [vmem:[#allocation9 + $0x278] ss:$24 sps:$4 sm:$0xff]   ;;  %v20162_v18 = vld [vmem:[#allocation9 + $0x24c] ss:$24 sps:$4 sm:$0xff]  }
 0x665   :  { %22567 = vst [vmem:[#allocation34_spill] sm:$0xff] %v20156_v17  ;;  %22568 = vst [vmem:[#allocation40_spill] sm:$0xff] %v20158_v45  ;;  %v20164_v8 = vld [vmem:[#allocation9 + $0x248] ss:$24 sps:$4 sm:$0xff]  }
 0x666   :  { %v19986_v23 = vadd.f32 %v5009_v30, %v5007_v60  ;;  %5012 = vst [vmem:[#allocation2 + $0x40] sm:$0xff] %v19984_v55  ;;  %v19996_v0 = vpack.c.bf16 %v19984_v55, %v19984_v55  ;;  %22569 = vst [vmem:[#allocation35_spill] sm:$0xff] %v20162_v18  ;;  %v20166_v60 = vld [vmem:[#allocation9 + $0x21c] ss:$24 sps:$4 sm:$0xff]   ;;  %v20170_v30 = vld [vmem:[#allocation9 + $0x218] ss:$24 sps:$4 sm:$0xff]  }
 0x667   :  { %22570 = vst [vmem:[#allocation41_spill] sm:$0xff] %v20164_v8  ;;  %22571 = vst [vmem:[#allocation55_spill] sm:$0xff] %v20166_v60 }
 0x668   :  { %5013 = vst [vmem:[#allocation2 + $0x38] sm:$0xff] %v19986_v23  ;;  %v5021_v15 = vpack.c.bf16 %v19986_v23, %v19986_v23  ;;  %22572 = vst [vmem:[#allocation58_spill] sm:$0xff] %v20170_v30 }
 0x66a   :  { %5662 = vmatprep.mubr.bf16.mxu0 %v5021_v15  ;;  %5703 = vmatprep.mubr.bf16.mxu1 %v5021_v15 }
 0x66b   :  { %5663 = vmatmul.mubr.bf16.vlgmr.msra.gmra.mxu0 %v19996_v0  ;;  %5704 = vmatmul.mubr.bf16.vlgmr.msra.gmra.mxu1 %v19996_v0 }
 0x66c   :  { %5713 = vmatpush1.bf16.msra.mxu0 %v19992_v25  ;;  %5744 = vmatprep.mubr.bf16.mxu0 %v5021_v15  ;;  %v20173_v15 = vld [vmem:[#allocation9 + $0x1ec] ss:$24 sps:$4 sm:$0xff]  }
 0x66d   :  { %5714 = vmatprep.subr.bf16.mxu0 %v19998_v53  ;;  %6414 = vmatpush1.bf16.msra.mxu1 %v19850_v46  ;;  %v20022_v46 = vld [vmem:[#allocation9 + $0xa4] ss:$24 sps:$4 sm:$0xff]   ;;  %22573 = vst [vmem:[#allocation69_spill] sm:$0xff] %v20173_v15 }
 0x66e   :  { %6415 = vmatprep.subr.bf16.mxu1 %v19853_v39  ;;  %v20027_v39 = vld [vmem:[#allocation9 + $0xa0] ss:$24 sps:$4 sm:$0xff]  }
 0x670   :  { %5715 = vmatpush1.bf16.msra.mxu0 %v20003_v57 }
 0x671   :  { %5716 = vmatprep.subr.bf16.mxu0 %v20006_v52  ;;  %6416 = vmatpush1.bf16.msra.mxu1 %v19856_v62  ;;  %v20030_v62 = vld [vmem:[#allocation9 + $0x74] ss:$24 sps:$4 sm:$0xff]  }
 0x672   :  { %6417 = vmatprep.subr.bf16.mxu1 %v19860_v10  ;;  %v20035_v10 = vld [vmem:[#allocation9 + $0x70] ss:$24 sps:$4 sm:$0xff]  }
 0x674   :  { %5717 = vmatpush1.bf16.msra.mxu0 %v20011_v61 }
 0x675   :  { %5718 = vmatprep.subr.bf16.mxu0 %v20014_v20  ;;  %6418 = vmatpush1.bf16.msra.mxu1 %v19864_v51  ;;  %v20038_v51 = vld [vmem:[#allocation9 + $0x44] ss:$24 sps:$4 sm:$0xff]  }
 0x676   :  { %6419 = vmatprep.subr.bf16.mxu1 %v19868_v14  ;;  %v20043_v14 = vld [vmem:[#allocation9 + $0x40] ss:$24 sps:$4 sm:$0xff]  }
 0x678   :  { %5719 = vmatpush1.bf16.msra.mxu0 %v20019_v29 }
 0x679   :  { %5720 = vmatprep.subr.bf16.mxu0 %v20022_v46  ;;  %6420 = vmatpush1.bf16.msra.mxu1 %v19872_v26  ;;  %v20046_v26 = vld [vmem:[#allocation9 + $0x14] ss:$24 sps:$4 sm:$0xff]  }
 0x67a   :  { %6421 = vmatprep.subr.bf16.mxu1 %v19876_v2  ;;  %v20051_v2 = vld [vmem:[#allocation9 + $0x10] ss:$24 sps:$4 sm:$0xff]  }
 0x67c   :  { %5721 = vmatpush1.bf16.msra.mxu0 %v20027_v39 }
 0x67d   :  { %5722 = vmatprep.subr.bf16.mxu0 %v20030_v62  ;;  %6422 = vmatpush1.bf16.msra.mxu1 %v19880_v59  ;;  %v20054_v59 = vld [vmem:[#allocation9 + $0x2e4] ss:$24 sps:$4 sm:$0xff]  }
 0x67e   :  { %6423 = vmatprep.subr.bf16.mxu1 %v19884_v13  ;;  %v20059_v13 = vld [vmem:[#allocation9 + $0x2e0] ss:$24 sps:$4 sm:$0xff]  }
 0x680   :  { %5723 = vmatpush1.bf16.msra.mxu0 %v20035_v10 }
 0x681   :  { %5724 = vmatprep.subr.bf16.mxu0 %v20038_v51  ;;  %6424 = vmatpush1.bf16.msra.mxu1 %v19888_v24  ;;  %v22563_v24 = vld [vmem:[#allocation66_spill] sm:$0xff] }
 0x682   :  { %6425 = vmatprep.subr.bf16.mxu1 %v19892_v58  ;;  %v22564_v58 = vld [vmem:[#allocation83_spill] sm:$0xff] }
 0x684   :  { %5725 = vmatpush1.bf16.msra.mxu0 %v20043_v14 }
 0x685   :  { %5726 = vmatprep.subr.bf16.mxu0 %v20046_v26  ;;  %6426 = vmatpush1.bf16.msra.mxu1 %v19896_v40  ;;  %v20096_v40 = vld [vmem:[#allocation9 + $0x158] ss:$24 sps:$4 sm:$0xff]  }
 0x686   :  { %6427 = vmatprep.subr.bf16.mxu1 %v19900_v35  ;;  %v20098_v35 = vld [vmem:[#allocation9 + $0x15c] ss:$24 sps:$4 sm:$0xff]  }
 0x688   :  { %5727 = vmatpush1.bf16.msra.mxu0 %v20051_v2 }
 0x689   :  { %5728 = vmatprep.subr.bf16.mxu0 %v20054_v59  ;;  %6428 = vmatpush1.bf16.msra.mxu1 %v19904_v9  ;;  %v20100_v9 = vld [vmem:[#allocation9 + $0x12c] ss:$24 sps:$4 sm:$0xff]  }
 0x68a   :  { %6429 = vmatprep.subr.bf16.mxu1 %v19908_v5  ;;  %v20104_v5 = vld [vmem:[#allocation9 + $0x128] ss:$24 sps:$4 sm:$0xff]  }
 0x68c   :  { %5729 = vmatpush2.bf16.msra.mxu0 %v20059_v13 }
 0x68d   :  { %5730 = vmatprep.subr.bf16.mxu0 %v19793_v12  ;;  %6430 = vmatpush2.bf16.msra.mxu1 %v19912_v21  ;;  %v22554_v12 = vld [vmem:[#allocation60_spill] sm:$0xff]  ;;  %v20107_v21 = vld [vmem:[#allocation9 + $0xfc] ss:$24 sps:$4 sm:$0xff]  }
 0x68e   :  { %6431 = vmatprep.subr.bf16.mxu1 %v19919_v22  ;;  %v20110_v22 = vld [vmem:[#allocation9 + $0xf8] ss:$24 sps:$4 sm:$0xff]  }
 0x690   :  { %5731 = vmatpush2.bf16.msra.mxu0 %v19796_v16  ;;  %v22555_v16 = vld [vmem:[#allocation53_spill] sm:$0xff] }
 0x691   :  { %5732 = vmatprep.subr.bf16.mxu0 %v19799_v34  ;;  %6432 = vmatpush2.bf16.msra.mxu1 %v19921_v48  ;;  %v22556_v34 = vld [vmem:[#allocation64_spill] sm:$0xff] }
 0x692   :  { %6433 = vmatprep.subr.bf16.mxu1 %v19925_v43  ;;  %v20113_v48 = vld [vmem:[#allocation9 + $0xcc] ss:$24 sps:$4 sm:$0xff]   ;;  %v20116_v43 = vld [vmem:[#allocation9 + $0xc8] ss:$24 sps:$4 sm:$0xff]  }
 0x694   :  { %5733 = vmatpush2.bf16.msra.mxu0 %v19802_v63  ;;  %v22557_v63 = vld [vmem:[#allocation81_spill] sm:$0xff] }
 0x695   :  { %5734 = vmatprep.subr.bf16.mxu0 %v19805_v6  ;;  %6434 = vmatpush2.bf16.msra.mxu1 %v19927_v54  ;;  %v22558_v6 = vld [vmem:[#allocation79_spill] sm:$0xff]  ;;  %v20119_v54 = vld [vmem:[#allocation9 + $0x9c] ss:$24 sps:$4 sm:$0xff]  }
 0x696   :  { %6435 = vmatprep.subr.bf16.mxu1 %v19931_v41  ;;  %v20122_v41 = vld [vmem:[#allocation9 + $0x98] ss:$24 sps:$4 sm:$0xff]  }
 0x698   :  { %5735 = vmatpush2.bf16.msra.mxu0 %v19808_v11  ;;  %v22559_v11 = vld [vmem:[#allocation80_spill] sm:$0xff] }
 0x699   :  { %5736 = vmatprep.subr.bf16.mxu0 %v19811_v47  ;;  %6436 = vmatpush2.bf16.msra.mxu1 %v19933_v56  ;;  %v22560_v47 = vld [vmem:[#allocation82_spill] sm:$0xff]  ;;  %v20125_v56 = vld [vmem:[#allocation9 + $0x6c] ss:$24 sps:$4 sm:$0xff]  }
 0x69a   :  { %6437 = vmatprep.subr.bf16.mxu1 %v19936_v38  ;;  %v20128_v38 = vld [vmem:[#allocation9 + $0x68] ss:$24 sps:$4 sm:$0xff]  }
 0x69c   :  { %5737 = vmatpush2.bf16.msra.mxu0 %v19814_v44  ;;  %v22561_v44 = vld [vmem:[#allocation65_spill] sm:$0xff] }
 0x69d   :  { %5738 = vmatprep.subr.bf16.mxu0 %v19817_v4  ;;  %6438 = vmatpush2.bf16.msra.mxu1 %v19939_v32  ;;  %v22562_v4 = vld [vmem:[#allocation63_spill] sm:$0xff]  ;;  %v20131_v32 = vld [vmem:[#allocation9 + $0x3c] ss:$24 sps:$4 sm:$0xff]  }
 0x69e   :  { %6439 = vmatprep.subr.bf16.mxu1 %v19942_v33  ;;  %v20134_v33 = vld [vmem:[#allocation9 + $0x38] ss:$24 sps:$4 sm:$0xff]  }
 0x6a0   :  { %5739 = vmatpush2.bf16.msra.mxu0 %v22554_v12  ;;  %v20179_v12 = vld [vmem:[#allocation9 + $0x1bc] ss:$24 sps:$4 sm:$0xff]  }
 0x6a1   :  { %5740 = vmatprep.subr.bf16.mxu0 %v22555_v16  ;;  %6440 = vmatpush2.bf16.msra.mxu1 %v22556_v34  ;;  %22575 = vst [vmem:[#allocation71_spill] sm:$0xff] %v20179_v12  ;;  %v20182_v16 = vld [vmem:[#allocation9 + $0x1b8] ss:$24 sps:$4 sm:$0xff]   ;;  %v20185_v34 = vld [vmem:[#allocation9 + $0x18c] ss:$24 sps:$4 sm:$0xff]  }
 0x6a2   :  { %6441 = vmatprep.subr.bf16.mxu1 %v22557_v63  ;;  %22576 = vst [vmem:[#allocation72_spill] sm:$0xff] %v20182_v16  ;;  %22577 = vst [vmem:[#allocation73_spill] sm:$0xff] %v20185_v34  ;;  %v20188_v63 = vld [vmem:[#allocation9 + $0x188] ss:$24 sps:$4 sm:$0xff]  }
 0x6a3   :  { %22578 = vst [vmem:[#allocation74_spill] sm:$0xff] %v20188_v63 }
 0x6a4   :  { %5741 = vmatpush2.bf16.msra.mxu0 %v22558_v6 }
 0x6a5   :  { %5742 = vmatprep.subr.bf16.mxu0 %v22559_v11  ;;  %6442 = vmatpush2.bf16.msra.mxu1 %v22560_v47 }
 0x6a6   :  { %6443 = vmatprep.subr.bf16.mxu1 %v22561_v44 }
 0x6a8   :  { %5743 = vmatpush2.bf16.msra.mxu0 %v22562_v4 }
 0x6a9   :  { %6444 = vmatpush2.bf16.msra.mxu1 %v22563_v24  ;;  %6454 = vmatprep.subr.bf16.mxu0 %v20098_v35 }
 0x6aa   :  { %6495 = vmatprep.subr.bf16.mxu1 %v22564_v58 }
 0x6ab   :  { %5745 = vmatmul.mubr.bf16.vlgmr.msra.gmra.mxu0 %v19996_v0  ;;  %v20176_v0 = vld [vmem:[#allocation9 + $0x1e8] ss:$24 sps:$4 sm:$0xff]  }
 0x6ac   :  { %6455 = vmatpush1.bf16.msra.mxu0 %v20096_v40  ;;  %22574 = vst [vmem:[#allocation70_spill] sm:$0xff] %v20176_v0 }
 0x6ad   :  { %6456 = vmatprep.subr.bf16.mxu0 %v20100_v9 }
 0x6b0   :  { %6457 = vmatpush1.bf16.msra.mxu0 %v20104_v5 }
 0x6b1   :  { %6458 = vmatprep.subr.bf16.mxu0 %v20107_v21 }
 0x6b4   :  { %6459 = vmatpush1.bf16.msra.mxu0 %v20110_v22 }
 0x6b5   :  { %6460 = vmatprep.subr.bf16.mxu0 %v20113_v48 }
 0x6b8   :  { %6461 = vmatpush1.bf16.msra.mxu0 %v20116_v43 }
 0x6b9   :  { %6462 = vmatprep.subr.bf16.mxu0 %v20119_v54 }
 0x6bc   :  { %6463 = vmatpush1.bf16.msra.mxu0 %v20122_v41 }
 0x6bd   :  { %6464 = vmatprep.subr.bf16.mxu0 %v20125_v56 }
 0x6c0   :  { %6465 = vmatpush1.bf16.msra.mxu0 %v20128_v38 }
 0x6c1   :  { %6466 = vmatprep.subr.bf16.mxu0 %v20131_v32 }
 0x6c4   :  { %6467 = vmatpush1.bf16.msra.mxu0 %v20134_v33 }
 0x6c5   :  { %6468 = vmatprep.subr.bf16.mxu0 %v20137_v42 }
 0x6c8   :  { %6469 = vmatpush1.bf16.msra.mxu0 %v20140_v19 }
 0x6c9   :  { %6470 = vmatprep.subr.bf16.mxu0 %v20143_v3 }
 0x6cc   :  { %6471 = vmatpush2.bf16.msra.mxu0 %v20146_v28 }
 0x6cd   :  { %6472 = vmatprep.subr.bf16.mxu0 %v20150_v27  ;;  %v22584_v27 = vld [vmem:[#allocation33_spill] sm:$0xff] }
 0x6d0   :  { %6473 = vmatpush2.bf16.msra.mxu0 %v20152_v1  ;;  %v22583_v1 = vld [vmem:[#allocation43_spill] sm:$0xff] }
 0x6d1   :  { %6474 = vmatprep.subr.bf16.mxu0 %v20156_v17 }
 0x6d4   :  { %6475 = vmatpush2.bf16.msra.mxu0 %v20158_v45 }
 0x6d5   :  { %6476 = vmatprep.subr.bf16.mxu0 %v20162_v18 }
 0x6d8   :  { %6477 = vmatpush2.bf16.msra.mxu0 %v20164_v8  ;;  %v22582_v8 = vld [vmem:[#allocation32_spill] sm:$0xff] }
 0x6d9   :  { %6478 = vmatprep.subr.bf16.mxu0 %v20166_v60  ;;  %v22581_v60 = vld [vmem:[#allocation42_spill] sm:$0xff] }
 0x6dc   :  { %6479 = vmatpush2.bf16.msra.mxu0 %v20170_v30 }
 0x6dd   :  { %6480 = vmatprep.subr.bf16.mxu0 %v20173_v15 }
 0x6e0   :  { %6481 = vmatpush2.bf16.msra.mxu0 %v20176_v0  ;;  %v22580_v0 = vld [vmem:[#allocation21_spill] sm:$0xff] }
 0x6e1   :  { %6482 = vmatprep.subr.bf16.mxu0 %v20179_v12  ;;  %v22579_v12 = vld [vmem:[#allocation23_spill] sm:$0xff]  ;;  %v5127_v15 = vrot.slane %v5118_v7, %v22580_v0 }
 0x6e4   :  { %6483 = vmatpush2.bf16.msra.mxu0 %v20182_v16  ;;  %v5123_v16 = vrot.slane %v5118_v7, %v22579_v12 }
 0x6e5   :  { %6484 = vmatprep.subr.bf16.mxu0 %v20185_v34 }
 0x6e8   :  { %6485 = vmatpush2.bf16.msra.mxu0 %v20188_v63 }
 0x72b   :  { %v5664_v6 = vpop.f32.mrf.mxu0  ;;  %v5705_v11 = vpop.f32.mrf.mxu1 }
 0x72c   :  { %v5665_v30 = vadd.f32 %v5664_v6, %v5123_v16 }
 0x72d   :  { %v5666_v47 = vpop.f32.mrf.mxu0  ;;  %v5707_v44 = vpop.f32.mrf.mxu1 }
 0x72e   :  { %v5667_v34 = vadd.f32 %v5666_v47, %v5127_v15  ;;  %v5753_v63 = vadd.f32 %v5665_v30, %v22581_v60 }
 0x72f   :  { %v5668_v4 = vpop.f32.mrf.mxu0  ;;  %v5709_v24 = vpop.f32.mrf.mxu1 }
 0x730   :  { %v5754_v18 = vadd.f32 %v5667_v34, %v22582_v8  ;;  %v15390_v45 = vmul.f32 -1.442695, %v5753_v63  ;;  %v5131_v4 = vrot.slane %v5118_v7, %v18969_v50 }
 0x731   :  { %v5669_v58 = vpop.f32.mrf.mxu0  ;;  %v5710_v37 = vpop.f32.mrf.mxu1 }
 0x732   :  { %v15391_v24 = vmul.f32 -1.442695, %v5754_v18  ;;  %18188 = vpow2.f32 %v15390_v45  ;;  %v5135_v37 = vrot.slane %v5118_v7, %v18966_v49  ;;  %v5706_v58 = vadd.f32 %v5705_v11, %v5131_v4 }
 0x733   :  { %v5139_v18 = vrot.slane %v5118_v7, %v19077_v36  ;;  %v5143_v11 = vrot.slane %v5118_v7, %v19074_v31 }
 0x734   :  { %18190 = vpow2.f32 %v15391_v24  ;;  %v5708_v17 = vadd.f32 %v5707_v44, %v5135_v37  ;;  %v5767_v12 = vadd.f32 %v5706_v58, %v22583_v1  ;;  %v22585_v37 = vld [vmem:[#allocation59_spill] sm:$0xff] }
 0x736   :  { %v5768_v0 = vadd.f32 %v5708_v17, %v22584_v27  ;;  %v15392_v16 = vmul.f32 -1.442695, %v5767_v12 }
 0x738   :  { %v15393_v15 = vmul.f32 -1.442695, %v5768_v0  ;;  %18192 = vpow2.f32 %v15392_v16 }
 0x73a   :  { %18194 = vpow2.f32 %v15393_v15 }
 0x73f   :  { %v18189_v6 = vpop.eup %18188 }
 0x740   :  { %v5761_v8 = vadd.f32 1.0, %v18189_v6  ;;  %v22586_v6 = vld [vmem:[#allocation54_spill] sm:$0xff] }
 0x741   :  { %v18191_v60 = vpop.eup %18190 }
 0x742   :  { %v5762_v30 = vadd.f32 1.0, %v18191_v60  ;;  %18196 = vrcp.f32 %v5761_v8 }
 0x744   :  { %18198 = vrcp.f32 %v5762_v30 }
 0x745   :  { %v18193_v45 = vpop.eup %18192 }
 0x746   :  { %v5775_v63 = vadd.f32 1.0, %v18193_v45 }
 0x747   :  { %v18195_v34 = vpop.eup %18194 }
 0x748   :  { %v5776_v47 = vadd.f32 1.0, %v18195_v34  ;;  %18200 = vrcp.f32 %v5775_v63 }
 0x74a   :  { %18202 = vrcp.f32 %v5776_v47 }
 0x74f   :  { %v18197_v17 = vpop.eup %18196 }
 0x751   :  { %v18199_v4 = vpop.eup %18198 }
 0x755   :  { %v18201_v7 = vpop.eup %18200 }
 0x756   :  { %v5787_v30 = vsub.f32 1.0, %v18201_v7  ;;  %v5791_v63 = vmul.f32 %v18201_v7, %v19984_v55  ;;  %v20235_v55 = vld [vmem:[#allocation9 + $0x2b4] ss:$24 sps:$4 sm:$0xff]   ;;  %v17253_v7 = vld [vmem:[#allocation9 + $0x2a4] ss:$24 sps:$4 sm:$0xff]  }
 0x757   :  { %v18203_v8 = vpop.eup %18202 }
 0x758   :  { %v5792_v47 = vmul.f32 %v18203_v8, %v19986_v23  ;;  %v20238_v23 = vld [vmem:[#allocation9 + $0x2b0] ss:$24 sps:$4 sm:$0xff]  }
 0x76b   :  { %v5746_v1 = vpop.f32.mrf.mxu0 }
 0x76c   :  { %v5747_v27 = vadd.f32 %v5746_v1, %v5139_v18  ;;  %v5788_v18 = vsub.f32 1.0, %v18203_v8  ;;  %v17251_v8 = vld [vmem:[#allocation9 + $0x2a0] ss:$24 sps:$4 sm:$0xff]  }
 0x76d   :  { %v5748_v0 = vpop.f32.mrf.mxu0 }
 0x76e   :  { %v5781_v12 = vmul.f32 %v18197_v17, %v5747_v27  ;;  %v5749_v44 = vadd.f32 %v5748_v0, %v5143_v11 }
 0x76f   :  { %v5750_v24 = vpop.f32.mrf.mxu0 }
 0x770   :  { %v5783_v58 = vadd.f32 %v5781_v12, %v22585_v37  ;;  %v5782_v16 = vmul.f32 %v18199_v4, %v5749_v44  ;;  %v22595_v44 = vld [vmem:[#allocation69_spill] sm:$0xff]  ;;  %v17245_v4 = vld [vmem:[#allocation9] ss:$24 sps:$4 sm:$0xff]  }
 0x771   :  { %v5751_v15 = vpop.f32.mrf.mxu0  ;;  %v22596_v24 = vld [vmem:[#allocation70_spill] sm:$0xff]  ;;  %v17250_v37 = vld [vmem:[#allocation9 + $0x2d4] ss:$24 sps:$4 sm:$0xff]  }
 0x772   :  { %18204 = vtanh.f32 %v5783_v58  ;;  %v5784_v60 = vadd.f32 %v5782_v16, %v22586_v6  ;;  %v22597_v58 = vld [vmem:[#allocation71_spill] sm:$0xff]  ;;  %v17248_v16 = vld [vmem:[#allocation9 + $0x2d0] ss:$24 sps:$4 sm:$0xff]  }
 0x773   :  { %v22598_v15 = vld [vmem:[#allocation72_spill] sm:$0xff]  ;;  %v22599_v6 = vld [vmem:[#allocation73_spill] sm:$0xff] }
 0x774   :  { %18206 = vtanh.f32 %v5784_v60  ;;  %v22600_v60 = vld [vmem:[#allocation74_spill] sm:$0xff] }
 0x77f   :  { %v18205_v45 = vpop.eup %18204 }
 0x780   :  { %v5789_v34 = vmul.f32 %v18205_v45, %v5787_v30  ;;  %v17256_v30 = vld [vmem:[#allocation9 + $0x274] ss:$24 sps:$4 sm:$0xff]   ;;  %v17254_v45 = vld [vmem:[#allocation9 + $0x270] ss:$24 sps:$4 sm:$0xff]  }
 0x781   :  { %v18207_v11 = vpop.eup %18206 }
 0x782   :  { %v5790_v1 = vmul.f32 %v18207_v11, %v5788_v18  ;;  %v20209_v27 = vadd.f32 %v5791_v63, %v5789_v34  ;;  %v17259_v18 = vld [vmem:[#allocation9 + $0x244] ss:$24 sps:$4 sm:$0xff]   ;;  %v17257_v34 = vld [vmem:[#allocation9 + $0x240] ss:$24 sps:$4 sm:$0xff]   ;;  %v17262_v63 = vld [vmem:[#allocation9 + $0x214] ss:$24 sps:$4 sm:$0xff]  }
 0x783   :  { %v17260_v11 = vld [vmem:[#allocation9 + $0x210] ss:$24 sps:$4 sm:$0xff]  }
 0x784   :  { %v20211_v17 = vadd.f32 %v5792_v47, %v5790_v1  ;;  %5795 = vst [vmem:[#allocation2 + $0x50] sm:$0xff] %v20209_v27  ;;  %v5803_v12 = vpack.c.bf16 %v20209_v27, %v20209_v27  ;;  %v17265_v1 = vld [vmem:[#allocation9 + $0x1e4] ss:$24 sps:$4 sm:$0xff]   ;;  %v17263_v47 = vld [vmem:[#allocation9 + $0x1e0] ss:$24 sps:$4 sm:$0xff]  }
 0x786   :  { %5796 = vst [vmem:[#allocation2 + $0x28] sm:$0xff] %v20211_v17  ;;  %v5804_v0 = vpack.c.bf16 %v20211_v17, %v20211_v17 }
 0x788   :  { %6445 = vmatprep.mubr.bf16.mxu1 %v5804_v0  ;;  %6486 = vmatprep.mubr.bf16.mxu0 %v5804_v0 }
 0x789   :  { %6446 = vmatmul.mubr.bf16.vlgmr.msra.gmra.mxu1 %v5803_v12  ;;  %6487 = vmatmul.mubr.bf16.vlgmr.msra.gmra.mxu0 %v5803_v12 }
 0x78a   :  { %6496 = vmatpush1.bf16.msra.mxu1 %v19992_v25  ;;  %6527 = vmatprep.mubr.bf16.mxu1 %v5804_v0  ;;  %v20241_v25 = vld [vmem:[#allocation9 + $0x284] ss:$24 sps:$4 sm:$0xff]   ;;  %v17268_v0 = vld [vmem:[#allocation9 + $0x1b4] ss:$24 sps:$4 sm:$0xff]  }
 0x78b   :  { %6497 = vmatprep.subr.bf16.mxu1 %v19998_v53  ;;  %v20244_v53 = vld [vmem:[#allocation9 + $0x280] ss:$24 sps:$4 sm:$0xff]  }
 0x78e   :  { %6498 = vmatpush1.bf16.msra.mxu1 %v20003_v57  ;;  %v20247_v57 = vld [vmem:[#allocation9 + $0x254] ss:$24 sps:$4 sm:$0xff]  }
 0x78f   :  { %6499 = vmatprep.subr.bf16.mxu1 %v20006_v52  ;;  %v20250_v52 = vld [vmem:[#allocation9 + $0x250] ss:$24 sps:$4 sm:$0xff]  }
 0x792   :  { %6500 = vmatpush1.bf16.msra.mxu1 %v20011_v61  ;;  %v20253_v61 = vld [vmem:[#allocation9 + $0x224] ss:$24 sps:$4 sm:$0xff]  }
 0x793   :  { %6501 = vmatprep.subr.bf16.mxu1 %v20014_v20  ;;  %v20256_v20 = vld [vmem:[#allocation9 + $0x220] ss:$24 sps:$4 sm:$0xff]  }
 0x796   :  { %6502 = vmatpush1.bf16.msra.mxu1 %v20019_v29  ;;  %v20259_v29 = vld [vmem:[#allocation9 + $0x1f4] ss:$24 sps:$4 sm:$0xff]  }
 0x797   :  { %6503 = vmatprep.subr.bf16.mxu1 %v20022_v46  ;;  %v20262_v46 = vld [vmem:[#allocation9 + $0x1f0] ss:$24 sps:$4 sm:$0xff]  }
 0x79a   :  { %6504 = vmatpush1.bf16.msra.mxu1 %v20027_v39  ;;  %v20265_v39 = vld [vmem:[#allocation9 + $0x1c4] ss:$24 sps:$4 sm:$0xff]  }
 0x79b   :  { %6505 = vmatprep.subr.bf16.mxu1 %v20030_v62  ;;  %v20268_v62 = vld [vmem:[#allocation9 + $0x1c0] ss:$24 sps:$4 sm:$0xff]  }
 0x79e   :  { %6506 = vmatpush1.bf16.msra.mxu1 %v20035_v10  ;;  %v20271_v10 = vld [vmem:[#allocation9 + $0x194] ss:$24 sps:$4 sm:$0xff]  }
 0x79f   :  { %6507 = vmatprep.subr.bf16.mxu1 %v20038_v51  ;;  %v20274_v51 = vld [vmem:[#allocation9 + $0x190] ss:$24 sps:$4 sm:$0xff]  }
 0x7a2   :  { %6508 = vmatpush1.bf16.msra.mxu1 %v20043_v14  ;;  %v17224_v14 = vld [vmem:[#allocation9 + $0x150] ss:$24 sps:$4 sm:$0xff]  }
 0x7a3   :  { %6509 = vmatprep.subr.bf16.mxu1 %v20046_v26  ;;  %v17226_v26 = vld [vmem:[#allocation9 + $0x154] ss:$24 sps:$4 sm:$0xff]  }
 0x7a4   :  { %7196 = vmatprep.subr.bf16.mxu0 %v17226_v26  ;;  %v17269_v26 = vld [vmem:[#allocation9 + $0x180] ss:$24 sps:$4 sm:$0xff]  }
 0x7a5   :  { %7197 = vmatpush1.bf16.msra.mxu0 %v17224_v14  ;;  %v17271_v14 = vld [vmem:[#allocation9 + $0x184] ss:$24 sps:$4 sm:$0xff]  }
 0x7a6   :  { %6510 = vmatpush1.bf16.msra.mxu1 %v20051_v2  ;;  %v17229_v2 = vld [vmem:[#allocation9 + $0x124] ss:$24 sps:$4 sm:$0xff]  }
 0x7a7   :  { %6511 = vmatprep.subr.bf16.mxu1 %v20054_v59  ;;  %v17227_v59 = vld [vmem:[#allocation9 + $0x120] ss:$24 sps:$4 sm:$0xff]   ;;  %7198 = vmatprep.subr.bf16.mxu0 %v17229_v2  ;;  %v17274_v2 = vld [vmem:[#allocation9 + $0x164] ss:$24 sps:$4 sm:$0xff]  }
 0x7a9   :  { %7199 = vmatpush1.bf16.msra.mxu0 %v17227_v59 }
 0x7aa   :  { %6512 = vmatpush2.bf16.msra.mxu1 %v20059_v13  ;;  %v17232_v13 = vld [vmem:[#allocation9 + $0xf4] ss:$24 sps:$4 sm:$0xff]  }
 0x7ab   :  { %6513 = vmatprep.subr.bf16.mxu1 %v20235_v55  ;;  %7200 = vmatprep.subr.bf16.mxu0 %v17232_v13 }
 0x7ae   :  { %6514 = vmatpush2.bf16.msra.mxu1 %v20238_v23 }
 0x7af   :  { %6515 = vmatprep.subr.bf16.mxu1 %v20241_v25 }
 0x7b2   :  { %6516 = vmatpush2.bf16.msra.mxu1 %v20244_v53 }
 0x7b3   :  { %6517 = vmatprep.subr.bf16.mxu1 %v20247_v57 }
 0x7b6   :  { %6518 = vmatpush2.bf16.msra.mxu1 %v20250_v52 }
 0x7b7   :  { %6519 = vmatprep.subr.bf16.mxu1 %v20253_v61 }
 0x7ba   :  { %6520 = vmatpush2.bf16.msra.mxu1 %v20256_v20 }
 0x7bb   :  { %6521 = vmatprep.subr.bf16.mxu1 %v20259_v29 }
 0x7be   :  { %6522 = vmatpush2.bf16.msra.mxu1 %v20262_v46 }
 0x7bf   :  { %6523 = vmatprep.subr.bf16.mxu1 %v20265_v39 }
 0x7c2   :  { %6524 = vmatpush2.bf16.msra.mxu1 %v20268_v62 }
 0x7c3   :  { %6525 = vmatprep.subr.bf16.mxu1 %v20271_v10 }
 0x7c6   :  { %6526 = vmatpush2.bf16.msra.mxu1 %v20274_v51 }
 0x7c7   :  { %7237 = vmatprep.subr.bf16.mxu1 %v20098_v35  ;;  %v17235_v35 = vld [vmem:[#allocation9 + $0xc4] ss:$24 sps:$4 sm:$0xff]  }
 0x7c9   :  { %6528 = vmatmul.mubr.bf16.vlgmr.msra.gmra.mxu1 %v5803_v12  ;;  %v17266_v12 = vld [vmem:[#allocation9 + $0x1b0] ss:$24 sps:$4 sm:$0xff]  }
 0x7ca   :  { %7238 = vmatpush1.bf16.msra.mxu1 %v20096_v40  ;;  %v17230_v40 = vld [vmem:[#allocation9 + $0xf0] ss:$24 sps:$4 sm:$0xff]  }
 0x7cb   :  { %7239 = vmatprep.subr.bf16.mxu1 %v20100_v9  ;;  %v22587_v9 = vld [vmem:[#allocation67_spill] sm:$0xff]  ;;  %7201 = vmatpush1.bf16.msra.mxu0 %v17230_v40 }
 0x7cc   :  { %7202 = vmatprep.subr.bf16.mxu0 %v17235_v35 }
 0x7ce   :  { %7240 = vmatpush1.bf16.msra.mxu1 %v20104_v5  ;;  %v17233_v5 = vld [vmem:[#allocation9 + $0xc0] ss:$24 sps:$4 sm:$0xff]  }
 0x7cf   :  { %7241 = vmatprep.subr.bf16.mxu1 %v20107_v21  ;;  %v22588_v21 = vld [vmem:[#allocation68_spill] sm:$0xff]  ;;  %7203 = vmatpush1.bf16.msra.mxu0 %v17233_v5 }
 0x7d2   :  { %7242 = vmatpush1.bf16.msra.mxu1 %v20110_v22  ;;  %v17238_v22 = vld [vmem:[#allocation9 + $0x94] ss:$24 sps:$4 sm:$0xff]  }
 0x7d3   :  { %7243 = vmatprep.subr.bf16.mxu1 %v20113_v48  ;;  %v22589_v48 = vld [vmem:[#allocation34_spill] sm:$0xff]  ;;  %7204 = vmatprep.subr.bf16.mxu0 %v17238_v22 }
 0x7d6   :  { %7244 = vmatpush1.bf16.msra.mxu1 %v20116_v43  ;;  %v17236_v43 = vld [vmem:[#allocation9 + $0x90] ss:$24 sps:$4 sm:$0xff]  }
 0x7d7   :  { %7245 = vmatprep.subr.bf16.mxu1 %v20119_v54  ;;  %v22590_v54 = vld [vmem:[#allocation40_spill] sm:$0xff]  ;;  %7205 = vmatpush1.bf16.msra.mxu0 %v17236_v43  ;;  %v22601_v43 = vld [vmem:[#allocation23_spill] sm:$0xff] }
 0x7da   :  { %7246 = vmatpush1.bf16.msra.mxu1 %v20122_v41  ;;  %v17241_v41 = vld [vmem:[#allocation9 + $0x64] ss:$24 sps:$4 sm:$0xff]  }
 0x7db   :  { %7247 = vmatprep.subr.bf16.mxu1 %v20125_v56  ;;  %v22591_v56 = vld [vmem:[#allocation35_spill] sm:$0xff]  ;;  %7206 = vmatprep.subr.bf16.mxu0 %v17241_v41  ;;  %v22602_v41 = vld [vmem:[#allocation21_spill] sm:$0xff] }
 0x7de   :  { %7248 = vmatpush1.bf16.msra.mxu1 %v20128_v38  ;;  %v17239_v38 = vld [vmem:[#allocation9 + $0x60] ss:$24 sps:$4 sm:$0xff]  }
 0x7df   :  { %7249 = vmatprep.subr.bf16.mxu1 %v20131_v32  ;;  %v22592_v32 = vld [vmem:[#allocation41_spill] sm:$0xff]  ;;  %7207 = vmatpush1.bf16.msra.mxu0 %v17239_v38 }
 0x7e2   :  { %7250 = vmatpush1.bf16.msra.mxu1 %v20134_v33  ;;  %v17244_v33 = vld [vmem:[#allocation9 + $0x34] ss:$24 sps:$4 sm:$0xff]  }
 0x7e3   :  { %7251 = vmatprep.subr.bf16.mxu1 %v20137_v42  ;;  %v22593_v42 = vld [vmem:[#allocation55_spill] sm:$0xff]  ;;  %7208 = vmatprep.subr.bf16.mxu0 %v17244_v33  ;;  %v22603_v33 = vld [vmem:[#allocation24_spill] sm:$0xff] }
 0x7e6   :  { %7252 = vmatpush1.bf16.msra.mxu1 %v20140_v19  ;;  %v17242_v19 = vld [vmem:[#allocation9 + $0x30] ss:$24 sps:$4 sm:$0xff]  }
 0x7e7   :  { %7253 = vmatprep.subr.bf16.mxu1 %v20143_v3  ;;  %v22594_v3 = vld [vmem:[#allocation58_spill] sm:$0xff]  ;;  %7209 = vmatpush1.bf16.msra.mxu0 %v17242_v19 }
 0x7ea   :  { %7254 = vmatpush2.bf16.msra.mxu1 %v20146_v28  ;;  %v17247_v28 = vld [vmem:[#allocation9 + $0x4] ss:$24 sps:$4 sm:$0xff]  }
 0x7eb   :  { %7255 = vmatprep.subr.bf16.mxu1 %v22587_v9  ;;  %7210 = vmatprep.subr.bf16.mxu0 %v17247_v28 }
 0x7ec   :  { %7211 = vmatpush1.bf16.msra.mxu0 %v17245_v4 }
 0x7ed   :  { %7212 = vmatprep.subr.bf16.mxu0 %v17250_v37 }
 0x7ee   :  { %7256 = vmatpush2.bf16.msra.mxu1 %v22588_v21 }
 0x7ef   :  { %7257 = vmatprep.subr.bf16.mxu1 %v22589_v48  ;;  %v5901_v48 = vld [vmem:[%s22218_s5] sm:$0x3f] }
 0x7f0   :  { %7213 = vmatpush2.bf16.msra.mxu0 %v17248_v16 }
 0x7f1   :  { %7214 = vmatprep.subr.bf16.mxu0 %v17253_v7 }
 0x7f2   :  { %7258 = vmatpush2.bf16.msra.mxu1 %v22590_v54  ;;  %v5906_v54 = vrot.slane %v5901_v48, %v22601_v43 }
 0x7f3   :  { %7259 = vmatprep.subr.bf16.mxu1 %v22591_v56  ;;  %v5910_v56 = vrot.slane %v5901_v48, %v22602_v41 }
 0x7f4   :  { %7215 = vmatpush2.bf16.msra.mxu0 %v17251_v8  ;;  %v22608_v8 = vld [vmem:[#allocation47_spill] sm:$0xff] }
 0x7f5   :  { %7216 = vmatprep.subr.bf16.mxu0 %v17256_v30 }
 0x7f6   :  { %7260 = vmatpush2.bf16.msra.mxu1 %v22592_v32 }
 0x7f7   :  { %7261 = vmatprep.subr.bf16.mxu1 %v22593_v42  ;;  %v22604_v42 = vld [vmem:[#allocation28_spill] sm:$0xff] }
 0x7f8   :  { %7217 = vmatpush2.bf16.msra.mxu0 %v17254_v45  ;;  %v868_v19 = vadd.f32 %v22604_v42, %v22603_v33  ;;  %v22611_v33 = vld [vmem:[#allocation61_spill] sm:$0xff] }
 0x7f9   :  { %7218 = vmatprep.subr.bf16.mxu0 %v17259_v18 }
 0x7fa   :  { %7262 = vmatpush2.bf16.msra.mxu1 %v22594_v3  ;;  %v22605_v3 = vld [vmem:[#allocation46_spill] sm:$0xff] }
 0x7fb   :  { %7263 = vmatprep.subr.bf16.mxu1 %v22595_v44 }
 0x7fc   :  { %7219 = vmatpush2.bf16.msra.mxu0 %v17257_v34 }
 0x7fd   :  { %7220 = vmatprep.subr.bf16.mxu0 %v17262_v63 }
 0x7fe   :  { %7264 = vmatpush2.bf16.msra.mxu1 %v22596_v24  ;;  %v5914_v24 = vrot.slane %v5901_v48, %v18969_v50 }
 0x7ff   :  { %7265 = vmatprep.subr.bf16.mxu1 %v22597_v58  ;;  %v5918_v58 = vrot.slane %v5901_v48, %v18966_v49 }
 0x800   :  { %7221 = vmatpush2.bf16.msra.mxu0 %v17260_v11 }
 0x801   :  { %7222 = vmatprep.subr.bf16.mxu0 %v17265_v1 }
 0x802   :  { %7266 = vmatpush2.bf16.msra.mxu1 %v22598_v15 }
 0x803   :  { %7267 = vmatprep.subr.bf16.mxu1 %v22599_v6  ;;  %v22606_v6 = vld [vmem:[#allocation25_spill] sm:$0xff] }
 0x804   :  { %7223 = vmatpush2.bf16.msra.mxu0 %v17263_v47 }
 0x805   :  { %7224 = vmatprep.subr.bf16.mxu0 %v17268_v0 }
 0x806   :  { %7268 = vmatpush2.bf16.msra.mxu1 %v22600_v60  ;;  %v22607_v60 = vld [vmem:[#allocation29_spill] sm:$0xff] }
 0x807   :  { %v941_v7 = vadd.f32 %v22607_v60, %v22606_v6 }
 0x808   :  { %7225 = vmatpush2.bf16.msra.mxu0 %v17266_v12  ;;  %v5922_v12 = vrot.slane %v5901_v48, %v19077_v36 }
 0x809   :  { %7226 = vmatprep.subr.bf16.mxu0 %v17271_v14 }
 0x80c   :  { %7227 = vmatpush2.bf16.msra.mxu0 %v17269_v26 }
 0x80d   :  { %7278 = vmatprep.subr.bf16.mxu0 %v17274_v2  ;;  %v5926_v2 = vrot.slane %v5901_v48, %v19074_v31 }
 0x849   :  { %v6447_v59 = vpop.f32.mrf.mxu1  ;;  %v6488_v13 = vpop.f32.mrf.mxu0 }
 0x84a   :  { %v6448_v38 = vadd.f32 %v6447_v59, %v5906_v54  ;;  %v6489_v16 = vadd.f32 %v6488_v13, %v5914_v24 }
 0x84b   :  { %v6449_v40 = vpop.f32.mrf.mxu1  ;;  %v6490_v35 = vpop.f32.mrf.mxu0 }
 0x84c   :  { %v6450_v32 = vadd.f32 %v6449_v40, %v5910_v56  ;;  %v6536_v28 = vadd.f32 %v6448_v38, %v22605_v3  ;;  %v6491_v15 = vadd.f32 %v6490_v35, %v5918_v58  ;;  %v6550_v30 = vadd.f32 %v6489_v16, %v22608_v8  ;;  %v22609_v56 = vld [vmem:[#allocation50_spill] sm:$0xff]  ;;  %v22610_v38 = vld [vmem:[#allocation52_spill] sm:$0xff] }
 0x84d   :  { %v6451_v9 = vpop.f32.mrf.mxu1  ;;  %v6492_v5 = vpop.f32.mrf.mxu0 }
 0x84e   :  { %v6537_v44 = vadd.f32 %v6450_v32, %v868_v19  ;;  %v15490_v4 = vmul.f32 -1.442695, %v6536_v28  ;;  %v6551_v45 = vadd.f32 %v6491_v15, %v941_v7  ;;  %v15492_v18 = vmul.f32 -1.442695, %v6550_v30 }
 0x84f   :  { %v6452_v21 = vpop.f32.mrf.mxu1  ;;  %v6493_v22 = vpop.f32.mrf.mxu0  ;;  %v1014_v32 = vadd.f32 %v22610_v38, %v22609_v56  ;;  %v17326_v56 = vld [vmem:[#allocation11 + $0x98] ss:$24 sps:$4 sm:$0xff]   ;;  %v17331_v38 = vld [vmem:[#allocation11 + $0x64] ss:$24 sps:$4 sm:$0xff]  }
 0x850   :  { %v15491_v37 = vmul.f32 -1.442695, %v6537_v44  ;;  %18208 = vpow2.f32 %v15490_v4  ;;  %v15493_v34 = vmul.f32 -1.442695, %v6551_v45  ;;  %v17272_v45 = vld [vmem:[#allocation9 + $0x160] ss:$24 sps:$4 sm:$0xff]  }
 0x852   :  { %18210 = vpow2.f32 %v15491_v37 }
 0x853   :  { %18212 = vpow2.f32 %v15492_v18 }
 0x854   :  { %18214 = vpow2.f32 %v15493_v34  ;;  %v17277_v34 = vld [vmem:[#allocation9 + $0x134] ss:$24 sps:$4 sm:$0xff]  }
 0x85d   :  { %v18209_v63 = vpop.eup %18208 }
 0x85e   :  { %v6544_v1 = vadd.f32 1.0, %v18209_v63  ;;  %v17278_v63 = vld [vmem:[#allocation9 + $0x100] ss:$24 sps:$4 sm:$0xff]  }
 0x85f   :  { %v18211_v11 = vpop.eup %18210 }
 0x860   :  { %v6545_v47 = vadd.f32 1.0, %v18211_v11  ;;  %18216 = vrcp.f32 %v6544_v1  ;;  %v18213_v0 = vpop.eup %18212  ;;  %v17283_v11 = vld [vmem:[#allocation9 + $0xd4] ss:$24 sps:$4 sm:$0xff]   ;;  %v17281_v1 = vld [vmem:[#allocation9 + $0xd0] ss:$24 sps:$4 sm:$0xff]  }
 0x861   :  { %v18215_v14 = vpop.eup %18214  ;;  %v6558_v26 = vadd.f32 1.0, %v18213_v0  ;;  %v17284_v0 = vld [vmem:[#allocation9 + $0xa0] ss:$24 sps:$4 sm:$0xff]  }
 0x862   :  { %18218 = vrcp.f32 %v6545_v47  ;;  %v6559_v13 = vadd.f32 1.0, %v18215_v14  ;;  %v17286_v47 = vld [vmem:[#allocation9 + $0xa4] ss:$24 sps:$4 sm:$0xff]   ;;  %v17287_v14 = vld [vmem:[#allocation9 + $0x70] ss:$24 sps:$4 sm:$0xff]  }
 0x863   :  { %18220 = vrcp.f32 %v6558_v26  ;;  %v17292_v26 = vld [vmem:[#allocation9 + $0x44] ss:$24 sps:$4 sm:$0xff]  }
 0x864   :  { %18222 = vrcp.f32 %v6559_v13  ;;  %v17293_v13 = vld [vmem:[#allocation9 + $0x10] ss:$24 sps:$4 sm:$0xff]  }
 0x86d   :  { %v18217_v35 = vpop.eup %18216 }
 0x86f   :  { %v18219_v22 = vpop.eup %18218 }
 0x870   :  { %v18221_v28 = vpop.eup %18220 }
 0x871   :  { %v18223_v44 = vpop.eup %18222  ;;  %v6570_v4 = vsub.f32 1.0, %v18221_v28  ;;  %v6574_v16 = vmul.f32 %v18221_v28, %v20209_v27  ;;  %v17275_v27 = vld [vmem:[#allocation9 + $0x130] ss:$24 sps:$4 sm:$0xff]  }
 0x872   :  { %v6571_v37 = vsub.f32 1.0, %v18223_v44  ;;  %v6575_v60 = vmul.f32 %v18223_v44, %v20211_v17  ;;  %v17280_v17 = vld [vmem:[#allocation9 + $0x104] ss:$24 sps:$4 sm:$0xff]   ;;  %v17338_v28 = vld [vmem:[#allocation11 + $0x38] ss:$24 sps:$4 sm:$0xff]  }
 0x873   :  { %v17343_v44 = vld [vmem:[#allocation11 + $0x4] ss:$24 sps:$4 sm:$0xff]  }
 0x889   :  { %v6529_v59 = vpop.f32.mrf.mxu1 }
 0x88a   :  { %v6530_v40 = vadd.f32 %v6529_v59, %v5922_v12  ;;  %v17289_v12 = vld [vmem:[#allocation9 + $0x74] ss:$24 sps:$4 sm:$0xff]  }
 0x88b   :  { %v6531_v9 = vpop.f32.mrf.mxu1  ;;  %v17295_v59 = vld [vmem:[#allocation9 + $0x14] ss:$24 sps:$4 sm:$0xff]  }
 0x88c   :  { %v6564_v5 = vmul.f32 %v18217_v35, %v6530_v40  ;;  %v6532_v21 = vadd.f32 %v6531_v9, %v5926_v2  ;;  %v17290_v2 = vld [vmem:[#allocation9 + $0x40] ss:$24 sps:$4 sm:$0xff]   ;;  %v17298_v40 = vld [vmem:[#allocation9 + $0x2e4] ss:$24 sps:$4 sm:$0xff]  }
 0x88d   :  { %v6533_v54 = vpop.f32.mrf.mxu1  ;;  %v17296_v35 = vld [vmem:[#allocation9 + $0x2e0] ss:$24 sps:$4 sm:$0xff]  }
 0x88e   :  { %v6566_v42 = vadd.f32 %v6564_v5, %v22611_v33  ;;  %v6565_v19 = vmul.f32 %v18219_v22, %v6532_v21  ;;  %v17317_v9 = vld [vmem:[#allocation11 + $0xc0] ss:$24 sps:$4 sm:$0xff]   ;;  %v17325_v21 = vld [vmem:[#allocation11 + $0x94] ss:$24 sps:$4 sm:$0xff]   ;;  %v17323_v54 = vld [vmem:[#allocation11 + $0x90] ss:$24 sps:$4 sm:$0xff]  }
 0x88f   :  { %v6534_v3 = vpop.f32.mrf.mxu1  ;;  %v17320_v5 = vld [vmem:[#allocation11 + $0xc8] ss:$24 sps:$4 sm:$0xff]   ;;  %v17328_v22 = vld [vmem:[#allocation11 + $0x9c] ss:$24 sps:$4 sm:$0xff]  }
 0x890   :  { %18224 = vtanh.f32 %v6566_v42  ;;  %v6567_v48 = vadd.f32 %v6565_v19, %v1014_v32  ;;  %v17334_v32 = vld [vmem:[#allocation11 + $0x6c] ss:$24 sps:$4 sm:$0xff]   ;;  %v17329_v33 = vld [vmem:[#allocation11 + $0x60] ss:$24 sps:$4 sm:$0xff]   ;;  %v17340_v3 = vld [vmem:[#allocation11 + $0x3c] ss:$24 sps:$4 sm:$0xff]  }
 0x891   :  { %v17332_v42 = vld [vmem:[#allocation11 + $0x68] ss:$24 sps:$4 sm:$0xff]   ;;  %v17337_v19 = vld [vmem:[#allocation11 + $0x34] ss:$24 sps:$4 sm:$0xff]  }
 0x892   :  { %18226 = vtanh.f32 %v6567_v48  ;;  %v17335_v48 = vld [vmem:[#allocation11 + $0x30] ss:$24 sps:$4 sm:$0xff]  }
 0x89d   :  { %v18225_v24 = vpop.eup %18224 }
 0x89e   :  { %v6572_v58 = vmul.f32 %v18225_v24, %v6570_v4  ;;  %v17346_v4 = vld [vmem:[#allocation11 + $0xc] ss:$24 sps:$4 sm:$0xff]   ;;  %v17341_v24 = vld [vmem:[#allocation11] ss:$24 sps:$4 sm:$0xff]  }
 0x89f   :  { %v18227_v15 = vpop.eup %18226 }
 0x8a0   :  { %v6573_v6 = vmul.f32 %v18227_v15, %v6571_v37  ;;  %v20330_v7 = vadd.f32 %v6574_v16, %v6572_v58  ;;  %v17344_v37 = vld [vmem:[#allocation11 + $0x8] ss:$24 sps:$4 sm:$0xff]   ;;  %v17349_v58 = vld [vmem:[#allocation11 + $0x2d4] ss:$24 sps:$4 sm:$0xff]  }
 0x8a1   :  { %v17352_v16 = vld [vmem:[#allocation11 + $0x2dc] ss:$24 sps:$4 sm:$0xff]   ;;  %v17347_v15 = vld [vmem:[#allocation11 + $0x2d0] ss:$24 sps:$4 sm:$0xff]  }
 0x8a2   :  { %v20332_v8 = vadd.f32 %v6575_v60, %v6573_v6  ;;  %v6586_v18 = vpack.c.bf16 %v20330_v7, %v20330_v7  ;;  %v17350_v6 = vld [vmem:[#allocation11 + $0x2d8] ss:$24 sps:$4 sm:$0xff]   ;;  %v17355_v60 = vld [vmem:[#allocation11 + $0x2a4] ss:$24 sps:$4 sm:$0xff]  }
 0x8a4   :  { %v6587_v30 = vpack.c.bf16 %v20332_v8, %v20332_v8 }
 0x8a6   :  { %7228 = vmatprep.mubr.bf16.mxu0 %v6587_v30  ;;  %7269 = vmatprep.mubr.bf16.mxu1 %v6587_v30 }
 0x8a7   :  { %7229 = vmatmul.mubr.bf16.vlgmr.msra.gmra.mxu0 %v6586_v18  ;;  %7270 = vmatmul.mubr.bf16.vlgmr.msra.gmra.mxu1 %v6586_v18 }
 0x8a8   :  { %7279 = vmatpush1.bf16.msra.mxu0 %v17272_v45  ;;  %7310 = vmatprep.mubr.bf16.mxu0 %v6587_v30  ;;  %v17358_v30 = vld [vmem:[#allocation11 + $0x2ac] ss:$24 sps:$4 sm:$0xff]   ;;  %v17353_v45 = vld [vmem:[#allocation11 + $0x2a0] ss:$24 sps:$4 sm:$0xff]  }
 0x8a9   :  { %7280 = vmatprep.subr.bf16.mxu0 %v17277_v34  ;;  %v17361_v34 = vld [vmem:[#allocation11 + $0x274] ss:$24 sps:$4 sm:$0xff]  }
 0x8ac   :  { %7281 = vmatpush1.bf16.msra.mxu0 %v17275_v27  ;;  %v17364_v27 = vld [vmem:[#allocation11 + $0x27c] ss:$24 sps:$4 sm:$0xff]  }
 0x8ad   :  { %7282 = vmatprep.subr.bf16.mxu0 %v17280_v17  ;;  %v17359_v17 = vld [vmem:[#allocation11 + $0x270] ss:$24 sps:$4 sm:$0xff]  }
 0x8b0   :  { %7283 = vmatpush1.bf16.msra.mxu0 %v17278_v63  ;;  %v17362_v63 = vld [vmem:[#allocation11 + $0x278] ss:$24 sps:$4 sm:$0xff]  }
 0x8b1   :  { %7284 = vmatprep.subr.bf16.mxu0 %v17283_v11  ;;  %v17367_v11 = vld [vmem:[#allocation11 + $0x244] ss:$24 sps:$4 sm:$0xff]  }
 0x8b4   :  { %7285 = vmatpush1.bf16.msra.mxu0 %v17281_v1  ;;  %v17370_v1 = vld [vmem:[#allocation11 + $0x24c] ss:$24 sps:$4 sm:$0xff]  }
 0x8b5   :  { %7286 = vmatprep.subr.bf16.mxu0 %v17286_v47  ;;  %v17365_v47 = vld [vmem:[#allocation11 + $0x240] ss:$24 sps:$4 sm:$0xff]  }
 0x8b8   :  { %7287 = vmatpush1.bf16.msra.mxu0 %v17284_v0  ;;  %v17368_v0 = vld [vmem:[#allocation11 + $0x248] ss:$24 sps:$4 sm:$0xff]  }
 0x8b9   :  { %7288 = vmatprep.subr.bf16.mxu0 %v17289_v12  ;;  %v17373_v12 = vld [vmem:[#allocation11 + $0x214] ss:$24 sps:$4 sm:$0xff]  }
 0x8bc   :  { %7289 = vmatpush1.bf16.msra.mxu0 %v17287_v14  ;;  %v17376_v14 = vld [vmem:[#allocation11 + $0x21c] ss:$24 sps:$4 sm:$0xff]  }
 0x8bd   :  { %7290 = vmatprep.subr.bf16.mxu0 %v17292_v26  ;;  %v17371_v26 = vld [vmem:[#allocation11 + $0x210] ss:$24 sps:$4 sm:$0xff]  }
 0x8c0   :  { %7291 = vmatpush1.bf16.msra.mxu0 %v17290_v2  ;;  %v17374_v2 = vld [vmem:[#allocation11 + $0x218] ss:$24 sps:$4 sm:$0xff]  }
 0x8c1   :  { %7292 = vmatprep.subr.bf16.mxu0 %v17295_v59  ;;  %v17379_v59 = vld [vmem:[#allocation11 + $0x1e4] ss:$24 sps:$4 sm:$0xff]  }
 0x8c4   :  { %7293 = vmatpush1.bf16.msra.mxu0 %v17293_v13  ;;  %v17382_v13 = vld [vmem:[#allocation11 + $0x1ec] ss:$24 sps:$4 sm:$0xff]  }
 0x8c5   :  { %7294 = vmatprep.subr.bf16.mxu0 %v17298_v40  ;;  %v17377_v40 = vld [vmem:[#allocation11 + $0x1e0] ss:$24 sps:$4 sm:$0xff]  }
 0x8c8   :  { %7295 = vmatpush2.bf16.msra.mxu0 %v17296_v35  ;;  %v17380_v35 = vld [vmem:[#allocation11 + $0x1e8] ss:$24 sps:$4 sm:$0xff]  }
 0x8c9   :  { %7296 = vmatprep.subr.bf16.mxu0 %v20235_v55  ;;  %v17301_v55 = vld [vmem:[#allocation11 + $0x154] ss:$24 sps:$4 sm:$0xff]  }
 0x8ca   :  { %7999 = vmatprep.subr.bf16.mxu1 %v17301_v55  ;;  %v17385_v55 = vld [vmem:[#allocation11 + $0x1b4] ss:$24 sps:$4 sm:$0xff]  }
 0x8cc   :  { %7297 = vmatpush2.bf16.msra.mxu0 %v20238_v23  ;;  %v17304_v23 = vld [vmem:[#allocation11 + $0x15c] ss:$24 sps:$4 sm:$0xff]  }
 0x8cd   :  { %7298 = vmatprep.subr.bf16.mxu0 %v20241_v25  ;;  %v17299_v25 = vld [vmem:[#allocation11 + $0x150] ss:$24 sps:$4 sm:$0xff]  }
 0x8ce   :  { %8000 = vmatpush1.bf16.msra.mxu1 %v17299_v25  ;;  %v17383_v25 = vld [vmem:[#allocation11 + $0x1b0] ss:$24 sps:$4 sm:$0xff]  }
 0x8d0   :  { %7299 = vmatpush2.bf16.msra.mxu0 %v20244_v53  ;;  %v17302_v53 = vld [vmem:[#allocation11 + $0x158] ss:$24 sps:$4 sm:$0xff]  }
 0x8d1   :  { %7300 = vmatprep.subr.bf16.mxu0 %v20247_v57  ;;  %v17307_v57 = vld [vmem:[#allocation11 + $0x124] ss:$24 sps:$4 sm:$0xff]  }
 0x8d2   :  { %8001 = vmatprep.subr.bf16.mxu1 %v17307_v57  ;;  %v17391_v57 = vld [vmem:[#allocation11 + $0x184] ss:$24 sps:$4 sm:$0xff]  }
 0x8d4   :  { %7301 = vmatpush2.bf16.msra.mxu0 %v20250_v52  ;;  %v17310_v52 = vld [vmem:[#allocation11 + $0x12c] ss:$24 sps:$4 sm:$0xff]  }
 0x8d5   :  { %7302 = vmatprep.subr.bf16.mxu0 %v20253_v61  ;;  %v17305_v61 = vld [vmem:[#allocation11 + $0x120] ss:$24 sps:$4 sm:$0xff]  }
 0x8d6   :  { %8002 = vmatpush1.bf16.msra.mxu1 %v17305_v61  ;;  %v17389_v61 = vld [vmem:[#allocation11 + $0x180] ss:$24 sps:$4 sm:$0xff]  }
 0x8d8   :  { %7303 = vmatpush2.bf16.msra.mxu0 %v20256_v20  ;;  %v17308_v20 = vld [vmem:[#allocation11 + $0x128] ss:$24 sps:$4 sm:$0xff]  }
 0x8d9   :  { %7304 = vmatprep.subr.bf16.mxu0 %v20259_v29  ;;  %v17313_v29 = vld [vmem:[#allocation11 + $0xf4] ss:$24 sps:$4 sm:$0xff]  }
 0x8da   :  { %8003 = vmatprep.subr.bf16.mxu1 %v17313_v29  ;;  %v17397_v29 = vld [vmem:[#allocation11 + $0x164] ss:$24 sps:$4 sm:$0xff]  }
 0x8dc   :  { %7305 = vmatpush2.bf16.msra.mxu0 %v20262_v46  ;;  %v17316_v46 = vld [vmem:[#allocation11 + $0xfc] ss:$24 sps:$4 sm:$0xff]  }
 0x8dd   :  { %7306 = vmatprep.subr.bf16.mxu0 %v20265_v39  ;;  %v17311_v39 = vld [vmem:[#allocation11 + $0xf0] ss:$24 sps:$4 sm:$0xff]  }
 0x8de   :  { %8004 = vmatpush1.bf16.msra.mxu1 %v17311_v39 }
 0x8e0   :  { %7307 = vmatpush2.bf16.msra.mxu0 %v20268_v62  ;;  %v17314_v62 = vld [vmem:[#allocation11 + $0xf8] ss:$24 sps:$4 sm:$0xff]  }
 0x8e1   :  { %7308 = vmatprep.subr.bf16.mxu0 %v20271_v10  ;;  %v17319_v10 = vld [vmem:[#allocation11 + $0xc4] ss:$24 sps:$4 sm:$0xff]  }
 0x8e2   :  { %8005 = vmatprep.subr.bf16.mxu1 %v17319_v10 }
 0x8e3   :  { %8006 = vmatpush1.bf16.msra.mxu1 %v17317_v9 }
 0x8e4   :  { %7309 = vmatpush2.bf16.msra.mxu0 %v20274_v51  ;;  %v17322_v51 = vld [vmem:[#allocation11 + $0xcc] ss:$24 sps:$4 sm:$0xff]   ;;  %8007 = vmatprep.subr.bf16.mxu1 %v17325_v21 }
 0x8e5   :  { %8072 = vmatprep.subr.bf16.mxu0 %v17304_v23  ;;  %v17388_v23 = vld [vmem:[#allocation11 + $0x1bc] ss:$24 sps:$4 sm:$0xff]  }
 0x8e7   :  { %7311 = vmatmul.mubr.bf16.vlgmr.msra.gmra.mxu0 %v6586_v18  ;;  %8008 = vmatpush1.bf16.msra.mxu1 %v17323_v54  ;;  %v17356_v18 = vld [vmem:[#allocation11 + $0x2a8] ss:$24 sps:$4 sm:$0xff]  }
 0x8e8   :  { %8073 = vmatpush1.bf16.msra.mxu0 %v17302_v53  ;;  %8009 = vmatprep.subr.bf16.mxu1 %v17331_v38  ;;  %v17386_v53 = vld [vmem:[#allocation11 + $0x1b8] ss:$24 sps:$4 sm:$0xff]   ;;  %v6684_v54 = vld [vmem:[%s22218_s5] sm:$0x3f]  ;;  %s14650_s5 = sshll.u32 %s18589_s21, 4  ;;  %s14651_s5 = int_to_ptr.vmem [resolvable:$true] %s14650_s5 }
 0x8e9   :  { %8074 = vmatprep.subr.bf16.mxu0 %v17310_v52  ;;  %v17394_v52 = vld [vmem:[#allocation11 + $0x18c] ss:$24 sps:$4 sm:$0xff]   ;;  %v6693_v38 = vrot.slane %v6684_v54, %v22602_v41  ;;  %s18546_s27 = scalar_lea.vmem %s14651_s5, 128  ;;  %p18551_p12 = scmp.lt.s32.totalorder %s14651_s5, %s14651_s5 }
 0x8ea   :  { %p18547_p11 = scmp.ne.s32.totalorder %s14651_s5, %s18546_s27  ;;  %p18552_p13 = scmp.lt.s32.totalorder %s18546_s27, %s18546_s27 }
 0x8eb   :  { %8010 = vmatpush1.bf16.msra.mxu1 %v17329_v33 }
 0x8ec   :  { %8075 = vmatpush1.bf16.msra.mxu0 %v17308_v20  ;;  %8011 = vmatprep.subr.bf16.mxu1 %v17337_v19  ;;  %v17392_v20 = vld [vmem:[#allocation11 + $0x188] ss:$24 sps:$4 sm:$0xff]   ;;  %p18553_p0 = por %p18552_p13, %p18551_p12 }
 0x8ed   :  { %8076 = vmatprep.subr.bf16.mxu0 %v17316_v46  ;;  %v17400_v46 = vld [vmem:[#allocation12 + $0x154] ss:$24 sps:$4 sm:$0xff]  }
 0x8ee   :  { %p18554_p1 = pnand %p18553_p0, %p18547_p11 }
 0x8ef   :  { %8012 = vmatpush1.bf16.msra.mxu1 %v17335_v48 }
 0x8f0   :  { %8077 = vmatpush1.bf16.msra.mxu0 %v17314_v62  ;;  %8013 = vmatprep.subr.bf16.mxu1 %v17343_v44  ;;  %v6697_v44 = vrot.slane %v6684_v54, %v18969_v50 }
 0x8f1   :  { %8078 = vmatprep.subr.bf16.mxu0 %v17322_v51 }
 0x8f3   :  { %8014 = vmatpush1.bf16.msra.mxu1 %v17341_v24  ;;  %v6701_v24 = vrot.slane %v6684_v54, %v18966_v49 }
 0x8f4   :  { %8079 = vmatpush1.bf16.msra.mxu0 %v17320_v5  ;;  %8015 = vmatprep.subr.bf16.mxu1 %v17349_v58 }
 0x8f5   :  { %8080 = vmatprep.subr.bf16.mxu0 %v17328_v22 }
 0x8f7   :  { %8016 = vmatpush2.bf16.msra.mxu1 %v17347_v15 }
 0x8f8   :  { %8081 = vmatpush1.bf16.msra.mxu0 %v17326_v56  ;;  %8017 = vmatprep.subr.bf16.mxu1 %v17355_v60  ;;  %v6689_v56 = vrot.slane %v6684_v54, %v22601_v43 }
 0x8f9   :  { %8082 = vmatprep.subr.bf16.mxu0 %v17334_v32 }
 0x8fb   :  { %8018 = vmatpush2.bf16.msra.mxu1 %v17353_v45 }
 0x8fc   :  { %8083 = vmatpush1.bf16.msra.mxu0 %v17332_v42  ;;  %8019 = vmatprep.subr.bf16.mxu1 %v17361_v34  ;;  %v22612_v42 = vld [vmem:[#allocation48_spill] sm:$0xff] }
 0x8fd   :  { %8084 = vmatprep.subr.bf16.mxu0 %v17340_v3  ;;  %v22613_v3 = vld [vmem:[#allocation26_spill] sm:$0xff] }
 0x8ff   :  { %8020 = vmatpush2.bf16.msra.mxu1 %v17359_v17 }
 0x900   :  { %8085 = vmatpush1.bf16.msra.mxu0 %v17338_v28  ;;  %8021 = vmatprep.subr.bf16.mxu1 %v17367_v11  ;;  %v6705_v11 = vrot.slane %v6684_v54, %v19077_v36 }
 0x901   :  { %8086 = vmatprep.subr.bf16.mxu0 %v17346_v4 }
 0x903   :  { %8022 = vmatpush2.bf16.msra.mxu1 %v17365_v47 }
 0x904   :  { %8087 = vmatpush1.bf16.msra.mxu0 %v17344_v37  ;;  %8023 = vmatprep.subr.bf16.mxu1 %v17373_v12 }
 0x905   :  { %8088 = vmatprep.subr.bf16.mxu0 %v17352_v16  ;;  %v22614_v16 = vld [vmem:[#allocation49_spill] sm:$0xff] }
 0x907   :  { %8024 = vmatpush2.bf16.msra.mxu1 %v17371_v26 }
 0x908   :  { %8089 = vmatpush2.bf16.msra.mxu0 %v17350_v6  ;;  %8025 = vmatprep.subr.bf16.mxu1 %v17379_v59  ;;  %v22615_v6 = vld [vmem:[#allocation27_spill] sm:$0xff] }
 0x909   :  { %8090 = vmatprep.subr.bf16.mxu0 %v17358_v30 }
 0x90b   :  { %8026 = vmatpush2.bf16.msra.mxu1 %v17377_v40 }
 0x90c   :  { %8091 = vmatpush2.bf16.msra.mxu0 %v17356_v18  ;;  %8027 = vmatprep.subr.bf16.mxu1 %v17385_v55 }
 0x90d   :  { %8092 = vmatprep.subr.bf16.mxu0 %v17364_v27 }
 0x90f   :  { %8028 = vmatpush2.bf16.msra.mxu1 %v17383_v25 }
 0x910   :  { %8093 = vmatpush2.bf16.msra.mxu0 %v17362_v63  ;;  %8029 = vmatprep.subr.bf16.mxu1 %v17391_v57 }
 0x911   :  { %8094 = vmatprep.subr.bf16.mxu0 %v17370_v1 }
 0x913   :  { %8030 = vmatpush2.bf16.msra.mxu1 %v17389_v61 }
 0x914   :  { %8095 = vmatpush2.bf16.msra.mxu0 %v17368_v0  ;;  %8145 = vmatprep.subr.bf16.mxu1 %v17397_v29  ;;  %v6709_v0 = vrot.slane %v6684_v54, %v19074_v31 }
 0x915   :  { %8096 = vmatprep.subr.bf16.mxu0 %v17376_v14 }
 0x918   :  { %8097 = vmatpush2.bf16.msra.mxu0 %v17374_v2 }
 0x919   :  { %8098 = vmatprep.subr.bf16.mxu0 %v17382_v13 }
 0x91c   :  { %8099 = vmatpush2.bf16.msra.mxu0 %v17380_v35 }
 0x91d   :  { %8100 = vmatprep.subr.bf16.mxu0 %v17388_v23  ;;  %v22616_v23 = vld [vmem:[#allocation62_spill] sm:$0xff] }
 0x920   :  { %8101 = vmatpush2.bf16.msra.mxu0 %v17386_v53 }
 0x921   :  { %8102 = vmatprep.subr.bf16.mxu0 %v17394_v52  ;;  %v22617_v52 = vld [vmem:[#allocation51_spill] sm:$0xff] }
 0x924   :  { %8103 = vmatpush2.bf16.msra.mxu0 %v17392_v20 }
 0x925   :  { %8880 = vmatprep.subr.bf16.mxu0 %v17400_v46 }
 0x967   :  { %v7230_v39 = vpop.f32.mrf.mxu0  ;;  %v7271_v62 = vpop.f32.mrf.mxu1 }
 0x968   :  { %v7231_v32 = vadd.f32 %v7230_v39, %v6689_v56  ;;  %v7272_v37 = vadd.f32 %v7271_v62, %v6697_v44  ;;  %v7369_v56 = vld [vmem:[#allocation2 + $0x10] sm:$0xff]  ;;  %v17406_v44 = vld [vmem:[#allocation12 + $0x124] ss:$24 sps:$4 sm:$0xff]  }
 0x969   :  { %v7232_v10 = vpop.f32.mrf.mxu0  ;;  %v7273_v51 = vpop.f32.mrf.mxu1 }
 0x96a   :  { %v7233_v33 = vadd.f32 %v7232_v10, %v6693_v38  ;;  %v7319_v19 = vadd.f32 %v7231_v32, %v22612_v42  ;;  %v7274_v58 = vadd.f32 %v7273_v51, %v6701_v24  ;;  %v7333_v15 = vadd.f32 %v7272_v37, %v22614_v16  ;;  %v7367_v38 = vld [vmem:[#allocation2] sm:$0xff]  ;;  %v17398_v42 = vld [vmem:[#allocation12 + $0x150] ss:$24 sps:$4 sm:$0xff]  }
 0x96b   :  { %v7234_v9 = vpop.f32.mrf.mxu0  ;;  %v7275_v5 = vpop.f32.mrf.mxu1  ;;  %v17404_v24 = vld [vmem:[#allocation12 + $0x120] ss:$24 sps:$4 sm:$0xff]   ;;  %v17409_v37 = vld [vmem:[#allocation11 + $0x104] ss:$24 sps:$4 sm:$0xff]   ;;  %v7373_v16 = vld [vmem:[#allocation2 + $0x30] sm:$0xff] }
 0x96c   :  { %v7320_v48 = vadd.f32 %v7233_v33, %v22613_v3  ;;  %v15590_v28 = vmul.f32 -1.442695, %v7319_v19  ;;  %v7334_v60 = vadd.f32 %v7274_v58, %v22615_v6  ;;  %v15592_v30 = vmul.f32 -1.442695, %v7333_v15  ;;  %v17395_v33 = vld [vmem:[#allocation11 + $0x160] ss:$24 sps:$4 sm:$0xff]  }
 0x96d   :  { %v7235_v21 = vpop.f32.mrf.mxu0  ;;  %v7276_v22 = vpop.f32.mrf.mxu1  ;;  %v7372_v19 = vld [vmem:[#allocation2 + $0x28] sm:$0xff]  ;;  %v20377_v3 = vpack.c.bf16 %v7369_v56, %v7367_v38  ;;  %v7371_v15 = vld [vmem:[#allocation2 + $0x20] sm:$0xff] }
 0x96e   :  { %v15591_v4 = vmul.f32 -1.442695, %v7320_v48  ;;  %18228 = vpow2.f32 %v15590_v28  ;;  %v15593_v45 = vmul.f32 -1.442695, %v7334_v60  ;;  %v7374_v48 = vld [vmem:[#allocation2 + $0x38] sm:$0xff] }
 0x96f   :  { %v17403_v28 = vld [vmem:[#allocation11 + $0x134] ss:$24 sps:$4 sm:$0xff]   ;;  %v17407_v6 = vld [vmem:[#allocation11 + $0x100] ss:$24 sps:$4 sm:$0xff]   ;;  %v17410_v60 = vld [vmem:[#allocation12 + $0xf0] ss:$24 sps:$4 sm:$0xff]  }
 0x970   :  { %18230 = vpow2.f32 %v15591_v4  ;;  %v17401_v4 = vld [vmem:[#allocation11 + $0x130] ss:$24 sps:$4 sm:$0xff]   ;;  %v17412_v58 = vld [vmem:[#allocation12 + $0xf4] ss:$24 sps:$4 sm:$0xff]   ;;  %v17452_v56 = vld [vmem:[#allocation12 + $0x2a0] ss:$24 sps:$4 sm:$0xff]  }
 0x971   :  { %18232 = vpow2.f32 %v15592_v30  ;;  %v7376_v30 = vld [vmem:[#allocation2 + $0x48] sm:$0xff]  ;;  %v17457_v38 = vld [vmem:[#allocation11 + $0x284] ss:$24 sps:$4 sm:$0xff]  }
 0x972   :  { %18234 = vpow2.f32 %v15593_v45  ;;  %v20387_v45 = vpack.c.bf16 %v7373_v16, %v7371_v15  ;;  %v17475_v16 = vld [vmem:[#allocation11 + $0x1f4] ss:$24 sps:$4 sm:$0xff]   ;;  %v17478_v15 = vld [vmem:[#allocation12 + $0x1e4] ss:$24 sps:$4 sm:$0xff]  }
 0x97b   :  { %v18229_v18 = vpop.eup %18228 }
 0x97c   :  { %v7327_v27 = vadd.f32 1.0, %v18229_v18  ;;  %v7378_v18 = vld [vmem:[#allocation2 + $0x58] sm:$0xff] }
 0x97d   :  { %v18231_v34 = vpop.eup %18230 }
 0x97e   :  { %v7328_v17 = vadd.f32 1.0, %v18231_v34  ;;  %18236 = vrcp.f32 %v7327_v27  ;;  %v18233_v63 = vpop.eup %18232  ;;  %v17415_v34 = vld [vmem:[#allocation11 + $0xd4] ss:$24 sps:$4 sm:$0xff]   ;;  %v17418_v27 = vld [vmem:[#allocation12 + $0xc4] ss:$24 sps:$4 sm:$0xff]  }
 0x97f   :  { %v18235_v1 = vpop.eup %18234  ;;  %v7341_v47 = vadd.f32 1.0, %v18233_v63  ;;  %v17413_v63 = vld [vmem:[#allocation11 + $0xd0] ss:$24 sps:$4 sm:$0xff]  }
 0x980   :  { %18238 = vrcp.f32 %v7328_v17  ;;  %v7342_v14 = vadd.f32 1.0, %v18235_v1  ;;  %v20391_v17 = vpack.c.bf16 %v7378_v18, %v7376_v30  ;;  %v17421_v1 = vld [vmem:[#allocation11 + $0xa4] ss:$24 sps:$4 sm:$0xff]   ;;  %v17484_v18 = vld [vmem:[#allocation12 + $0x1b4] ss:$24 sps:$4 sm:$0xff]  }
 0x981   :  { %18240 = vrcp.f32 %v7341_v47  ;;  %v17424_v47 = vld [vmem:[#allocation12 + $0x94] ss:$24 sps:$4 sm:$0xff]   ;;  %v17481_v30 = vld [vmem:[#allocation11 + $0x1c4] ss:$24 sps:$4 sm:$0xff]  }
 0x982   :  { %18242 = vrcp.f32 %v7342_v14  ;;  %v17419_v14 = vld [vmem:[#allocation11 + $0xa0] ss:$24 sps:$4 sm:$0xff]  }
 0x98b   :  { %v18237_v2 = vpop.eup %18236 }
 0x98d   :  { %v18239_v35 = vpop.eup %18238 }
 0x98e   :  { %v18241_v20 = vpop.eup %18240 }
 0x98f   :  { %v18243_v29 = vpop.eup %18242  ;;  %v7353_v46 = vsub.f32 1.0, %v18241_v20  ;;  %v7357_v62 = vmul.f32 %v18241_v20, %v20330_v7 }
 0x990   :  { %v7354_v51 = vsub.f32 1.0, %v18243_v29  ;;  %v7358_v5 = vmul.f32 %v18243_v29, %v20332_v8  ;;  %v17439_v29 = vld [vmem:[#allocation11 + $0x14] ss:$24 sps:$4 sm:$0xff]  }
 0x9a7   :  { %v7312_v12 = vpop.f32.mrf.mxu0 }
 0x9a8   :  { %v7313_v26 = vadd.f32 %v7312_v12, %v6705_v11  ;;  %v17416_v11 = vld [vmem:[#allocation12 + $0xc0] ss:$24 sps:$4 sm:$0xff]   ;;  %v7380_v12 = vld [vmem:[#allocation2 + $0x68] sm:$0xff] }
 0x9a9   :  { %v7314_v59 = vpop.f32.mrf.mxu0 }
 0x9aa   :  { %v7347_v13 = vmul.f32 %v18237_v2, %v7313_v26  ;;  %v7315_v40 = vadd.f32 %v7314_v59, %v6709_v0  ;;  %v7377_v0 = vld [vmem:[#allocation2 + $0x50] sm:$0xff]  ;;  %v7375_v2 = vld [vmem:[#allocation2 + $0x40] sm:$0xff] }
 0x9ab   :  { %v7316_v55 = vpop.f32.mrf.mxu0  ;;  %v17422_v26 = vld [vmem:[#allocation12 + $0x90] ss:$24 sps:$4 sm:$0xff]   ;;  %v20395_v59 = vpack.c.bf16 %v7377_v0, %v7375_v2  ;;  %v20411_v0 = vld [vmem:[#allocation12 + $0x15c] ss:$24 sps:$4 sm:$0xff]   ;;  %v20416_v2 = vld [vmem:[#allocation12 + $0x12c] ss:$24 sps:$4 sm:$0xff]  }
 0x9ac   :  { %v7349_v25 = vadd.f32 %v7347_v13, %v22616_v23  ;;  %v7348_v53 = vmul.f32 %v18239_v35, %v7315_v40  ;;  %v7382_v13 = vld [vmem:[#allocation2 + $0x78] sm:$0xff]  ;;  %v17427_v40 = vld [vmem:[#allocation11 + $0x74] ss:$24 sps:$4 sm:$0xff]   ;;  %v17425_v23 = vld [vmem:[#allocation11 + $0x70] ss:$24 sps:$4 sm:$0xff]  }
 0x9ad   :  { %v7317_v57 = vpop.f32.mrf.mxu0  ;;  %v17430_v35 = vld [vmem:[#allocation12 + $0x64] ss:$24 sps:$4 sm:$0xff]   ;;  %v20399_v55 = vpack.c.bf16 %v7382_v13, %v7380_v12  ;;  %v17502_v13 = vld [vmem:[#allocation12 + $0x134] ss:$24 sps:$4 sm:$0xff]  }
 0x9ae   :  { %18244 = vtanh.f32 %v7349_v25  ;;  %v7350_v61 = vadd.f32 %v7348_v53, %v22617_v52  ;;  %v17428_v25 = vld [vmem:[#allocation12 + $0x60] ss:$24 sps:$4 sm:$0xff]   ;;  %v17433_v53 = vld [vmem:[#allocation11 + $0x44] ss:$24 sps:$4 sm:$0xff]   ;;  %v17436_v57 = vld [vmem:[#allocation12 + $0x34] ss:$24 sps:$4 sm:$0xff]  }
 0x9af   :  { %v17431_v52 = vld [vmem:[#allocation11 + $0x40] ss:$24 sps:$4 sm:$0xff]   ;;  %v17496_v12 = vld [vmem:[#allocation12 + $0x164] ss:$24 sps:$4 sm:$0xff]  }
 0x9b0   :  { %18246 = vtanh.f32 %v7350_v61  ;;  %v17434_v61 = vld [vmem:[#allocation12 + $0x30] ss:$24 sps:$4 sm:$0xff]  }
 0x9bb   :  { %v18245_v39 = vpop.eup %18244 }
 0x9bc   :  { %v7355_v10 = vmul.f32 %v18245_v39, %v7353_v46  ;;  %v17442_v46 = vld [vmem:[#allocation12 + $0x4] ss:$24 sps:$4 sm:$0xff]   ;;  %v17437_v39 = vld [vmem:[#allocation11 + $0x10] ss:$24 sps:$4 sm:$0xff]  }
 0x9bd   :  { %v18247_v9 = vpop.eup %18246 }
 0x9be   :  { %v20369_v21 = vadd.f32 %v7357_v62, %v7355_v10  ;;  %v7356_v22 = vmul.f32 %v18247_v9, %v7354_v51  ;;  %v17440_v62 = vld [vmem:[#allocation12] ss:$24 sps:$4 sm:$0xff]   ;;  %v17445_v10 = vld [vmem:[#allocation11 + $0x2e4] ss:$24 sps:$4 sm:$0xff]   ;;  %v17448_v51 = vld [vmem:[#allocation12 + $0x2d4] ss:$24 sps:$4 sm:$0xff]  }
 0x9bf   :  { %v22618_v9 = vmov 0  }
 0x9c0   :  { %v7360_v54 = vadd.f32 %v7358_v5, %v7356_v22  ;;  %7364 = vst.msk [vmem:[#allocation14] sm:$0x3] %vm7363_vm1, %v20369_v21  ;;  %v20405_v20 = vpack.c.bf16 %v20369_v21, %v20330_v7  ;;  %v17443_v7 = vld [vmem:[#allocation11 + $0x2e0] ss:$24 sps:$4 sm:$0xff]   ;;  %v17446_v5 = vld [vmem:[#allocation12 + $0x2d0] ss:$24 sps:$4 sm:$0xff]  }
 0x9c1   :  { %v17451_v21 = vld [vmem:[#allocation11 + $0x2b4] ss:$24 sps:$4 sm:$0xff]   ;;  %v17454_v22 = vld [vmem:[#allocation12 + $0x2a4] ss:$24 sps:$4 sm:$0xff]  }
 0x9c2   :  { %v20374_v32 = vpack.c.bf16 %v20332_v8, %v7360_v54  ;;  %7366 = vst.msk [vmem:[#allocation14 + $0x2] sm:$0x3] %vm7363_vm1, %v7360_v54  ;;  %v20383_v8 = vpack.c.bf16 %v7374_v48, %v7372_v19  ;;  %v17449_v54 = vld [vmem:[#allocation11 + $0x2b0] ss:$24 sps:$4 sm:$0xff]   ;;  %v17463_v19 = vld [vmem:[#allocation11 + $0x254] ss:$24 sps:$4 sm:$0xff]  }
 0x9c3   :  { %v17466_v48 = vld [vmem:[#allocation12 + $0x244] ss:$24 sps:$4 sm:$0xff]  }
 0x9c4   :  { %8031 = vmatprep.mubr.bf16.mxu1 %v20374_v32  ;;  %8104 = vmatprep.mubr.bf16.mxu0 %v20374_v32 }
 0x9c5   :  { %8032 = vmatmul.mubr.bf16.vlgmr.msra.gmra.mxu1 %v20377_v3  ;;  %8105 = vmatmul.mubr.bf16.vlgmr.msra.gmra.mxu0 %v20377_v3 }
 0x9c6   :  { %8146 = vmatpush1.bf16.msra.mxu1 %v17395_v33  ;;  %8881 = vmatpush1.bf16.msra.mxu0 %v17398_v42  ;;  %v17455_v33 = vld [vmem:[#allocation11 + $0x280] ss:$24 sps:$4 sm:$0xff]   ;;  %v17458_v42 = vld [vmem:[#allocation12 + $0x270] ss:$24 sps:$4 sm:$0xff]  }
 0x9c7   :  { %8041 = vmatprep.mubr.bf16.mxu1 %v20383_v8  ;;  %8114 = vmatprep.mubr.bf16.mxu0 %v20383_v8 }
 0x9c8   :  { %8147 = vmatprep.subr.bf16.mxu1 %v17403_v28  ;;  %8882 = vmatprep.subr.bf16.mxu0 %v17406_v44  ;;  %v17461_v28 = vld [vmem:[#allocation11 + $0x250] ss:$24 sps:$4 sm:$0xff]   ;;  %v17464_v44 = vld [vmem:[#allocation12 + $0x240] ss:$24 sps:$4 sm:$0xff]  }
 0x9ca   :  { %8148 = vmatpush1.bf16.msra.mxu1 %v17401_v4  ;;  %8883 = vmatpush1.bf16.msra.mxu0 %v17404_v24  ;;  %v17469_v4 = vld [vmem:[#allocation11 + $0x224] ss:$24 sps:$4 sm:$0xff]   ;;  %v17472_v24 = vld [vmem:[#allocation12 + $0x214] ss:$24 sps:$4 sm:$0xff]  }
 0x9cb   :  { %8149 = vmatprep.subr.bf16.mxu1 %v17409_v37  ;;  %8884 = vmatprep.subr.bf16.mxu0 %v17412_v58  ;;  %v17467_v37 = vld [vmem:[#allocation11 + $0x220] ss:$24 sps:$4 sm:$0xff]   ;;  %v17470_v58 = vld [vmem:[#allocation12 + $0x210] ss:$24 sps:$4 sm:$0xff]  }
 0x9cd   :  { %8042 = vmatmul.mubr.bf16.gmra.mxu1 %v20387_v45  ;;  %8115 = vmatmul.mubr.bf16.gmra.mxu0 %v20387_v45 }
 0x9ce   :  { %8150 = vmatpush1.bf16.msra.mxu1 %v17407_v6  ;;  %8885 = vmatpush1.bf16.msra.mxu0 %v17410_v60  ;;  %v17473_v6 = vld [vmem:[#allocation11 + $0x1f0] ss:$24 sps:$4 sm:$0xff]   ;;  %v17476_v60 = vld [vmem:[#allocation12 + $0x1e0] ss:$24 sps:$4 sm:$0xff]  }
 0x9cf   :  { %8051 = vmatprep.mubr.bf16.mxu1 %v20391_v17  ;;  %8124 = vmatprep.mubr.bf16.mxu0 %v20391_v17 }
 0x9d0   :  { %8151 = vmatprep.subr.bf16.mxu1 %v17415_v34  ;;  %8886 = vmatprep.subr.bf16.mxu0 %v17418_v27  ;;  %v17479_v34 = vld [vmem:[#allocation11 + $0x1c0] ss:$24 sps:$4 sm:$0xff]   ;;  %v17482_v27 = vld [vmem:[#allocation12 + $0x1b0] ss:$24 sps:$4 sm:$0xff]  }
 0x9d2   :  { %8152 = vmatpush1.bf16.msra.mxu1 %v17413_v63  ;;  %8887 = vmatpush1.bf16.msra.mxu0 %v17416_v11  ;;  %v17487_v63 = vld [vmem:[#allocation11 + $0x194] ss:$24 sps:$4 sm:$0xff]   ;;  %v17490_v11 = vld [vmem:[#allocation12 + $0x184] ss:$24 sps:$4 sm:$0xff]  }
 0x9d3   :  { %8153 = vmatprep.subr.bf16.mxu1 %v17421_v1  ;;  %8888 = vmatprep.subr.bf16.mxu0 %v17424_v47  ;;  %v17485_v1 = vld [vmem:[#allocation11 + $0x190] ss:$24 sps:$4 sm:$0xff]   ;;  %v17488_v47 = vld [vmem:[#allocation12 + $0x180] ss:$24 sps:$4 sm:$0xff]  }
 0x9d5   :  { %8052 = vmatmul.mubr.bf16.gmra.mxu1 %v20395_v59  ;;  %8125 = vmatmul.mubr.bf16.gmra.mxu0 %v20395_v59 }
 0x9d6   :  { %8154 = vmatpush1.bf16.msra.mxu1 %v17419_v14  ;;  %8889 = vmatpush1.bf16.msra.mxu0 %v17422_v26  ;;  %v20413_v14 = vld [vmem:[#allocation12 + $0x158] ss:$24 sps:$4 sm:$0xff]  }
 0x9d7   :  { %8061 = vmatprep.mubr.bf16.mxu1 %v20399_v55  ;;  %8134 = vmatprep.mubr.bf16.mxu0 %v20399_v55  ;;  %v17494_v26 = vld [vmem:[#allocation12 + $0x160] ss:$24 sps:$4 sm:$0xff]  }
 0x9d8   :  { %8155 = vmatprep.subr.bf16.mxu1 %v17427_v40  ;;  %8890 = vmatprep.subr.bf16.mxu0 %v17430_v35  ;;  %v20422_v40 = vld [vmem:[#allocation12 + $0x128] ss:$24 sps:$4 sm:$0xff]  }
 0x9d9   :  { %v17500_v35 = vld [vmem:[#allocation12 + $0x130] ss:$24 sps:$4 sm:$0xff]  }
 0x9da   :  { %8156 = vmatpush1.bf16.msra.mxu1 %v17425_v23  ;;  %8891 = vmatpush1.bf16.msra.mxu0 %v17428_v25  ;;  %v20425_v23 = vld [vmem:[#allocation12 + $0xfc] ss:$24 sps:$4 sm:$0xff]  }
 0x9db   :  { %8157 = vmatprep.subr.bf16.mxu1 %v17433_v53  ;;  %8892 = vmatprep.subr.bf16.mxu0 %v17436_v57  ;;  %v17508_v25 = vld [vmem:[#allocation12 + $0x104] ss:$24 sps:$4 sm:$0xff]   ;;  %v17514_v57 = vld [vmem:[#allocation12 + $0xd4] ss:$24 sps:$4 sm:$0xff]  }
 0x9dc   :  { %v20432_v53 = vld [vmem:[#allocation12 + $0xcc] ss:$24 sps:$4 sm:$0xff]  }
 0x9dd   :  { %8062 = vmatmul.mubr.bf16.gmra.mxu1 %v20405_v20  ;;  %8135 = vmatmul.mubr.bf16.gmra.mxu0 %v20405_v20 }
 0x9de   :  { %8158 = vmatpush1.bf16.msra.mxu1 %v17431_v52  ;;  %8893 = vmatpush1.bf16.msra.mxu0 %v17434_v61  ;;  %v20437_v52 = vld [vmem:[#allocation12 + $0xc8] ss:$24 sps:$4 sm:$0xff]  }
 0x9df   :  { %8177 = vmatprep.mubr.bf16.mxu1 %v20374_v32  ;;  %8159 = vmatprep.subr.bf16.mxu1 %v17439_v29  ;;  %v17460_v32 = vld [vmem:[#allocation12 + $0x274] ss:$24 sps:$4 sm:$0xff]   ;;  %v17512_v61 = vld [vmem:[#allocation12 + $0xd0] ss:$24 sps:$4 sm:$0xff]  }
 0x9e0   :  { %8894 = vmatprep.subr.bf16.mxu0 %v17442_v46  ;;  %8912 = vmatprep.mubr.bf16.mxu0 %v22618_v9  ;;  %v20440_v29 = vld [vmem:[#allocation12 + $0x9c] ss:$24 sps:$4 sm:$0xff]  }
 0x9e1   :  { %v17520_v46 = vld [vmem:[#allocation12 + $0xa4] ss:$24 sps:$4 sm:$0xff]  }
 0x9e2   :  { %8160 = vmatpush1.bf16.msra.mxu1 %v17437_v39  ;;  %8895 = vmatpush1.bf16.msra.mxu0 %v17440_v62  ;;  %v20443_v39 = vld [vmem:[#allocation12 + $0x98] ss:$24 sps:$4 sm:$0xff]   ;;  %v17526_v62 = vld [vmem:[#allocation12 + $0x74] ss:$24 sps:$4 sm:$0xff]  }
 0x9e3   :  { %8161 = vmatprep.subr.bf16.mxu1 %v17445_v10  ;;  %8896 = vmatprep.subr.bf16.mxu0 %v17448_v51  ;;  %v20451_v10 = vld [vmem:[#allocation12 + $0x68] ss:$24 sps:$4 sm:$0xff]  }
 0x9e4   :  { %v17524_v51 = vld [vmem:[#allocation12 + $0x70] ss:$24 sps:$4 sm:$0xff]  }
 0x9e6   :  { %8162 = vmatpush2.bf16.msra.mxu1 %v17443_v7  ;;  %8897 = vmatpush2.bf16.msra.mxu0 %v17446_v5  ;;  %v20454_v7 = vld [vmem:[#allocation12 + $0x3c] ss:$24 sps:$4 sm:$0xff]  }
 0x9e7   :  { %8163 = vmatprep.subr.bf16.mxu1 %v17451_v21  ;;  %8898 = vmatprep.subr.bf16.mxu0 %v17454_v22  ;;  %v17532_v5 = vld [vmem:[#allocation12 + $0x44] ss:$24 sps:$4 sm:$0xff]   ;;  %v20457_v21 = vld [vmem:[#allocation12 + $0x38] ss:$24 sps:$4 sm:$0xff]   ;;  %v20462_v22 = vld [vmem:[#allocation12 + $0x14] ss:$24 sps:$4 sm:$0xff]  }
 0x9ea   :  { %8164 = vmatpush2.bf16.msra.mxu1 %v17449_v54  ;;  %8899 = vmatpush2.bf16.msra.mxu0 %v17452_v56  ;;  %v20466_v54 = vld [vmem:[#allocation12 + $0x8] ss:$24 sps:$4 sm:$0xff]  }
 0x9eb   :  { %8165 = vmatprep.subr.bf16.mxu1 %v17457_v38  ;;  %8900 = vmatprep.subr.bf16.mxu0 %v17460_v32  ;;  %v20470_v56 = vld [vmem:[#allocation12 + $0x10] ss:$24 sps:$4 sm:$0xff]   ;;  %v20472_v38 = vld [vmem:[#allocation12 + $0x2dc] ss:$24 sps:$4 sm:$0xff]  }
 0x9ec   :  { %v20475_v32 = vld [vmem:[#allocation12 + $0x2e4] ss:$24 sps:$4 sm:$0xff]  }
 0x9ee   :  { %8166 = vmatpush2.bf16.msra.mxu1 %v17455_v33  ;;  %8901 = vmatpush2.bf16.msra.mxu0 %v17458_v42  ;;  %v20482_v33 = vld [vmem:[#allocation12 + $0x2e0] ss:$24 sps:$4 sm:$0xff]   ;;  %v20484_v42 = vld [vmem:[#allocation12 + $0x2ac] ss:$24 sps:$4 sm:$0xff]  }
 0x9ef   :  { %8167 = vmatprep.subr.bf16.mxu1 %v17463_v19  ;;  %8902 = vmatprep.subr.bf16.mxu0 %v17466_v48  ;;  %v20487_v19 = vld [vmem:[#allocation12 + $0x2b4] ss:$24 sps:$4 sm:$0xff]   ;;  %v20490_v48 = vld [vmem:[#allocation12 + $0x2a8] ss:$24 sps:$4 sm:$0xff]  }
 0x9f2   :  { %8168 = vmatpush2.bf16.msra.mxu1 %v17461_v28  ;;  %8903 = vmatpush2.bf16.msra.mxu0 %v17464_v44  ;;  %v20494_v28 = vld [vmem:[#allocation12 + $0x2b0] ss:$24 sps:$4 sm:$0xff]   ;;  %v20496_v44 = vld [vmem:[#allocation12 + $0x27c] ss:$24 sps:$4 sm:$0xff]  }
 0x9f3   :  { %8169 = vmatprep.subr.bf16.mxu1 %v17469_v4  ;;  %8904 = vmatprep.subr.bf16.mxu0 %v17472_v24  ;;  %v20499_v4 = vld [vmem:[#allocation12 + $0x284] ss:$24 sps:$4 sm:$0xff]   ;;  %v20502_v24 = vld [vmem:[#allocation12 + $0x278] ss:$24 sps:$4 sm:$0xff]  }
 0x9f6   :  { %8170 = vmatpush2.bf16.msra.mxu1 %v17467_v37  ;;  %8905 = vmatpush2.bf16.msra.mxu0 %v17470_v58  ;;  %v20506_v37 = vld [vmem:[#allocation12 + $0x280] ss:$24 sps:$4 sm:$0xff]   ;;  %v20508_v58 = vld [vmem:[#allocation12 + $0x24c] ss:$24 sps:$4 sm:$0xff]  }
 0x9f7   :  { %8171 = vmatprep.subr.bf16.mxu1 %v17475_v16  ;;  %8906 = vmatprep.subr.bf16.mxu0 %v17478_v15  ;;  %v20511_v16 = vld [vmem:[#allocation12 + $0x254] ss:$24 sps:$4 sm:$0xff]   ;;  %v20514_v15 = vld [vmem:[#allocation12 + $0x248] ss:$24 sps:$4 sm:$0xff]  }
 0x9fa   :  { %8172 = vmatpush2.bf16.msra.mxu1 %v17473_v6  ;;  %8907 = vmatpush2.bf16.msra.mxu0 %v17476_v60  ;;  %v20518_v6 = vld [vmem:[#allocation12 + $0x250] ss:$24 sps:$4 sm:$0xff]   ;;  %v20520_v60 = vld [vmem:[#allocation12 + $0x21c] ss:$24 sps:$4 sm:$0xff]  }
 0x9fb   :  { %8173 = vmatprep.subr.bf16.mxu1 %v17481_v30  ;;  %8908 = vmatprep.subr.bf16.mxu0 %v17484_v18  ;;  %22619 = vst [vmem:[#allocation75_spill] sm:$0xff] %v20518_v6  ;;  %v20523_v30 = vld [vmem:[#allocation12 + $0x224] ss:$24 sps:$4 sm:$0xff]   ;;  %v20526_v18 = vld [vmem:[#allocation12 + $0x218] ss:$24 sps:$4 sm:$0xff]  }
 0x9fc   :  { %22620 = vst [vmem:[#allocation76_spill] sm:$0xff] %v20523_v30 }
 0x9fe   :  { %8174 = vmatpush2.bf16.msra.mxu1 %v17479_v34  ;;  %8909 = vmatpush2.bf16.msra.mxu0 %v17482_v27  ;;  %v20530_v34 = vld [vmem:[#allocation12 + $0x220] ss:$24 sps:$4 sm:$0xff]   ;;  %v20532_v27 = vld [vmem:[#allocation12 + $0x1ec] ss:$24 sps:$4 sm:$0xff]  }
 0x9ff   :  { %8175 = vmatprep.subr.bf16.mxu1 %v17487_v63  ;;  %8910 = vmatprep.subr.bf16.mxu0 %v17490_v11  ;;  %22621 = vst [vmem:[#allocation77_spill] sm:$0xff] %v20530_v34  ;;  %v20535_v63 = vld [vmem:[#allocation12 + $0x1f4] ss:$24 sps:$4 sm:$0xff]   ;;  %v20538_v11 = vld [vmem:[#allocation12 + $0x1e8] ss:$24 sps:$4 sm:$0xff]  }
 0xa00   :  { %22622 = vst [vmem:[#allocation78_spill] sm:$0xff] %v20535_v63 }
 0xa02   :  { %8176 = vmatpush2.bf16.msra.mxu1 %v17485_v1  ;;  %8911 = vmatpush2.bf16.msra.mxu0 %v17488_v47  ;;  %v20542_v1 = vld [vmem:[#allocation12 + $0x1f0] ss:$24 sps:$4 sm:$0xff]   ;;  %v20544_v47 = vld [vmem:[#allocation12 + $0x1bc] ss:$24 sps:$4 sm:$0xff]  }
 0xa03   :  { %8921 = vmatprep.subr.bf16.mxu1 %v20411_v0  ;;  %8962 = vmatprep.subr.bf16.mxu0 %v17496_v12  ;;  %22623 = vst [vmem:[#allocation44_spill] sm:$0xff] %v20542_v1  ;;  %v20547_v12 = vld [vmem:[#allocation12 + $0x1c4] ss:$24 sps:$4 sm:$0xff]  }
 0xa04   :  { %22624 = vst [vmem:[#allocation30_spill] sm:$0xff] %v20547_v12 }
 0xa05   :  { %8178 = vmatmul.mubr.bf16.vlgmr.msra.gmra.mxu1 %v20377_v3  ;;  %8913 = vmatmul.mubr.bf16.vlgmr.msra.gmra.mxu0 %v22618_v9  ;;  %v20429_v3 = vld [vmem:[#allocation12 + $0xf8] ss:$24 sps:$4 sm:$0xff]  }
 0xa06   :  { %8187 = vmatprep.mubr.bf16.mxu1 %v20383_v8  ;;  %8922 = vmatpush1.bf16.msra.mxu1 %v20413_v14  ;;  %v17506_v8 = vld [vmem:[#allocation12 + $0x100] ss:$24 sps:$4 sm:$0xff]  }
 0xa07   :  { %8963 = vmatpush1.bf16.msra.mxu0 %v17494_v26  ;;  %8923 = vmatprep.subr.bf16.mxu1 %v20416_v2  ;;  %v20550_v26 = vld [vmem:[#allocation12 + $0x1b8] ss:$24 sps:$4 sm:$0xff]  }
 0xa08   :  { %8964 = vmatprep.subr.bf16.mxu0 %v17502_v13  ;;  %8994 = vmatprep.mubr.bf16.mxu0 %v22618_v9  ;;  %v20554_v13 = vld [vmem:[#allocation12 + $0x1c0] ss:$24 sps:$4 sm:$0xff]  }
 0xa09   :  { %22625 = vst [vmem:[#allocation45_spill] sm:$0xff] %v20554_v13 }
 0xa0a   :  { %8924 = vmatpush1.bf16.msra.mxu1 %v20422_v40 }
 0xa0b   :  { %8965 = vmatpush1.bf16.msra.mxu0 %v17500_v35  ;;  %8925 = vmatprep.subr.bf16.mxu1 %v20425_v23  ;;  %v17583_v35 = vld [vmem:[#allocation12 + $0x18c] ss:$24 sps:$4 sm:$0xff]  }
 0xa0c   :  { %8966 = vmatprep.subr.bf16.mxu0 %v17508_v25  ;;  %v20557_v25 = vld [vmem:[#allocation12 + $0x194] ss:$24 sps:$4 sm:$0xff]  }
 0xa0d   :  { %8188 = vmatmul.mubr.bf16.gmra.mxu1 %v20387_v45  ;;  %v17518_v45 = vld [vmem:[#allocation12 + $0xa0] ss:$24 sps:$4 sm:$0xff]   ;;  %22626 = vst [vmem:[#allocation31_spill] sm:$0xff] %v20557_v25 }
 0xa0e   :  { %8197 = vmatprep.mubr.bf16.mxu1 %v20391_v17  ;;  %8926 = vmatpush1.bf16.msra.mxu1 %v20429_v3  ;;  %v20446_v17 = vld [vmem:[#allocation12 + $0x6c] ss:$24 sps:$4 sm:$0xff]  }
 0xa0f   :  { %8967 = vmatpush1.bf16.msra.mxu0 %v17506_v8  ;;  %8927 = vmatprep.subr.bf16.mxu1 %v20432_v53  ;;  %v17581_v8 = vld [vmem:[#allocation12 + $0x188] ss:$24 sps:$4 sm:$0xff]  }
 0xa10   :  { %8968 = vmatprep.subr.bf16.mxu0 %v17514_v57  ;;  %v20561_v57 = vld [vmem:[#allocation12 + $0x190] ss:$24 sps:$4 sm:$0xff]  }
 0xa11   :  { %22627 = vst [vmem:[#allocation36_spill] sm:$0xff] %v20561_v57 }
 0xa12   :  { %8928 = vmatpush1.bf16.msra.mxu1 %v20437_v52 }
 0xa13   :  { %8969 = vmatpush1.bf16.msra.mxu0 %v17512_v61  ;;  %8929 = vmatprep.subr.bf16.mxu1 %v20440_v29  ;;  %v20613_v61 = vld [vmem:[#allocation12 + $0x90] ss:$24 sps:$4 sm:$0xff]  }
 0xa14   :  { %8970 = vmatprep.subr.bf16.mxu0 %v17520_v46 }
 0xa15   :  { %8198 = vmatmul.mubr.bf16.gmra.mxu1 %v20395_v59  ;;  %v17530_v59 = vld [vmem:[#allocation12 + $0x40] ss:$24 sps:$4 sm:$0xff]  }
 0xa16   :  { %8207 = vmatprep.mubr.bf16.mxu1 %v20399_v55  ;;  %8930 = vmatpush1.bf16.msra.mxu1 %v20443_v39  ;;  %v20460_v55 = vld [vmem:[#allocation12 + $0xc] ss:$24 sps:$4 sm:$0xff]  }
 0xa17   :  { %8971 = vmatpush1.bf16.msra.mxu0 %v17518_v45  ;;  %8931 = vmatprep.subr.bf16.mxu1 %v20446_v17 }
 0xa18   :  { %8972 = vmatprep.subr.bf16.mxu0 %v17526_v62 }
 0xa1a   :  { %8932 = vmatpush1.bf16.msra.mxu1 %v20451_v10 }
 0xa1b   :  { %8973 = vmatpush1.bf16.msra.mxu0 %v17524_v51  ;;  %8933 = vmatprep.subr.bf16.mxu1 %v20454_v7  ;;  %v20641_v51 = vld [vmem:[#allocation12 + $0x64] ss:$24 sps:$4 sm:$0xff]  }
 0xa1c   :  { %8974 = vmatprep.subr.bf16.mxu0 %v17532_v5 }
 0xa1d   :  { %8208 = vmatmul.mubr.bf16.gmra.mxu1 %v20405_v20  ;;  %v20478_v20 = vld [vmem:[#allocation12 + $0x2d8] ss:$24 sps:$4 sm:$0xff]  }
 0xa1e   :  { %8934 = vmatpush1.bf16.msra.mxu1 %v20457_v21  ;;  %8953 = vmatprep.mubr.bf16.mxu1 %v22618_v9 }
 0xa1f   :  { %8975 = vmatpush1.bf16.msra.mxu0 %v17530_v59  ;;  %8935 = vmatprep.subr.bf16.mxu1 %v20460_v55 }
 0xa20   :  { %8976 = vmatprep.subr.bf16.mxu0 %v20462_v22 }
 0xa22   :  { %8936 = vmatpush1.bf16.msra.mxu1 %v20466_v54 }
 0xa23   :  { %8977 = vmatpush1.bf16.msra.mxu0 %v20470_v56  ;;  %8937 = vmatprep.subr.bf16.mxu1 %v20472_v38 }
 0xa24   :  { %8978 = vmatprep.subr.bf16.mxu0 %v20475_v32 }
 0xa26   :  { %8938 = vmatpush2.bf16.msra.mxu1 %v20478_v20 }
 0xa27   :  { %8979 = vmatpush2.bf16.msra.mxu0 %v20482_v33  ;;  %8939 = vmatprep.subr.bf16.mxu1 %v20484_v42 }
 0xa28   :  { %8980 = vmatprep.subr.bf16.mxu0 %v20487_v19 }
 0xa2a   :  { %8940 = vmatpush2.bf16.msra.mxu1 %v20490_v48 }
 0xa2b   :  { %8981 = vmatpush2.bf16.msra.mxu0 %v20494_v28  ;;  %8941 = vmatprep.subr.bf16.mxu1 %v20496_v44 }
 0xa2c   :  { %8982 = vmatprep.subr.bf16.mxu0 %v20499_v4 }
 0xa2e   :  { %8942 = vmatpush2.bf16.msra.mxu1 %v20502_v24 }
 0xa2f   :  { %8983 = vmatpush2.bf16.msra.mxu0 %v20506_v37  ;;  %8943 = vmatprep.subr.bf16.mxu1 %v20508_v58 }
 0xa30   :  { %8984 = vmatprep.subr.bf16.mxu0 %v20511_v16 }
 0xa32   :  { %8944 = vmatpush2.bf16.msra.mxu1 %v20514_v15 }
 0xa33   :  { %8985 = vmatpush2.bf16.msra.mxu0 %v20518_v6  ;;  %8945 = vmatprep.subr.bf16.mxu1 %v20520_v60 }
 0xa34   :  { %8986 = vmatprep.subr.bf16.mxu0 %v20523_v30 }
 0xa36   :  { %8946 = vmatpush2.bf16.msra.mxu1 %v20526_v18 }
 0xa37   :  { %8987 = vmatpush2.bf16.msra.mxu0 %v20530_v34  ;;  %8947 = vmatprep.subr.bf16.mxu1 %v20532_v27 }
 0xa38   :  { %8988 = vmatprep.subr.bf16.mxu0 %v20535_v63 }
 0xa3a   :  { %8948 = vmatpush2.bf16.msra.mxu1 %v20538_v11 }
 0xa3b   :  { %8989 = vmatpush2.bf16.msra.mxu0 %v20542_v1  ;;  %8949 = vmatprep.subr.bf16.mxu1 %v20544_v47 }
 0xa3c   :  { %8990 = vmatprep.subr.bf16.mxu0 %v20547_v12 }
 0xa3e   :  { %8950 = vmatpush2.bf16.msra.mxu1 %v20550_v26 }
 0xa3f   :  { %8991 = vmatpush2.bf16.msra.mxu0 %v20554_v13  ;;  %8951 = vmatprep.subr.bf16.mxu1 %v17583_v35 }
 0xa40   :  { %8992 = vmatprep.subr.bf16.mxu0 %v20557_v25 }
 0xa42   :  { %8952 = vmatpush2.bf16.msra.mxu1 %v17581_v8 }
 0xa43   :  { %8993 = vmatpush2.bf16.msra.mxu0 %v20561_v57 }
 0xa44   :  { %9704 = vmatprep.subr.bf16.mxu0 %v20411_v0  ;;  %v17589_v0 = vld [vmem:[#allocation12 + $0x154] ss:$24 sps:$4 sm:$0xff]  }
 0xa45   :  { %8954 = vmatmul.mubr.bf16.vlgmr.msra.gmra.mxu1 %v22618_v9  ;;  %9663 = vmatprep.subr.bf16.mxu1 %v17589_v0 }
 0xa46   :  { %8995 = vmatmul.mubr.bf16.vlgmr.msra.gmra.mxu0 %v22618_v9  ;;  %v20583_v9 = vld [vmem:[#allocation12 + $0x150] ss:$24 sps:$4 sm:$0xff]  }
 0xa47   :  { %9705 = vmatpush1.bf16.msra.mxu0 %v20413_v14  ;;  %v20586_v14 = vld [vmem:[#allocation12 + $0x124] ss:$24 sps:$4 sm:$0xff]   ;;  %9664 = vmatpush1.bf16.msra.mxu1 %v20583_v9 }
 0xa48   :  { %9706 = vmatprep.subr.bf16.mxu0 %v20416_v2  ;;  %v20589_v2 = vld [vmem:[#allocation12 + $0x120] ss:$24 sps:$4 sm:$0xff]   ;;  %9665 = vmatprep.subr.bf16.mxu1 %v20586_v14 }
 0xa4b   :  { %9707 = vmatpush1.bf16.msra.mxu0 %v20422_v40  ;;  %v20593_v40 = vld [vmem:[#allocation12 + $0xf4] ss:$24 sps:$4 sm:$0xff]   ;;  %9666 = vmatpush1.bf16.msra.mxu1 %v20589_v2 }
 0xa4c   :  { %9708 = vmatprep.subr.bf16.mxu0 %v20425_v23  ;;  %v20597_v23 = vld [vmem:[#allocation12 + $0xf0] ss:$24 sps:$4 sm:$0xff]   ;;  %9667 = vmatprep.subr.bf16.mxu1 %v20593_v40 }
 0xa4f   :  { %9709 = vmatpush1.bf16.msra.mxu0 %v20429_v3  ;;  %v20601_v3 = vld [vmem:[#allocation12 + $0xc4] ss:$24 sps:$4 sm:$0xff]   ;;  %9668 = vmatpush1.bf16.msra.mxu1 %v20597_v23 }
 0xa50   :  { %9710 = vmatprep.subr.bf16.mxu0 %v20432_v53  ;;  %v20605_v53 = vld [vmem:[#allocation12 + $0xc0] ss:$24 sps:$4 sm:$0xff]   ;;  %9669 = vmatprep.subr.bf16.mxu1 %v20601_v3 }
 0xa53   :  { %9711 = vmatpush1.bf16.msra.mxu0 %v20437_v52  ;;  %v20609_v52 = vld [vmem:[#allocation12 + $0x94] ss:$24 sps:$4 sm:$0xff]   ;;  %9670 = vmatpush1.bf16.msra.mxu1 %v20605_v53 }
 0xa54   :  { %9712 = vmatprep.subr.bf16.mxu0 %v20440_v29  ;;  %9671 = vmatprep.subr.bf16.mxu1 %v20609_v52  ;;  %v20627_v29 = vld [vmem:[%s22221_s8] sm:$0x3f] }
 0xa55   :  { %v20631_v46 = vrot.slane %v20627_v29, %v22602_v41  ;;  %v20649_v5 = vrot.slane %v20627_v29, %v18969_v50  ;;  %v20804_v25 = vrot.slane %v20627_v29, %v19074_v31 }
 0xa57   :  { %9713 = vmatpush1.bf16.msra.mxu0 %v20443_v39  ;;  %9672 = vmatpush1.bf16.msra.mxu1 %v20613_v61  ;;  %v20635_v39 = vrot.slane %v20627_v29, %v18966_v49 }
 0xa58   :  { %9714 = vmatprep.subr.bf16.mxu0 %v20446_v17  ;;  %9673 = vmatprep.subr.bf16.mxu1 %v20641_v51 }
 0xa5b   :  { %9715 = vmatpush1.bf16.msra.mxu0 %v20451_v10 }
 0xa5c   :  { %9716 = vmatprep.subr.bf16.mxu0 %v20454_v7  ;;  %v20645_v7 = vrot.slane %v20627_v29, %v22601_v43 }
 0xa5f   :  { %9717 = vmatpush1.bf16.msra.mxu0 %v20457_v21 }
 0xa60   :  { %9718 = vmatprep.subr.bf16.mxu0 %v20460_v55  ;;  %v20657_v55 = vld [vmem:[#allocation12 + $0x60] ss:$24 sps:$4 sm:$0xff]  }
 0xa61   :  { %9674 = vmatpush1.bf16.msra.mxu1 %v20657_v55 }
 0xa63   :  { %9719 = vmatpush1.bf16.msra.mxu0 %v20466_v54 }
 0xa64   :  { %9720 = vmatprep.subr.bf16.mxu0 %v20472_v38 }
 0xa67   :  { %9721 = vmatpush2.bf16.msra.mxu0 %v20478_v20 }
 0xa68   :  { %9722 = vmatprep.subr.bf16.mxu0 %v20484_v42 }
 0xa6b   :  { %9723 = vmatpush2.bf16.msra.mxu0 %v20490_v48 }
 0xa6c   :  { %9724 = vmatprep.subr.bf16.mxu0 %v20496_v44 }
 0xa6f   :  { %9725 = vmatpush2.bf16.msra.mxu0 %v20502_v24  ;;  %v20667_v24 = vld [vmem:[#allocation12 + $0x34] ss:$24 sps:$4 sm:$0xff]  }
 0xa70   :  { %9726 = vmatprep.subr.bf16.mxu0 %v20508_v58  ;;  %9675 = vmatprep.subr.bf16.mxu1 %v20667_v24 }
 0xa73   :  { %9727 = vmatpush2.bf16.msra.mxu0 %v20514_v15 }
 0xa74   :  { %9728 = vmatprep.subr.bf16.mxu0 %v20520_v60  ;;  %v20675_v60 = vld [vmem:[#allocation12 + $0x30] ss:$24 sps:$4 sm:$0xff]  }
 0xa75   :  { %9676 = vmatpush1.bf16.msra.mxu1 %v20675_v60 }
 0xa77   :  { %9729 = vmatpush2.bf16.msra.mxu0 %v20526_v18 }
 0xa78   :  { %9730 = vmatprep.subr.bf16.mxu0 %v20532_v27 }
 0xa7b   :  { %9731 = vmatpush2.bf16.msra.mxu0 %v20538_v11 }
 0xa7c   :  { %9732 = vmatprep.subr.bf16.mxu0 %v20544_v47 }
 0xa7f   :  { %9733 = vmatpush2.bf16.msra.mxu0 %v20550_v26 }
 0xa80   :  { %9734 = vmatprep.subr.bf16.mxu0 %v17583_v35 }
 0xa83   :  { %9735 = vmatpush2.bf16.msra.mxu0 %v17581_v8  ;;  %v20685_v8 = vld [vmem:[#allocation12 + $0x4] ss:$24 sps:$4 sm:$0xff]  }
 0xa84   :  { %10446 = vmatprep.subr.bf16.mxu0 %v17589_v0  ;;  %9677 = vmatprep.subr.bf16.mxu1 %v20685_v8 }
 0xa85   :  { %v20637_v45 = vpop.f32.mrf.mxu1  ;;  %v20639_v17 = vpop.f32.mrf.mxu0 }
 0xa87   :  { %v8035_v62 = vpop.f32.mrf.mxu1  ;;  %v8108_v10 = vpop.f32.mrf.mxu0 }
 0xa88   :  { %v20652_v21 = vadd.f32 %v8035_v62, %v20631_v46  ;;  %v20655_v59 = vadd.f32 %v8108_v10, %v20635_v39  ;;  %v20693_v10 = vld [vmem:[#allocation12] ss:$24 sps:$4 sm:$0xff]  }
 0xa89   :  { %v8037_v54 = vpop.f32.mrf.mxu1  ;;  %v8110_v38 = vpop.f32.mrf.mxu0  ;;  %9678 = vmatpush1.bf16.msra.mxu1 %v20693_v10 }
 0xa8a   :  { %22628 = vst [vmem:[#allocation38_spill] sm:$0xff] %v20652_v21  ;;  %22629 = vst [vmem:[#allocation37_spill] sm:$0xff] %v20655_v59  ;;  %v20661_v20 = vadd.f32 %v8037_v54, %v20645_v7  ;;  %v20664_v42 = vadd.f32 %v8110_v38, %v20649_v5  ;;  %v20711_v21 = vld [vmem:[#allocation12 + $0x2d0] ss:$24 sps:$4 sm:$0xff]  }
 0xa8b   :  { %v8039_v48 = vpop.f32.mrf.mxu1  ;;  %v8112_v44 = vpop.f32.mrf.mxu0 }
 0xa8c   :  { %22630 = vst [vmem:[#allocation39_spill] sm:$0xff] %v20661_v20  ;;  %22631 = vst [vmem:[#allocation56_spill] sm:$0xff] %v20664_v42  ;;  %v20670_v58 = vadd.f32 %v8039_v48, %v20631_v46  ;;  %v20673_v15 = vadd.f32 %v8112_v44, %v20635_v39  ;;  %v20777_v20 = vld [vmem:[#allocation12 + $0x210] ss:$24 sps:$4 sm:$0xff]  }
 0xa8d   :  { %v8043_v18 = vpop.f32.mrf.mxu1  ;;  %v8116_v27 = vpop.f32.mrf.mxu0  ;;  %22659 = vst [vmem:[#allocation70_spill] sm:$0xff] %v20777_v20 }
 0xa8e   :  { %22632 = vst [vmem:[#allocation57_spill] sm:$0xff] %v20670_v58  ;;  %22633 = vst [vmem:[#allocation60_spill] sm:$0xff] %v20673_v15  ;;  %v20679_v11 = vadd.f32 %v8043_v18, %v20645_v7  ;;  %v20682_v47 = vadd.f32 %v8116_v27, %v20649_v5 }
 0xa8f   :  { %v8045_v26 = vpop.f32.mrf.mxu1  ;;  %v8118_v35 = vpop.f32.mrf.mxu0 }
 0xa90   :  { %22634 = vst [vmem:[#allocation53_spill] sm:$0xff] %v20679_v11  ;;  %22635 = vst [vmem:[#allocation64_spill] sm:$0xff] %v20682_v47  ;;  %v20688_v0 = vadd.f32 %v8045_v26, %v20631_v46  ;;  %v20691_v62 = vadd.f32 %v8118_v35, %v20635_v39  ;;  %v20703_v26 = vld [vmem:[#allocation12 + $0x2d4] ss:$24 sps:$4 sm:$0xff]  }
 0xa91   :  { %v8047_v54 = vpop.f32.mrf.mxu1  ;;  %v8120_v38 = vpop.f32.mrf.mxu0  ;;  %9679 = vmatprep.subr.bf16.mxu1 %v20703_v26 }
 0xa92   :  { %22636 = vst [vmem:[#allocation81_spill] sm:$0xff] %v20688_v0  ;;  %22637 = vst [vmem:[#allocation79_spill] sm:$0xff] %v20691_v62  ;;  %v20697_v48 = vadd.f32 %v8047_v54, %v20645_v7  ;;  %v20700_v44 = vadd.f32 %v8120_v38, %v20649_v5  ;;  %9680 = vmatpush2.bf16.msra.mxu1 %v20711_v21  ;;  %v20721_v0 = vld [vmem:[#allocation12 + $0x2a4] ss:$24 sps:$4 sm:$0xff]  }
 0xa93   :  { %v8049_v18 = vpop.f32.mrf.mxu1  ;;  %v8122_v27 = vpop.f32.mrf.mxu0  ;;  %9681 = vmatprep.subr.bf16.mxu1 %v20721_v0 }
 0xa94   :  { %22638 = vst [vmem:[#allocation80_spill] sm:$0xff] %v20697_v48  ;;  %22639 = vst [vmem:[#allocation82_spill] sm:$0xff] %v20700_v44  ;;  %v20706_v35 = vadd.f32 %v8049_v18, %v20631_v46  ;;  %v20709_v59 = vadd.f32 %v8122_v27, %v20635_v39  ;;  %v20747_v48 = vld [vmem:[#allocation12 + $0x270] ss:$24 sps:$4 sm:$0xff]  }
 0xa95   :  { %v8053_v15 = vpop.f32.mrf.mxu1  ;;  %v8126_v54 = vpop.f32.mrf.mxu0 }
 0xa96   :  { %22640 = vst [vmem:[#allocation65_spill] sm:$0xff] %v20706_v35  ;;  %22641 = vst [vmem:[#allocation63_spill] sm:$0xff] %v20709_v59  ;;  %v20715_v38 = vadd.f32 %v8053_v15, %v20645_v7  ;;  %v20718_v58 = vadd.f32 %v8126_v54, %v20649_v5  ;;  %v20729_v35 = vld [vmem:[#allocation12 + $0x2a0] ss:$24 sps:$4 sm:$0xff]  }
 0xa97   :  { %v8055_v62 = vpop.f32.mrf.mxu1  ;;  %v8128_v18 = vpop.f32.mrf.mxu0  ;;  %9682 = vmatpush2.bf16.msra.mxu1 %v20729_v35 }
 0xa98   :  { %22642 = vst [vmem:[#allocation66_spill] sm:$0xff] %v20715_v38  ;;  %22643 = vst [vmem:[#allocation83_spill] sm:$0xff] %v20718_v58  ;;  %v20724_v27 = vadd.f32 %v8055_v62, %v20631_v46  ;;  %v20727_v59 = vadd.f32 %v8128_v18, %v20635_v39 }
 0xa99   :  { %v8057_v44 = vpop.f32.mrf.mxu1  ;;  %v8130_v15 = vpop.f32.mrf.mxu0 }
 0xa9a   :  { %22644 = vst [vmem:[#allocation42_spill] sm:$0xff] %v20724_v27  ;;  %22645 = vst [vmem:[#allocation32_spill] sm:$0xff] %v20727_v59  ;;  %v20733_v54 = vadd.f32 %v8057_v44, %v20645_v7  ;;  %v20736_v58 = vadd.f32 %v8130_v15, %v20649_v5  ;;  %v20739_v27 = vld [vmem:[#allocation12 + $0x274] ss:$24 sps:$4 sm:$0xff]  }
 0xa9b   :  { %v8059_v38 = vpop.f32.mrf.mxu1  ;;  %v8132_v62 = vpop.f32.mrf.mxu0  ;;  %9683 = vmatprep.subr.bf16.mxu1 %v20739_v27 }
 0xa9c   :  { %22646 = vst [vmem:[#allocation43_spill] sm:$0xff] %v20733_v54  ;;  %22647 = vst [vmem:[#allocation33_spill] sm:$0xff] %v20736_v58  ;;  %v20742_v18 = vadd.f32 %v8059_v38, %v20631_v46  ;;  %v20745_v59 = vadd.f32 %v8132_v62, %v20635_v39  ;;  %9684 = vmatpush2.bf16.msra.mxu1 %v20747_v48  ;;  %v20757_v54 = vld [vmem:[#allocation12 + $0x240] ss:$24 sps:$4 sm:$0xff]   ;;  %v20759_v38 = vld [vmem:[#allocation12 + $0x244] ss:$24 sps:$4 sm:$0xff]  }
 0xa9d   :  { %v8063_v47 = vpop.f32.mrf.mxu1  ;;  %v8136_v44 = vpop.f32.mrf.mxu0  ;;  %22652 = vst [vmem:[#allocation34_spill] sm:$0xff] %v20757_v54  ;;  %22653 = vst [vmem:[#allocation40_spill] sm:$0xff] %v20759_v38  ;;  %9685 = vmatprep.subr.bf16.mxu1 %v20759_v38 }
 0xa9e   :  { %22648 = vst [vmem:[#allocation59_spill] sm:$0xff] %v20742_v18  ;;  %22649 = vst [vmem:[#allocation54_spill] sm:$0xff] %v20745_v59  ;;  %v20751_v15 = vadd.f32 %v8063_v47, %v20645_v7  ;;  %v20754_v58 = vadd.f32 %v8136_v44, %v20649_v5  ;;  %v20761_v18 = vld [vmem:[#allocation12 + $0x214] ss:$24 sps:$4 sm:$0xff]  }
 0xa9f   :  { %v8065_v62 = vpop.f32.mrf.mxu1  ;;  %v8138_v59 = vpop.f32.mrf.mxu0  ;;  %22654 = vst [vmem:[#allocation35_spill] sm:$0xff] %v20761_v18 }
 0xaa0   :  { %22650 = vst [vmem:[#allocation67_spill] sm:$0xff] %v20751_v15  ;;  %22651 = vst [vmem:[#allocation68_spill] sm:$0xff] %v20754_v58  ;;  %v20764_v11 = vadd.f32 %v8065_v62, %v20631_v46  ;;  %v20767_v42 = vadd.f32 %v8138_v59, %v20635_v39  ;;  %9686 = vmatpush2.bf16.msra.mxu1 %v20757_v54  ;;  %v20780_v62 = vld [vmem:[#allocation12 + $0x1e4] ss:$24 sps:$4 sm:$0xff]   ;;  %v20783_v59 = vld [vmem:[#allocation12 + $0x1e0] ss:$24 sps:$4 sm:$0xff]  }
 0xaa1   :  { %v8067_v47 = vpop.f32.mrf.mxu1  ;;  %v8140_v44 = vpop.f32.mrf.mxu0  ;;  %9687 = vmatprep.subr.bf16.mxu1 %v20761_v18  ;;  %22660 = vst [vmem:[#allocation71_spill] sm:$0xff] %v20780_v62  ;;  %22661 = vst [vmem:[#allocation72_spill] sm:$0xff] %v20783_v59 }
 0xaa2   :  { %22655 = vst [vmem:[#allocation41_spill] sm:$0xff] %v20764_v11  ;;  %22656 = vst [vmem:[#allocation55_spill] sm:$0xff] %v20767_v42  ;;  %v20771_v58 = vadd.f32 %v8067_v47, %v20645_v7  ;;  %v20774_v15 = vadd.f32 %v8140_v44, %v20649_v5  ;;  %v20786_v42 = vld [vmem:[#allocation12 + $0x1b4] ss:$24 sps:$4 sm:$0xff]   ;;  %v20789_v47 = vld [vmem:[#allocation12 + $0x1b0] ss:$24 sps:$4 sm:$0xff]  }
 0xaa3   :  { %22662 = vst [vmem:[#allocation73_spill] sm:$0xff] %v20786_v42  ;;  %22663 = vst [vmem:[#allocation74_spill] sm:$0xff] %v20789_v47  ;;  %v20792_v44 = vld [vmem:[#allocation12 + $0x184] ss:$24 sps:$4 sm:$0xff]   ;;  %v8069_v11 = vpop.f32.mrf.mxu1  ;;  %v8142_v57 = vpop.f32.mrf.mxu0 }
 0xaa4   :  { %22657 = vst [vmem:[#allocation58_spill] sm:$0xff] %v20771_v58  ;;  %22658 = vst [vmem:[#allocation69_spill] sm:$0xff] %v20774_v15  ;;  %9688 = vmatpush2.bf16.msra.mxu1 %v20777_v20  ;;  %v20795_v15 = vld [vmem:[#allocation12 + $0x180] ss:$24 sps:$4 sm:$0xff]   ;;  %v20799_v58 = vld [vmem:[#allocation12 + $0x164] ss:$24 sps:$4 sm:$0xff]  }
 0xaa5   :  { %9689 = vmatprep.subr.bf16.mxu1 %v20780_v62  ;;  %22664 = vst [vmem:[#allocation24_spill] sm:$0xff] %v20792_v44  ;;  %22665 = vst [vmem:[#allocation28_spill] sm:$0xff] %v20795_v15 }
 0xaa6   :  { %22666 = vst [vmem:[#allocation46_spill] sm:$0xff] %v20799_v58 }
 0xaa8   :  { %9690 = vmatpush2.bf16.msra.mxu1 %v20783_v59 }
 0xaa9   :  { %9691 = vmatprep.subr.bf16.mxu1 %v20786_v42 }
 0xaac   :  { %9692 = vmatpush2.bf16.msra.mxu1 %v20789_v47 }
 0xaad   :  { %9693 = vmatprep.subr.bf16.mxu1 %v20792_v44  ;;  %v20810_v44 = vrot.slane %v20627_v29, %v19077_v36 }
 0xab0   :  { %9694 = vmatpush2.bf16.msra.mxu1 %v20795_v15 }
 0xab1   :  { %9745 = vmatprep.subr.bf16.mxu1 %v20799_v58 }
 0xac5   :  { %v20806_v13 = vpop.f32.mrf.mxu1  ;;  %v8914_v42 = vpop.f32.mrf.mxu0 }
 0xac7   :  { %v8181_v47 = vpop.f32.mrf.mxu1  ;;  %v8916_v59 = vpop.f32.mrf.mxu0 }
 0xac8   :  { %v20813_v15 = vadd.f32 %v8181_v47, %v20804_v25 }
 0xac9   :  { %v8183_v12 = vpop.f32.mrf.mxu1  ;;  %v8918_v58 = vpop.f32.mrf.mxu0 }
 0xaca   :  { %22667 = vst [vmem:[#allocation25_spill] sm:$0xff] %v20813_v15  ;;  %v20816_v1 = vadd.f32 %v8183_v12, %v20810_v44 }
 0xacb   :  { %v8185_v62 = vpop.f32.mrf.mxu1  ;;  %v8919_v20 = vpop.f32.mrf.mxu0 }
 0xacc   :  { %22668 = vst [vmem:[#allocation29_spill] sm:$0xff] %v20816_v1  ;;  %v20819_v63 = vadd.f32 %v8185_v62, %v20804_v25  ;;  %v8070_v1 = vadd.f32 %v8069_v11, %v20631_v46 }
 0xacd   :  { %v8189_v34 = vpop.f32.mrf.mxu1 }
 0xace   :  { %22669 = vst [vmem:[#allocation47_spill] sm:$0xff] %v20819_v63  ;;  %v20822_v18 = vadd.f32 %v8189_v34, %v20810_v44 }
 0xacf   :  { %v8191_v54 = vpop.f32.mrf.mxu1 }
 0xad0   :  { %22670 = vst [vmem:[#allocation50_spill] sm:$0xff] %v20822_v18  ;;  %v20825_v29 = vadd.f32 %v8191_v54, %v20804_v25 }
 0xad1   :  { %v8193_v47 = vpop.f32.mrf.mxu1 }
 0xad2   :  { %22671 = vst [vmem:[#allocation52_spill] sm:$0xff] %v20825_v29  ;;  %v20828_v15 = vadd.f32 %v8193_v47, %v20810_v44 }
 0xad3   :  { %v8195_v58 = vpop.f32.mrf.mxu1 }
 0xad4   :  { %22672 = vst [vmem:[#allocation61_spill] sm:$0xff] %v20828_v15  ;;  %v20831_v12 = vadd.f32 %v8195_v58, %v20804_v25 }
 0xad5   :  { %v8199_v20 = vpop.f32.mrf.mxu1 }
 0xad6   :  { %22673 = vst [vmem:[#allocation48_spill] sm:$0xff] %v20831_v12  ;;  %v20834_v62 = vadd.f32 %v8199_v20, %v20810_v44  ;;  %v8368_v20 = vld [vmem:[%s22222_s9] sm:$0x3f] }
 0xad7   :  { %v8201_v63 = vpop.f32.mrf.mxu1 }
 0xad8   :  { %22674 = vst [vmem:[#allocation26_spill] sm:$0xff] %v20834_v62  ;;  %v20837_v34 = vadd.f32 %v8201_v63, %v20804_v25 }
 0xad9   :  { %v8203_v18 = vpop.f32.mrf.mxu1 }
 0xada   :  { %22675 = vst [vmem:[#allocation49_spill] sm:$0xff] %v20837_v34  ;;  %v20840_v54 = vadd.f32 %v8203_v18, %v20810_v44 }
 0xadb   :  { %v8205_v29 = vpop.f32.mrf.mxu1 }
 0xadc   :  { %22676 = vst [vmem:[#allocation27_spill] sm:$0xff] %v20840_v54  ;;  %v20843_v47 = vadd.f32 %v8205_v29, %v20804_v25  ;;  %v8373_v54 = vrot.slane %v8368_v20, %v22601_v43  ;;  %v8377_v29 = vrot.slane %v8368_v20, %v22602_v41 }
 0xadd   :  { %v8209_v15 = vpop.f32.mrf.mxu1 }
 0xade   :  { %22677 = vst [vmem:[#allocation62_spill] sm:$0xff] %v20843_v47  ;;  %v20846_v58 = vadd.f32 %v8209_v15, %v20810_v44  ;;  %v8915_v34 = vadd.f32 %v8914_v42, %v8373_v54  ;;  %v8034_v15 = vadd.f32 %v20637_v45, %v20645_v7  ;;  %v8385_v42 = vrot.slane %v8368_v20, %v18966_v49 }
 0xadf   :  { %v8211_v12 = vpop.f32.mrf.mxu1  ;;  %v8107_v45 = vadd.f32 %v20639_v17, %v20649_v5  ;;  %v8389_v17 = vrot.slane %v8368_v20, %v19077_v36 }
 0xae0   :  { %22678 = vst [vmem:[#allocation51_spill] sm:$0xff] %v20846_v58  ;;  %v20852_v63 = vadd.f32 %v8211_v12, %v20804_v25  ;;  %v8917_v58 = vadd.f32 %v8916_v59, %v8377_v29  ;;  %v9003_v47 = vadd.f32 %v8915_v34, %v8034_v15 }
 0xae1   :  { %v8213_v62 = vpop.f32.mrf.mxu1 }
 0xae2   :  { %22679 = vst [vmem:[#allocation84_spill] sm:$0xff] %v20852_v63  ;;  %v20855_v18 = vadd.f32 %v8213_v62, %v20810_v44  ;;  %v9004_v30 = vadd.f32 %v8917_v58, %v8070_v1  ;;  %v15786_v6 = vmul.f32 -1.442695, %v9003_v47  ;;  %v8381_v62 = vrot.slane %v8368_v20, %v18969_v50 }
 0xae3   :  { %v8215_v38 = vpop.f32.mrf.mxu1 }
 0xae4   :  { %22680 = vst [vmem:[#allocation85_spill] sm:$0xff] %v20855_v18  ;;  %v15787_v12 = vmul.f32 -1.442695, %v9004_v30  ;;  %18248 = vpow2.f32 %v15786_v6  ;;  %v8143_v6 = vadd.f32 %v8142_v57, %v20635_v39 }
 0xae6   :  { %18250 = vpow2.f32 %v15787_v12 }
 0xaf1   :  { %v18249_v63 = vpop.eup %18248 }
 0xaf2   :  { %v9011_v43 = vadd.f32 1.0, %v18249_v63 }
 0xaf3   :  { %v18251_v18 = vpop.eup %18250 }
 0xaf4   :  { %v9012_v7 = vadd.f32 1.0, %v18251_v18  ;;  %18252 = vrcp.f32 %v9011_v43  ;;  %v8393_v43 = vrot.slane %v8368_v20, %v19074_v31 }
 0xaf6   :  { %18254 = vrcp.f32 %v9012_v7 }
 0xb01   :  { %v18253_v18 = vpop.eup %18252 }
 0xb05   :  { %v8955_v54 = vpop.f32.mrf.mxu1 }
 0xb06   :  { %v8956_v59 = vadd.f32 %v8955_v54, %v8381_v62  ;;  %v8996_v46 = vpop.f32.mrf.mxu0  ;;  %v18255_v62 = vpop.eup %18254 }
 0xb07   :  { %v8957_v1 = vpop.f32.mrf.mxu1  ;;  %v8997_v5 = vadd.f32 %v8996_v46, %v8389_v17 }
 0xb08   :  { %v9017_v30 = vadd.f32 %v8956_v59, %v8107_v45  ;;  %v8958_v11 = vadd.f32 %v8957_v1, %v8385_v42  ;;  %v8998_v34 = vpop.f32.mrf.mxu0  ;;  %v8180_v42 = vadd.f32 %v20806_v13, %v20810_v44  ;;  %v8216_v59 = vadd.f32 %v8215_v38, %v20804_v25 }
 0xb09   :  { %v8959_v47 = vpop.f32.mrf.mxu1  ;;  %v8999_v57 = vadd.f32 %v8998_v34, %v8393_v43  ;;  %v9031_v39 = vmul.f32 %v18253_v18, %v8997_v5  ;;  %v20886_v43 = vld [vmem:[#allocation12 + $0x134] ss:$24 sps:$4 sm:$0xff]   ;;  %v20891_v5 = vld [vmem:[#allocation12 + $0x130] ss:$24 sps:$4 sm:$0xff]   ;;  %v20894_v18 = vld [vmem:[#allocation12 + $0x104] ss:$24 sps:$4 sm:$0xff]  }
 0xb0a   :  { %v15788_v58 = vmul.f32 -1.442695, %v9017_v30  ;;  %v9018_v63 = vadd.f32 %v8958_v11, %v8143_v6  ;;  %v9000_v29 = vpop.f32.mrf.mxu0 }
 0xb0b   :  { %v8960_v15 = vpop.f32.mrf.mxu1  ;;  %v9032_v54 = vmul.f32 %v18255_v62, %v8999_v57  ;;  %v9033_v7 = vadd.f32 %v9031_v39, %v8180_v42  ;;  %v20899_v57 = vld [vmem:[#allocation12 + $0x100] ss:$24 sps:$4 sm:$0xff]   ;;  %v20902_v39 = vld [vmem:[#allocation12 + $0xd4] ss:$24 sps:$4 sm:$0xff]   ;;  %v20907_v62 = vld [vmem:[#allocation12 + $0xd0] ss:$24 sps:$4 sm:$0xff]  }
 0xb0c   :  { %18256 = vpow2.f32 %v15788_v58  ;;  %v15789_v12 = vmul.f32 -1.442695, %v9018_v63  ;;  %v9001_v49 = vpop.f32.mrf.mxu0  ;;  %v20987_v42 = vld [vmem:[#allocation12 + $0xfc] ss:$24 sps:$4 sm:$0xff]  }
 0xb0d   :  { %v9034_v30 = vadd.f32 %v9032_v54, %v8216_v59  ;;  %v20990_v54 = vld [vmem:[#allocation12 + $0xf8] ss:$24 sps:$4 sm:$0xff]   ;;  %v20999_v59 = vld [vmem:[#allocation12 + $0x9c] ss:$24 sps:$4 sm:$0xff]  }
 0xb0e   :  { %18258 = vpow2.f32 %v15789_v12  ;;  %v20880_v12 = vld [vmem:[#allocation12 + $0x160] ss:$24 sps:$4 sm:$0xff]  }
 0xb19   :  { %v18257_v45 = vpop.eup %18256 }
 0xb1a   :  { %v9025_v1 = vadd.f32 1.0, %v18257_v45  ;;  %v20993_v45 = vld [vmem:[#allocation12 + $0xcc] ss:$24 sps:$4 sm:$0xff]  }
 0xb1b   :  { %v18259_v49 = vpop.eup %18258 }
 0xb1c   :  { %18260 = vrcp.f32 %v9025_v1  ;;  %v9026_v6 = vadd.f32 1.0, %v18259_v49  ;;  %v21002_v1 = vld [vmem:[#allocation12 + $0x98] ss:$24 sps:$4 sm:$0xff]   ;;  %v21005_v49 = vld [vmem:[#allocation12 + $0x6c] ss:$24 sps:$4 sm:$0xff]  }
 0xb1d   :  { %18262 = vtanh.f32 %v9033_v7  ;;  %v20996_v7 = vld [vmem:[#allocation12 + $0xc8] ss:$24 sps:$4 sm:$0xff]  }
 0xb1e   :  { %18264 = vrcp.f32 %v9026_v6  ;;  %v21008_v6 = vld [vmem:[#allocation12 + $0x68] ss:$24 sps:$4 sm:$0xff]  }
 0xb1f   :  { %18266 = vtanh.f32 %v9034_v30  ;;  %v21011_v30 = vld [vmem:[#allocation12 + $0x3c] ss:$24 sps:$4 sm:$0xff]  }
 0xb29   :  { %v18261_v20 = vpop.eup %18260 }
 0xb2a   :  { %v18263_v46 = vpop.eup %18262  ;;  %v9037_v11 = vsub.f32 1.0, %v18261_v20  ;;  %v9041_v13 = vmul.f32 0.0, %v18261_v20  ;;  %v21014_v20 = vld [vmem:[#allocation12 + $0x38] ss:$24 sps:$4 sm:$0xff]  }
 0xb2b   :  { %v18265_v34 = vpop.eup %18264 }
 0xb2c   :  { %v9038_v47 = vsub.f32 1.0, %v18265_v34  ;;  %v9039_v58 = vmul.f32 %v18263_v46, %v9037_v11  ;;  %v18267_v44 = vpop.eup %18266  ;;  %v9042_v29 = vmul.f32 0.0, %v18265_v34  ;;  %v21017_v46 = vld [vmem:[#allocation12 + $0xc] ss:$24 sps:$4 sm:$0xff]   ;;  %v21020_v11 = vld [vmem:[#allocation12 + $0x8] ss:$24 sps:$4 sm:$0xff]  }
 0xb2d   :  { %v21023_v34 = vld [vmem:[#allocation12 + $0x2dc] ss:$24 sps:$4 sm:$0xff]  }
 0xb2e   :  { %v9040_v63 = vmul.f32 %v18267_v44, %v9038_v47  ;;  %v20872_v15 = vadd.f32 %v9041_v13, %v9039_v58  ;;  %v21026_v47 = vld [vmem:[#allocation12 + $0x2d8] ss:$24 sps:$4 sm:$0xff]   ;;  %v21030_v58 = vld [vmem:[#allocation12 + $0x2ac] ss:$24 sps:$4 sm:$0xff]   ;;  %v21032_v13 = vld [vmem:[#allocation12 + $0x2a8] ss:$24 sps:$4 sm:$0xff]  }
 0xb2f   :  { %v21036_v44 = vld [vmem:[#allocation12 + $0x27c] ss:$24 sps:$4 sm:$0xff]  }
 0xb30   :  { %v20874_v25 = vadd.f32 %v9042_v29, %v9040_v63  ;;  %9045 = vst [vmem:[#allocation2] sm:$0xff] %v20872_v15  ;;  %v20884_v17 = vpack.c.bf16 %v20872_v15, %v20872_v15  ;;  %v21038_v63 = vld [vmem:[#allocation12 + $0x278] ss:$24 sps:$4 sm:$0xff]   ;;  %v21042_v29 = vld [vmem:[#allocation12 + $0x24c] ss:$24 sps:$4 sm:$0xff]  }
 0xb32   :  { %9046 = vst [vmem:[#allocation2 + $0x78] sm:$0xff] %v20874_v25  ;;  %v9054_v38 = vpack.c.bf16 %v20874_v25, %v20874_v25 }
 0xb34   :  { %9695 = vmatprep.mubr.bf16.mxu1 %v9054_v38  ;;  %9736 = vmatprep.mubr.bf16.mxu0 %v9054_v38 }
 0xb35   :  { %9696 = vmatmul.mubr.bf16.vlgmr.msra.gmra.mxu1 %v20884_v17  ;;  %9737 = vmatmul.mubr.bf16.vlgmr.msra.gmra.mxu0 %v20884_v17 }
 0xb36   :  { %9746 = vmatpush1.bf16.msra.mxu1 %v20880_v12  ;;  %9777 = vmatprep.mubr.bf16.mxu1 %v9054_v38  ;;  %v21044_v38 = vld [vmem:[#allocation12 + $0x248] ss:$24 sps:$4 sm:$0xff]  }
 0xb37   :  { %9747 = vmatprep.subr.bf16.mxu1 %v20886_v43  ;;  %10447 = vmatpush1.bf16.msra.mxu0 %v20583_v9  ;;  %v20910_v9 = vld [vmem:[#allocation12 + $0xa4] ss:$24 sps:$4 sm:$0xff]  }
 0xb38   :  { %10448 = vmatprep.subr.bf16.mxu0 %v20586_v14  ;;  %v20915_v14 = vld [vmem:[#allocation12 + $0xa0] ss:$24 sps:$4 sm:$0xff]  }
 0xb3a   :  { %9748 = vmatpush1.bf16.msra.mxu1 %v20891_v5 }
 0xb3b   :  { %9749 = vmatprep.subr.bf16.mxu1 %v20894_v18  ;;  %10449 = vmatpush1.bf16.msra.mxu0 %v20589_v2  ;;  %v20918_v2 = vld [vmem:[#allocation12 + $0x74] ss:$24 sps:$4 sm:$0xff]  }
 0xb3c   :  { %10450 = vmatprep.subr.bf16.mxu0 %v20593_v40  ;;  %v20923_v40 = vld [vmem:[#allocation12 + $0x70] ss:$24 sps:$4 sm:$0xff]  }
 0xb3e   :  { %9750 = vmatpush1.bf16.msra.mxu1 %v20899_v57 }
 0xb3f   :  { %9751 = vmatprep.subr.bf16.mxu1 %v20902_v39  ;;  %10451 = vmatpush1.bf16.msra.mxu0 %v20597_v23  ;;  %v20926_v23 = vld [vmem:[#allocation12 + $0x44] ss:$24 sps:$4 sm:$0xff]  }
 0xb40   :  { %10452 = vmatprep.subr.bf16.mxu0 %v20601_v3  ;;  %v20931_v3 = vld [vmem:[#allocation12 + $0x40] ss:$24 sps:$4 sm:$0xff]  }
 0xb42   :  { %9752 = vmatpush1.bf16.msra.mxu1 %v20907_v62 }
 0xb43   :  { %9753 = vmatprep.subr.bf16.mxu1 %v20910_v9  ;;  %10453 = vmatpush1.bf16.msra.mxu0 %v20605_v53  ;;  %v22688_v53 = vld [vmem:[#allocation70_spill] sm:$0xff] }
 0xb44   :  { %10454 = vmatprep.subr.bf16.mxu0 %v20609_v52  ;;  %v22691_v52 = vld [vmem:[#allocation30_spill] sm:$0xff] }
 0xb46   :  { %9754 = vmatpush1.bf16.msra.mxu1 %v20915_v14 }
 0xb47   :  { %9755 = vmatprep.subr.bf16.mxu1 %v20918_v2  ;;  %10455 = vmatpush1.bf16.msra.mxu0 %v20613_v61  ;;  %v22692_v61 = vld [vmem:[#allocation72_spill] sm:$0xff] }
 0xb48   :  { %10456 = vmatprep.subr.bf16.mxu0 %v20641_v51  ;;  %v22693_v51 = vld [vmem:[#allocation73_spill] sm:$0xff] }
 0xb4a   :  { %9756 = vmatpush1.bf16.msra.mxu1 %v20923_v40 }
 0xb4b   :  { %9757 = vmatprep.subr.bf16.mxu1 %v20926_v23  ;;  %10457 = vmatpush1.bf16.msra.mxu0 %v20657_v55  ;;  %v22695_v55 = vld [vmem:[#allocation31_spill] sm:$0xff] }
 0xb4c   :  { %10458 = vmatprep.subr.bf16.mxu0 %v20667_v24  ;;  %v22696_v24 = vld [vmem:[#allocation74_spill] sm:$0xff] }
 0xb4e   :  { %9758 = vmatpush1.bf16.msra.mxu1 %v20931_v3 }
 0xb4f   :  { %9759 = vmatprep.subr.bf16.mxu1 %v20462_v22  ;;  %10459 = vmatpush1.bf16.msra.mxu0 %v20675_v60  ;;  %v22681_v22 = vld [vmem:[#allocation40_spill] sm:$0xff] }
 0xb50   :  { %10460 = vmatprep.subr.bf16.mxu0 %v20685_v8  ;;  %v22697_v60 = vld [vmem:[#allocation24_spill] sm:$0xff]  ;;  %22701 = vst [vmem:[#allocation40_spill] sm:$0xff] %v21042_v29 }
 0xb51   :  { %v22698_v8 = vld [vmem:[#allocation36_spill] sm:$0xff] }
 0xb52   :  { %9760 = vmatpush1.bf16.msra.mxu1 %v20470_v56  ;;  %v22682_v56 = vld [vmem:[#allocation75_spill] sm:$0xff] }
 0xb53   :  { %9761 = vmatprep.subr.bf16.mxu1 %v20475_v32  ;;  %10461 = vmatpush1.bf16.msra.mxu0 %v20693_v10  ;;  %v22683_v32 = vld [vmem:[#allocation76_spill] sm:$0xff]  ;;  %v22700_v10 = vld [vmem:[#allocation46_spill] sm:$0xff]  ;;  %22702 = vst [vmem:[#allocation75_spill] sm:$0xff] %v21044_v38 }
 0xb54   :  { %10462 = vmatprep.subr.bf16.mxu0 %v20703_v26  ;;  %v20978_v26 = vld [vmem:[#allocation12 + $0x15c] ss:$24 sps:$4 sm:$0xff]  }
 0xb56   :  { %9762 = vmatpush2.bf16.msra.mxu1 %v20482_v33  ;;  %v22684_v33 = vld [vmem:[#allocation34_spill] sm:$0xff] }
 0xb57   :  { %9763 = vmatprep.subr.bf16.mxu1 %v20487_v19  ;;  %10463 = vmatpush2.bf16.msra.mxu0 %v20711_v21  ;;  %v22685_v19 = vld [vmem:[#allocation35_spill] sm:$0xff]  ;;  %v22694_v21 = vld [vmem:[#allocation45_spill] sm:$0xff] }
 0xb58   :  { %10464 = vmatprep.subr.bf16.mxu0 %v20721_v0  ;;  %v22699_v0 = vld [vmem:[#allocation28_spill] sm:$0xff] }
 0xb5a   :  { %9764 = vmatpush2.bf16.msra.mxu1 %v20494_v28  ;;  %v22686_v28 = vld [vmem:[#allocation77_spill] sm:$0xff] }
 0xb5b   :  { %9765 = vmatprep.subr.bf16.mxu1 %v20499_v4  ;;  %10465 = vmatpush2.bf16.msra.mxu0 %v20729_v35  ;;  %v22687_v4 = vld [vmem:[#allocation78_spill] sm:$0xff]  ;;  %v20980_v35 = vld [vmem:[#allocation12 + $0x12c] ss:$24 sps:$4 sm:$0xff]  }
 0xb5c   :  { %10466 = vmatprep.subr.bf16.mxu0 %v20739_v27  ;;  %v20984_v27 = vld [vmem:[#allocation12 + $0x128] ss:$24 sps:$4 sm:$0xff]  }
 0xb5e   :  { %9766 = vmatpush2.bf16.msra.mxu1 %v20506_v37  ;;  %v22689_v37 = vld [vmem:[#allocation71_spill] sm:$0xff] }
 0xb5f   :  { %9767 = vmatprep.subr.bf16.mxu1 %v20511_v16  ;;  %10467 = vmatpush2.bf16.msra.mxu0 %v20747_v48  ;;  %v22690_v16 = vld [vmem:[#allocation44_spill] sm:$0xff]  ;;  %v20976_v48 = vld [vmem:[#allocation12 + $0x158] ss:$24 sps:$4 sm:$0xff]  }
 0xb60   :  { %10468 = vmatprep.subr.bf16.mxu0 %v22681_v22  ;;  %v21050_v22 = vld [vmem:[#allocation12 + $0x218] ss:$24 sps:$4 sm:$0xff]  }
 0xb61   :  { %22704 = vst [vmem:[#allocation34_spill] sm:$0xff] %v21050_v22 }
 0xb62   :  { %9768 = vmatpush2.bf16.msra.mxu1 %v22682_v56  ;;  %v21053_v56 = vld [vmem:[#allocation12 + $0x1ec] ss:$24 sps:$4 sm:$0xff]  }
 0xb63   :  { %9769 = vmatprep.subr.bf16.mxu1 %v22683_v32  ;;  %10469 = vmatpush2.bf16.msra.mxu0 %v22684_v33  ;;  %22705 = vst [vmem:[#allocation35_spill] sm:$0xff] %v21053_v56  ;;  %v21056_v32 = vld [vmem:[#allocation12 + $0x1e8] ss:$24 sps:$4 sm:$0xff]   ;;  %v21059_v33 = vld [vmem:[#allocation12 + $0x1bc] ss:$24 sps:$4 sm:$0xff]  }
 0xb64   :  { %10470 = vmatprep.subr.bf16.mxu0 %v22685_v19  ;;  %22706 = vst [vmem:[#allocation77_spill] sm:$0xff] %v21056_v32  ;;  %22707 = vst [vmem:[#allocation78_spill] sm:$0xff] %v21059_v33  ;;  %v21062_v19 = vld [vmem:[#allocation12 + $0x1b8] ss:$24 sps:$4 sm:$0xff]  }
 0xb65   :  { %22708 = vst [vmem:[#allocation70_spill] sm:$0xff] %v21062_v19 }
 0xb66   :  { %9770 = vmatpush2.bf16.msra.mxu1 %v22686_v28  ;;  %v21065_v28 = vld [vmem:[#allocation12 + $0x18c] ss:$24 sps:$4 sm:$0xff]  }
 0xb67   :  { %9771 = vmatprep.subr.bf16.mxu1 %v22687_v4  ;;  %10471 = vmatpush2.bf16.msra.mxu0 %v22688_v53  ;;  %22709 = vst [vmem:[#allocation71_spill] sm:$0xff] %v21065_v28  ;;  %v21068_v4 = vld [vmem:[#allocation12 + $0x188] ss:$24 sps:$4 sm:$0xff]  }
 0xb68   :  { %10472 = vmatprep.subr.bf16.mxu0 %v22689_v37  ;;  %22710 = vst [vmem:[#allocation44_spill] sm:$0xff] %v21068_v4 }
 0xb6a   :  { %9772 = vmatpush2.bf16.msra.mxu1 %v22690_v16 }
 0xb6b   :  { %9773 = vmatprep.subr.bf16.mxu1 %v22691_v52  ;;  %10473 = vmatpush2.bf16.msra.mxu0 %v22692_v61 }
 0xb6c   :  { %10474 = vmatprep.subr.bf16.mxu0 %v22693_v51 }
 0xb6e   :  { %9774 = vmatpush2.bf16.msra.mxu1 %v22694_v21 }
 0xb6f   :  { %9775 = vmatprep.subr.bf16.mxu1 %v22695_v55  ;;  %10475 = vmatpush2.bf16.msra.mxu0 %v22696_v24  ;;  %v9151_v24 = vld [vmem:[%s22222_s9] sm:$0x3f] }
 0xb70   :  { %10476 = vmatprep.subr.bf16.mxu0 %v22697_v60  ;;  %v22711_v60 = vld [vmem:[#allocation23_spill] sm:$0xff] }
 0xb72   :  { %9776 = vmatpush2.bf16.msra.mxu1 %v22698_v8  ;;  %v9156_v8 = vrot.slane %v9151_v24, %v22711_v60 }
 0xb73   :  { %10477 = vmatpush2.bf16.msra.mxu0 %v22699_v0  ;;  %10487 = vmatprep.subr.bf16.mxu1 %v20978_v26  ;;  %v9160_v0 = vrot.slane %v9151_v24, %v22602_v41 }
 0xb74   :  { %10528 = vmatprep.subr.bf16.mxu0 %v22700_v10 }
 0xb75   :  { %9778 = vmatmul.mubr.bf16.vlgmr.msra.gmra.mxu1 %v20884_v17  ;;  %v21046_v17 = vld [vmem:[#allocation12 + $0x21c] ss:$24 sps:$4 sm:$0xff]  }
 0xb76   :  { %10488 = vmatpush1.bf16.msra.mxu1 %v20976_v48  ;;  %22703 = vst [vmem:[#allocation76_spill] sm:$0xff] %v21046_v17 }
 0xb77   :  { %10489 = vmatprep.subr.bf16.mxu1 %v20980_v35 }
 0xb7a   :  { %10490 = vmatpush1.bf16.msra.mxu1 %v20984_v27 }
 0xb7b   :  { %10491 = vmatprep.subr.bf16.mxu1 %v20987_v42 }
 0xb7e   :  { %10492 = vmatpush1.bf16.msra.mxu1 %v20990_v54 }
 0xb7f   :  { %10493 = vmatprep.subr.bf16.mxu1 %v20993_v45 }
 0xb82   :  { %10494 = vmatpush1.bf16.msra.mxu1 %v20996_v7 }
 0xb83   :  { %10495 = vmatprep.subr.bf16.mxu1 %v20999_v59 }
 0xb86   :  { %10496 = vmatpush1.bf16.msra.mxu1 %v21002_v1 }
 0xb87   :  { %10497 = vmatprep.subr.bf16.mxu1 %v21005_v49 }
 0xb8a   :  { %10498 = vmatpush1.bf16.msra.mxu1 %v21008_v6 }
 0xb8b   :  { %10499 = vmatprep.subr.bf16.mxu1 %v21011_v30 }
 0xb8e   :  { %10500 = vmatpush1.bf16.msra.mxu1 %v21014_v20 }
 0xb8f   :  { %10501 = vmatprep.subr.bf16.mxu1 %v21017_v46 }
 0xb92   :  { %10502 = vmatpush1.bf16.msra.mxu1 %v21020_v11 }
 0xb93   :  { %10503 = vmatprep.subr.bf16.mxu1 %v21023_v34 }
 0xb96   :  { %10504 = vmatpush2.bf16.msra.mxu1 %v21026_v47 }
 0xb97   :  { %10505 = vmatprep.subr.bf16.mxu1 %v21030_v58 }
 0xb9a   :  { %10506 = vmatpush2.bf16.msra.mxu1 %v21032_v13 }
 0xb9b   :  { %10507 = vmatprep.subr.bf16.mxu1 %v21036_v44 }
 0xb9e   :  { %10508 = vmatpush2.bf16.msra.mxu1 %v21038_v63 }
 0xb9f   :  { %10509 = vmatprep.subr.bf16.mxu1 %v21042_v29  ;;  %v22716_v29 = vld [vmem:[#allocation55_spill] sm:$0xff] }
 0xba2   :  { %10510 = vmatpush2.bf16.msra.mxu1 %v21044_v38  ;;  %v22715_v38 = vld [vmem:[#allocation56_spill] sm:$0xff] }
 0xba3   :  { %10511 = vmatprep.subr.bf16.mxu1 %v21046_v17 }
 0xba6   :  { %10512 = vmatpush2.bf16.msra.mxu1 %v21050_v22 }
 0xba7   :  { %10513 = vmatprep.subr.bf16.mxu1 %v21053_v56 }
 0xbaa   :  { %10514 = vmatpush2.bf16.msra.mxu1 %v21056_v32 }
 0xbab   :  { %10515 = vmatprep.subr.bf16.mxu1 %v21059_v33  ;;  %v22713_v33 = vld [vmem:[#allocation41_spill] sm:$0xff] }
 0xbae   :  { %10516 = vmatpush2.bf16.msra.mxu1 %v21062_v19  ;;  %v22712_v19 = vld [vmem:[#allocation39_spill] sm:$0xff] }
 0xbaf   :  { %10517 = vmatprep.subr.bf16.mxu1 %v21065_v28 }
 0xbb2   :  { %10518 = vmatpush2.bf16.msra.mxu1 %v21068_v4 }
 0xbf5   :  { %v9697_v53 = vpop.f32.mrf.mxu1  ;;  %v9738_v37 = vpop.f32.mrf.mxu0 }
 0xbf6   :  { %v9698_v10 = vadd.f32 %v9697_v53, %v9156_v8 }
 0xbf7   :  { %v9699_v16 = vpop.f32.mrf.mxu1  ;;  %v9740_v52 = vpop.f32.mrf.mxu0 }
 0xbf8   :  { %v9700_v28 = vadd.f32 %v9699_v16, %v9160_v0  ;;  %v9786_v4 = vadd.f32 %v9698_v10, %v22712_v19 }
 0xbf9   :  { %v9701_v61 = vpop.f32.mrf.mxu1  ;;  %v9742_v51 = vpop.f32.mrf.mxu0 }
 0xbfa   :  { %v9787_v32 = vadd.f32 %v9700_v28, %v22713_v33  ;;  %v15886_v56 = vmul.f32 -1.442695, %v9786_v4  ;;  %v9164_v61 = vrot.slane %v9151_v24, %v18969_v50 }
 0xbfb   :  { %v9702_v21 = vpop.f32.mrf.mxu1  ;;  %v9743_v55 = vpop.f32.mrf.mxu0 }
 0xbfc   :  { %v15887_v51 = vmul.f32 -1.442695, %v9787_v32  ;;  %18268 = vpow2.f32 %v15886_v56  ;;  %v22714_v21 = vld [vmem:[#allocation22_spill] sm:$0xff]  ;;  %v9739_v22 = vadd.f32 %v9738_v37, %v9164_v61  ;;  %v9172_v32 = vrot.slane %v9151_v24, %v19077_v36 }
 0xbfd   :  { %v9168_v55 = vrot.slane %v9151_v24, %v22714_v21 }
 0xbfe   :  { %18270 = vpow2.f32 %v15887_v51  ;;  %v9800_v60 = vadd.f32 %v9739_v22, %v22715_v38  ;;  %v22717_v51 = vld [vmem:[#allocation29_spill] sm:$0xff] }
 0xbff   :  { %v9741_v17 = vadd.f32 %v9740_v52, %v9168_v55  ;;  %v9176_v52 = vrot.slane %v9151_v24, %v19074_v31 }
 0xc00   :  { %v15888_v53 = vmul.f32 -1.442695, %v9800_v60 }
 0xc01   :  { %v9801_v41 = vadd.f32 %v9741_v17, %v22716_v29 }
 0xc02   :  { %18272 = vpow2.f32 %v15888_v53 }
 0xc03   :  { %v15889_v16 = vmul.f32 -1.442695, %v9801_v41 }
 0xc05   :  { %18274 = vpow2.f32 %v15889_v16 }
 0xc09   :  { %v18269_v8 = vpop.eup %18268 }
 0xc0a   :  { %v9794_v33 = vadd.f32 1.0, %v18269_v8  ;;  %v22718_v8 = vld [vmem:[#allocation84_spill] sm:$0xff] }
 0xc0b   :  { %v18271_v19 = vpop.eup %18270 }
 0xc0c   :  { %v9795_v28 = vadd.f32 1.0, %v18271_v19  ;;  %18276 = vrcp.f32 %v9794_v33 }
 0xc0e   :  { %18278 = vrcp.f32 %v9795_v28 }
 0xc0f   :  { %v18273_v56 = vpop.eup %18272 }
 0xc10   :  { %v9808_v37 = vadd.f32 1.0, %v18273_v56 }
 0xc12   :  { %v18275_v4 = vpop.eup %18274  ;;  %18280 = vrcp.f32 %v9808_v37 }
 0xc13   :  { %v9809_v22 = vadd.f32 1.0, %v18275_v4 }
 0xc15   :  { %18282 = vrcp.f32 %v9809_v22 }
 0xc19   :  { %v18277_v17 = vpop.eup %18276 }
 0xc1b   :  { %v18279_v10 = vpop.eup %18278 }
 0xc1f   :  { %v18281_v24 = vpop.eup %18280 }
 0xc20   :  { %v9820_v28 = vsub.f32 1.0, %v18281_v24  ;;  %v9824_v37 = vmul.f32 %v18281_v24, %v20872_v15  ;;  %v21111_v15 = vld [vmem:[#allocation12 + $0x14] ss:$24 sps:$4 sm:$0xff]   ;;  %v21249_v24 = vld [vmem:[#allocation12 + $0x2a4] ss:$24 sps:$4 sm:$0xff]  }
 0xc22   :  { %v18283_v33 = vpop.eup %18282 }
 0xc23   :  { %v9825_v22 = vmul.f32 %v18283_v33, %v20874_v25  ;;  %v21114_v25 = vld [vmem:[#allocation12 + $0x10] ss:$24 sps:$4 sm:$0xff]  }
 0xc35   :  { %v9779_v38 = vpop.f32.mrf.mxu1 }
 0xc36   :  { %v9780_v29 = vadd.f32 %v9779_v38, %v9172_v32  ;;  %v9821_v32 = vsub.f32 1.0, %v18283_v33  ;;  %v21251_v33 = vld [vmem:[#allocation12 + $0x2a0] ss:$24 sps:$4 sm:$0xff]  }
 0xc37   :  { %v9781_v41 = vpop.f32.mrf.mxu1 }
 0xc38   :  { %v9814_v60 = vmul.f32 %v18277_v17, %v9780_v29  ;;  %v9782_v0 = vadd.f32 %v9781_v41, %v9176_v52 }
 0xc39   :  { %v9783_v61 = vpop.f32.mrf.mxu1 }
 0xc3a   :  { %v9816_v55 = vadd.f32 %v9814_v60, %v22717_v51  ;;  %v9815_v53 = vmul.f32 %v18279_v10, %v9782_v0  ;;  %v21156_v0 = vld [vmem:[#allocation12 + $0x1c0] ss:$24 sps:$4 sm:$0xff]   ;;  %v21159_v10 = vld [vmem:[#allocation12 + $0x194] ss:$24 sps:$4 sm:$0xff]   ;;  %v21162_v61 = vld [vmem:[#allocation12 + $0x190] ss:$24 sps:$4 sm:$0xff]  }
 0xc3b   :  { %v9784_v16 = vpop.f32.mrf.mxu1  ;;  %22723 = vst [vmem:[#allocation31_spill] sm:$0xff] %v21156_v0  ;;  %22724 = vst [vmem:[#allocation74_spill] sm:$0xff] %v21159_v10  ;;  %v21238_v51 = vld [vmem:[#allocation12 + $0x2d4] ss:$24 sps:$4 sm:$0xff]  }
 0xc3c   :  { %18284 = vtanh.f32 %v9816_v55  ;;  %v9817_v19 = vadd.f32 %v9815_v53, %v22718_v8  ;;  %22725 = vst [vmem:[#allocation24_spill] sm:$0xff] %v21162_v61  ;;  %v22732_v55 = vld [vmem:[#allocation78_spill] sm:$0xff]  ;;  %v21242_v53 = vld [vmem:[#allocation12 + $0x2d0] ss:$24 sps:$4 sm:$0xff]   ;;  %v22734_v8 = vld [vmem:[#allocation71_spill] sm:$0xff] }
 0xc3d   :  { %v22733_v16 = vld [vmem:[#allocation70_spill] sm:$0xff] }
 0xc3e   :  { %18286 = vtanh.f32 %v9817_v19  ;;  %v22735_v19 = vld [vmem:[#allocation44_spill] sm:$0xff] }
 0xc49   :  { %v18285_v56 = vpop.eup %18284 }
 0xc4a   :  { %v9822_v4 = vmul.f32 %v18285_v56, %v9820_v28  ;;  %v21255_v28 = vld [vmem:[#allocation12 + $0x274] ss:$24 sps:$4 sm:$0xff]   ;;  %v21257_v56 = vld [vmem:[#allocation12 + $0x270] ss:$24 sps:$4 sm:$0xff]  }
 0xc4b   :  { %v18287_v52 = vpop.eup %18286 }
 0xc4c   :  { %v9823_v38 = vmul.f32 %v18287_v52, %v9821_v32  ;;  %v21089_v29 = vadd.f32 %v9824_v37, %v9822_v4  ;;  %v21261_v32 = vld [vmem:[#allocation12 + $0x244] ss:$24 sps:$4 sm:$0xff]   ;;  %v21263_v4 = vld [vmem:[#allocation12 + $0x240] ss:$24 sps:$4 sm:$0xff]   ;;  %v21266_v37 = vld [vmem:[#allocation12 + $0x214] ss:$24 sps:$4 sm:$0xff]  }
 0xc4d   :  { %v21269_v52 = vld [vmem:[#allocation12 + $0x210] ss:$24 sps:$4 sm:$0xff]  }
 0xc4e   :  { %v21091_v17 = vadd.f32 %v9825_v22, %v9823_v38  ;;  %9828 = vst [vmem:[#allocation2 + $0x10] sm:$0xff] %v21089_v29  ;;  %v9836_v60 = vpack.c.bf16 %v21089_v29, %v21089_v29  ;;  %22736 = vst [vmem:[#allocation36_spill] sm:$0xff] %v21269_v52  ;;  %v21272_v38 = vld [vmem:[#allocation12 + $0x1e4] ss:$24 sps:$4 sm:$0xff]   ;;  %v21275_v22 = vld [vmem:[#allocation12 + $0x1e0] ss:$24 sps:$4 sm:$0xff]  }
 0xc4f   :  { %22737 = vst [vmem:[#allocation28_spill] sm:$0xff] %v21272_v38  ;;  %22738 = vst [vmem:[#allocation46_spill] sm:$0xff] %v21275_v22 }
 0xc50   :  { %9829 = vst [vmem:[#allocation2 + $0x68] sm:$0xff] %v21091_v17  ;;  %v9837_v41 = vpack.c.bf16 %v21091_v17, %v21091_v17 }
 0xc52   :  { %10478 = vmatprep.mubr.bf16.mxu0 %v9837_v41  ;;  %10519 = vmatprep.mubr.bf16.mxu1 %v9837_v41 }
 0xc53   :  { %10479 = vmatmul.mubr.bf16.vlgmr.msra.gmra.mxu0 %v9836_v60  ;;  %10520 = vmatmul.mubr.bf16.vlgmr.msra.gmra.mxu1 %v9836_v60 }
 0xc54   :  { %10529 = vmatpush1.bf16.msra.mxu0 %v20880_v12  ;;  %10560 = vmatprep.mubr.bf16.mxu0 %v9837_v41  ;;  %v21117_v12 = vld [vmem:[#allocation12 + $0x2e4] ss:$24 sps:$4 sm:$0xff]   ;;  %v21278_v41 = vld [vmem:[#allocation12 + $0x1b4] ss:$24 sps:$4 sm:$0xff]  }
 0xc55   :  { %10530 = vmatprep.subr.bf16.mxu0 %v20886_v43  ;;  %v21120_v43 = vld [vmem:[#allocation12 + $0x2e0] ss:$24 sps:$4 sm:$0xff]   ;;  %22739 = vst [vmem:[#allocation39_spill] sm:$0xff] %v21278_v41 }
 0xc58   :  { %10531 = vmatpush1.bf16.msra.mxu0 %v20891_v5  ;;  %v21123_v5 = vld [vmem:[#allocation12 + $0x2b4] ss:$24 sps:$4 sm:$0xff]  }
 0xc59   :  { %10532 = vmatprep.subr.bf16.mxu0 %v20894_v18  ;;  %v21126_v18 = vld [vmem:[#allocation12 + $0x2b0] ss:$24 sps:$4 sm:$0xff]  }
 0xc5c   :  { %10533 = vmatpush1.bf16.msra.mxu0 %v20899_v57  ;;  %v21129_v57 = vld [vmem:[#allocation12 + $0x284] ss:$24 sps:$4 sm:$0xff]  }
 0xc5d   :  { %10534 = vmatprep.subr.bf16.mxu0 %v20902_v39  ;;  %v21132_v39 = vld [vmem:[#allocation12 + $0x280] ss:$24 sps:$4 sm:$0xff]  }
 0xc60   :  { %10535 = vmatpush1.bf16.msra.mxu0 %v20907_v62  ;;  %v21135_v62 = vld [vmem:[#allocation12 + $0x254] ss:$24 sps:$4 sm:$0xff]  }
 0xc61   :  { %10536 = vmatprep.subr.bf16.mxu0 %v20910_v9  ;;  %v21138_v9 = vld [vmem:[#allocation12 + $0x250] ss:$24 sps:$4 sm:$0xff]  }
 0xc64   :  { %10537 = vmatpush1.bf16.msra.mxu0 %v20915_v14  ;;  %v21141_v14 = vld [vmem:[#allocation12 + $0x224] ss:$24 sps:$4 sm:$0xff]  }
 0xc65   :  { %10538 = vmatprep.subr.bf16.mxu0 %v20918_v2  ;;  %v21144_v2 = vld [vmem:[#allocation12 + $0x220] ss:$24 sps:$4 sm:$0xff]  }
 0xc66   :  { %22719 = vst [vmem:[#allocation30_spill] sm:$0xff] %v21144_v2 }
 0xc68   :  { %10539 = vmatpush1.bf16.msra.mxu0 %v20923_v40  ;;  %v21147_v40 = vld [vmem:[#allocation12 + $0x1f4] ss:$24 sps:$4 sm:$0xff]  }
 0xc69   :  { %10540 = vmatprep.subr.bf16.mxu0 %v20926_v23  ;;  %22720 = vst [vmem:[#allocation72_spill] sm:$0xff] %v21147_v40  ;;  %v21150_v23 = vld [vmem:[#allocation12 + $0x1f0] ss:$24 sps:$4 sm:$0xff]  }
 0xc6a   :  { %22721 = vst [vmem:[#allocation73_spill] sm:$0xff] %v21150_v23 }
 0xc6c   :  { %10541 = vmatpush1.bf16.msra.mxu0 %v20931_v3  ;;  %v21153_v3 = vld [vmem:[#allocation12 + $0x1c4] ss:$24 sps:$4 sm:$0xff]  }
 0xc6d   :  { %10542 = vmatprep.subr.bf16.mxu0 %v21111_v15  ;;  %22722 = vst [vmem:[#allocation45_spill] sm:$0xff] %v21153_v3 }
 0xc70   :  { %10543 = vmatpush1.bf16.msra.mxu0 %v21114_v25 }
 0xc71   :  { %10544 = vmatprep.subr.bf16.mxu0 %v21117_v12 }
 0xc74   :  { %10545 = vmatpush2.bf16.msra.mxu0 %v21120_v43 }
 0xc75   :  { %10546 = vmatprep.subr.bf16.mxu0 %v21123_v5 }
 0xc78   :  { %10547 = vmatpush2.bf16.msra.mxu0 %v21126_v18 }
 0xc79   :  { %10548 = vmatprep.subr.bf16.mxu0 %v21129_v57 }
 0xc7c   :  { %10549 = vmatpush2.bf16.msra.mxu0 %v21132_v39 }
 0xc7d   :  { %10550 = vmatprep.subr.bf16.mxu0 %v21135_v62 }
 0xc80   :  { %10551 = vmatpush2.bf16.msra.mxu0 %v21138_v9 }
 0xc81   :  { %10552 = vmatprep.subr.bf16.mxu0 %v21141_v14 }
 0xc84   :  { %10553 = vmatpush2.bf16.msra.mxu0 %v21144_v2  ;;  %v22749_v2 = vld [vmem:[#allocation54_spill] sm:$0xff] }
 0xc85   :  { %10554 = vmatprep.subr.bf16.mxu0 %v21147_v40  ;;  %v22748_v40 = vld [vmem:[#allocation64_spill] sm:$0xff] }
 0xc88   :  { %10555 = vmatpush2.bf16.msra.mxu0 %v21150_v23 }
 0xc89   :  { %10556 = vmatprep.subr.bf16.mxu0 %v21153_v3  ;;  %v22747_v3 = vld [vmem:[#allocation59_spill] sm:$0xff] }
 0xc8c   :  { %10557 = vmatpush2.bf16.msra.mxu0 %v21156_v0 }
 0xc8d   :  { %10558 = vmatprep.subr.bf16.mxu0 %v21159_v10  ;;  %v22745_v10 = vld [vmem:[#allocation21_spill] sm:$0xff] }
 0xc90   :  { %10559 = vmatpush2.bf16.msra.mxu0 %v21162_v61  ;;  %v9934_v61 = vld [vmem:[%s22222_s9] sm:$0x3f] }
 0xc91   :  { %11270 = vmatprep.subr.bf16.mxu0 %v20978_v26  ;;  %v17733_v26 = vld [vmem:[#allocation12 + $0x154] ss:$24 sps:$4 sm:$0xff]  }
 0xc92   :  { %11229 = vmatprep.subr.bf16.mxu1 %v17733_v26 }
 0xc93   :  { %10561 = vmatmul.mubr.bf16.vlgmr.msra.gmra.mxu0 %v9836_v60  ;;  %v21281_v60 = vld [vmem:[#allocation12 + $0x1b0] ss:$24 sps:$4 sm:$0xff]  }
 0xc94   :  { %11271 = vmatpush1.bf16.msra.mxu0 %v20976_v48  ;;  %v21180_v48 = vld [vmem:[#allocation12 + $0x150] ss:$24 sps:$4 sm:$0xff]   ;;  %22740 = vst [vmem:[#allocation41_spill] sm:$0xff] %v21281_v60 }
 0xc95   :  { %11272 = vmatprep.subr.bf16.mxu0 %v20980_v35  ;;  %v21183_v35 = vld [vmem:[#allocation12 + $0x124] ss:$24 sps:$4 sm:$0xff]   ;;  %11230 = vmatpush1.bf16.msra.mxu1 %v21180_v48 }
 0xc96   :  { %11231 = vmatprep.subr.bf16.mxu1 %v21183_v35 }
 0xc98   :  { %11273 = vmatpush1.bf16.msra.mxu0 %v20984_v27  ;;  %v21186_v27 = vld [vmem:[#allocation12 + $0x120] ss:$24 sps:$4 sm:$0xff]  }
 0xc99   :  { %11274 = vmatprep.subr.bf16.mxu0 %v20987_v42  ;;  %v21190_v42 = vld [vmem:[#allocation12 + $0xf4] ss:$24 sps:$4 sm:$0xff]   ;;  %11232 = vmatpush1.bf16.msra.mxu1 %v21186_v27 }
 0xc9a   :  { %11233 = vmatprep.subr.bf16.mxu1 %v21190_v42 }
 0xc9c   :  { %11275 = vmatpush1.bf16.msra.mxu0 %v20990_v54  ;;  %v21194_v54 = vld [vmem:[#allocation12 + $0xf0] ss:$24 sps:$4 sm:$0xff]  }
 0xc9d   :  { %11276 = vmatprep.subr.bf16.mxu0 %v20993_v45  ;;  %v21198_v45 = vld [vmem:[#allocation12 + $0xc4] ss:$24 sps:$4 sm:$0xff]   ;;  %11234 = vmatpush1.bf16.msra.mxu1 %v21194_v54 }
 0xc9e   :  { %11235 = vmatprep.subr.bf16.mxu1 %v21198_v45 }
 0xca0   :  { %11277 = vmatpush1.bf16.msra.mxu0 %v20996_v7  ;;  %v21202_v7 = vld [vmem:[#allocation12 + $0xc0] ss:$24 sps:$4 sm:$0xff]  }
 0xca1   :  { %11278 = vmatprep.subr.bf16.mxu0 %v20999_v59  ;;  %v21206_v59 = vld [vmem:[#allocation12 + $0x94] ss:$24 sps:$4 sm:$0xff]   ;;  %11236 = vmatpush1.bf16.msra.mxu1 %v21202_v7 }
 0xca2   :  { %11237 = vmatprep.subr.bf16.mxu1 %v21206_v59 }
 0xca4   :  { %11279 = vmatpush1.bf16.msra.mxu0 %v21002_v1  ;;  %v21210_v1 = vld [vmem:[#allocation12 + $0x90] ss:$24 sps:$4 sm:$0xff]  }
 0xca5   :  { %11280 = vmatprep.subr.bf16.mxu0 %v21005_v49  ;;  %v21214_v49 = vld [vmem:[#allocation12 + $0x64] ss:$24 sps:$4 sm:$0xff]   ;;  %11238 = vmatpush1.bf16.msra.mxu1 %v21210_v1 }
 0xca6   :  { %11239 = vmatprep.subr.bf16.mxu1 %v21214_v49 }
 0xca8   :  { %11281 = vmatpush1.bf16.msra.mxu0 %v21008_v6  ;;  %v22726_v6 = vld [vmem:[#allocation40_spill] sm:$0xff] }
 0xca9   :  { %11282 = vmatprep.subr.bf16.mxu0 %v21011_v30  ;;  %v21218_v30 = vld [vmem:[#allocation12 + $0x60] ss:$24 sps:$4 sm:$0xff]  }
 0xcaa   :  { %11240 = vmatpush1.bf16.msra.mxu1 %v21218_v30 }
 0xcac   :  { %11283 = vmatpush1.bf16.msra.mxu0 %v21014_v20  ;;  %v22727_v20 = vld [vmem:[#allocation75_spill] sm:$0xff] }
 0xcad   :  { %11284 = vmatprep.subr.bf16.mxu0 %v21017_v46  ;;  %v21222_v46 = vld [vmem:[#allocation12 + $0x34] ss:$24 sps:$4 sm:$0xff]  }
 0xcae   :  { %11241 = vmatprep.subr.bf16.mxu1 %v21222_v46 }
 0xcb0   :  { %11285 = vmatpush1.bf16.msra.mxu0 %v21020_v11  ;;  %v22728_v11 = vld [vmem:[#allocation76_spill] sm:$0xff] }
 0xcb1   :  { %11286 = vmatprep.subr.bf16.mxu0 %v21023_v34  ;;  %v21226_v34 = vld [vmem:[#allocation12 + $0x30] ss:$24 sps:$4 sm:$0xff]  }
 0xcb2   :  { %11242 = vmatpush1.bf16.msra.mxu1 %v21226_v34 }
 0xcb4   :  { %11287 = vmatpush2.bf16.msra.mxu0 %v21026_v47  ;;  %v22729_v47 = vld [vmem:[#allocation34_spill] sm:$0xff] }
 0xcb5   :  { %11288 = vmatprep.subr.bf16.mxu0 %v21030_v58  ;;  %v21230_v58 = vld [vmem:[#allocation12 + $0x4] ss:$24 sps:$4 sm:$0xff]  }
 0xcb6   :  { %11243 = vmatprep.subr.bf16.mxu1 %v21230_v58 }
 0xcb8   :  { %11289 = vmatpush2.bf16.msra.mxu0 %v21032_v13  ;;  %v22730_v13 = vld [vmem:[#allocation35_spill] sm:$0xff] }
 0xcb9   :  { %11290 = vmatprep.subr.bf16.mxu0 %v21036_v44  ;;  %v21234_v44 = vld [vmem:[#allocation12] ss:$24 sps:$4 sm:$0xff]  }
 0xcba   :  { %11244 = vmatpush1.bf16.msra.mxu1 %v21234_v44 }
 0xcbb   :  { %11245 = vmatprep.subr.bf16.mxu1 %v21238_v51 }
 0xcbc   :  { %11291 = vmatpush2.bf16.msra.mxu0 %v21038_v63  ;;  %v22731_v63 = vld [vmem:[#allocation77_spill] sm:$0xff] }
 0xcbd   :  { %11292 = vmatprep.subr.bf16.mxu0 %v22726_v6  ;;  %v21287_v6 = vld [vmem:[#allocation12 + $0x180] ss:$24 sps:$4 sm:$0xff]  }
 0xcbe   :  { %11246 = vmatpush2.bf16.msra.mxu1 %v21242_v53  ;;  %22742 = vst [vmem:[#allocation56_spill] sm:$0xff] %v21287_v6 }
 0xcbf   :  { %11247 = vmatprep.subr.bf16.mxu1 %v21249_v24 }
 0xcc0   :  { %11293 = vmatpush2.bf16.msra.mxu0 %v22727_v20  ;;  %v21291_v20 = vld [vmem:[#allocation12 + $0x164] ss:$24 sps:$4 sm:$0xff]  }
 0xcc1   :  { %11294 = vmatprep.subr.bf16.mxu0 %v22728_v11  ;;  %22743 = vst [vmem:[#allocation55_spill] sm:$0xff] %v21291_v20 }
 0xcc2   :  { %11248 = vmatpush2.bf16.msra.mxu1 %v21251_v33 }
 0xcc3   :  { %11249 = vmatprep.subr.bf16.mxu1 %v21255_v28 }
 0xcc4   :  { %11295 = vmatpush2.bf16.msra.mxu0 %v22729_v47 }
 0xcc5   :  { %11296 = vmatprep.subr.bf16.mxu0 %v22730_v13 }
 0xcc6   :  { %11250 = vmatpush2.bf16.msra.mxu1 %v21257_v56 }
 0xcc7   :  { %11251 = vmatprep.subr.bf16.mxu1 %v21261_v32 }
 0xcc8   :  { %11297 = vmatpush2.bf16.msra.mxu0 %v22731_v63 }
 0xcc9   :  { %11298 = vmatprep.subr.bf16.mxu0 %v22732_v55 }
 0xcca   :  { %11252 = vmatpush2.bf16.msra.mxu1 %v21263_v4 }
 0xccb   :  { %11253 = vmatprep.subr.bf16.mxu1 %v21266_v37 }
 0xccc   :  { %11299 = vmatpush2.bf16.msra.mxu0 %v22733_v16 }
 0xccd   :  { %11300 = vmatprep.subr.bf16.mxu0 %v22734_v8 }
 0xcce   :  { %11254 = vmatpush2.bf16.msra.mxu1 %v21269_v52 }
 0xccf   :  { %11255 = vmatprep.subr.bf16.mxu1 %v21272_v38 }
 0xcd0   :  { %11301 = vmatpush2.bf16.msra.mxu0 %v22735_v19 }
 0xcd1   :  { %12012 = vmatprep.subr.bf16.mxu0 %v17733_v26  ;;  %v21284_v26 = vld [vmem:[#allocation12 + $0x184] ss:$24 sps:$4 sm:$0xff]  }
 0xcd2   :  { %11256 = vmatpush2.bf16.msra.mxu1 %v21275_v22  ;;  %22741 = vst [vmem:[#allocation22_spill] sm:$0xff] %v21284_v26  ;;  %v22746_v22 = vld [vmem:[#allocation53_spill] sm:$0xff] }
 0xcd3   :  { %11257 = vmatprep.subr.bf16.mxu1 %v21278_v41 }
 0xcd6   :  { %11258 = vmatpush2.bf16.msra.mxu1 %v21281_v60  ;;  %v22744_v60 = vld [vmem:[#allocation23_spill] sm:$0xff] }
 0xcd7   :  { %11259 = vmatprep.subr.bf16.mxu1 %v21284_v26  ;;  %v9939_v26 = vrot.slane %v9934_v61, %v22744_v60 }
 0xcda   :  { %11260 = vmatpush2.bf16.msra.mxu1 %v21287_v6  ;;  %v9943_v6 = vrot.slane %v9934_v61, %v22745_v10 }
 0xcdb   :  { %11311 = vmatprep.subr.bf16.mxu1 %v21291_v20 }
 0xd13   :  { %v10480_v11 = vpop.f32.mrf.mxu0  ;;  %v10521_v47 = vpop.f32.mrf.mxu1 }
 0xd14   :  { %v10481_v0 = vadd.f32 %v10480_v11, %v9939_v26 }
 0xd15   :  { %v10482_v13 = vpop.f32.mrf.mxu0  ;;  %v10523_v63 = vpop.f32.mrf.mxu1 }
 0xd16   :  { %v10483_v41 = vadd.f32 %v10482_v13, %v9943_v6  ;;  %v10569_v20 = vadd.f32 %v10481_v0, %v22746_v22 }
 0xd17   :  { %v10484_v55 = vpop.f32.mrf.mxu0  ;;  %v10525_v16 = vpop.f32.mrf.mxu1 }
 0xd18   :  { %v10570_v23 = vadd.f32 %v10483_v41, %v22747_v3  ;;  %v15986_v38 = vmul.f32 -1.442695, %v10569_v20  ;;  %v9947_v55 = vrot.slane %v9934_v61, %v18969_v50 }
 0xd19   :  { %v10485_v8 = vpop.f32.mrf.mxu0  ;;  %v10526_v19 = vpop.f32.mrf.mxu1 }
 0xd1a   :  { %v15987_v16 = vmul.f32 -1.442695, %v10570_v23  ;;  %18288 = vpow2.f32 %v15986_v38  ;;  %v9951_v8 = vrot.slane %v9934_v61, %v22714_v21  ;;  %v10522_v19 = vadd.f32 %v10521_v47, %v9947_v55 }
 0xd1b   :  { %v9955_v38 = vrot.slane %v9934_v61, %v19077_v36  ;;  %v9959_v47 = vrot.slane %v9934_v61, %v19074_v31 }
 0xd1c   :  { %18290 = vpow2.f32 %v15987_v16  ;;  %v10524_v52 = vadd.f32 %v10523_v63, %v9951_v8  ;;  %v10583_v60 = vadd.f32 %v10522_v19, %v22748_v40  ;;  %v22750_v8 = vld [vmem:[#allocation50_spill] sm:$0xff] }
 0xd1e   :  { %v10584_v10 = vadd.f32 %v10524_v52, %v22749_v2  ;;  %v15988_v26 = vmul.f32 -1.442695, %v10583_v60 }
 0xd20   :  { %v15989_v6 = vmul.f32 -1.442695, %v10584_v10  ;;  %18292 = vpow2.f32 %v15988_v26 }
 0xd22   :  { %18294 = vpow2.f32 %v15989_v6 }
 0xd27   :  { %v18289_v11 = vpop.eup %18288 }
 0xd28   :  { %v10577_v3 = vadd.f32 1.0, %v18289_v11  ;;  %v22751_v11 = vld [vmem:[#allocation62_spill] sm:$0xff] }
 0xd29   :  { %v18291_v0 = vpop.eup %18290 }
 0xd2a   :  { %v10578_v22 = vadd.f32 1.0, %v18291_v0  ;;  %18296 = vrcp.f32 %v10577_v3 }
 0xd2c   :  { %18298 = vrcp.f32 %v10578_v22 }
 0xd2d   :  { %v18293_v23 = vpop.eup %18292 }
 0xd2e   :  { %v10591_v20 = vadd.f32 1.0, %v18293_v23 }
 0xd2f   :  { %v18295_v41 = vpop.eup %18294 }
 0xd30   :  { %v10592_v13 = vadd.f32 1.0, %v18295_v41  ;;  %18300 = vrcp.f32 %v10591_v20 }
 0xd32   :  { %18302 = vrcp.f32 %v10592_v13 }
 0xd37   :  { %v18297_v52 = vpop.eup %18296 }
 0xd39   :  { %v18299_v55 = vpop.eup %18298 }
 0xd3d   :  { %v18301_v61 = vpop.eup %18300 }
 0xd3e   :  { %v10603_v22 = vsub.f32 1.0, %v18301_v61  ;;  %v10607_v20 = vmul.f32 %v18301_v61, %v21089_v29  ;;  %v21468_v61 = vld [vmem:[#allocation12 + $0x2d8] ss:$24 sps:$4 sm:$0xff]  }
 0xd3f   :  { %v18303_v3 = vpop.eup %18302 }
 0xd40   :  { %v10608_v13 = vmul.f32 %v18303_v3, %v21091_v17  ;;  %v21327_v17 = vld [vmem:[#allocation12 + $0x134] ss:$24 sps:$4 sm:$0xff]  }
 0xd53   :  { %v10562_v40 = vpop.f32.mrf.mxu0 }
 0xd54   :  { %v10563_v2 = vadd.f32 %v10562_v40, %v9955_v38  ;;  %v10604_v38 = vsub.f32 1.0, %v18303_v3  ;;  %v21472_v3 = vld [vmem:[#allocation12 + $0x2ac] ss:$24 sps:$4 sm:$0xff]  }
 0xd55   :  { %v10564_v10 = vpop.f32.mrf.mxu0 }
 0xd56   :  { %v10597_v60 = vmul.f32 %v18297_v52, %v10563_v2  ;;  %v10565_v63 = vadd.f32 %v10564_v10, %v9959_v47 }
 0xd57   :  { %v10566_v16 = vpop.f32.mrf.mxu0 }
 0xd58   :  { %v10599_v19 = vadd.f32 %v10597_v60, %v22750_v8  ;;  %v10598_v26 = vmul.f32 %v18299_v55, %v10565_v63  ;;  %v21319_v60 = vld [vmem:[#allocation12 + $0x160] ss:$24 sps:$4 sm:$0xff]   ;;  %v21332_v63 = vld [vmem:[#allocation12 + $0x130] ss:$24 sps:$4 sm:$0xff]   ;;  %v21335_v16 = vld [vmem:[#allocation12 + $0x104] ss:$24 sps:$4 sm:$0xff]  }
 0xd59   :  { %v10567_v6 = vpop.f32.mrf.mxu0  ;;  %v14625_v55 = vld [vmem:[#allocation2 + $0x78] sm:$0xff] }
 0xd5a   :  { %18304 = vtanh.f32 %v10599_v19  ;;  %v10600_v0 = vadd.f32 %v10598_v26, %v22751_v11  ;;  %v21341_v8 = vld [vmem:[#allocation12 + $0x100] ss:$24 sps:$4 sm:$0xff]   ;;  %v21344_v19 = vld [vmem:[#allocation12 + $0xd4] ss:$24 sps:$4 sm:$0xff]   ;;  %v21349_v26 = vld [vmem:[#allocation12 + $0xd0] ss:$24 sps:$4 sm:$0xff]  }
 0xd5b   :  { %v21459_v6 = vld [vmem:[#allocation12 + $0xc] ss:$24 sps:$4 sm:$0xff]   ;;  %v21462_v11 = vld [vmem:[#allocation12 + $0x8] ss:$24 sps:$4 sm:$0xff]  }
 0xd5c   :  { %18306 = vtanh.f32 %v10600_v0  ;;  %v21465_v0 = vld [vmem:[#allocation12 + $0x2dc] ss:$24 sps:$4 sm:$0xff]  }
 0xd67   :  { %v18305_v23 = vpop.eup %18304 }
 0xd68   :  { %v10605_v41 = vmul.f32 %v18305_v23, %v10603_v22  ;;  %v21474_v22 = vld [vmem:[#allocation12 + $0x2a8] ss:$24 sps:$4 sm:$0xff]   ;;  %v21478_v23 = vld [vmem:[#allocation12 + $0x27c] ss:$24 sps:$4 sm:$0xff]  }
 0xd69   :  { %v18307_v47 = vpop.eup %18306 }
 0xd6a   :  { %v10606_v40 = vmul.f32 %v18307_v47, %v10604_v38  ;;  %v21311_v2 = vadd.f32 %v10607_v20, %v10605_v41  ;;  %v21480_v38 = vld [vmem:[#allocation12 + $0x278] ss:$24 sps:$4 sm:$0xff]   ;;  %v21484_v41 = vld [vmem:[#allocation12 + $0x24c] ss:$24 sps:$4 sm:$0xff]   ;;  %v21486_v20 = vld [vmem:[#allocation12 + $0x248] ss:$24 sps:$4 sm:$0xff]  }
 0xd6b   :  { %22767 = vst [vmem:[#allocation29_spill] sm:$0xff] %v21484_v41  ;;  %22768 = vst [vmem:[#allocation84_spill] sm:$0xff] %v21486_v20  ;;  %v21488_v47 = vld [vmem:[#allocation12 + $0x21c] ss:$24 sps:$4 sm:$0xff]  }
 0xd6c   :  { %v21313_v52 = vadd.f32 %v10608_v13, %v10606_v40  ;;  %10611 = vst [vmem:[#allocation2 + $0x20] sm:$0xff] %v21311_v2  ;;  %v21325_v29 = vpack.c.bf16 %v21311_v2, %v21311_v2  ;;  %22769 = vst [vmem:[#allocation40_spill] sm:$0xff] %v21488_v47  ;;  %v21492_v40 = vld [vmem:[#allocation12 + $0x218] ss:$24 sps:$4 sm:$0xff]   ;;  %v21495_v13 = vld [vmem:[#allocation12 + $0x1ec] ss:$24 sps:$4 sm:$0xff]  }
 0xd6d   :  { %22770 = vst [vmem:[#allocation75_spill] sm:$0xff] %v21492_v40  ;;  %22771 = vst [vmem:[#allocation76_spill] sm:$0xff] %v21495_v13 }
 0xd6e   :  { %10612 = vst [vmem:[#allocation2 + $0x58] sm:$0xff] %v21313_v52  ;;  %v10620_v10 = vpack.c.bf16 %v21313_v52, %v21313_v52  ;;  %14600 = vrot.lane.b32.xlu1 %v21313_v52, %s18586_s17 }
 0xd70   :  { %11261 = vmatprep.mubr.bf16.mxu1 %v10620_v10  ;;  %11302 = vmatprep.mubr.bf16.mxu0 %v10620_v10 }
 0xd71   :  { %11262 = vmatmul.mubr.bf16.vlgmr.msra.gmra.mxu1 %v21325_v29  ;;  %11303 = vmatmul.mubr.bf16.vlgmr.msra.gmra.mxu0 %v21325_v29 }
 0xd72   :  { %11312 = vmatpush1.bf16.msra.mxu1 %v21319_v60  ;;  %11343 = vmatprep.mubr.bf16.mxu1 %v10620_v10  ;;  %v21498_v10 = vld [vmem:[#allocation12 + $0x1e8] ss:$24 sps:$4 sm:$0xff]  }
 0xd73   :  { %11313 = vmatprep.subr.bf16.mxu1 %v21327_v17  ;;  %14627 = vrot.lane.b32.xlu1 %v14625_v55, %s18586_s17  ;;  %22772 = vst [vmem:[#allocation34_spill] sm:$0xff] %v21498_v10  ;;  %v21504_v55 = vld [vmem:[#allocation12 + $0x1b8] ss:$24 sps:$4 sm:$0xff]  }
 0xd74   :  { %12013 = vmatpush1.bf16.msra.mxu0 %v21180_v48  ;;  %v21352_v48 = vld [vmem:[#allocation12 + $0xa4] ss:$24 sps:$4 sm:$0xff]   ;;  %22774 = vst [vmem:[#allocation77_spill] sm:$0xff] %v21504_v55 }
 0xd75   :  { %12014 = vmatprep.subr.bf16.mxu0 %v21183_v35  ;;  %v21357_v35 = vld [vmem:[#allocation12 + $0xa0] ss:$24 sps:$4 sm:$0xff]  }
 0xd76   :  { %11314 = vmatpush1.bf16.msra.mxu1 %v21332_v63 }
 0xd77   :  { %11315 = vmatprep.subr.bf16.mxu1 %v21335_v16 }
 0xd78   :  { %12015 = vmatpush1.bf16.msra.mxu0 %v21186_v27  ;;  %v21360_v27 = vld [vmem:[#allocation12 + $0x74] ss:$24 sps:$4 sm:$0xff]  }
 0xd79   :  { %12016 = vmatprep.subr.bf16.mxu0 %v21190_v42  ;;  %v21365_v42 = vld [vmem:[#allocation12 + $0x70] ss:$24 sps:$4 sm:$0xff]  }
 0xd7a   :  { %11316 = vmatpush1.bf16.msra.mxu1 %v21341_v8 }
 0xd7b   :  { %11317 = vmatprep.subr.bf16.mxu1 %v21344_v19 }
 0xd7c   :  { %12017 = vmatpush1.bf16.msra.mxu0 %v21194_v54  ;;  %v21368_v54 = vld [vmem:[#allocation12 + $0x44] ss:$24 sps:$4 sm:$0xff]  }
 0xd7d   :  { %12018 = vmatprep.subr.bf16.mxu0 %v21198_v45  ;;  %v21373_v45 = vld [vmem:[#allocation12 + $0x40] ss:$24 sps:$4 sm:$0xff]  }
 0xd7e   :  { %11318 = vmatpush1.bf16.msra.mxu1 %v21349_v26 }
 0xd7f   :  { %11319 = vmatprep.subr.bf16.mxu1 %v21352_v48 }
 0xd80   :  { %12019 = vmatpush1.bf16.msra.mxu0 %v21202_v7  ;;  %v22763_v7 = vld [vmem:[#allocation22_spill] sm:$0xff] }
 0xd81   :  { %12020 = vmatprep.subr.bf16.mxu0 %v21206_v59  ;;  %v22764_v59 = vld [vmem:[#allocation24_spill] sm:$0xff] }
 0xd82   :  { %11320 = vmatpush1.bf16.msra.mxu1 %v21357_v35 }
 0xd83   :  { %11321 = vmatprep.subr.bf16.mxu1 %v21360_v27 }
 0xd84   :  { %12021 = vmatpush1.bf16.msra.mxu0 %v21210_v1  ;;  %v22765_v1 = vld [vmem:[#allocation56_spill] sm:$0xff] }
 0xd85   :  { %12022 = vmatprep.subr.bf16.mxu0 %v21214_v49  ;;  %v22766_v49 = vld [vmem:[#allocation55_spill] sm:$0xff] }
 0xd86   :  { %11322 = vmatpush1.bf16.msra.mxu1 %v21365_v42 }
 0xd87   :  { %11323 = vmatprep.subr.bf16.mxu1 %v21368_v54 }
 0xd88   :  { %12023 = vmatpush1.bf16.msra.mxu0 %v21218_v30  ;;  %v21418_v30 = vld [vmem:[#allocation12 + $0x158] ss:$24 sps:$4 sm:$0xff]  }
 0xd89   :  { %12024 = vmatprep.subr.bf16.mxu0 %v21222_v46  ;;  %v21420_v46 = vld [vmem:[#allocation12 + $0x15c] ss:$24 sps:$4 sm:$0xff]  }
 0xd8a   :  { %11324 = vmatpush1.bf16.msra.mxu1 %v21373_v45 }
 0xd8b   :  { %11325 = vmatprep.subr.bf16.mxu1 %v21111_v15  ;;  %v22752_v15 = vld [vmem:[#allocation30_spill] sm:$0xff] }
 0xd8c   :  { %12025 = vmatpush1.bf16.msra.mxu0 %v21226_v34  ;;  %v21422_v34 = vld [vmem:[#allocation12 + $0x12c] ss:$24 sps:$4 sm:$0xff]  }
 0xd8d   :  { %12026 = vmatprep.subr.bf16.mxu0 %v21230_v58  ;;  %v21426_v58 = vld [vmem:[#allocation12 + $0x128] ss:$24 sps:$4 sm:$0xff]  }
 0xd8e   :  { %11326 = vmatpush1.bf16.msra.mxu1 %v21114_v25  ;;  %v22753_v25 = vld [vmem:[#allocation72_spill] sm:$0xff] }
 0xd8f   :  { %11327 = vmatprep.subr.bf16.mxu1 %v21117_v12  ;;  %v22754_v12 = vld [vmem:[#allocation36_spill] sm:$0xff] }
 0xd90   :  { %12027 = vmatpush1.bf16.msra.mxu0 %v21234_v44  ;;  %v21429_v44 = vld [vmem:[#allocation12 + $0xfc] ss:$24 sps:$4 sm:$0xff]  }
 0xd91   :  { %12028 = vmatprep.subr.bf16.mxu0 %v21238_v51  ;;  %v21432_v51 = vld [vmem:[#allocation12 + $0xf8] ss:$24 sps:$4 sm:$0xff]  }
 0xd92   :  { %11328 = vmatpush2.bf16.msra.mxu1 %v21120_v43  ;;  %v22755_v43 = vld [vmem:[#allocation28_spill] sm:$0xff] }
 0xd93   :  { %11329 = vmatprep.subr.bf16.mxu1 %v21123_v5  ;;  %v22756_v5 = vld [vmem:[#allocation73_spill] sm:$0xff] }
 0xd94   :  { %12029 = vmatpush2.bf16.msra.mxu0 %v21242_v53  ;;  %v21435_v53 = vld [vmem:[#allocation12 + $0xcc] ss:$24 sps:$4 sm:$0xff]  }
 0xd95   :  { %12030 = vmatprep.subr.bf16.mxu0 %v21249_v24  ;;  %v21438_v24 = vld [vmem:[#allocation12 + $0xc8] ss:$24 sps:$4 sm:$0xff]  }
 0xd96   :  { %11330 = vmatpush2.bf16.msra.mxu1 %v21126_v18  ;;  %v22757_v18 = vld [vmem:[#allocation45_spill] sm:$0xff] }
 0xd97   :  { %11331 = vmatprep.subr.bf16.mxu1 %v21129_v57  ;;  %v22758_v57 = vld [vmem:[#allocation46_spill] sm:$0xff] }
 0xd98   :  { %12031 = vmatpush2.bf16.msra.mxu0 %v21251_v33  ;;  %v21441_v33 = vld [vmem:[#allocation12 + $0x9c] ss:$24 sps:$4 sm:$0xff]  }
 0xd99   :  { %12032 = vmatprep.subr.bf16.mxu0 %v21255_v28  ;;  %v21444_v28 = vld [vmem:[#allocation12 + $0x98] ss:$24 sps:$4 sm:$0xff]  }
 0xd9a   :  { %11332 = vmatpush2.bf16.msra.mxu1 %v21132_v39  ;;  %v22759_v39 = vld [vmem:[#allocation39_spill] sm:$0xff] }
 0xd9b   :  { %11333 = vmatprep.subr.bf16.mxu1 %v21135_v62  ;;  %v22760_v62 = vld [vmem:[#allocation31_spill] sm:$0xff] }
 0xd9c   :  { %12033 = vmatpush2.bf16.msra.mxu0 %v21257_v56  ;;  %v21447_v56 = vld [vmem:[#allocation12 + $0x6c] ss:$24 sps:$4 sm:$0xff]  }
 0xd9d   :  { %12034 = vmatprep.subr.bf16.mxu0 %v21261_v32  ;;  %v21450_v32 = vld [vmem:[#allocation12 + $0x68] ss:$24 sps:$4 sm:$0xff]  }
 0xd9e   :  { %11334 = vmatpush2.bf16.msra.mxu1 %v21138_v9  ;;  %v22761_v9 = vld [vmem:[#allocation74_spill] sm:$0xff] }
 0xd9f   :  { %11335 = vmatprep.subr.bf16.mxu1 %v21141_v14  ;;  %v22762_v14 = vld [vmem:[#allocation41_spill] sm:$0xff] }
 0xda0   :  { %12035 = vmatpush2.bf16.msra.mxu0 %v21263_v4  ;;  %v21453_v4 = vld [vmem:[#allocation12 + $0x3c] ss:$24 sps:$4 sm:$0xff]  }
 0xda1   :  { %12036 = vmatprep.subr.bf16.mxu0 %v21266_v37  ;;  %v21456_v37 = vld [vmem:[#allocation12 + $0x38] ss:$24 sps:$4 sm:$0xff]  }
 0xda2   :  { %11336 = vmatpush2.bf16.msra.mxu1 %v22752_v15  ;;  %v21507_v15 = vld [vmem:[#allocation12 + $0x18c] ss:$24 sps:$4 sm:$0xff]  }
 0xda3   :  { %11337 = vmatprep.subr.bf16.mxu1 %v22753_v25  ;;  %22775 = vst [vmem:[#allocation78_spill] sm:$0xff] %v21507_v15  ;;  %v21510_v25 = vld [vmem:[#allocation12 + $0x188] ss:$24 sps:$4 sm:$0xff]  }
 0xda4   :  { %12037 = vmatpush2.bf16.msra.mxu0 %v22754_v12  ;;  %22776 = vst [vmem:[#allocation70_spill] sm:$0xff] %v21510_v25 }
 0xda5   :  { %12038 = vmatprep.subr.bf16.mxu0 %v22755_v43 }
 0xda6   :  { %11338 = vmatpush2.bf16.msra.mxu1 %v22756_v5 }
 0xda7   :  { %11339 = vmatprep.subr.bf16.mxu1 %v22757_v18 }
 0xda8   :  { %12039 = vmatpush2.bf16.msra.mxu0 %v22758_v57 }
 0xda9   :  { %12040 = vmatprep.subr.bf16.mxu0 %v22759_v39 }
 0xdaa   :  { %11340 = vmatpush2.bf16.msra.mxu1 %v22760_v62 }
 0xdab   :  { %11341 = vmatprep.subr.bf16.mxu1 %v22761_v9 }
 0xdac   :  { %12041 = vmatpush2.bf16.msra.mxu0 %v22762_v14  ;;  %v10717_v14 = vld [vmem:[%s22222_s9] sm:$0x3f] }
 0xdad   :  { %12042 = vmatprep.subr.bf16.mxu0 %v22763_v7  ;;  %v22777_v7 = vld [vmem:[#allocation23_spill] sm:$0xff] }
 0xdae   :  { %11342 = vmatpush2.bf16.msra.mxu1 %v22764_v59  ;;  %v10722_v59 = vrot.slane %v10717_v14, %v22777_v7 }
 0xdaf   :  { %12053 = vmatprep.subr.bf16.mxu1 %v21420_v46 }
 0xdb0   :  { %12043 = vmatpush2.bf16.msra.mxu0 %v22765_v1  ;;  %v22778_v1 = vld [vmem:[#allocation21_spill] sm:$0xff] }
 0xdb1   :  { %11344 = vmatmul.mubr.bf16.vlgmr.msra.gmra.mxu1 %v21325_v29  ;;  %12094 = vmatprep.subr.bf16.mxu0 %v22766_v49  ;;  %v21501_v29 = vld [vmem:[#allocation12 + $0x1bc] ss:$24 sps:$4 sm:$0xff]   ;;  %v10726_v49 = vrot.slane %v10717_v14, %v22778_v1 }
 0xdb2   :  { %12054 = vmatpush1.bf16.msra.mxu1 %v21418_v30  ;;  %22773 = vst [vmem:[#allocation35_spill] sm:$0xff] %v21501_v29 }
 0xdb3   :  { %12055 = vmatprep.subr.bf16.mxu1 %v21422_v34 }
 0xdb6   :  { %12056 = vmatpush1.bf16.msra.mxu1 %v21426_v58 }
 0xdb7   :  { %12057 = vmatprep.subr.bf16.mxu1 %v21429_v44 }
 0xdba   :  { %12058 = vmatpush1.bf16.msra.mxu1 %v21432_v51 }
 0xdbb   :  { %12059 = vmatprep.subr.bf16.mxu1 %v21435_v53 }
 0xdbe   :  { %12060 = vmatpush1.bf16.msra.mxu1 %v21438_v24 }
 0xdbf   :  { %12061 = vmatprep.subr.bf16.mxu1 %v21441_v33 }
 0xdc2   :  { %12062 = vmatpush1.bf16.msra.mxu1 %v21444_v28 }
 0xdc3   :  { %12063 = vmatprep.subr.bf16.mxu1 %v21447_v56 }
 0xdc6   :  { %12064 = vmatpush1.bf16.msra.mxu1 %v21450_v32 }
 0xdc7   :  { %12065 = vmatprep.subr.bf16.mxu1 %v21453_v4 }
 0xdca   :  { %12066 = vmatpush1.bf16.msra.mxu1 %v21456_v37 }
 0xdcb   :  { %12067 = vmatprep.subr.bf16.mxu1 %v21459_v6 }
 0xdce   :  { %12068 = vmatpush1.bf16.msra.mxu1 %v21462_v11 }
 0xdcf   :  { %12069 = vmatprep.subr.bf16.mxu1 %v21465_v0 }
 0xdd2   :  { %12070 = vmatpush2.bf16.msra.mxu1 %v21468_v61 }
 0xdd3   :  { %12071 = vmatprep.subr.bf16.mxu1 %v21472_v3 }
 0xdd6   :  { %12072 = vmatpush2.bf16.msra.mxu1 %v21474_v22 }
 0xdd7   :  { %12073 = vmatprep.subr.bf16.mxu1 %v21478_v23 }
 0xdda   :  { %12074 = vmatpush2.bf16.msra.mxu1 %v21480_v38 }
 0xddb   :  { %12075 = vmatprep.subr.bf16.mxu1 %v21484_v41  ;;  %v22782_v41 = vld [vmem:[#allocation32_spill] sm:$0xff] }
 0xdde   :  { %12076 = vmatpush2.bf16.msra.mxu1 %v21486_v20  ;;  %v22781_v20 = vld [vmem:[#allocation82_spill] sm:$0xff] }
 0xddf   :  { %12077 = vmatprep.subr.bf16.mxu1 %v21488_v47 }
 0xde2   :  { %12078 = vmatpush2.bf16.msra.mxu1 %v21492_v40 }
 0xde3   :  { %12079 = vmatprep.subr.bf16.mxu1 %v21495_v13 }
 0xde6   :  { %12080 = vmatpush2.bf16.msra.mxu1 %v21498_v10  ;;  %v22780_v10 = vld [vmem:[#allocation42_spill] sm:$0xff] }
 0xde7   :  { %12081 = vmatprep.subr.bf16.mxu1 %v21501_v29  ;;  %v22779_v29 = vld [vmem:[#allocation80_spill] sm:$0xff] }
 0xdea   :  { %12082 = vmatpush2.bf16.msra.mxu1 %v21504_v55 }
 0xdeb   :  { %12083 = vmatprep.subr.bf16.mxu1 %v21507_v15 }
 0xdee   :  { %12084 = vmatpush2.bf16.msra.mxu1 %v21510_v25 }
 0xe31   :  { %v11263_v12 = vpop.f32.mrf.mxu1  ;;  %v11304_v43 = vpop.f32.mrf.mxu0 }
 0xe32   :  { %v11264_v55 = vadd.f32 %v11263_v12, %v10722_v59 }
 0xe33   :  { %v11265_v5 = vpop.f32.mrf.mxu1  ;;  %v11306_v18 = vpop.f32.mrf.mxu0 }
 0xe34   :  { %v11266_v15 = vadd.f32 %v11265_v5, %v10726_v49  ;;  %v11352_v25 = vadd.f32 %v11264_v55, %v22779_v29 }
 0xe35   :  { %v11267_v57 = vpop.f32.mrf.mxu1  ;;  %v11308_v39 = vpop.f32.mrf.mxu0 }
 0xe36   :  { %v11353_v13 = vadd.f32 %v11266_v15, %v22780_v10  ;;  %v16086_v40 = vmul.f32 -1.442695, %v11352_v25  ;;  %v10730_v57 = vrot.slane %v10717_v14, %v18969_v50 }
 0xe37   :  { %v11268_v62 = vpop.f32.mrf.mxu1  ;;  %v11309_v9 = vpop.f32.mrf.mxu0 }
 0xe38   :  { %v16087_v39 = vmul.f32 -1.442695, %v11353_v13  ;;  %18308 = vpow2.f32 %v16086_v40  ;;  %v10734_v62 = vrot.slane %v10717_v14, %v22714_v21  ;;  %v11305_v9 = vadd.f32 %v11304_v43, %v10730_v57 }
 0xe39   :  { %v10738_v13 = vrot.slane %v10717_v14, %v19077_v36  ;;  %v10742_v43 = vrot.slane %v10717_v14, %v19074_v31 }
 0xe3a   :  { %18310 = vpow2.f32 %v16087_v39  ;;  %v11307_v47 = vadd.f32 %v11306_v18, %v10734_v62  ;;  %v11366_v7 = vadd.f32 %v11305_v9, %v22781_v20  ;;  %v22783_v62 = vld [vmem:[#allocation61_spill] sm:$0xff] }
 0xe3c   :  { %v11367_v1 = vadd.f32 %v11307_v47, %v22782_v41  ;;  %v16088_v12 = vmul.f32 -1.442695, %v11366_v7 }
 0xe3e   :  { %v16089_v5 = vmul.f32 -1.442695, %v11367_v1  ;;  %18312 = vpow2.f32 %v16088_v12 }
 0xe40   :  { %18314 = vpow2.f32 %v16089_v5 }
 0xe45   :  { %v18309_v59 = vpop.eup %18308 }
 0xe46   :  { %v11360_v10 = vadd.f32 1.0, %v18309_v59  ;;  %v22784_v59 = vld [vmem:[#allocation49_spill] sm:$0xff] }
 0xe47   :  { %v18311_v29 = vpop.eup %18310 }
 0xe48   :  { %v11361_v55 = vadd.f32 1.0, %v18311_v29  ;;  %18316 = vrcp.f32 %v11360_v10 }
 0xe4a   :  { %18318 = vrcp.f32 %v11361_v55 }
 0xe4b   :  { %v18313_v40 = vpop.eup %18312 }
 0xe4c   :  { %v11374_v25 = vadd.f32 1.0, %v18313_v40 }
 0xe4d   :  { %v18315_v15 = vpop.eup %18314 }
 0xe4e   :  { %v11375_v18 = vadd.f32 1.0, %v18315_v15  ;;  %18320 = vrcp.f32 %v11374_v25 }
 0xe50   :  { %18322 = vrcp.f32 %v11375_v18 }
 0xe55   :  { %v18317_v47 = vpop.eup %18316 }
 0xe57   :  { %v18319_v57 = vpop.eup %18318 }
 0xe5b   :  { %v18321_v14 = vpop.eup %18320 }
 0xe5c   :  { %v11386_v55 = vsub.f32 1.0, %v18321_v14  ;;  %v11390_v25 = vmul.f32 %v18321_v14, %v21311_v2  ;;  %v21553_v2 = vld [vmem:[#allocation12 + $0x14] ss:$24 sps:$4 sm:$0xff]   ;;  %v21691_v14 = vld [vmem:[#allocation12 + $0x2a4] ss:$24 sps:$4 sm:$0xff]  }
 0xe5d   :  { %v18323_v10 = vpop.eup %18322 }
 0xe5e   :  { %v11391_v18 = vmul.f32 %v18323_v10, %v21313_v52  ;;  %v21556_v52 = vld [vmem:[#allocation12 + $0x10] ss:$24 sps:$4 sm:$0xff]  }
 0xe71   :  { %v11345_v20 = vpop.f32.mrf.mxu1 }
 0xe72   :  { %v11346_v41 = vadd.f32 %v11345_v20, %v10738_v13  ;;  %v11387_v13 = vsub.f32 1.0, %v18323_v10  ;;  %v21693_v10 = vld [vmem:[#allocation12 + $0x2a0] ss:$24 sps:$4 sm:$0xff]  }
 0xe73   :  { %v11347_v7 = vpop.f32.mrf.mxu1 }
 0xe74   :  { %v11380_v1 = vmul.f32 %v18317_v47, %v11346_v41  ;;  %v11348_v49 = vadd.f32 %v11347_v7, %v10742_v43 }
 0xe75   :  { %v11349_v39 = vpop.f32.mrf.mxu1 }
 0xe76   :  { %v11382_v9 = vadd.f32 %v11380_v1, %v22783_v62  ;;  %v11381_v12 = vmul.f32 %v18319_v57, %v11348_v49  ;;  %v21598_v49 = vld [vmem:[#allocation12 + $0x1c0] ss:$24 sps:$4 sm:$0xff]   ;;  %v21601_v57 = vld [vmem:[#allocation12 + $0x194] ss:$24 sps:$4 sm:$0xff]   ;;  %v21604_v39 = vld [vmem:[#allocation12 + $0x190] ss:$24 sps:$4 sm:$0xff]  }
 0xe77   :  { %v11350_v5 = vpop.f32.mrf.mxu1  ;;  %22789 = vst [vmem:[#allocation64_spill] sm:$0xff] %v21598_v49  ;;  %22790 = vst [vmem:[#allocation54_spill] sm:$0xff] %v21601_v57  ;;  %v21680_v62 = vld [vmem:[#allocation12 + $0x2d4] ss:$24 sps:$4 sm:$0xff]  }
 0xe78   :  { %18324 = vtanh.f32 %v11382_v9  ;;  %v11383_v29 = vadd.f32 %v11381_v12, %v22784_v59  ;;  %22791 = vst [vmem:[#allocation50_spill] sm:$0xff] %v21604_v39  ;;  %v22798_v9 = vld [vmem:[#allocation35_spill] sm:$0xff]  ;;  %v21684_v12 = vld [vmem:[#allocation12 + $0x2d0] ss:$24 sps:$4 sm:$0xff]   ;;  %v22800_v59 = vld [vmem:[#allocation78_spill] sm:$0xff] }
 0xe79   :  { %v22799_v5 = vld [vmem:[#allocation77_spill] sm:$0xff] }
 0xe7a   :  { %18326 = vtanh.f32 %v11383_v29  ;;  %v22801_v29 = vld [vmem:[#allocation70_spill] sm:$0xff] }
 0xe85   :  { %v18325_v40 = vpop.eup %18324 }
 0xe86   :  { %v11388_v15 = vmul.f32 %v18325_v40, %v11386_v55  ;;  %v21697_v55 = vld [vmem:[#allocation12 + $0x274] ss:$24 sps:$4 sm:$0xff]   ;;  %v21699_v40 = vld [vmem:[#allocation12 + $0x270] ss:$24 sps:$4 sm:$0xff]  }
 0xe87   :  { %v18327_v43 = vpop.eup %18326 }
 0xe88   :  { %v11389_v20 = vmul.f32 %v18327_v43, %v11387_v13  ;;  %v21531_v41 = vadd.f32 %v11390_v25, %v11388_v15  ;;  %v21703_v13 = vld [vmem:[#allocation12 + $0x244] ss:$24 sps:$4 sm:$0xff]   ;;  %v21705_v15 = vld [vmem:[#allocation12 + $0x240] ss:$24 sps:$4 sm:$0xff]   ;;  %v21708_v25 = vld [vmem:[#allocation12 + $0x214] ss:$24 sps:$4 sm:$0xff]  }
 0xe89   :  { %v21711_v43 = vld [vmem:[#allocation12 + $0x210] ss:$24 sps:$4 sm:$0xff]  }
 0xe8a   :  { %v21533_v47 = vadd.f32 %v11391_v18, %v11389_v20  ;;  %11394 = vst [vmem:[#allocation2 + $0x30] sm:$0xff] %v21531_v41  ;;  %v11402_v1 = vpack.c.bf16 %v21531_v41, %v21531_v41  ;;  %22802 = vst [vmem:[#allocation62_spill] sm:$0xff] %v21711_v43  ;;  %v21714_v20 = vld [vmem:[#allocation12 + $0x1e4] ss:$24 sps:$4 sm:$0xff]   ;;  %v21717_v18 = vld [vmem:[#allocation12 + $0x1e0] ss:$24 sps:$4 sm:$0xff]  }
 0xe8b   :  { %22803 = vst [vmem:[#allocation30_spill] sm:$0xff] %v21714_v20  ;;  %22804 = vst [vmem:[#allocation72_spill] sm:$0xff] %v21717_v18 }
 0xe8c   :  { %11395 = vst [vmem:[#allocation2 + $0x48] sm:$0xff] %v21533_v47  ;;  %v11403_v7 = vpack.c.bf16 %v21533_v47, %v21533_v47 }
 0xe8e   :  { %12044 = vmatprep.mubr.bf16.mxu0 %v11403_v7  ;;  %12085 = vmatprep.mubr.bf16.mxu1 %v11403_v7 }
 0xe8f   :  { %12045 = vmatmul.mubr.bf16.vlgmr.msra.gmra.mxu0 %v11402_v1  ;;  %12086 = vmatmul.mubr.bf16.vlgmr.msra.gmra.mxu1 %v11402_v1 }
 0xe90   :  { %12095 = vmatpush1.bf16.msra.mxu0 %v21319_v60  ;;  %12126 = vmatprep.mubr.bf16.mxu0 %v11403_v7  ;;  %v21559_v60 = vld [vmem:[#allocation12 + $0x2e4] ss:$24 sps:$4 sm:$0xff]   ;;  %v21720_v7 = vld [vmem:[#allocation12 + $0x1b4] ss:$24 sps:$4 sm:$0xff]  }
 0xe91   :  { %12096 = vmatprep.subr.bf16.mxu0 %v21327_v17  ;;  %v21562_v17 = vld [vmem:[#allocation12 + $0x2e0] ss:$24 sps:$4 sm:$0xff]   ;;  %22805 = vst [vmem:[#allocation36_spill] sm:$0xff] %v21720_v7 }
 0xe94   :  { %12097 = vmatpush1.bf16.msra.mxu0 %v21332_v63  ;;  %v21565_v63 = vld [vmem:[#allocation12 + $0x2b4] ss:$24 sps:$4 sm:$0xff]  }
 0xe95   :  { %12098 = vmatprep.subr.bf16.mxu0 %v21335_v16  ;;  %v21568_v16 = vld [vmem:[#allocation12 + $0x2b0] ss:$24 sps:$4 sm:$0xff]  }
 0xe98   :  { %12099 = vmatpush1.bf16.msra.mxu0 %v21341_v8  ;;  %v21571_v8 = vld [vmem:[#allocation12 + $0x284] ss:$24 sps:$4 sm:$0xff]  }
 0xe99   :  { %12100 = vmatprep.subr.bf16.mxu0 %v21344_v19  ;;  %v21574_v19 = vld [vmem:[#allocation12 + $0x280] ss:$24 sps:$4 sm:$0xff]  }
 0xe9c   :  { %12101 = vmatpush1.bf16.msra.mxu0 %v21349_v26  ;;  %v21577_v26 = vld [vmem:[#allocation12 + $0x254] ss:$24 sps:$4 sm:$0xff]  }
 0xe9d   :  { %12102 = vmatprep.subr.bf16.mxu0 %v21352_v48  ;;  %v21580_v48 = vld [vmem:[#allocation12 + $0x250] ss:$24 sps:$4 sm:$0xff]  }
 0xea0   :  { %12103 = vmatpush1.bf16.msra.mxu0 %v21357_v35  ;;  %v21583_v35 = vld [vmem:[#allocation12 + $0x224] ss:$24 sps:$4 sm:$0xff]  }
 0xea1   :  { %12104 = vmatprep.subr.bf16.mxu0 %v21360_v27  ;;  %v21586_v27 = vld [vmem:[#allocation12 + $0x220] ss:$24 sps:$4 sm:$0xff]  }
 0xea2   :  { %22785 = vst [vmem:[#allocation71_spill] sm:$0xff] %v21586_v27 }
 0xea4   :  { %12105 = vmatpush1.bf16.msra.mxu0 %v21365_v42  ;;  %v21589_v42 = vld [vmem:[#allocation12 + $0x1f4] ss:$24 sps:$4 sm:$0xff]  }
 0xea5   :  { %12106 = vmatprep.subr.bf16.mxu0 %v21368_v54  ;;  %22786 = vst [vmem:[#allocation44_spill] sm:$0xff] %v21589_v42  ;;  %v21592_v54 = vld [vmem:[#allocation12 + $0x1f0] ss:$24 sps:$4 sm:$0xff]  }
 0xea6   :  { %22787 = vst [vmem:[#allocation53_spill] sm:$0xff] %v21592_v54 }
 0xea8   :  { %12107 = vmatpush1.bf16.msra.mxu0 %v21373_v45  ;;  %v21595_v45 = vld [vmem:[#allocation12 + $0x1c4] ss:$24 sps:$4 sm:$0xff]  }
 0xea9   :  { %12108 = vmatprep.subr.bf16.mxu0 %v21553_v2  ;;  %22788 = vst [vmem:[#allocation59_spill] sm:$0xff] %v21595_v45 }
 0xeac   :  { %12109 = vmatpush1.bf16.msra.mxu0 %v21556_v52 }
 0xead   :  { %12110 = vmatprep.subr.bf16.mxu0 %v21559_v60 }
 0xeb0   :  { %12111 = vmatpush2.bf16.msra.mxu0 %v21562_v17 }
 0xeb1   :  { %12112 = vmatprep.subr.bf16.mxu0 %v21565_v63 }
 0xeb4   :  { %12113 = vmatpush2.bf16.msra.mxu0 %v21568_v16 }
 0xeb5   :  { %12114 = vmatprep.subr.bf16.mxu0 %v21571_v8 }
 0xeb8   :  { %12115 = vmatpush2.bf16.msra.mxu0 %v21574_v19 }
 0xeb9   :  { %12116 = vmatprep.subr.bf16.mxu0 %v21577_v26 }
 0xebc   :  { %12117 = vmatpush2.bf16.msra.mxu0 %v21580_v48 }
 0xebd   :  { %12118 = vmatprep.subr.bf16.mxu0 %v21583_v35 }
 0xec0   :  { %12119 = vmatpush2.bf16.msra.mxu0 %v21586_v27  ;;  %v22815_v27 = vld [vmem:[#allocation63_spill] sm:$0xff] }
 0xec1   :  { %12120 = vmatprep.subr.bf16.mxu0 %v21589_v42  ;;  %v22814_v42 = vld [vmem:[#allocation83_spill] sm:$0xff] }
 0xec4   :  { %12121 = vmatpush2.bf16.msra.mxu0 %v21592_v54 }
 0xec5   :  { %12122 = vmatprep.subr.bf16.mxu0 %v21595_v45  ;;  %v22813_v45 = vld [vmem:[#allocation65_spill] sm:$0xff] }
 0xec8   :  { %12123 = vmatpush2.bf16.msra.mxu0 %v21598_v49 }
 0xec9   :  { %12124 = vmatprep.subr.bf16.mxu0 %v21601_v57  ;;  %v22811_v57 = vld [vmem:[#allocation21_spill] sm:$0xff] }
 0xecc   :  { %12125 = vmatpush2.bf16.msra.mxu0 %v21604_v39  ;;  %v11500_v39 = vld [vmem:[%s22222_s9] sm:$0x3f] }
 0xecd   :  { %12836 = vmatprep.subr.bf16.mxu0 %v21420_v46  ;;  %v17877_v46 = vld [vmem:[#allocation12 + $0x154] ss:$24 sps:$4 sm:$0xff]  }
 0xece   :  { %12795 = vmatprep.subr.bf16.mxu1 %v17877_v46 }
 0xecf   :  { %12127 = vmatmul.mubr.bf16.vlgmr.msra.gmra.mxu0 %v11402_v1  ;;  %v21723_v1 = vld [vmem:[#allocation12 + $0x1b0] ss:$24 sps:$4 sm:$0xff]  }
 0xed0   :  { %12837 = vmatpush1.bf16.msra.mxu0 %v21418_v30  ;;  %v21622_v30 = vld [vmem:[#allocation12 + $0x150] ss:$24 sps:$4 sm:$0xff]   ;;  %22806 = vst [vmem:[#allocation28_spill] sm:$0xff] %v21723_v1 }
 0xed1   :  { %12838 = vmatprep.subr.bf16.mxu0 %v21422_v34  ;;  %v21625_v34 = vld [vmem:[#allocation12 + $0x124] ss:$24 sps:$4 sm:$0xff]   ;;  %12796 = vmatpush1.bf16.msra.mxu1 %v21622_v30 }
 0xed2   :  { %12797 = vmatprep.subr.bf16.mxu1 %v21625_v34 }
 0xed4   :  { %12839 = vmatpush1.bf16.msra.mxu0 %v21426_v58  ;;  %v21628_v58 = vld [vmem:[#allocation12 + $0x120] ss:$24 sps:$4 sm:$0xff]  }
 0xed5   :  { %12840 = vmatprep.subr.bf16.mxu0 %v21429_v44  ;;  %v21632_v44 = vld [vmem:[#allocation12 + $0xf4] ss:$24 sps:$4 sm:$0xff]   ;;  %12798 = vmatpush1.bf16.msra.mxu1 %v21628_v58 }
 0xed6   :  { %12799 = vmatprep.subr.bf16.mxu1 %v21632_v44 }
 0xed8   :  { %12841 = vmatpush1.bf16.msra.mxu0 %v21432_v51  ;;  %v21636_v51 = vld [vmem:[#allocation12 + $0xf0] ss:$24 sps:$4 sm:$0xff]  }
 0xed9   :  { %12842 = vmatprep.subr.bf16.mxu0 %v21435_v53  ;;  %v21640_v53 = vld [vmem:[#allocation12 + $0xc4] ss:$24 sps:$4 sm:$0xff]   ;;  %12800 = vmatpush1.bf16.msra.mxu1 %v21636_v51 }
 0xeda   :  { %12801 = vmatprep.subr.bf16.mxu1 %v21640_v53 }
 0xedc   :  { %12843 = vmatpush1.bf16.msra.mxu0 %v21438_v24  ;;  %v21644_v24 = vld [vmem:[#allocation12 + $0xc0] ss:$24 sps:$4 sm:$0xff]  }
 0xedd   :  { %12844 = vmatprep.subr.bf16.mxu0 %v21441_v33  ;;  %v21648_v33 = vld [vmem:[#allocation12 + $0x94] ss:$24 sps:$4 sm:$0xff]   ;;  %12802 = vmatpush1.bf16.msra.mxu1 %v21644_v24 }
 0xede   :  { %12803 = vmatprep.subr.bf16.mxu1 %v21648_v33 }
 0xee0   :  { %12845 = vmatpush1.bf16.msra.mxu0 %v21444_v28  ;;  %v21652_v28 = vld [vmem:[#allocation12 + $0x90] ss:$24 sps:$4 sm:$0xff]  }
 0xee1   :  { %12846 = vmatprep.subr.bf16.mxu0 %v21447_v56  ;;  %v21656_v56 = vld [vmem:[#allocation12 + $0x64] ss:$24 sps:$4 sm:$0xff]   ;;  %12804 = vmatpush1.bf16.msra.mxu1 %v21652_v28 }
 0xee2   :  { %12805 = vmatprep.subr.bf16.mxu1 %v21656_v56 }
 0xee4   :  { %12847 = vmatpush1.bf16.msra.mxu0 %v21450_v32  ;;  %v22792_v32 = vld [vmem:[#allocation29_spill] sm:$0xff] }
 0xee5   :  { %12848 = vmatprep.subr.bf16.mxu0 %v21453_v4  ;;  %v21660_v4 = vld [vmem:[#allocation12 + $0x60] ss:$24 sps:$4 sm:$0xff]  }
 0xee6   :  { %12806 = vmatpush1.bf16.msra.mxu1 %v21660_v4 }
 0xee8   :  { %12849 = vmatpush1.bf16.msra.mxu0 %v21456_v37  ;;  %v22793_v37 = vld [vmem:[#allocation84_spill] sm:$0xff] }
 0xee9   :  { %12850 = vmatprep.subr.bf16.mxu0 %v21459_v6  ;;  %v21664_v6 = vld [vmem:[#allocation12 + $0x34] ss:$24 sps:$4 sm:$0xff]  }
 0xeea   :  { %12807 = vmatprep.subr.bf16.mxu1 %v21664_v6 }
 0xeec   :  { %12851 = vmatpush1.bf16.msra.mxu0 %v21462_v11  ;;  %v22794_v11 = vld [vmem:[#allocation40_spill] sm:$0xff] }
 0xeed   :  { %12852 = vmatprep.subr.bf16.mxu0 %v21465_v0  ;;  %v21668_v0 = vld [vmem:[#allocation12 + $0x30] ss:$24 sps:$4 sm:$0xff]  }
 0xeee   :  { %12808 = vmatpush1.bf16.msra.mxu1 %v21668_v0 }
 0xef0   :  { %12853 = vmatpush2.bf16.msra.mxu0 %v21468_v61  ;;  %v22795_v61 = vld [vmem:[#allocation75_spill] sm:$0xff] }
 0xef1   :  { %12854 = vmatprep.subr.bf16.mxu0 %v21472_v3  ;;  %v21672_v3 = vld [vmem:[#allocation12 + $0x4] ss:$24 sps:$4 sm:$0xff]  }
 0xef2   :  { %12809 = vmatprep.subr.bf16.mxu1 %v21672_v3 }
 0xef4   :  { %12855 = vmatpush2.bf16.msra.mxu0 %v21474_v22  ;;  %v22796_v22 = vld [vmem:[#allocation76_spill] sm:$0xff] }
 0xef5   :  { %12856 = vmatprep.subr.bf16.mxu0 %v21478_v23  ;;  %v21676_v23 = vld [vmem:[#allocation12] ss:$24 sps:$4 sm:$0xff]  }
 0xef6   :  { %12810 = vmatpush1.bf16.msra.mxu1 %v21676_v23 }
 0xef7   :  { %12811 = vmatprep.subr.bf16.mxu1 %v21680_v62 }
 0xef8   :  { %12857 = vmatpush2.bf16.msra.mxu0 %v21480_v38  ;;  %v22797_v38 = vld [vmem:[#allocation34_spill] sm:$0xff] }
 0xef9   :  { %12858 = vmatprep.subr.bf16.mxu0 %v22792_v32  ;;  %v21729_v32 = vld [vmem:[#allocation12 + $0x180] ss:$24 sps:$4 sm:$0xff]  }
 0xefa   :  { %12812 = vmatpush2.bf16.msra.mxu1 %v21684_v12  ;;  %22808 = vst [vmem:[#allocation45_spill] sm:$0xff] %v21729_v32 }
 0xefb   :  { %12813 = vmatprep.subr.bf16.mxu1 %v21691_v14 }
 0xefc   :  { %12859 = vmatpush2.bf16.msra.mxu0 %v22793_v37  ;;  %v21733_v37 = vld [vmem:[#allocation12 + $0x164] ss:$24 sps:$4 sm:$0xff]  }
 0xefd   :  { %12860 = vmatprep.subr.bf16.mxu0 %v22794_v11  ;;  %22809 = vst [vmem:[#allocation46_spill] sm:$0xff] %v21733_v37 }
 0xefe   :  { %12814 = vmatpush2.bf16.msra.mxu1 %v21693_v10 }
 0xeff   :  { %12815 = vmatprep.subr.bf16.mxu1 %v21697_v55 }
 0xf00   :  { %12861 = vmatpush2.bf16.msra.mxu0 %v22795_v61 }
 0xf01   :  { %12862 = vmatprep.subr.bf16.mxu0 %v22796_v22 }
 0xf02   :  { %12816 = vmatpush2.bf16.msra.mxu1 %v21699_v40 }
 0xf03   :  { %12817 = vmatprep.subr.bf16.mxu1 %v21703_v13 }
 0xf04   :  { %12863 = vmatpush2.bf16.msra.mxu0 %v22797_v38 }
 0xf05   :  { %12864 = vmatprep.subr.bf16.mxu0 %v22798_v9 }
 0xf06   :  { %12818 = vmatpush2.bf16.msra.mxu1 %v21705_v15 }
 0xf07   :  { %12819 = vmatprep.subr.bf16.mxu1 %v21708_v25 }
 0xf08   :  { %12865 = vmatpush2.bf16.msra.mxu0 %v22799_v5 }
 0xf09   :  { %12866 = vmatprep.subr.bf16.mxu0 %v22800_v59 }
 0xf0a   :  { %12820 = vmatpush2.bf16.msra.mxu1 %v21711_v43 }
 0xf0b   :  { %12821 = vmatprep.subr.bf16.mxu1 %v21714_v20 }
 0xf0c   :  { %12867 = vmatpush2.bf16.msra.mxu0 %v22801_v29 }
 0xf0d   :  { %13578 = vmatprep.subr.bf16.mxu0 %v17877_v46  ;;  %v21726_v46 = vld [vmem:[#allocation12 + $0x184] ss:$24 sps:$4 sm:$0xff]  }
 0xf0e   :  { %12822 = vmatpush2.bf16.msra.mxu1 %v21717_v18  ;;  %22807 = vst [vmem:[#allocation73_spill] sm:$0xff] %v21726_v46  ;;  %v22812_v18 = vld [vmem:[#allocation66_spill] sm:$0xff] }
 0xf0f   :  { %12823 = vmatprep.subr.bf16.mxu1 %v21720_v7 }
 0xf12   :  { %12824 = vmatpush2.bf16.msra.mxu1 %v21723_v1  ;;  %v22810_v1 = vld [vmem:[#allocation23_spill] sm:$0xff] }
 0xf13   :  { %12825 = vmatprep.subr.bf16.mxu1 %v21726_v46  ;;  %v11505_v46 = vrot.slane %v11500_v39, %v22810_v1 }
 0xf16   :  { %12826 = vmatpush2.bf16.msra.mxu1 %v21729_v32  ;;  %v11509_v32 = vrot.slane %v11500_v39, %v22811_v57 }
 0xf17   :  { %12877 = vmatprep.subr.bf16.mxu1 %v21733_v37 }
 0xf4f   :  { %v12046_v11 = vpop.f32.mrf.mxu0  ;;  %v12087_v61 = vpop.f32.mrf.mxu1 }
 0xf50   :  { %v12047_v49 = vadd.f32 %v12046_v11, %v11505_v46 }
 0xf51   :  { %v12048_v22 = vpop.f32.mrf.mxu0  ;;  %v12089_v38 = vpop.f32.mrf.mxu1 }
 0xf52   :  { %v12049_v7 = vadd.f32 %v12048_v22, %v11509_v32  ;;  %v12135_v37 = vadd.f32 %v12047_v49, %v22812_v18 }
 0xf53   :  { %v12050_v9 = vpop.f32.mrf.mxu0  ;;  %v12091_v5 = vpop.f32.mrf.mxu1 }
 0xf54   :  { %v12136_v54 = vadd.f32 %v12049_v7, %v22813_v45  ;;  %v16186_v20 = vmul.f32 -1.442695, %v12135_v37  ;;  %v11513_v9 = vrot.slane %v11500_v39, %v18969_v50 }
 0xf55   :  { %v12051_v59 = vpop.f32.mrf.mxu0  ;;  %v12092_v29 = vpop.f32.mrf.mxu1 }
 0xf56   :  { %v16187_v5 = vmul.f32 -1.442695, %v12136_v54  ;;  %18328 = vpow2.f32 %v16186_v20  ;;  %v11517_v59 = vrot.slane %v11500_v39, %v22714_v21  ;;  %v12088_v29 = vadd.f32 %v12087_v61, %v11513_v9 }
 0xf57   :  { %v11521_v20 = vrot.slane %v11500_v39, %v19077_v36  ;;  %v11525_v61 = vrot.slane %v11500_v39, %v19074_v31 }
 0xf58   :  { %18330 = vpow2.f32 %v16187_v5  ;;  %v12090_v43 = vadd.f32 %v12089_v38, %v11517_v59  ;;  %v12149_v1 = vadd.f32 %v12088_v29, %v22814_v42  ;;  %v22816_v59 = vld [vmem:[#allocation26_spill] sm:$0xff] }
 0xf5a   :  { %v12150_v57 = vadd.f32 %v12090_v43, %v22815_v27  ;;  %v16188_v46 = vmul.f32 -1.442695, %v12149_v1 }
 0xf5c   :  { %v16189_v32 = vmul.f32 -1.442695, %v12150_v57  ;;  %18332 = vpow2.f32 %v16188_v46 }
 0xf5e   :  { %18334 = vpow2.f32 %v16189_v32 }
 0xf63   :  { %v18329_v11 = vpop.eup %18328 }
 0xf64   :  { %v12143_v45 = vadd.f32 1.0, %v18329_v11  ;;  %v22817_v11 = vld [vmem:[#allocation48_spill] sm:$0xff] }
 0xf65   :  { %v18331_v49 = vpop.eup %18330 }
 0xf66   :  { %v12144_v18 = vadd.f32 1.0, %v18331_v49  ;;  %18336 = vrcp.f32 %v12143_v45 }
 0xf68   :  { %18338 = vrcp.f32 %v12144_v18 }
 0xf69   :  { %v18333_v54 = vpop.eup %18332 }
 0xf6a   :  { %v12157_v37 = vadd.f32 1.0, %v18333_v54 }
 0xf6b   :  { %v18335_v7 = vpop.eup %18334 }
 0xf6c   :  { %v12158_v22 = vadd.f32 1.0, %v18335_v7  ;;  %18340 = vrcp.f32 %v12157_v37 }
 0xf6e   :  { %18342 = vrcp.f32 %v12158_v22 }
 0xf73   :  { %v18337_v43 = vpop.eup %18336 }
 0xf75   :  { %v18339_v9 = vpop.eup %18338 }
 0xf79   :  { %v18341_v39 = vpop.eup %18340 }
 0xf7a   :  { %v12169_v18 = vsub.f32 1.0, %v18341_v39  ;;  %v12173_v37 = vmul.f32 %v18341_v39, %v21531_v41  ;;  %v21911_v39 = vld [vmem:[#allocation12 + $0x2ac] ss:$24 sps:$4 sm:$0xff]  }
 0xf7b   :  { %v18343_v45 = vpop.eup %18342 }
 0xf7c   :  { %v12174_v22 = vmul.f32 %v18343_v45, %v21533_v47  ;;  %v21772_v47 = vld [vmem:[#allocation12 + $0x130] ss:$24 sps:$4 sm:$0xff]  }
 0xf8f   :  { %v12128_v42 = vpop.f32.mrf.mxu0 }
 0xf90   :  { %v12129_v27 = vadd.f32 %v12128_v42, %v11521_v20  ;;  %v12170_v20 = vsub.f32 1.0, %v18343_v45  ;;  %v21913_v45 = vld [vmem:[#allocation12 + $0x2a8] ss:$24 sps:$4 sm:$0xff]  }
 0xf91   :  { %v12130_v57 = vpop.f32.mrf.mxu0 }
 0xf92   :  { %v12163_v1 = vmul.f32 %v18337_v43, %v12129_v27  ;;  %v12131_v38 = vadd.f32 %v12130_v57, %v11525_v61 }
 0xf93   :  { %v12132_v5 = vpop.f32.mrf.mxu0 }
 0xf94   :  { %v12165_v29 = vadd.f32 %v12163_v1, %v22816_v59  ;;  %v12164_v46 = vmul.f32 %v18339_v9, %v12131_v38  ;;  %v21761_v1 = vld [vmem:[#allocation12 + $0x160] ss:$24 sps:$4 sm:$0xff]   ;;  %v21767_v38 = vld [vmem:[#allocation12 + $0x134] ss:$24 sps:$4 sm:$0xff]   ;;  %v21775_v9 = vld [vmem:[#allocation12 + $0x104] ss:$24 sps:$4 sm:$0xff]  }
 0xf95   :  { %v12133_v32 = vpop.f32.mrf.mxu0  ;;  %v21780_v5 = vld [vmem:[#allocation12 + $0x100] ss:$24 sps:$4 sm:$0xff]   ;;  %v21783_v59 = vld [vmem:[#allocation12 + $0xd4] ss:$24 sps:$4 sm:$0xff]  }
 0xf96   :  { %18344 = vtanh.f32 %v12165_v29  ;;  %v12166_v49 = vadd.f32 %v12164_v46, %v22817_v11  ;;  %v21788_v29 = vld [vmem:[#allocation12 + $0xd0] ss:$24 sps:$4 sm:$0xff]   ;;  %v21898_v46 = vld [vmem:[#allocation12 + $0xc] ss:$24 sps:$4 sm:$0xff]   ;;  %v21904_v11 = vld [vmem:[#allocation12 + $0x2dc] ss:$24 sps:$4 sm:$0xff]  }
 0xf97   :  { %v21901_v32 = vld [vmem:[#allocation12 + $0x8] ss:$24 sps:$4 sm:$0xff]  }
 0xf98   :  { %18346 = vtanh.f32 %v12166_v49  ;;  %v21907_v49 = vld [vmem:[#allocation12 + $0x2d8] ss:$24 sps:$4 sm:$0xff]  }
 0xfa3   :  { %v18345_v54 = vpop.eup %18344 }
 0xfa4   :  { %v12171_v7 = vmul.f32 %v18345_v54, %v12169_v18  ;;  %v21917_v18 = vld [vmem:[#allocation12 + $0x27c] ss:$24 sps:$4 sm:$0xff]   ;;  %v21919_v54 = vld [vmem:[#allocation12 + $0x278] ss:$24 sps:$4 sm:$0xff]  }
 0xfa5   :  { %v18347_v61 = vpop.eup %18346 }
 0xfa6   :  { %v12172_v42 = vmul.f32 %v18347_v61, %v12170_v20  ;;  %v21753_v27 = vadd.f32 %v12173_v37, %v12171_v7  ;;  %v21923_v20 = vld [vmem:[#allocation12 + $0x24c] ss:$24 sps:$4 sm:$0xff]   ;;  %v21925_v7 = vld [vmem:[#allocation12 + $0x248] ss:$24 sps:$4 sm:$0xff]   ;;  %v21927_v37 = vld [vmem:[#allocation12 + $0x21c] ss:$24 sps:$4 sm:$0xff]  }
 0xfa7   :  { %22833 = vst [vmem:[#allocation39_spill] sm:$0xff] %v21923_v20  ;;  %22834 = vst [vmem:[#allocation31_spill] sm:$0xff] %v21925_v7  ;;  %v21931_v61 = vld [vmem:[#allocation12 + $0x218] ss:$24 sps:$4 sm:$0xff]  }
 0xfa8   :  { %v21755_v43 = vadd.f32 %v12174_v22, %v12172_v42  ;;  %12177 = vst [vmem:[#allocation2 + $0x40] sm:$0xff] %v21753_v27  ;;  %v21765_v41 = vpack.c.bf16 %v21753_v27, %v21753_v27  ;;  %22835 = vst [vmem:[#allocation74_spill] sm:$0xff] %v21927_v37  ;;  %v21934_v42 = vld [vmem:[#allocation12 + $0x1ec] ss:$24 sps:$4 sm:$0xff]   ;;  %v21937_v22 = vld [vmem:[#allocation12 + $0x1e8] ss:$24 sps:$4 sm:$0xff]  }
 0xfa9   :  { %22836 = vst [vmem:[#allocation41_spill] sm:$0xff] %v21931_v61  ;;  %22837 = vst [vmem:[#allocation22_spill] sm:$0xff] %v21934_v42 }
 0xfaa   :  { %12178 = vst [vmem:[#allocation2 + $0x38] sm:$0xff] %v21755_v43  ;;  %v12186_v57 = vpack.c.bf16 %v21755_v43, %v21755_v43  ;;  %22838 = vst [vmem:[#allocation24_spill] sm:$0xff] %v21937_v22 }
 0xfac   :  { %12827 = vmatprep.mubr.bf16.mxu1 %v12186_v57  ;;  %12868 = vmatprep.mubr.bf16.mxu0 %v12186_v57 }
 0xfad   :  { %12828 = vmatmul.mubr.bf16.vlgmr.msra.gmra.mxu1 %v21765_v41  ;;  %12869 = vmatmul.mubr.bf16.vlgmr.msra.gmra.mxu0 %v21765_v41 }
 0xfae   :  { %12878 = vmatpush1.bf16.msra.mxu1 %v21761_v1  ;;  %12909 = vmatprep.mubr.bf16.mxu1 %v12186_v57  ;;  %v21940_v57 = vld [vmem:[#allocation12 + $0x1bc] ss:$24 sps:$4 sm:$0xff]  }
 0xfaf   :  { %12879 = vmatprep.subr.bf16.mxu1 %v21767_v38  ;;  %13579 = vmatpush1.bf16.msra.mxu0 %v21622_v30  ;;  %v21791_v30 = vld [vmem:[#allocation12 + $0xa4] ss:$24 sps:$4 sm:$0xff]   ;;  %22839 = vst [vmem:[#allocation56_spill] sm:$0xff] %v21940_v57 }
 0xfb0   :  { %13580 = vmatprep.subr.bf16.mxu0 %v21625_v34  ;;  %v21796_v34 = vld [vmem:[#allocation12 + $0xa0] ss:$24 sps:$4 sm:$0xff]  }
 0xfb2   :  { %12880 = vmatpush1.bf16.msra.mxu1 %v21772_v47 }
 0xfb3   :  { %12881 = vmatprep.subr.bf16.mxu1 %v21775_v9  ;;  %13581 = vmatpush1.bf16.msra.mxu0 %v21628_v58  ;;  %v21799_v58 = vld [vmem:[#allocation12 + $0x74] ss:$24 sps:$4 sm:$0xff]  }
 0xfb4   :  { %13582 = vmatprep.subr.bf16.mxu0 %v21632_v44  ;;  %v21804_v44 = vld [vmem:[#allocation12 + $0x70] ss:$24 sps:$4 sm:$0xff]  }
 0xfb6   :  { %12882 = vmatpush1.bf16.msra.mxu1 %v21780_v5 }
 0xfb7   :  { %12883 = vmatprep.subr.bf16.mxu1 %v21783_v59  ;;  %13583 = vmatpush1.bf16.msra.mxu0 %v21636_v51  ;;  %v21807_v51 = vld [vmem:[#allocation12 + $0x44] ss:$24 sps:$4 sm:$0xff]  }
 0xfb8   :  { %13584 = vmatprep.subr.bf16.mxu0 %v21640_v53  ;;  %v21812_v53 = vld [vmem:[#allocation12 + $0x40] ss:$24 sps:$4 sm:$0xff]  }
 0xfba   :  { %12884 = vmatpush1.bf16.msra.mxu1 %v21788_v29 }
 0xfbb   :  { %12885 = vmatprep.subr.bf16.mxu1 %v21791_v30  ;;  %13585 = vmatpush1.bf16.msra.mxu0 %v21644_v24  ;;  %v22829_v24 = vld [vmem:[#allocation73_spill] sm:$0xff] }
 0xfbc   :  { %13586 = vmatprep.subr.bf16.mxu0 %v21648_v33  ;;  %v22830_v33 = vld [vmem:[#allocation50_spill] sm:$0xff] }
 0xfbe   :  { %12886 = vmatpush1.bf16.msra.mxu1 %v21796_v34 }
 0xfbf   :  { %12887 = vmatprep.subr.bf16.mxu1 %v21799_v58  ;;  %13587 = vmatpush1.bf16.msra.mxu0 %v21652_v28  ;;  %v22831_v28 = vld [vmem:[#allocation45_spill] sm:$0xff] }
 0xfc0   :  { %13588 = vmatprep.subr.bf16.mxu0 %v21656_v56  ;;  %v22832_v56 = vld [vmem:[#allocation46_spill] sm:$0xff] }
 0xfc2   :  { %12888 = vmatpush1.bf16.msra.mxu1 %v21804_v44 }
 0xfc3   :  { %12889 = vmatprep.subr.bf16.mxu1 %v21807_v51  ;;  %13589 = vmatpush1.bf16.msra.mxu0 %v21660_v4  ;;  %v21857_v4 = vld [vmem:[#allocation12 + $0x158] ss:$24 sps:$4 sm:$0xff]  }
 0xfc4   :  { %13590 = vmatprep.subr.bf16.mxu0 %v21664_v6  ;;  %v21859_v6 = vld [vmem:[#allocation12 + $0x15c] ss:$24 sps:$4 sm:$0xff]  }
 0xfc6   :  { %12890 = vmatpush1.bf16.msra.mxu1 %v21812_v53 }
 0xfc7   :  { %12891 = vmatprep.subr.bf16.mxu1 %v21553_v2  ;;  %13591 = vmatpush1.bf16.msra.mxu0 %v21668_v0  ;;  %v22818_v2 = vld [vmem:[#allocation71_spill] sm:$0xff] }
 0xfc8   :  { %13592 = vmatprep.subr.bf16.mxu0 %v21672_v3  ;;  %v21861_v0 = vld [vmem:[#allocation12 + $0x12c] ss:$24 sps:$4 sm:$0xff]   ;;  %v21865_v3 = vld [vmem:[#allocation12 + $0x128] ss:$24 sps:$4 sm:$0xff]  }
 0xfca   :  { %12892 = vmatpush1.bf16.msra.mxu1 %v21556_v52  ;;  %v22819_v52 = vld [vmem:[#allocation44_spill] sm:$0xff] }
 0xfcb   :  { %12893 = vmatprep.subr.bf16.mxu1 %v21559_v60  ;;  %13593 = vmatpush1.bf16.msra.mxu0 %v21676_v23  ;;  %v22820_v60 = vld [vmem:[#allocation62_spill] sm:$0xff] }
 0xfcc   :  { %13594 = vmatprep.subr.bf16.mxu0 %v21680_v62  ;;  %v21868_v23 = vld [vmem:[#allocation12 + $0xfc] ss:$24 sps:$4 sm:$0xff]   ;;  %v21871_v62 = vld [vmem:[#allocation12 + $0xf8] ss:$24 sps:$4 sm:$0xff]  }
 0xfce   :  { %12894 = vmatpush2.bf16.msra.mxu1 %v21562_v17  ;;  %v22821_v17 = vld [vmem:[#allocation30_spill] sm:$0xff] }
 0xfcf   :  { %12895 = vmatprep.subr.bf16.mxu1 %v21565_v63  ;;  %13595 = vmatpush2.bf16.msra.mxu0 %v21684_v12  ;;  %v22822_v63 = vld [vmem:[#allocation53_spill] sm:$0xff]  ;;  %v21874_v12 = vld [vmem:[#allocation12 + $0xcc] ss:$24 sps:$4 sm:$0xff]  }
 0xfd0   :  { %13596 = vmatprep.subr.bf16.mxu0 %v21691_v14  ;;  %v21877_v14 = vld [vmem:[#allocation12 + $0xc8] ss:$24 sps:$4 sm:$0xff]  }
 0xfd2   :  { %12896 = vmatpush2.bf16.msra.mxu1 %v21568_v16  ;;  %v22823_v16 = vld [vmem:[#allocation59_spill] sm:$0xff] }
 0xfd3   :  { %12897 = vmatprep.subr.bf16.mxu1 %v21571_v8  ;;  %13597 = vmatpush2.bf16.msra.mxu0 %v21693_v10  ;;  %v22824_v8 = vld [vmem:[#allocation72_spill] sm:$0xff]  ;;  %v21880_v10 = vld [vmem:[#allocation12 + $0x9c] ss:$24 sps:$4 sm:$0xff]  }
 0xfd4   :  { %13598 = vmatprep.subr.bf16.mxu0 %v21697_v55  ;;  %v21883_v55 = vld [vmem:[#allocation12 + $0x98] ss:$24 sps:$4 sm:$0xff]  }
 0xfd6   :  { %12898 = vmatpush2.bf16.msra.mxu1 %v21574_v19  ;;  %v22825_v19 = vld [vmem:[#allocation36_spill] sm:$0xff] }
 0xfd7   :  { %12899 = vmatprep.subr.bf16.mxu1 %v21577_v26  ;;  %13599 = vmatpush2.bf16.msra.mxu0 %v21699_v40  ;;  %v22826_v26 = vld [vmem:[#allocation64_spill] sm:$0xff] }
 0xfd8   :  { %13600 = vmatprep.subr.bf16.mxu0 %v21703_v13  ;;  %v21886_v40 = vld [vmem:[#allocation12 + $0x6c] ss:$24 sps:$4 sm:$0xff]   ;;  %v21889_v13 = vld [vmem:[#allocation12 + $0x68] ss:$24 sps:$4 sm:$0xff]  }
 0xfda   :  { %12900 = vmatpush2.bf16.msra.mxu1 %v21580_v48  ;;  %v22827_v48 = vld [vmem:[#allocation54_spill] sm:$0xff] }
 0xfdb   :  { %12901 = vmatprep.subr.bf16.mxu1 %v21583_v35  ;;  %13601 = vmatpush2.bf16.msra.mxu0 %v21705_v15  ;;  %v22828_v35 = vld [vmem:[#allocation28_spill] sm:$0xff]  ;;  %v21892_v15 = vld [vmem:[#allocation12 + $0x3c] ss:$24 sps:$4 sm:$0xff]  }
 0xfdc   :  { %13602 = vmatprep.subr.bf16.mxu0 %v21708_v25  ;;  %v21895_v25 = vld [vmem:[#allocation12 + $0x38] ss:$24 sps:$4 sm:$0xff]  }
 0xfde   :  { %12902 = vmatpush2.bf16.msra.mxu1 %v22818_v2  ;;  %v21946_v2 = vld [vmem:[#allocation12 + $0x18c] ss:$24 sps:$4 sm:$0xff]  }
 0xfdf   :  { %12903 = vmatprep.subr.bf16.mxu1 %v22819_v52  ;;  %13603 = vmatpush2.bf16.msra.mxu0 %v22820_v60  ;;  %22841 = vst [vmem:[#allocation80_spill] sm:$0xff] %v21946_v2  ;;  %v21949_v52 = vld [vmem:[#allocation12 + $0x188] ss:$24 sps:$4 sm:$0xff]  }
 0xfe0   :  { %13604 = vmatprep.subr.bf16.mxu0 %v22821_v17  ;;  %22842 = vst [vmem:[#allocation42_spill] sm:$0xff] %v21949_v52 }
 0xfe2   :  { %12904 = vmatpush2.bf16.msra.mxu1 %v22822_v63 }
 0xfe3   :  { %12905 = vmatprep.subr.bf16.mxu1 %v22823_v16  ;;  %13605 = vmatpush2.bf16.msra.mxu0 %v22824_v8 }
 0xfe4   :  { %13606 = vmatprep.subr.bf16.mxu0 %v22825_v19 }
 0xfe6   :  { %12906 = vmatpush2.bf16.msra.mxu1 %v22826_v26 }
 0xfe7   :  { %12907 = vmatprep.subr.bf16.mxu1 %v22827_v48  ;;  %13607 = vmatpush2.bf16.msra.mxu0 %v22828_v35  ;;  %v12283_v35 = vld [vmem:[%s22222_s9] sm:$0x3f] }
 0xfe8   :  { %13608 = vmatprep.subr.bf16.mxu0 %v22829_v24  ;;  %v22843_v24 = vld [vmem:[#allocation23_spill] sm:$0xff] }
 0xfea   :  { %12908 = vmatpush2.bf16.msra.mxu1 %v22830_v33  ;;  %v12288_v33 = vrot.slane %v12283_v35, %v22843_v24 }
 0xfeb   :  { %13609 = vmatpush2.bf16.msra.mxu0 %v22831_v28  ;;  %13619 = vmatprep.subr.bf16.mxu1 %v21859_v6  ;;  %v22844_v28 = vld [vmem:[#allocation21_spill] sm:$0xff] }
 0xfec   :  { %13660 = vmatprep.subr.bf16.mxu0 %v22832_v56  ;;  %v12292_v56 = vrot.slane %v12283_v35, %v22844_v28 }
 0xfed   :  { %12910 = vmatmul.mubr.bf16.vlgmr.msra.gmra.mxu1 %v21765_v41  ;;  %v21943_v41 = vld [vmem:[#allocation12 + $0x1b8] ss:$24 sps:$4 sm:$0xff]  }
 0xfee   :  { %13620 = vmatpush1.bf16.msra.mxu1 %v21857_v4  ;;  %22840 = vst [vmem:[#allocation55_spill] sm:$0xff] %v21943_v41 }
 0xfef   :  { %13621 = vmatprep.subr.bf16.mxu1 %v21861_v0 }
 0xff2   :  { %13622 = vmatpush1.bf16.msra.mxu1 %v21865_v3 }
 0xff3   :  { %13623 = vmatprep.subr.bf16.mxu1 %v21868_v23 }
 0xff6   :  { %13624 = vmatpush1.bf16.msra.mxu1 %v21871_v62 }
 0xff7   :  { %13625 = vmatprep.subr.bf16.mxu1 %v21874_v12 }
 0xffa   :  { %13626 = vmatpush1.bf16.msra.mxu1 %v21877_v14 }
 0xffb   :  { %13627 = vmatprep.subr.bf16.mxu1 %v21880_v10 }
 0xffe   :  { %13628 = vmatpush1.bf16.msra.mxu1 %v21883_v55 }
 0xfff   :  { %13629 = vmatprep.subr.bf16.mxu1 %v21886_v40 }
0x1002   :  { %13630 = vmatpush1.bf16.msra.mxu1 %v21889_v13 }
0x1003   :  { %13631 = vmatprep.subr.bf16.mxu1 %v21892_v15 }
0x1006   :  { %13632 = vmatpush1.bf16.msra.mxu1 %v21895_v25 }
0x1007   :  { %13633 = vmatprep.subr.bf16.mxu1 %v21898_v46 }
0x100a   :  { %13634 = vmatpush1.bf16.msra.mxu1 %v21901_v32 }
0x100b   :  { %13635 = vmatprep.subr.bf16.mxu1 %v21904_v11 }
0x100e   :  { %13636 = vmatpush2.bf16.msra.mxu1 %v21907_v49 }
0x100f   :  { %13637 = vmatprep.subr.bf16.mxu1 %v21911_v39 }
0x1012   :  { %13638 = vmatpush2.bf16.msra.mxu1 %v21913_v45 }
0x1013   :  { %13639 = vmatprep.subr.bf16.mxu1 %v21917_v18 }
0x1016   :  { %13640 = vmatpush2.bf16.msra.mxu1 %v21919_v54 }
0x1017   :  { %13641 = vmatprep.subr.bf16.mxu1 %v21923_v20  ;;  %v22848_v20 = vld [vmem:[#allocation79_spill] sm:$0xff] }
0x101a   :  { %13642 = vmatpush2.bf16.msra.mxu1 %v21925_v7  ;;  %v22847_v7 = vld [vmem:[#allocation33_spill] sm:$0xff] }
0x101b   :  { %13643 = vmatprep.subr.bf16.mxu1 %v21927_v37 }
0x101e   :  { %13644 = vmatpush2.bf16.msra.mxu1 %v21931_v61 }
0x101f   :  { %13645 = vmatprep.subr.bf16.mxu1 %v21934_v42 }
0x1022   :  { %13646 = vmatpush2.bf16.msra.mxu1 %v21937_v22  ;;  %v22846_v22 = vld [vmem:[#allocation81_spill] sm:$0xff] }
0x1023   :  { %13647 = vmatprep.subr.bf16.mxu1 %v21940_v57  ;;  %v22845_v57 = vld [vmem:[#allocation43_spill] sm:$0xff] }
0x1026   :  { %13648 = vmatpush2.bf16.msra.mxu1 %v21943_v41 }
0x1027   :  { %13649 = vmatprep.subr.bf16.mxu1 %v21946_v2 }
0x102a   :  { %13650 = vmatpush2.bf16.msra.mxu1 %v21949_v52 }
0x106d   :  { %v12829_v60 = vpop.f32.mrf.mxu1  ;;  %v12870_v17 = vpop.f32.mrf.mxu0 }
0x106e   :  { %v12830_v41 = vadd.f32 %v12829_v60, %v12288_v33 }
0x106f   :  { %v12831_v63 = vpop.f32.mrf.mxu1  ;;  %v12872_v16 = vpop.f32.mrf.mxu0 }
0x1070   :  { %v12832_v2 = vadd.f32 %v12831_v63, %v12292_v56  ;;  %v12918_v52 = vadd.f32 %v12830_v41, %v22845_v57 }
0x1071   :  { %v12833_v8 = vpop.f32.mrf.mxu1  ;;  %v12874_v19 = vpop.f32.mrf.mxu0 }
0x1072   :  { %v12919_v42 = vadd.f32 %v12832_v2, %v22846_v22  ;;  %v16286_v61 = vmul.f32 -1.442695, %v12918_v52  ;;  %v12296_v8 = vrot.slane %v12283_v35, %v18969_v50 }
0x1073   :  { %v12834_v26 = vpop.f32.mrf.mxu1  ;;  %v12875_v48 = vpop.f32.mrf.mxu0 }
0x1074   :  { %v16287_v19 = vmul.f32 -1.442695, %v12919_v42  ;;  %18348 = vpow2.f32 %v16286_v61  ;;  %v12300_v26 = vrot.slane %v12283_v35, %v22714_v21  ;;  %v12871_v48 = vadd.f32 %v12870_v17, %v12296_v8 }
0x1075   :  { %v12304_v42 = vrot.slane %v12283_v35, %v19077_v36  ;;  %v12308_v17 = vrot.slane %v12283_v35, %v19074_v31 }
0x1076   :  { %18350 = vpow2.f32 %v16287_v19  ;;  %v12873_v37 = vadd.f32 %v12872_v16, %v12300_v26  ;;  %v12932_v24 = vadd.f32 %v12871_v48, %v22847_v7  ;;  %v22849_v26 = vld [vmem:[#allocation27_spill] sm:$0xff] }
0x1078   :  { %v12933_v28 = vadd.f32 %v12873_v37, %v22848_v20  ;;  %v16288_v60 = vmul.f32 -1.442695, %v12932_v24 }
0x107a   :  { %v16289_v63 = vmul.f32 -1.442695, %v12933_v28  ;;  %18352 = vpow2.f32 %v16288_v60 }
0x107c   :  { %18354 = vpow2.f32 %v16289_v63 }
0x1081   :  { %v18349_v33 = vpop.eup %18348 }
0x1082   :  { %v12926_v22 = vadd.f32 1.0, %v18349_v33  ;;  %v22850_v33 = vld [vmem:[#allocation52_spill] sm:$0xff] }
0x1083   :  { %v18351_v57 = vpop.eup %18350 }
0x1084   :  { %v12927_v41 = vadd.f32 1.0, %v18351_v57  ;;  %18356 = vrcp.f32 %v12926_v22 }
0x1086   :  { %18358 = vrcp.f32 %v12927_v41 }
0x1087   :  { %v18353_v61 = vpop.eup %18352 }
0x1088   :  { %v12940_v52 = vadd.f32 1.0, %v18353_v61 }
0x1089   :  { %v18355_v2 = vpop.eup %18354 }
0x108a   :  { %v12941_v16 = vadd.f32 1.0, %v18355_v2  ;;  %18360 = vrcp.f32 %v12940_v52 }
0x108c   :  { %18362 = vrcp.f32 %v12941_v16 }
0x1091   :  { %v18357_v37 = vpop.eup %18356 }
0x1093   :  { %v18359_v8 = vpop.eup %18358 }
0x1097   :  { %v18361_v35 = vpop.eup %18360 }
0x1098   :  { %v12952_v41 = vsub.f32 1.0, %v18361_v35  ;;  %v12956_v52 = vmul.f32 %v18361_v35, %v21753_v27  ;;  %v18045_v35 = vld [vmem:[#allocation12 + $0x2d4] ss:$24 sps:$4 sm:$0xff]  }
0x1099   :  { %v18363_v22 = vpop.eup %18362 }
0x109a   :  { %v12957_v16 = vmul.f32 %v18363_v22, %v21755_v43  ;;  %v14617_v43 = vld [vmem:[#allocation2 + $0x68] sm:$0xff] }
0x10ad   :  { %v12911_v7 = vpop.f32.mrf.mxu1 }
0x10ae   :  { %v12912_v20 = vadd.f32 %v12911_v7, %v12304_v42  ;;  %v12953_v42 = vsub.f32 1.0, %v18363_v22  ;;  %v22857_v22 = vld [vmem:[#allocation56_spill] sm:$0xff] }
0x10af   :  { %v12913_v24 = vpop.f32.mrf.mxu1 }
0x10b0   :  { %v12946_v28 = vmul.f32 %v18357_v37, %v12912_v20  ;;  %v12914_v56 = vadd.f32 %v12913_v24, %v12308_v17 }
0x10b1   :  { %v12915_v19 = vpop.f32.mrf.mxu1 }
0x10b2   :  { %v12948_v48 = vadd.f32 %v12946_v28, %v22849_v26  ;;  %v12947_v60 = vmul.f32 %v18359_v8, %v12914_v56  ;;  %v22034_v28 = vld [vmem:[#allocation12 + $0x1f0] ss:$24 sps:$4 sm:$0xff]   ;;  %v22037_v56 = vld [vmem:[#allocation12 + $0x1c4] ss:$24 sps:$4 sm:$0xff]   ;;  %v22040_v8 = vld [vmem:[#allocation12 + $0x1c0] ss:$24 sps:$4 sm:$0xff]  }
0x10b3   :  { %v12916_v63 = vpop.f32.mrf.mxu1  ;;  %v22043_v19 = vld [vmem:[#allocation12 + $0x194] ss:$24 sps:$4 sm:$0xff]   ;;  %v22046_v26 = vld [vmem:[#allocation12 + $0x190] ss:$24 sps:$4 sm:$0xff]  }
0x10b4   :  { %18364 = vtanh.f32 %v12948_v48  ;;  %v12949_v57 = vadd.f32 %v12947_v60, %v22850_v33  ;;  %v22854_v48 = vld [vmem:[#allocation41_spill] sm:$0xff]  ;;  %v18042_v60 = vld [vmem:[#allocation12 + $0x4] ss:$24 sps:$4 sm:$0xff]   ;;  %v18040_v33 = vld [vmem:[#allocation12] ss:$24 sps:$4 sm:$0xff]  }
0x10b5   :  { %v22855_v63 = vld [vmem:[#allocation22_spill] sm:$0xff] }
0x10b6   :  { %18366 = vtanh.f32 %v12949_v57  ;;  %v22856_v57 = vld [vmem:[#allocation24_spill] sm:$0xff] }
0x10c1   :  { %v18365_v61 = vpop.eup %18364 }
0x10c2   :  { %v12954_v2 = vmul.f32 %v18365_v61, %v12952_v41  ;;  %v18043_v41 = vld [vmem:[#allocation12 + $0x2d0] ss:$24 sps:$4 sm:$0xff]   ;;  %v22858_v61 = vld [vmem:[#allocation55_spill] sm:$0xff] }
0x10c3   :  { %v18367_v17 = vpop.eup %18366 }
0x10c4   :  { %v12955_v7 = vmul.f32 %v18367_v17, %v12953_v42  ;;  %v21970_v20 = vadd.f32 %v12956_v52, %v12954_v2  ;;  %v22859_v42 = vld [vmem:[#allocation80_spill] sm:$0xff]  ;;  %v22860_v2 = vld [vmem:[#allocation42_spill] sm:$0xff] }
0x10c5   :  { %v18048_v52 = vld [vmem:[#allocation12 + $0x2a4] ss:$24 sps:$4 sm:$0xff]   ;;  %v18046_v17 = vld [vmem:[#allocation12 + $0x2a0] ss:$24 sps:$4 sm:$0xff]  }
0x10c6   :  { %v21972_v37 = vadd.f32 %v12957_v16, %v12955_v7  ;;  %12960 = vst [vmem:[#allocation2 + $0x50] sm:$0xff] %v21970_v20  ;;  %v12968_v27 = vpack.c.bf16 %v21970_v20, %v21970_v20  ;;  %v18051_v7 = vld [vmem:[#allocation12 + $0x274] ss:$24 sps:$4 sm:$0xff]   ;;  %v18049_v16 = vld [vmem:[#allocation12 + $0x270] ss:$24 sps:$4 sm:$0xff]  }
0x10c8   :  { %12961 = vst [vmem:[#allocation2 + $0x28] sm:$0xff] %v21972_v37  ;;  %v12969_v24 = vpack.c.bf16 %v21972_v37, %v21972_v37  ;;  %14565 = vrot.lane.b32.xlu1 %v21972_v37, %s18586_s17 }
0x10ca   :  { %13610 = vmatprep.mubr.bf16.mxu0 %v12969_v24  ;;  %13651 = vmatprep.mubr.bf16.mxu1 %v12969_v24 }
0x10cb   :  { %13611 = vmatmul.mubr.bf16.vlgmr.msra.gmra.mxu0 %v12968_v27  ;;  %13652 = vmatmul.mubr.bf16.vlgmr.msra.gmra.mxu1 %v12968_v27 }
0x10cc   :  { %13661 = vmatpush1.bf16.msra.mxu0 %v21761_v1  ;;  %13692 = vmatprep.mubr.bf16.mxu0 %v12969_v24  ;;  %v21995_v1 = vld [vmem:[#allocation12 + $0x14] ss:$24 sps:$4 sm:$0xff]   ;;  %v18054_v24 = vld [vmem:[#allocation12 + $0x244] ss:$24 sps:$4 sm:$0xff]  }
0x10cd   :  { %13662 = vmatprep.subr.bf16.mxu0 %v21767_v38  ;;  %14619 = vrot.lane.b32.xlu1 %v14617_v43, %s18586_s17  ;;  %v21998_v38 = vld [vmem:[#allocation12 + $0x10] ss:$24 sps:$4 sm:$0xff]   ;;  %v18057_v43 = vld [vmem:[#allocation12 + $0x214] ss:$24 sps:$4 sm:$0xff]  }
0x10d0   :  { %13663 = vmatpush1.bf16.msra.mxu0 %v21772_v47  ;;  %v22001_v47 = vld [vmem:[#allocation12 + $0x2e4] ss:$24 sps:$4 sm:$0xff]  }
0x10d1   :  { %13664 = vmatprep.subr.bf16.mxu0 %v21775_v9  ;;  %v22004_v9 = vld [vmem:[#allocation12 + $0x2e0] ss:$24 sps:$4 sm:$0xff]  }
0x10d4   :  { %13665 = vmatpush1.bf16.msra.mxu0 %v21780_v5  ;;  %v22007_v5 = vld [vmem:[#allocation12 + $0x2b4] ss:$24 sps:$4 sm:$0xff]  }
0x10d5   :  { %13666 = vmatprep.subr.bf16.mxu0 %v21783_v59  ;;  %v22010_v59 = vld [vmem:[#allocation12 + $0x2b0] ss:$24 sps:$4 sm:$0xff]  }
0x10d8   :  { %13667 = vmatpush1.bf16.msra.mxu0 %v21788_v29  ;;  %v22013_v29 = vld [vmem:[#allocation12 + $0x284] ss:$24 sps:$4 sm:$0xff]  }
0x10d9   :  { %13668 = vmatprep.subr.bf16.mxu0 %v21791_v30  ;;  %v22016_v30 = vld [vmem:[#allocation12 + $0x280] ss:$24 sps:$4 sm:$0xff]  }
0x10dc   :  { %13669 = vmatpush1.bf16.msra.mxu0 %v21796_v34  ;;  %v22019_v34 = vld [vmem:[#allocation12 + $0x254] ss:$24 sps:$4 sm:$0xff]  }
0x10dd   :  { %13670 = vmatprep.subr.bf16.mxu0 %v21799_v58  ;;  %v22022_v58 = vld [vmem:[#allocation12 + $0x250] ss:$24 sps:$4 sm:$0xff]  }
0x10e0   :  { %13671 = vmatpush1.bf16.msra.mxu0 %v21804_v44  ;;  %v22025_v44 = vld [vmem:[#allocation12 + $0x224] ss:$24 sps:$4 sm:$0xff]  }
0x10e1   :  { %13672 = vmatprep.subr.bf16.mxu0 %v21807_v51  ;;  %v22028_v51 = vld [vmem:[#allocation12 + $0x220] ss:$24 sps:$4 sm:$0xff]  }
0x10e4   :  { %13673 = vmatpush1.bf16.msra.mxu0 %v21812_v53  ;;  %v22031_v53 = vld [vmem:[#allocation12 + $0x1f4] ss:$24 sps:$4 sm:$0xff]  }
0x10e5   :  { %13674 = vmatprep.subr.bf16.mxu0 %v21995_v1 }
0x10e8   :  { %13675 = vmatpush1.bf16.msra.mxu0 %v21998_v38 }
0x10e9   :  { %13676 = vmatprep.subr.bf16.mxu0 %v22001_v47 }
0x10ec   :  { %13677 = vmatpush2.bf16.msra.mxu0 %v22004_v9 }
0x10ed   :  { %13678 = vmatprep.subr.bf16.mxu0 %v22007_v5 }
0x10f0   :  { %13679 = vmatpush2.bf16.msra.mxu0 %v22010_v59 }
0x10f1   :  { %13680 = vmatprep.subr.bf16.mxu0 %v22013_v29 }
0x10f4   :  { %13681 = vmatpush2.bf16.msra.mxu0 %v22016_v30 }
0x10f5   :  { %13682 = vmatprep.subr.bf16.mxu0 %v22019_v34 }
0x10f8   :  { %13683 = vmatpush2.bf16.msra.mxu0 %v22022_v58 }
0x10f9   :  { %13684 = vmatprep.subr.bf16.mxu0 %v22025_v44 }
0x10fc   :  { %13685 = vmatpush2.bf16.msra.mxu0 %v22028_v51 }
0x10fd   :  { %13686 = vmatprep.subr.bf16.mxu0 %v22031_v53 }
0x1100   :  { %13687 = vmatpush2.bf16.msra.mxu0 %v22034_v28 }
0x1101   :  { %13688 = vmatprep.subr.bf16.mxu0 %v22037_v56 }
0x1104   :  { %13689 = vmatpush2.bf16.msra.mxu0 %v22040_v8 }
0x1105   :  { %13690 = vmatprep.subr.bf16.mxu0 %v22043_v19 }
0x1108   :  { %13691 = vmatpush2.bf16.msra.mxu0 %v22046_v26 }
0x1109   :  { %14402 = vmatprep.subr.bf16.mxu0 %v21859_v6  ;;  %v18021_v6 = vld [vmem:[#allocation12 + $0x154] ss:$24 sps:$4 sm:$0xff]  }
0x110a   :  { %14361 = vmatprep.subr.bf16.mxu1 %v18021_v6  ;;  %v18060_v6 = vld [vmem:[#allocation12 + $0x1e4] ss:$24 sps:$4 sm:$0xff]  }
0x110b   :  { %13693 = vmatmul.mubr.bf16.vlgmr.msra.gmra.mxu0 %v12968_v27  ;;  %v18052_v27 = vld [vmem:[#allocation12 + $0x240] ss:$24 sps:$4 sm:$0xff]  }
0x110c   :  { %14403 = vmatpush1.bf16.msra.mxu0 %v21857_v4  ;;  %v18019_v4 = vld [vmem:[#allocation12 + $0x150] ss:$24 sps:$4 sm:$0xff]  }
0x110d   :  { %14404 = vmatprep.subr.bf16.mxu0 %v21861_v0  ;;  %v18024_v0 = vld [vmem:[#allocation12 + $0x124] ss:$24 sps:$4 sm:$0xff]   ;;  %14362 = vmatpush1.bf16.msra.mxu1 %v18019_v4  ;;  %v18055_v4 = vld [vmem:[#allocation12 + $0x210] ss:$24 sps:$4 sm:$0xff]  }
0x110e   :  { %14363 = vmatprep.subr.bf16.mxu1 %v18024_v0  ;;  %v18058_v0 = vld [vmem:[#allocation12 + $0x1e0] ss:$24 sps:$4 sm:$0xff]  }
0x1110   :  { %14405 = vmatpush1.bf16.msra.mxu0 %v21865_v3  ;;  %v18022_v3 = vld [vmem:[#allocation12 + $0x120] ss:$24 sps:$4 sm:$0xff]  }
0x1111   :  { %14406 = vmatprep.subr.bf16.mxu0 %v21868_v23  ;;  %v18027_v23 = vld [vmem:[#allocation12 + $0xf4] ss:$24 sps:$4 sm:$0xff]   ;;  %14364 = vmatpush1.bf16.msra.mxu1 %v18022_v3 }
0x1112   :  { %14365 = vmatprep.subr.bf16.mxu1 %v18027_v23  ;;  %v18063_v3 = vld [vmem:[#allocation12 + $0x1b4] ss:$24 sps:$4 sm:$0xff]   ;;  %v18061_v23 = vld [vmem:[#allocation12 + $0x1b0] ss:$24 sps:$4 sm:$0xff]  }
0x1114   :  { %14407 = vmatpush1.bf16.msra.mxu0 %v21871_v62  ;;  %v18025_v62 = vld [vmem:[#allocation12 + $0xf0] ss:$24 sps:$4 sm:$0xff]  }
0x1115   :  { %14408 = vmatprep.subr.bf16.mxu0 %v21874_v12  ;;  %v18030_v12 = vld [vmem:[#allocation12 + $0xc4] ss:$24 sps:$4 sm:$0xff]   ;;  %14366 = vmatpush1.bf16.msra.mxu1 %v18025_v62 }
0x1116   :  { %14367 = vmatprep.subr.bf16.mxu1 %v18030_v12  ;;  %v18066_v62 = vld [vmem:[#allocation12 + $0x184] ss:$24 sps:$4 sm:$0xff]   ;;  %v18064_v12 = vld [vmem:[#allocation12 + $0x180] ss:$24 sps:$4 sm:$0xff]  }
0x1118   :  { %14409 = vmatpush1.bf16.msra.mxu0 %v21877_v14  ;;  %v22069_v14 = vpop.permute.xlu1 %14600 }
0x1119   :  { %14410 = vmatprep.subr.bf16.mxu0 %v21880_v10  ;;  %v18028_v10 = vld [vmem:[#allocation12 + $0xc0] ss:$24 sps:$4 sm:$0xff]  }
0x111a   :  { %14368 = vmatpush1.bf16.msra.mxu1 %v18028_v10  ;;  %v18069_v10 = vld [vmem:[#allocation12 + $0x164] ss:$24 sps:$4 sm:$0xff]  }
0x111c   :  { %14411 = vmatpush1.bf16.msra.mxu0 %v21883_v55  ;;  %v18033_v55 = vld [vmem:[#allocation12 + $0x94] ss:$24 sps:$4 sm:$0xff]  }
0x111d   :  { %14412 = vmatprep.subr.bf16.mxu0 %v21886_v40  ;;  %v18031_v40 = vld [vmem:[#allocation12 + $0x90] ss:$24 sps:$4 sm:$0xff]   ;;  %14369 = vmatprep.subr.bf16.mxu1 %v18033_v55 }
0x111e   :  { %14370 = vmatpush1.bf16.msra.mxu1 %v18031_v40 }
0x1120   :  { %14413 = vmatpush1.bf16.msra.mxu0 %v21889_v13  ;;  %v18036_v13 = vld [vmem:[#allocation12 + $0x64] ss:$24 sps:$4 sm:$0xff]  }
0x1121   :  { %14414 = vmatprep.subr.bf16.mxu0 %v21892_v15  ;;  %v22851_v15 = vld [vmem:[#allocation39_spill] sm:$0xff]  ;;  %14371 = vmatprep.subr.bf16.mxu1 %v18036_v13 }
0x1124   :  { %14415 = vmatpush1.bf16.msra.mxu0 %v21895_v25  ;;  %v22075_v25 = vpop.permute.xlu1 %14627 }
0x1125   :  { %14416 = vmatprep.subr.bf16.mxu0 %v21898_v46  ;;  %v18034_v46 = vld [vmem:[#allocation12 + $0x60] ss:$24 sps:$4 sm:$0xff]  }
0x1126   :  { %14372 = vmatpush1.bf16.msra.mxu1 %v18034_v46 }
0x1128   :  { %14417 = vmatpush1.bf16.msra.mxu0 %v21901_v32  ;;  %v22852_v32 = vld [vmem:[#allocation31_spill] sm:$0xff] }
0x1129   :  { %14418 = vmatprep.subr.bf16.mxu0 %v21904_v11  ;;  %v18039_v11 = vld [vmem:[#allocation12 + $0x34] ss:$24 sps:$4 sm:$0xff]  }
0x112a   :  { %14373 = vmatprep.subr.bf16.mxu1 %v18039_v11 }
0x112c   :  { %14419 = vmatpush2.bf16.msra.mxu0 %v21907_v49  ;;  %v22853_v49 = vld [vmem:[#allocation74_spill] sm:$0xff] }
0x112d   :  { %14420 = vmatprep.subr.bf16.mxu0 %v21911_v39 }
0x1130   :  { %14421 = vmatpush2.bf16.msra.mxu0 %v21913_v45  ;;  %v14562_v45 = vld [vmem:[#allocation2 + $0x20] sm:$0xff] }
0x1131   :  { %14422 = vmatprep.subr.bf16.mxu0 %v21917_v18 }
0x1134   :  { %14423 = vmatpush2.bf16.msra.mxu0 %v21919_v54  ;;  %v18037_v54 = vld [vmem:[#allocation12 + $0x30] ss:$24 sps:$4 sm:$0xff]  }
0x1135   :  { %14424 = vmatprep.subr.bf16.mxu0 %v22851_v15  ;;  %14374 = vmatpush1.bf16.msra.mxu1 %v18037_v54  ;;  %v22862_v54 = vld [vmem:[#allocation21_spill] sm:$0xff] }
0x1136   :  { %14375 = vmatprep.subr.bf16.mxu1 %v18042_v60 }
0x1138   :  { %14425 = vmatpush2.bf16.msra.mxu0 %v22852_v32 }
0x1139   :  { %14426 = vmatprep.subr.bf16.mxu0 %v22853_v49  ;;  %14376 = vmatpush1.bf16.msra.mxu1 %v18040_v33  ;;  %v22863_v33 = vld [vmem:[#allocation67_spill] sm:$0xff] }
0x113a   :  { %v14566_v39 = vpop.permute.xlu1 %14565  ;;  %14377 = vmatprep.subr.bf16.mxu1 %v18045_v35  ;;  %v22864_v35 = vld [vmem:[#allocation57_spill] sm:$0xff] }
0x113b   :  { %v14568_v18 = vsel %vm14538_vm3, %v14562_v45, %v14566_v39  ;;  %v13066_v39 = vld [vmem:[%s22222_s9] sm:$0x3f] }
0x113c   :  { %14569 = vst.msk [vmem:[%s22223_s10 + $0x2] sm:$0x3] %vm14540_vm2, %v14568_v18  ;;  %14427 = vmatpush2.bf16.msra.mxu0 %v22854_v48  ;;  %v22861_v45 = vld [vmem:[#allocation23_spill] sm:$0xff]  ;;  %v13075_v48 = vrot.slane %v13066_v39, %v22862_v54 }
0x113d   :  { %14428 = vmatprep.subr.bf16.mxu0 %v22855_v63  ;;  %14378 = vmatpush2.bf16.msra.mxu1 %v18043_v41  ;;  %v13071_v18 = vrot.slane %v13066_v39, %v22861_v45 }
0x113e   :  { %14379 = vmatprep.subr.bf16.mxu1 %v18048_v52 }
0x1140   :  { %14429 = vmatpush2.bf16.msra.mxu0 %v22856_v57 }
0x1141   :  { %14430 = vmatprep.subr.bf16.mxu0 %v22857_v22  ;;  %14380 = vmatpush2.bf16.msra.mxu1 %v18046_v17 }
0x1142   :  { %14381 = vmatprep.subr.bf16.mxu1 %v18051_v7  ;;  %v22865_v7 = vld [vmem:[#allocation68_spill] sm:$0xff] }
0x1144   :  { %14431 = vmatpush2.bf16.msra.mxu0 %v22858_v61  ;;  %v13079_v61 = vrot.slane %v13066_v39, %v18969_v50 }
0x1145   :  { %14432 = vmatprep.subr.bf16.mxu0 %v22859_v42  ;;  %14382 = vmatpush2.bf16.msra.mxu1 %v18049_v16 }
0x1146   :  { %14383 = vmatprep.subr.bf16.mxu1 %v18054_v24  ;;  %v22866_v24 = vld [vmem:[#allocation60_spill] sm:$0xff] }
0x1148   :  { %14433 = vmatpush2.bf16.msra.mxu0 %v22860_v2  ;;  %v13083_v2 = vrot.slane %v13066_v39, %v22714_v21 }
0x1149   :  { %14384 = vmatpush2.bf16.msra.mxu1 %v18052_v27 }
0x114a   :  { %14385 = vmatprep.subr.bf16.mxu1 %v18057_v43 }
0x114d   :  { %14386 = vmatpush2.bf16.msra.mxu1 %v18055_v4 }
0x114e   :  { %14387 = vmatprep.subr.bf16.mxu1 %v18060_v6 }
0x1151   :  { %14388 = vmatpush2.bf16.msra.mxu1 %v18058_v0 }
0x1152   :  { %14389 = vmatprep.subr.bf16.mxu1 %v18063_v3 }
0x1155   :  { %14390 = vmatpush2.bf16.msra.mxu1 %v18061_v23 }
0x1156   :  { %14391 = vmatprep.subr.bf16.mxu1 %v18066_v62 }
0x1159   :  { %14392 = vmatpush2.bf16.msra.mxu1 %v18064_v12  ;;  %v13087_v12 = vrot.slane %v13066_v39, %v19077_v36 }
0x115a   :  { %14443 = vmatprep.subr.bf16.mxu1 %v18069_v10 }
0x118b   :  { %v13612_v55 = vpop.f32.mrf.mxu0  ;;  %v13653_v40 = vpop.f32.mrf.mxu1 }
0x118c   :  { %v13613_v60 = vadd.f32 %v13612_v55, %v13071_v18  ;;  %v13654_v52 = vadd.f32 %v13653_v40, %v13079_v61  ;;  %v13091_v40 = vrot.slane %v13066_v39, %v19074_v31 }
0x118d   :  { %v13614_v13 = vpop.f32.mrf.mxu0  ;;  %v13655_v15 = vpop.f32.mrf.mxu1 }
0x118e   :  { %v13615_v63 = vadd.f32 %v13614_v13, %v13075_v48  ;;  %v13701_v57 = vadd.f32 %v13613_v60, %v22863_v33  ;;  %v13656_v17 = vadd.f32 %v13655_v15, %v13083_v2  ;;  %v13715_v16 = vadd.f32 %v13654_v52, %v22865_v7 }
0x118f   :  { %v13616_v46 = vpop.f32.mrf.mxu0  ;;  %v13657_v32 = vpop.f32.mrf.mxu1 }
0x1190   :  { %v13702_v22 = vadd.f32 %v13615_v63, %v22864_v35  ;;  %v16386_v41 = vmul.f32 -1.442695, %v13701_v57  ;;  %v13716_v27 = vadd.f32 %v13656_v17, %v22866_v24  ;;  %v16388_v43 = vmul.f32 -1.442695, %v13715_v16  ;;  %v22867_v63 = vld [vmem:[#allocation51_spill] sm:$0xff] }
0x1191   :  { %v13617_v11 = vpop.f32.mrf.mxu0  ;;  %v13658_v49 = vpop.f32.mrf.mxu1 }
0x1192   :  { %v16387_v42 = vmul.f32 -1.442695, %v13702_v22  ;;  %18368 = vpow2.f32 %v16386_v41  ;;  %v16389_v4 = vmul.f32 -1.442695, %v13716_v27  ;;  %v22868_v22 = vld [vmem:[#allocation47_spill] sm:$0xff] }
0x1194   :  { %18370 = vpow2.f32 %v16387_v42 }
0x1195   :  { %18372 = vpow2.f32 %v16388_v43 }
0x1196   :  { %18374 = vpow2.f32 %v16389_v4  ;;  %v14620_v4 = vpop.permute.xlu1 %14619 }
0x119f   :  { %v18369_v6 = vpop.eup %18368 }
0x11a0   :  { %v13709_v3 = vadd.f32 1.0, %v18369_v6 }
0x11a1   :  { %v18371_v0 = vpop.eup %18370 }
0x11a2   :  { %v13710_v23 = vadd.f32 1.0, %v18371_v0  ;;  %18376 = vrcp.f32 %v13709_v3  ;;  %v18373_v62 = vpop.eup %18372  ;;  %v18067_v3 = vld [vmem:[#allocation12 + $0x160] ss:$24 sps:$4 sm:$0xff]  }
0x11a3   :  { %v18375_v10 = vpop.eup %18374  ;;  %v13723_v55 = vadd.f32 1.0, %v18373_v62  ;;  %v18070_v62 = vld [vmem:[#allocation12 + $0x130] ss:$24 sps:$4 sm:$0xff]  }
0x11a4   :  { %18378 = vrcp.f32 %v13710_v23  ;;  %v13724_v15 = vadd.f32 1.0, %v18375_v10  ;;  %v18072_v23 = vld [vmem:[#allocation12 + $0x134] ss:$24 sps:$4 sm:$0xff]   ;;  %v18075_v10 = vld [vmem:[#allocation12 + $0x104] ss:$24 sps:$4 sm:$0xff]  }
0x11a5   :  { %18380 = vrcp.f32 %v13723_v55  ;;  %v18073_v55 = vld [vmem:[#allocation12 + $0x100] ss:$24 sps:$4 sm:$0xff]  }
0x11a6   :  { %18382 = vrcp.f32 %v13724_v15  ;;  %v18076_v15 = vld [vmem:[#allocation12 + $0xd0] ss:$24 sps:$4 sm:$0xff]  }
0x11af   :  { %v18377_v32 = vpop.eup %18376 }
0x11b1   :  { %v18379_v48 = vpop.eup %18378 }
0x11b2   :  { %v18381_v39 = vpop.eup %18380 }
0x11b3   :  { %v18383_v61 = vpop.eup %18382  ;;  %v13735_v42 = vsub.f32 1.0, %v18381_v39  ;;  %v13739_v7 = vmul.f32 %v18381_v39, %v21970_v20 }
0x11b4   :  { %v13736_v52 = vsub.f32 1.0, %v18383_v61  ;;  %v13740_v27 = vmul.f32 %v18383_v61, %v21972_v37 }
0x11cb   :  { %v13694_v13 = vpop.f32.mrf.mxu0 }
0x11cc   :  { %v13695_v46 = vadd.f32 %v13694_v13, %v13087_v12  ;;  %v14571_v12 = vld [vmem:[#allocation2 + $0x38] sm:$0xff]  ;;  %v18078_v13 = vld [vmem:[#allocation12 + $0xd4] ss:$24 sps:$4 sm:$0xff]  }
0x11cd   :  { %v13696_v11 = vpop.f32.mrf.mxu0 }
0x11ce   :  { %v13729_v49 = vmul.f32 %v18377_v32, %v13695_v46  ;;  %v13697_v18 = vadd.f32 %v13696_v11, %v13091_v40  ;;  %v14590_v40 = vld [vmem:[#allocation2 + $0x48] sm:$0xff]  ;;  %v18081_v46 = vld [vmem:[#allocation12 + $0xa4] ss:$24 sps:$4 sm:$0xff]   ;;  %v18079_v32 = vld [vmem:[#allocation12 + $0xa0] ss:$24 sps:$4 sm:$0xff]  }
0x11cf   :  { %v13698_v60 = vpop.f32.mrf.mxu0  ;;  %v18084_v11 = vld [vmem:[#allocation12 + $0x74] ss:$24 sps:$4 sm:$0xff]  }
0x11d0   :  { %v13731_v33 = vadd.f32 %v13729_v49, %v22867_v63  ;;  %v13730_v57 = vmul.f32 %v18379_v48, %v13697_v18  ;;  %v18082_v49 = vld [vmem:[#allocation12 + $0x70] ss:$24 sps:$4 sm:$0xff]   ;;  %v18087_v18 = vld [vmem:[#allocation12 + $0x44] ss:$24 sps:$4 sm:$0xff]   ;;  %v18085_v48 = vld [vmem:[#allocation12 + $0x40] ss:$24 sps:$4 sm:$0xff]  }
0x11d1   :  { %v13699_v35 = vpop.f32.mrf.mxu0 }
0x11d2   :  { %18384 = vtanh.f32 %v13731_v33  ;;  %v13732_v41 = vadd.f32 %v13730_v57, %v22868_v22 }
0x11d4   :  { %18386 = vtanh.f32 %v13732_v41  ;;  %v13849_v41 = vld [vmem:[%s22222_s9] sm:$0x3f] }
0x11d5   :  { %v13854_v39 = vrot.slane %v13849_v41, %v22861_v45  ;;  %v13858_v61 = vrot.slane %v13849_v41, %v22862_v54  ;;  %v22873_v54 = vld [vmem:[#allocation37_spill] sm:$0xff] }
0x11df   :  { %v18385_v2 = vpop.eup %18384 }
0x11e0   :  { %v13737_v17 = vmul.f32 %v18385_v2, %v13735_v42 }
0x11e1   :  { %v18387_v16 = vpop.eup %18386 }
0x11e2   :  { %v13738_v24 = vmul.f32 %v18387_v16, %v13736_v52  ;;  %v22108_v43 = vadd.f32 %v13739_v7, %v13737_v17  ;;  %v22870_v52 = vld [vmem:[#allocation58_spill] sm:$0xff] }
0x11e3   :  { %v22871_v7 = vld [vmem:[#allocation38_spill] sm:$0xff] }
0x11e4   :  { %v22110_v6 = vadd.f32 %v13740_v27, %v13738_v24  ;;  %13743 = vst [vmem:[#allocation2 + $0x60] sm:$0xff] %v22108_v43  ;;  %v14622_v0 = vsel %vm14538_vm3, %v22108_v43, %v14620_v4  ;;  %v13751_v37 = vpack.c.bf16 %v22108_v43, %v22108_v43  ;;  %v13862_v27 = vrot.slane %v13849_v41, %v18969_v50 }
0x11e5   :  { %14623 = vst.msk [vmem:[%s22223_s10 + $0x6] sm:$0x3] %vm14540_vm2, %v14622_v0  ;;  %v13866_v0 = vrot.slane %v13849_v41, %v22714_v21 }
0x11e6   :  { %v13752_v20 = vpack.c.bf16 %v22110_v6, %v22110_v6  ;;  %14545 = vrot.lane.b32.xlu0 %v22110_v6, %s18586_s17 }
0x11e8   :  { %14393 = vmatprep.mubr.bf16.mxu1 %v13752_v20  ;;  %14434 = vmatprep.mubr.bf16.mxu0 %v13752_v20 }
0x11e9   :  { %14394 = vmatmul.mubr.bf16.vlgmr.msra.gmra.mxu1 %v13751_v37  ;;  %14435 = vmatmul.mubr.bf16.vlgmr.msra.gmra.mxu0 %v13751_v37 }
0x11ea   :  { %14444 = vmatpush1.bf16.msra.mxu1 %v18067_v3  ;;  %14475 = vmatprep.mubr.bf16.mxu1 %v13752_v20 }
0x11eb   :  { %14445 = vmatprep.subr.bf16.mxu1 %v18072_v23  ;;  %14573 = vrot.lane.b32.xlu0 %v14571_v12, %s18586_s17 }
0x11ee   :  { %14446 = vmatpush1.bf16.msra.mxu1 %v18070_v62 }
0x11ef   :  { %14447 = vmatprep.subr.bf16.mxu1 %v18075_v10  ;;  %14592 = vrot.lane.b32.xlu0 %v14590_v40, %s18586_s17 }
0x11f2   :  { %14448 = vmatpush1.bf16.msra.mxu1 %v18073_v55 }
0x11f3   :  { %14449 = vmatprep.subr.bf16.mxu1 %v18078_v13 }
0x11f6   :  { %14450 = vmatpush1.bf16.msra.mxu1 %v18076_v15  ;;  %v13870_v15 = vrot.slane %v13849_v41, %v19077_v36  ;;  %v22875_v36 = vld [vmem:[#allocation25_spill] sm:$0xff] }
0x11f7   :  { %14451 = vmatprep.subr.bf16.mxu1 %v18081_v46 }
0x11fa   :  { %14452 = vmatpush1.bf16.msra.mxu1 %v18079_v32 }
0x11fb   :  { %14453 = vmatprep.subr.bf16.mxu1 %v18084_v11  ;;  %v13874_v11 = vrot.slane %v13849_v41, %v19074_v31 }
0x11fe   :  { %14454 = vmatpush1.bf16.msra.mxu1 %v18082_v49 }
0x11ff   :  { %14455 = vmatprep.subr.bf16.mxu1 %v18087_v18 }
0x1202   :  { %14456 = vmatpush1.bf16.msra.mxu1 %v18085_v48 }
0x1203   :  { %14457 = vmatprep.subr.bf16.mxu1 %v21995_v1  ;;  %v18587_v1 = vmov 1983009808  }
0x1206   :  { %14458 = vmatpush1.bf16.msra.mxu1 %v21998_v38  ;;  %v14551_v38 = vunpack.c.l.s4 %v18587_v1 }
0x1207   :  { %14459 = vmatprep.subr.bf16.mxu1 %v22001_v47 }
0x1208   :  { %v14552_v47 = vunpack.c.0.s8 %v14551_v38 }
0x120a   :  { %14460 = vmatpush2.bf16.msra.mxu1 %v22004_v9  ;;  %v22869_v9 = vld [vmem:[#allocation20_spill] sm:$0xff] }
0x120b   :  { %14461 = vmatprep.subr.bf16.mxu1 %v22007_v5  ;;  %v22146_v5 = vsub.s32 %v14552_v47, %v22869_v9 }
0x120e   :  { %14462 = vmatpush2.bf16.msra.mxu1 %v22010_v59 }
0x120f   :  { %14463 = vmatprep.subr.bf16.mxu1 %v22013_v29  ;;  %v14542_v29 = vld [vmem:[#allocation2 + $0x10] sm:$0xff] }
0x1212   :  { %14464 = vmatpush2.bf16.msra.mxu1 %v22016_v30 }
0x1213   :  { %14465 = vmatprep.subr.bf16.mxu1 %v22019_v34 }
0x1216   :  { %14466 = vmatpush2.bf16.msra.mxu1 %v22022_v58 }
0x1217   :  { %14467 = vmatprep.subr.bf16.mxu1 %v22025_v44  ;;  %v14570_v44 = vld [vmem:[#allocation2 + $0x30] sm:$0xff] }
0x121a   :  { %14468 = vmatpush2.bf16.msra.mxu1 %v22028_v51 }
0x121b   :  { %14469 = vmatprep.subr.bf16.mxu1 %v22031_v53 }
0x121e   :  { %14470 = vmatpush2.bf16.msra.mxu1 %v22034_v28 }
0x121f   :  { %14471 = vmatprep.subr.bf16.mxu1 %v22037_v56  ;;  %v14589_v56 = vld [vmem:[#allocation2 + $0x40] sm:$0xff] }
0x1222   :  { %14472 = vmatpush2.bf16.msra.mxu1 %v22040_v8 }
0x1223   :  { %14473 = vmatprep.subr.bf16.mxu1 %v22043_v19 }
0x1226   :  { %14474 = vmatpush2.bf16.msra.mxu1 %v22046_v26 }
0x1229   :  { %14476 = vmatmul.mubr.bf16.vlgmr.msra.gmra.mxu1 %v13751_v37  ;;  %v22872_v37 = vld [vmem:[#allocation69_spill] sm:$0xff] }
0x1258   :  { %v14546_v59 = vpop.permute.xlu0 %14545 }
0x1259   :  { %v14548_v30 = vsel %vm14538_vm3, %v14542_v29, %v14546_v59 }
0x125a   :  { %v14556_v34 = vrot.slane %v14548_v30, %v22146_v5  ;;  %v22874_v30 = vld [vmem:[#allocation85_spill] sm:$0xff] }
0x125c   :  { %14557 = vrot.lane.b32.xlu0 %v14556_v34, %s18588_s25 }
0x125d   :  { %v14574_v58 = vpop.permute.xlu0 %14573 }
0x125e   :  { %v14576_v51 = vsel %vm14538_vm3, %v14570_v44, %v14574_v58 }
0x125f   :  { %v14584_v53 = vrot.slane %v14576_v51, %v22146_v5 }
0x1261   :  { %v14593_v28 = vpop.permute.xlu0 %14592  ;;  %14585 = vrot.lane.b32.xlu1 %v14584_v53, %s18588_s25 }
0x1262   :  { %v14595_v8 = vsel %vm14538_vm3, %v14589_v56, %v14593_v28 }
0x1263   :  { %14596 = vst.msk [vmem:[%s22223_s10 + $0x4] sm:$0x3] %vm14540_vm2, %v14595_v8 }
0x12a9   :  { %v14395_v19 = vpop.f32.mrf.mxu1  ;;  %v14436_v26 = vpop.f32.mrf.mxu0 }
0x12aa   :  { %v14396_v42 = vadd.f32 %v14395_v19, %v13854_v39  ;;  %v14437_v20 = vadd.f32 %v14436_v26, %v13862_v27 }
0x12ab   :  { %v14397_v60 = vpop.f32.mrf.mxu1  ;;  %v14438_v63 = vpop.f32.mrf.mxu0 }
0x12ac   :  { %v14398_v2 = vadd.f32 %v14397_v60, %v13858_v61  ;;  %v14484_v17 = vadd.f32 %v14396_v42, %v22870_v52  ;;  %v14439_v3 = vadd.f32 %v14438_v63, %v13866_v0  ;;  %v14498_v45 = vadd.f32 %v14437_v20, %v22872_v37 }
0x12ad   :  { %v14399_v33 = vpop.f32.mrf.mxu1  ;;  %v14440_v57 = vpop.f32.mrf.mxu0 }
0x12ae   :  { %v14485_v16 = vadd.f32 %v14398_v2, %v22871_v7  ;;  %v16486_v24 = vmul.f32 -1.442695, %v14484_v17  ;;  %v14499_v23 = vadd.f32 %v14439_v3, %v22873_v54  ;;  %v16488_v12 = vmul.f32 -1.442695, %v14498_v45 }
0x12af   :  { %v14400_v35 = vpop.f32.mrf.mxu1  ;;  %v14441_v22 = vpop.f32.mrf.mxu0 }
0x12b0   :  { %v16487_v4 = vmul.f32 -1.442695, %v14485_v16  ;;  %18388 = vpow2.f32 %v16486_v24  ;;  %v16489_v50 = vmul.f32 -1.442695, %v14499_v23  ;;  %v14597_v35 = vld [vmem:[#allocation2 + $0x50] sm:$0xff] }
0x12b2   :  { %18390 = vpow2.f32 %v16487_v4 }
0x12b3   :  { %18392 = vpow2.f32 %v16488_v12 }
0x12b4   :  { %18394 = vpow2.f32 %v16489_v50 }
0x12bd   :  { %v18389_v10 = vpop.eup %18388 }
0x12be   :  { %v14492_v21 = vadd.f32 1.0, %v18389_v10 }
0x12bf   :  { %v18391_v55 = vpop.eup %18390 }
0x12c0   :  { %v14493_v40 = vadd.f32 1.0, %v18391_v55  ;;  %18396 = vrcp.f32 %v14492_v21  ;;  %v18393_v13 = vpop.eup %18392 }
0x12c1   :  { %v18395_v46 = vpop.eup %18394  ;;  %v14506_v32 = vadd.f32 1.0, %v18393_v13 }
0x12c2   :  { %18398 = vrcp.f32 %v14493_v40  ;;  %v14507_v18 = vadd.f32 1.0, %v18395_v46 }
0x12c3   :  { %18400 = vrcp.f32 %v14506_v32 }
0x12c4   :  { %18402 = vrcp.f32 %v14507_v18 }
0x12cd   :  { %v18397_v1 = vpop.eup %18396 }
0x12cf   :  { %v18399_v59 = vpop.eup %18398 }
0x12d0   :  { %v18401_v31 = vpop.eup %18400 }
0x12d1   :  { %v18403_v53 = vpop.eup %18402  ;;  %v14518_v28 = vsub.f32 1.0, %v18401_v31  ;;  %v14522_v8 = vmul.f32 %v18401_v31, %v22108_v43  ;;  %v14603_v43 = vsel %vm14538_vm3, %v14597_v35, %v22069_v14 }
0x12d2   :  { %v14519_v26 = vsub.f32 1.0, %v18403_v53  ;;  %v14523_v63 = vmul.f32 %v18403_v53, %v22110_v6  ;;  %v14611_v6 = vrot.slane %v14603_v43, %v22146_v5 }
0x12d3   :  { %v14586_v62 = vpop.permute.xlu1 %14585 }
0x12d4   :  { %14588 = vst.msk [vmem:[%s22223_s10 + $0x2] sm:$0x3] %vm14560_vm4, %v14586_v62 }
0x12e9   :  { %v14477_v49 = vpop.f32.mrf.mxu1 }
0x12ea   :  { %v14478_v48 = vadd.f32 %v14477_v49, %v13870_v15 }
0x12eb   :  { %v14479_v38 = vpop.f32.mrf.mxu1 }
0x12ec   :  { %v14512_v47 = vmul.f32 %v18397_v1, %v14478_v48  ;;  %v14480_v9 = vadd.f32 %v14479_v38, %v13874_v11 }
0x12ed   :  { %v14481_v29 = vpop.f32.mrf.mxu1 }
0x12ee   :  { %v14514_v34 = vadd.f32 %v14512_v47, %v22874_v30  ;;  %v14513_v58 = vmul.f32 %v18399_v59, %v14480_v9 }
0x12ef   :  { %v14482_v44 = vpop.f32.mrf.mxu1 }
0x12f0   :  { %18404 = vtanh.f32 %v14514_v34  ;;  %v14515_v51 = vadd.f32 %v14513_v58, %v22875_v36 }
0x12f2   :  { %18406 = vtanh.f32 %v14515_v51 }
0x12fd   :  { %v18405_v56 = vpop.eup %18404 }
0x12fe   :  { %v14520_v19 = vmul.f32 %v18405_v56, %v14518_v28 }
0x12ff   :  { %v18407_v60 = vpop.eup %18406 }
0x1300   :  { %v14524_v33 = vadd.f32 %v14522_v8, %v14520_v19  ;;  %v14521_v57 = vmul.f32 %v18407_v60, %v14519_v26 }
0x1302   :  { %14526 = vst [vmem:[#allocation2 + $0x70] sm:$0xff] %v14524_v33  ;;  %v14525_v22 = vadd.f32 %v14523_v63, %v14521_v57  ;;  %v14630_v41 = vsel %vm14538_vm3, %v14524_v33, %v22075_v25  ;;  %14529 = vst.msk [vmem:[#allocation14 + $0x4] sm:$0x3] %vm7363_vm1, %v14524_v33 }
0x1303   :  { %v14638_v39 = vrot.slane %v14630_v41, %v22146_v5 }
0x1304   :  { %14535 = vrot.lane.b32.xlu0 %v14525_v22, %s18586_s17  ;;  %14531 = vst.msk [vmem:[#allocation14 + $0x6] sm:$0x3] %vm7363_vm1, %v14525_v22 }
0x1305   :  { %14639 = vrot.lane.b32.xlu1 %v14638_v39, %s18588_s25 }
0x1306   :  { %18557 = shalt.err (!%p18554_p1)
}
0x1307   :  { %s18590_s8 = smov 2   ;;  %v14558_v14 = vpop.permute.xlu0 %14557  ;;  %v14532_v61 = vld [vmem:[#allocation2] sm:$0xff] }
0x1308   :  { %14656 = dma.vmem_to_hbm [thread:$0]  %s14651_s5, 128, %s22224_s11, [#allocation6], %s18586_s17, %s18586_s17, %s18590_s8  }
0x1309   :  { %14612 = vrot.lane.b32.xlu0 %v14611_v6, %s18588_s25 }
0x1376   :  { %v14536_v25 = vpop.permute.xlu0 %14535 }
0x1377   :  { %v14539_v5 = vsel %vm14538_vm3, %v14532_v61, %v14536_v25  ;;  %v14640_v42 = vpop.permute.xlu1 %14639 }
0x1378   :  { %14541 = vst.msk [vmem:[%s22223_s10] sm:$0x3] %vm14540_vm2, %v14539_v5 }
0x1379   :  { %14642 = vst.msk [vmem:[%s22223_s10 + $0x6] sm:$0x3] %vm14560_vm4, %v14640_v42  ;;  %14561 = vst.msk [vmem:[%s22223_s10] sm:$0x3] %vm14560_vm4, %v14558_v14 }
0x137b   :  { %v14613_v2 = vpop.permute.xlu0 %14612 }
0x137c   :  { %14615 = vst.msk [vmem:[%s22223_s10 + $0x4] sm:$0x3] %vm14560_vm4, %v14613_v2 }
0x137d   :  { %18574 = dma.done.wait [#allocation6], 128  }
0x137e   :  { %18575 = vsyncadd [#allocation6], 4294967168 }
0x137f   :  { %14662 = vsyncpa [#allocation5], 1 }
0x1380   :  { %14663 = vsyncpa [#allocation10], 1 }
0x1381   :  { %14664 = vsyncpa [#allocation13], 1 }
0x1382   :  { %14665 = vsyncpa [#allocation6], 1 }
0x1383   :  { %14666 = vsyncpa [#allocation7], 1 }

</bundles_post_ra>
